<compile_context>
chip_gen: v5e
topology: v5e:2x2
jax: 0.10.0
libtpu: 0.0.40
codegen_flags: <defaults>
</compile_context>

<pallas_src>
import functools

import jax
import jax.numpy as jnp
from jax.experimental import pallas as pl
from jax.experimental.pallas import tpu as pltpu


def _round_up(x, m):
    return (x + m - 1) // m * m


# ---------------------------------------------------------------------------
# Fused kernel (one batch image per grid step)
# ---------------------------------------------------------------------------
def _basic_block_kernel(x_ref, w1_ref, w2_ref, wr_ref, bn_ref, mask_ref,
                        o_ref, out1_ref, *, Wp, M1t, M2a):
    """x_ref:    (Lx, Cpi)  bf16  flattened zero-padded image (row stride Wp)
       w1_ref:   (9, Cpi, Cpo) bf16 conv1 tap matrices (tap = di*3+dj)
       w2_ref:   (9, Cpo, Cpo) bf16 conv2 tap matrices
       wr_ref:   (Cpi, Cpo)  bf16  1x1 residual conv (identity if Cin==Cout)
       bn_ref:   (8, Cpo)    f32   rows: scale1, shift1, scale2, shift2, scale_r, shift_r
       mask_ref: (M1t, Cpo)  f32   1.0 where a conv1 output is a real image pixel
       o_ref:    (M2a, Cpo)  f32   flattened block output (row stride Wp)
       out1_ref: (M1t+8, Cpo) bf16 VMEM scratch holding conv1 output + zero border."""
    cpo = o_ref.shape[-1]

    # ---- conv1 (3x3) + BN1 + ReLU as 9 shifted sub-matmuls -------------------
    acc1 = jnp.zeros((M1t, cpo), jnp.float32)
    for di in range(3):
        for dj in range(3):
            xs = x_ref[pl.ds(di * Wp + dj, M1t), :]
            acc1 += jnp.dot(xs, w1_ref[di * 3 + dj],
                            preferred_element_type=jnp.float32)
    out1 = jnp.maximum(acc1 * bn_ref[0:1, :] + bn_ref[1:2, :], 0.0)
    # Zero everything outside the real HxW image: those slots are exactly
    # conv2's zero padding (and the wrap-around garbage columns).
    out1 = out1 * mask_ref[...]
    # Store with an 8-row aligned zero border; conv2 reads from base offset 7,
    # so out1_ref[q + 7] == zero-padded out1 at flat index q (row stride Wp).
    out1_ref[pl.ds(0, 8), :] = jnp.zeros((8, cpo), out1_ref.dtype)
    out1_ref[pl.ds(8, M1t), :] = out1.astype(out1_ref.dtype)

    # ---- conv2 (3x3) + BN2 ---------------------------------------------------
    acc2 = jnp.zeros((M2a, cpo), jnp.float32)
    for di in range(3):
        for dj in range(3):
            o1s = out1_ref[pl.ds(7 + di * Wp + dj, M2a), :]
            acc2 += jnp.dot(o1s, w2_ref[di * 3 + dj],
                            preferred_element_type=jnp.float32)
    acc2 = acc2 * bn_ref[2:3, :] + bn_ref[3:4, :]

    # ---- residual branch (1x1 conv + BNres, or identity as x @ I) ------------
    xr = x_ref[pl.ds(2 * Wp + 1, M2a), :]
    res = jnp.dot(xr, wr_ref[...], preferred_element_type=jnp.float32)
    res = res * bn_ref[4:5, :] + bn_ref[5:6, :]

    # ---- add + final ReLU ----------------------------------------------------
    o_ref[...] = jnp.maximum(acc2 + res, 0.0).astype(o_ref.dtype)


# ---------------------------------------------------------------------------
# JAX glue: layout prep, BN folding, pallas_call
# ---------------------------------------------------------------------------
def _fold_bn(gamma, beta, mean, var, conv_bias, eps=1e-5):
    scale = gamma / jnp.sqrt(var + eps)
    shift = beta + scale * (conv_bias - mean)
    return scale, shift


def _conv3x3_to_taps(w, cpi, cpo):
    """PyTorch OIHW (Cout, Cin, 3, 3) -> (9, cpi, cpo) bf16 tap matrices."""
    cout, cin, kh, kw = w.shape
    wt = jnp.transpose(w, (2, 3, 1, 0)).reshape(kh * kw, cin, cout)
    wt = jnp.pad(wt, ((0, 0), (0, cpi - cin), (0, cpo - cout)))
    return wt.astype(jnp.bfloat16)


def basic_block_forward(x_nchw, p):
    N, Cin, H, W = x_nchw.shape
    Cout = p["w1"].shape[0]
    Cpi = _round_up(Cin, 128)                  # lane-dense contraction dim
    Cpo = _round_up(Cout, 128)                 # lane-dense output dim

    Wp = W + 2                                 # padded width == flat row stride
    M2 = H * Wp                                # flat length of the output grid
    M2a = _round_up(M2, 8)
    M1t = _round_up(M2a + 2 * Wp + 2, 8)       # conv1 outputs computed per image
    Lx = _round_up(M1t + 2 * Wp + 2, 8)        # flattened padded input length

    # NHWC, zero-pad spatially (2 rows top/bottom for the two stacked 3x3 convs,
    # 1 col left/right), pad channels to 128 lanes, flatten rows, cast to bf16.
    x = jnp.transpose(x_nchw, (0, 2, 3, 1)).astype(jnp.float32)
    xp = jnp.pad(x, ((0, 0), (2, 2), (1, 1), (0, Cpi - Cin)))
    xflat = xp.reshape(N, (H + 4) * Wp, Cpi)
    xflat = jnp.pad(xflat, ((0, 0), (0, Lx - (H + 4) * Wp), (0, 0)))
    xflat = xflat.astype(jnp.bfloat16)

    # Weights (bf16, channel-padded) and folded BN (scale, shift) in f32.
    w1m = _conv3x3_to_taps(p["w1"], Cpi, Cpo)
    w2m = _conv3x3_to_taps(p["w2"], Cpo, Cpo)
    scale1, shift1 = _fold_bn(p["bn1_g"], p["bn1_b"], p["bn1_m"], p["bn1_v"], p["b1"])
    scale2, shift2 = _fold_bn(p["bn2_g"], p["bn2_b"], p["bn2_m"], p["bn2_v"], p["b2"])
    if Cin == Cout:
        wrm = jnp.eye(Cpi, Cpo, dtype=jnp.float32)        # identity residual
        scale_r = jnp.ones((Cout,), jnp.float32)
        shift_r = jnp.zeros((Cout,), jnp.float32)
    else:
        wrm = jnp.pad(jnp.transpose(p["w_res"][:, :, 0, 0], (1, 0)),
                      ((0, Cpi - Cin), (0, Cpo - Cout)))
        scale_r, shift_r = _fold_bn(p["bnr_g"], p["bnr_b"], p["bnr_m"],
                                    p["bnr_v"], p["b_res"])
    wrm = wrm.astype(jnp.bfloat16)

    bn = jnp.zeros((8, Cpo), jnp.float32)
    for row, v in enumerate([scale1, shift1, scale2, shift2, scale_r, shift_r]):
        bn = bn.at[row, :Cout].set(v)

    # Validity mask for conv1 outputs (1.0 only on real HxW pixels).
    q = jnp.arange(M1t, dtype=jnp.int32) + 1   # index in the out1-store layout
    row_i, col_i = q // Wp, q % Wp
    mask = (row_i >= 1) & (row_i <= H) & (col_i >= 1) & (col_i <= W)
    mask = jnp.broadcast_to(mask[:, None].astype(jnp.float32), (M1t, Cpo))

    kernel = functools.partial(_basic_block_kernel, Wp=Wp, M1t=M1t, M2a=M2a)
    out = pl.pallas_call(
        kernel,
        out_shape=jax.ShapeDtypeStruct((N, M2a, Cpo), jnp.float32),
        grid_spec=pltpu.PrefetchScalarGridSpec(
            num_scalar_prefetch=0,
            grid=(N,),
            in_specs=[
                pl.BlockSpec((None, Lx, Cpi), lambda n: (n, 0, 0)),   # flattened image
                pl.BlockSpec((9, Cpi, Cpo), lambda n: (0, 0, 0)),     # conv1 taps
                pl.BlockSpec((9, Cpo, Cpo), lambda n: (0, 0, 0)),     # conv2 taps
                pl.BlockSpec((Cpi, Cpo), lambda n: (0, 0)),           # residual 1x1
                pl.BlockSpec((8, Cpo), lambda n: (0, 0)),             # BN scale/shift
                pl.BlockSpec((M1t, Cpo), lambda n: (0, 0)),           # out1 mask
            ],
            out_specs=pl.BlockSpec((None, M2a, Cpo), lambda n: (n, 0, 0)),
            scratch_shapes=[pltpu.VMEM((M1t + 8, Cpo), jnp.bfloat16)],
        ),
        compiler_params=pltpu.CompilerParams(
            dimension_semantics=("parallel",),
            vmem_limit_bytes=32 * 1024 * 1024,
        ),
    )(xflat, w1m, w2m, wrm, bn, mask)

    # Drop width-padding / wrap columns and channel padding.
    out = out[:, :M2, :Cout].reshape(N, H, Wp, Cout)[:, :, :W, :]
    # TODO(synk): consumers that accept NHWC can skip this final transpose.
    return jnp.transpose(out, (0, 3, 1, 2))


# ---------------------------------------------------------------------------
# Pure-JAX reference (NCHW, mirrors the PyTorch module in eval mode)
# ---------------------------------------------------------------------------
def _ref_conv(x, w, b, pad):
    y = jax.lax.conv_general_dilated(
        x, w, (1, 1), [(pad, pad), (pad, pad)],
        dimension_numbers=("NCHW", "OIHW", "NCHW"))
    return y + b.reshape(1, -1, 1, 1)


def _ref_bn(x, g, b, m, v, eps=1e-5):
    r = lambda a: a.reshape(1, -1, 1, 1)
    return r(g) * (x - r(m)) / jnp.sqrt(r(v) + eps) + r(b)


def basic_block_reference(x, p):
    Cin, Cout = x.shape[1], p["w1"].shape[0]
    if Cin == Cout:
        residual = x
    else:
        residual = _ref_bn(_ref_conv(x, p["w_res"], p["b_res"], 0),
                           p["bnr_g"], p["bnr_b"], p["bnr_m"], p["bnr_v"])
    out = jnp.maximum(_ref_bn(_ref_conv(x, p["w1"], p["b1"], 1),
                              p["bn1_g"], p["bn1_b"], p["bn1_m"], p["bn1_v"]), 0.0)
    out = _ref_bn(_ref_conv(out, p["w2"], p["b2"], 1),
                  p["bn2_g"], p["bn2_b"], p["bn2_m"], p["bn2_v"])
    return jnp.maximum(out + residual, 0.0)


# ---------------------------------------------------------------------------
if __name__ == "__main__":
    depth_in, output_dim, ksize, stride = 4, 8, 3, 1
    N, H, W = 2, 16, 16

    key = jax.random.PRNGKey(0)
    ks = jax.random.split(key, 8)

    def ones(c):  return jnp.ones((c,), jnp.float32)
    def zeros(c): return jnp.zeros((c,), jnp.float32)

    params = {
        # conv weights / biases (deterministic synthetic init)
        "w_res": 0.1 * jax.random.normal(ks[0], (output_dim, depth_in, 1, 1), jnp.float32),
        "b_res": 0.1 * jax.random.normal(ks[1], (output_dim,), jnp.float32),
        "w1":    0.1 * jax.random.normal(ks[2], (output_dim, depth_in, ksize, ksize), jnp.float32),
        "b1":    0.1 * jax.random.normal(ks[3], (output_dim,), jnp.float32),
        "w2":    0.1 * jax.random.normal(ks[4], (output_dim, output_dim, ksize, ksize), jnp.float32),
        "b2":    0.1 * jax.random.normal(ks[5], (output_dim,), jnp.float32),
        # BatchNorm params at nn.BatchNorm2d init (eval-mode stats)
        "bnr_g": ones(output_dim), "bnr_b": zeros(output_dim),
        "bnr_m": zeros(output_dim), "bnr_v": ones(output_dim),
        "bn1_g": ones(output_dim), "bn1_b": zeros(output_dim),
        "bn1_m": zeros(output_dim), "bn1_v": ones(output_dim),
        "bn2_g": ones(output_dim), "bn2_b": zeros(output_dim),
        "bn2_m": zeros(output_dim), "bn2_v": ones(output_dim),
    }

    x = jax.random.normal(ks[6], (N, depth_in, H, W), jnp.float32)

    out = jax.block_until_ready(basic_block_forward(x, params))
    ref = jax.block_until_ready(basic_block_reference(x, params))

    assert out.shape == (N, output_dim, H, W)
    # bf16 activations/weights inside the kernel -> loosened absolute tolerance.
    assert jnp.max(jnp.abs(out - ref)) < 5e-2

    print("KERNEL_OK")
</pallas_src>

<mosaic_0001>
module attributes {stable_mosaic.version = 11 : i64} {
  func.func @_basic_block_kernel(%arg0: i32, %arg1: memref<1x368x128xbf16, #tpu.memory_space<vmem>>, %arg2: memref<9x128x128xbf16, #tpu.memory_space<vmem>>, %arg3: memref<9x128x128xbf16, #tpu.memory_space<vmem>>, %arg4: memref<128x128xbf16, #tpu.memory_space<vmem>>, %arg5: memref<8x128xf32, #tpu.memory_space<vmem>>, %arg6: memref<328x128xf32, #tpu.memory_space<vmem>>, %arg7: memref<1x288x128xf32, #tpu.memory_space<vmem>>, %arg8: memref<336x128xbf16, #tpu.memory_space<vmem>>) attributes {dimension_semantics = [#tpu.dimension_semantics<parallel>], iteration_bounds = array<i64: 2>, scalar_prefetch = 0 : i64, scratch_operands = 1 : i64, tpu.core_type = #tpu.core_type<tc>, window_params = [{transform_indices = @transform_0, window_bounds = array<i64: 1, 368, 128>}, {pipeline_mode = #tpu.pipeline_mode<synchronous>, transform_indices = @transform_1, window_bounds = array<i64: 9, 128, 128>}, {pipeline_mode = #tpu.pipeline_mode<synchronous>, transform_indices = @transform_2, window_bounds = array<i64: 9, 128, 128>}, {pipeline_mode = #tpu.pipeline_mode<synchronous>, transform_indices = @transform_3, window_bounds = array<i64: 128, 128>}, {pipeline_mode = #tpu.pipeline_mode<synchronous>, transform_indices = @transform_4, window_bounds = array<i64: 8, 128>}, {pipeline_mode = #tpu.pipeline_mode<synchronous>, transform_indices = @transform_5, window_bounds = array<i64: 328, 128>}, {transform_indices = @transform_6, window_bounds = array<i64: 1, 288, 128>}]} {
    %cst = arith.constant 0.000000e+00 : f32
    %0 = vector.broadcast %cst : f32 to vector<328x128xf32>
    %c0 = arith.constant 0 : index
    %c0_0 = arith.constant 0 : index
    %c0_1 = arith.constant 0 : index
    %1 = vector.load %arg1[%c0, %c0_0, %c0_1] : memref<1x368x128xbf16, #tpu.memory_space<vmem>>, vector<1x328x128xbf16>
    %2 = vector.shape_cast %1 : vector<1x328x128xbf16> to vector<328x128xbf16>
    %c0_2 = arith.constant 0 : index
    %c0_3 = arith.constant 0 : index
    %c0_4 = arith.constant 0 : index
    %3 = vector.load %arg2[%c0_2, %c0_3, %c0_4] : memref<9x128x128xbf16, #tpu.memory_space<vmem>>, vector<1x128x128xbf16>
    %4 = vector.shape_cast %3 : vector<1x128x128xbf16> to vector<128x128xbf16>
    %cst_5 = arith.constant dense<0.000000e+00> : vector<328x128xf32>
    %5 = tpu.matmul %2, %4, %cst_5 {dimension_numbers = #tpu.dot_dimension_numbers<[1], [0], [0], [1], [0, 0, 1, 1], [], []>} : vector<328x128xbf16>, vector<128x128xbf16>, vector<328x128xf32> -> vector<328x128xf32>
    %6 = arith.addf %0, %5 : vector<328x128xf32>
    %c0_6 = arith.constant 0 : index
    %c1 = arith.constant 1 : index
    %c0_7 = arith.constant 0 : index
    %7 = vector.load %arg1[%c0_6, %c1, %c0_7] : memref<1x368x128xbf16, #tpu.memory_space<vmem>>, vector<1x328x128xbf16>
    %8 = vector.shape_cast %7 : vector<1x328x128xbf16> to vector<328x128xbf16>
    %c1_8 = arith.constant 1 : index
    %c0_9 = arith.constant 0 : index
    %c0_10 = arith.constant 0 : index
    %9 = vector.load %arg2[%c1_8, %c0_9, %c0_10] : memref<9x128x128xbf16, #tpu.memory_space<vmem>>, vector<1x128x128xbf16>
    %10 = vector.shape_cast %9 : vector<1x128x128xbf16> to vector<128x128xbf16>
    %cst_11 = arith.constant dense<0.000000e+00> : vector<328x128xf32>
    %11 = tpu.matmul %8, %10, %cst_11 {dimension_numbers = #tpu.dot_dimension_numbers<[1], [0], [0], [1], [0, 0, 1, 1], [], []>} : vector<328x128xbf16>, vector<128x128xbf16>, vector<328x128xf32> -> vector<328x128xf32>
    %12 = arith.addf %6, %11 : vector<328x128xf32>
    %c0_12 = arith.constant 0 : index
    %c2 = arith.constant 2 : index
    %c0_13 = arith.constant 0 : index
    %13 = vector.load %arg1[%c0_12, %c2, %c0_13] : memref<1x368x128xbf16, #tpu.memory_space<vmem>>, vector<1x328x128xbf16>
    %14 = vector.shape_cast %13 : vector<1x328x128xbf16> to vector<328x128xbf16>
    %c2_14 = arith.constant 2 : index
    %c0_15 = arith.constant 0 : index
    %c0_16 = arith.constant 0 : index
    %15 = vector.load %arg2[%c2_14, %c0_15, %c0_16] : memref<9x128x128xbf16, #tpu.memory_space<vmem>>, vector<1x128x128xbf16>
    %16 = vector.shape_cast %15 : vector<1x128x128xbf16> to vector<128x128xbf16>
    %cst_17 = arith.constant dense<0.000000e+00> : vector<328x128xf32>
    %17 = tpu.matmul %14, %16, %cst_17 {dimension_numbers = #tpu.dot_dimension_numbers<[1], [0], [0], [1], [0, 0, 1, 1], [], []>} : vector<328x128xbf16>, vector<128x128xbf16>, vector<328x128xf32> -> vector<328x128xf32>
    %18 = arith.addf %12, %17 : vector<328x128xf32>
    %c0_18 = arith.constant 0 : index
    %c18 = arith.constant 18 : index
    %c0_19 = arith.constant 0 : index
    %19 = vector.load %arg1[%c0_18, %c18, %c0_19] : memref<1x368x128xbf16, #tpu.memory_space<vmem>>, vector<1x328x128xbf16>
    %20 = vector.shape_cast %19 : vector<1x328x128xbf16> to vector<328x128xbf16>
    %c3 = arith.constant 3 : index
    %c0_20 = arith.constant 0 : index
    %c0_21 = arith.constant 0 : index
    %21 = vector.load %arg2[%c3, %c0_20, %c0_21] : memref<9x128x128xbf16, #tpu.memory_space<vmem>>, vector<1x128x128xbf16>
    %22 = vector.shape_cast %21 : vector<1x128x128xbf16> to vector<128x128xbf16>
    %cst_22 = arith.constant dense<0.000000e+00> : vector<328x128xf32>
    %23 = tpu.matmul %20, %22, %cst_22 {dimension_numbers = #tpu.dot_dimension_numbers<[1], [0], [0], [1], [0, 0, 1, 1], [], []>} : vector<328x128xbf16>, vector<128x128xbf16>, vector<328x128xf32> -> vector<328x128xf32>
    %24 = arith.addf %18, %23 : vector<328x128xf32>
    %c0_23 = arith.constant 0 : index
    %c19 = arith.constant 19 : index
    %c0_24 = arith.constant 0 : index
    %25 = vector.load %arg1[%c0_23, %c19, %c0_24] : memref<1x368x128xbf16, #tpu.memory_space<vmem>>, vector<1x328x128xbf16>
    %26 = vector.shape_cast %25 : vector<1x328x128xbf16> to vector<328x128xbf16>
    %c4 = arith.constant 4 : index
    %c0_25 = arith.constant 0 : index
    %c0_26 = arith.constant 0 : index
    %27 = vector.load %arg2[%c4, %c0_25, %c0_26] : memref<9x128x128xbf16, #tpu.memory_space<vmem>>, vector<1x128x128xbf16>
    %28 = vector.shape_cast %27 : vector<1x128x128xbf16> to vector<128x128xbf16>
    %cst_27 = arith.constant dense<0.000000e+00> : vector<328x128xf32>
    %29 = tpu.matmul %26, %28, %cst_27 {dimension_numbers = #tpu.dot_dimension_numbers<[1], [0], [0], [1], [0, 0, 1, 1], [], []>} : vector<328x128xbf16>, vector<128x128xbf16>, vector<328x128xf32> -> vector<328x128xf32>
    %30 = arith.addf %24, %29 : vector<328x128xf32>
    %c0_28 = arith.constant 0 : index
    %c20 = arith.constant 20 : index
    %c0_29 = arith.constant 0 : index
    %31 = vector.load %arg1[%c0_28, %c20, %c0_29] : memref<1x368x128xbf16, #tpu.memory_space<vmem>>, vector<1x328x128xbf16>
    %32 = vector.shape_cast %31 : vector<1x328x128xbf16> to vector<328x128xbf16>
    %c5 = arith.constant 5 : index
    %c0_30 = arith.constant 0 : index
    %c0_31 = arith.constant 0 : index
    %33 = vector.load %arg2[%c5, %c0_30, %c0_31] : memref<9x128x128xbf16, #tpu.memory_space<vmem>>, vector<1x128x128xbf16>
    %34 = vector.shape_cast %33 : vector<1x128x128xbf16> to vector<128x128xbf16>
    %cst_32 = arith.constant dense<0.000000e+00> : vector<328x128xf32>
    %35 = tpu.matmul %32, %34, %cst_32 {dimension_numbers = #tpu.dot_dimension_numbers<[1], [0], [0], [1], [0, 0, 1, 1], [], []>} : vector<328x128xbf16>, vector<128x128xbf16>, vector<328x128xf32> -> vector<328x128xf32>
    %36 = arith.addf %30, %35 : vector<328x128xf32>
    %c0_33 = arith.constant 0 : index
    %c36 = arith.constant 36 : index
    %c0_34 = arith.constant 0 : index
    %37 = vector.load %arg1[%c0_33, %c36, %c0_34] : memref<1x368x128xbf16, #tpu.memory_space<vmem>>, vector<1x328x128xbf16>
    %38 = vector.shape_cast %37 : vector<1x328x128xbf16> to vector<328x128xbf16>
    %c6 = arith.constant 6 : index
    %c0_35 = arith.constant 0 : index
    %c0_36 = arith.constant 0 : index
    %39 = vector.load %arg2[%c6, %c0_35, %c0_36] : memref<9x128x128xbf16, #tpu.memory_space<vmem>>, vector<1x128x128xbf16>
    %40 = vector.shape_cast %39 : vector<1x128x128xbf16> to vector<128x128xbf16>
    %cst_37 = arith.constant dense<0.000000e+00> : vector<328x128xf32>
    %41 = tpu.matmul %38, %40, %cst_37 {dimension_numbers = #tpu.dot_dimension_numbers<[1], [0], [0], [1], [0, 0, 1, 1], [], []>} : vector<328x128xbf16>, vector<128x128xbf16>, vector<328x128xf32> -> vector<328x128xf32>
    %42 = arith.addf %36, %41 : vector<328x128xf32>
    %c0_38 = arith.constant 0 : index
    %c37 = arith.constant 37 : index
    %c0_39 = arith.constant 0 : index
    %43 = vector.load %arg1[%c0_38, %c37, %c0_39] : memref<1x368x128xbf16, #tpu.memory_space<vmem>>, vector<1x328x128xbf16>
    %44 = vector.shape_cast %43 : vector<1x328x128xbf16> to vector<328x128xbf16>
    %c7 = arith.constant 7 : index
    %c0_40 = arith.constant 0 : index
    %c0_41 = arith.constant 0 : index
    %45 = vector.load %arg2[%c7, %c0_40, %c0_41] : memref<9x128x128xbf16, #tpu.memory_space<vmem>>, vector<1x128x128xbf16>
    %46 = vector.shape_cast %45 : vector<1x128x128xbf16> to vector<128x128xbf16>
    %cst_42 = arith.constant dense<0.000000e+00> : vector<328x128xf32>
    %47 = tpu.matmul %44, %46, %cst_42 {dimension_numbers = #tpu.dot_dimension_numbers<[1], [0], [0], [1], [0, 0, 1, 1], [], []>} : vector<328x128xbf16>, vector<128x128xbf16>, vector<328x128xf32> -> vector<328x128xf32>
    %48 = arith.addf %42, %47 : vector<328x128xf32>
    %c0_43 = arith.constant 0 : index
    %c38 = arith.constant 38 : index
    %c0_44 = arith.constant 0 : index
    %49 = vector.load %arg1[%c0_43, %c38, %c0_44] : memref<1x368x128xbf16, #tpu.memory_space<vmem>>, vector<1x328x128xbf16>
    %50 = vector.shape_cast %49 : vector<1x328x128xbf16> to vector<328x128xbf16>
    %c8 = arith.constant 8 : index
    %c0_45 = arith.constant 0 : index
    %c0_46 = arith.constant 0 : index
    %51 = vector.load %arg2[%c8, %c0_45, %c0_46] : memref<9x128x128xbf16, #tpu.memory_space<vmem>>, vector<1x128x128xbf16>
    %52 = vector.shape_cast %51 : vector<1x128x128xbf16> to vector<128x128xbf16>
    %cst_47 = arith.constant dense<0.000000e+00> : vector<328x128xf32>
    %53 = tpu.matmul %50, %52, %cst_47 {dimension_numbers = #tpu.dot_dimension_numbers<[1], [0], [0], [1], [0, 0, 1, 1], [], []>} : vector<328x128xbf16>, vector<128x128xbf16>, vector<328x128xf32> -> vector<328x128xf32>
    %54 = arith.addf %48, %53 : vector<328x128xf32>
    %c0_48 = arith.constant 0 : index
    %c0_49 = arith.constant 0 : index
    %55 = vector.load %arg5[%c0_48, %c0_49] : memref<8x128xf32, #tpu.memory_space<vmem>>, vector<1x128xf32>
    %56 = vector.broadcast %55 : vector<1x128xf32> to vector<328x128xf32>
    %57 = arith.mulf %54, %56 : vector<328x128xf32>
    %c1_50 = arith.constant 1 : index
    %c0_51 = arith.constant 0 : index
    %58 = vector.load %arg5[%c1_50, %c0_51] : memref<8x128xf32, #tpu.memory_space<vmem>>, vector<1x128xf32>
    %59 = vector.broadcast %58 : vector<1x128xf32> to vector<328x128xf32>
    %60 = arith.addf %57, %59 : vector<328x128xf32>
    %cst_52 = arith.constant 0.000000e+00 : f32
    %61 = vector.broadcast %cst_52 : f32 to vector<328x128xf32>
    %62 = arith.maximumf %60, %61 : vector<328x128xf32>
    %c0_53 = arith.constant 0 : index
    %c0_54 = arith.constant 0 : index
    %63 = vector.load %arg6[%c0_53, %c0_54] : memref<328x128xf32, #tpu.memory_space<vmem>>, vector<328x128xf32>
    %64 = arith.mulf %62, %63 : vector<328x128xf32>
    %cst_55 = arith.constant 0.000000e+00 : bf16
    %65 = vector.broadcast %cst_55 : bf16 to vector<8x128xbf16>
    %c0_56 = arith.constant 0 : index
    %c0_57 = arith.constant 0 : index
    %66 = vector.load %arg8[%c0_56, %c0_57] : memref<336x128xbf16, #tpu.memory_space<vmem>>, vector<8x128xbf16>
    tpu.vector_store %arg8[%c0_56, %c0_57], %65 {strides = array<i32>} : memref<336x128xbf16, #tpu.memory_space<vmem>>, vector<8x128xbf16>,
    %67 = arith.truncf %64 : vector<328x128xf32> to vector<328x128xbf16>
    %c8_58 = arith.constant 8 : index
    %c0_59 = arith.constant 0 : index
    %68 = vector.load %arg8[%c8_58, %c0_59] : memref<336x128xbf16, #tpu.memory_space<vmem>>, vector<328x128xbf16>
    tpu.vector_store %arg8[%c8_58, %c0_59], %67 {strides = array<i32>} : memref<336x128xbf16, #tpu.memory_space<vmem>>, vector<328x128xbf16>,
    %cst_60 = arith.constant 0.000000e+00 : f32
    %69 = vector.broadcast %cst_60 : f32 to vector<288x128xf32>
    %c7_61 = arith.constant 7 : index
    %c0_62 = arith.constant 0 : index
    %70 = vector.load %arg8[%c7_61, %c0_62] : memref<336x128xbf16, #tpu.memory_space<vmem>>, vector<288x128xbf16>
    %c0_63 = arith.constant 0 : index
    %c0_64 = arith.constant 0 : index
    %c0_65 = arith.constant 0 : index
    %71 = vector.load %arg3[%c0_63, %c0_64, %c0_65] : memref<9x128x128xbf16, #tpu.memory_space<vmem>>, vector<1x128x128xbf16>
    %72 = vector.shape_cast %71 : vector<1x128x128xbf16> to vector<128x128xbf16>
    %cst_66 = arith.constant dense<0.000000e+00> : vector<288x128xf32>
    %73 = tpu.matmul %70, %72, %cst_66 {dimension_numbers = #tpu.dot_dimension_numbers<[1], [0], [0], [1], [0, 0, 1, 1], [], []>} : vector<288x128xbf16>, vector<128x128xbf16>, vector<288x128xf32> -> vector<288x128xf32>
    %74 = arith.addf %69, %73 : vector<288x128xf32>
    %c8_67 = arith.constant 8 : index
    %c0_68 = arith.constant 0 : index
    %75 = vector.load %arg8[%c8_67, %c0_68] : memref<336x128xbf16, #tpu.memory_space<vmem>>, vector<288x128xbf16>
    %c1_69 = arith.constant 1 : index
    %c0_70 = arith.constant 0 : index
    %c0_71 = arith.constant 0 : index
    %76 = vector.load %arg3[%c1_69, %c0_70, %c0_71] : memref<9x128x128xbf16, #tpu.memory_space<vmem>>, vector<1x128x128xbf16>
    %77 = vector.shape_cast %76 : vector<1x128x128xbf16> to vector<128x128xbf16>
    %cst_72 = arith.constant dense<0.000000e+00> : vector<288x128xf32>
    %78 = tpu.matmul %75, %77, %cst_72 {dimension_numbers = #tpu.dot_dimension_numbers<[1], [0], [0], [1], [0, 0, 1, 1], [], []>} : vector<288x128xbf16>, vector<128x128xbf16>, vector<288x128xf32> -> vector<288x128xf32>
    %79 = arith.addf %74, %78 : vector<288x128xf32>
    %c9 = arith.constant 9 : index
    %c0_73 = arith.constant 0 : index
    %80 = vector.load %arg8[%c9, %c0_73] : memref<336x128xbf16, #tpu.memory_space<vmem>>, vector<288x128xbf16>
    %c2_74 = arith.constant 2 : index
    %c0_75 = arith.constant 0 : index
    %c0_76 = arith.constant 0 : index
    %81 = vector.load %arg3[%c2_74, %c0_75, %c0_76] : memref<9x128x128xbf16, #tpu.memory_space<vmem>>, vector<1x128x128xbf16>
    %82 = vector.shape_cast %81 : vector<1x128x128xbf16> to vector<128x128xbf16>
    %cst_77 = arith.constant dense<0.000000e+00> : vector<288x128xf32>
    %83 = tpu.matmul %80, %82, %cst_77 {dimension_numbers = #tpu.dot_dimension_numbers<[1], [0], [0], [1], [0, 0, 1, 1], [], []>} : vector<288x128xbf16>, vector<128x128xbf16>, vector<288x128xf32> -> vector<288x128xf32>
    %84 = arith.addf %79, %83 : vector<288x128xf32>
    %c25 = arith.constant 25 : index
    %c0_78 = arith.constant 0 : index
    %85 = vector.load %arg8[%c25, %c0_78] : memref<336x128xbf16, #tpu.memory_space<vmem>>, vector<288x128xbf16>
    %c3_79 = arith.constant 3 : index
    %c0_80 = arith.constant 0 : index
    %c0_81 = arith.constant 0 : index
    %86 = vector.load %arg3[%c3_79, %c0_80, %c0_81] : memref<9x128x128xbf16, #tpu.memory_space<vmem>>, vector<1x128x128xbf16>
    %87 = vector.shape_cast %86 : vector<1x128x128xbf16> to vector<128x128xbf16>
    %cst_82 = arith.constant dense<0.000000e+00> : vector<288x128xf32>
    %88 = tpu.matmul %85, %87, %cst_82 {dimension_numbers = #tpu.dot_dimension_numbers<[1], [0], [0], [1], [0, 0, 1, 1], [], []>} : vector<288x128xbf16>, vector<128x128xbf16>, vector<288x128xf32> -> vector<288x128xf32>
    %89 = arith.addf %84, %88 : vector<288x128xf32>
    %c26 = arith.constant 26 : index
    %c0_83 = arith.constant 0 : index
    %90 = vector.load %arg8[%c26, %c0_83] : memref<336x128xbf16, #tpu.memory_space<vmem>>, vector<288x128xbf16>
    %c4_84 = arith.constant 4 : index
    %c0_85 = arith.constant 0 : index
    %c0_86 = arith.constant 0 : index
    %91 = vector.load %arg3[%c4_84, %c0_85, %c0_86] : memref<9x128x128xbf16, #tpu.memory_space<vmem>>, vector<1x128x128xbf16>
    %92 = vector.shape_cast %91 : vector<1x128x128xbf16> to vector<128x128xbf16>
    %cst_87 = arith.constant dense<0.000000e+00> : vector<288x128xf32>
    %93 = tpu.matmul %90, %92, %cst_87 {dimension_numbers = #tpu.dot_dimension_numbers<[1], [0], [0], [1], [0, 0, 1, 1], [], []>} : vector<288x128xbf16>, vector<128x128xbf16>, vector<288x128xf32> -> vector<288x128xf32>
    %94 = arith.addf %89, %93 : vector<288x128xf32>
    %c27 = arith.constant 27 : index
    %c0_88 = arith.constant 0 : index
    %95 = vector.load %arg8[%c27, %c0_88] : memref<336x128xbf16, #tpu.memory_space<vmem>>, vector<288x128xbf16>
    %c5_89 = arith.constant 5 : index
    %c0_90 = arith.constant 0 : index
    %c0_91 = arith.constant 0 : index
    %96 = vector.load %arg3[%c5_89, %c0_90, %c0_91] : memref<9x128x128xbf16, #tpu.memory_space<vmem>>, vector<1x128x128xbf16>
    %97 = vector.shape_cast %96 : vector<1x128x128xbf16> to vector<128x128xbf16>
    %cst_92 = arith.constant dense<0.000000e+00> : vector<288x128xf32>
    %98 = tpu.matmul %95, %97, %cst_92 {dimension_numbers = #tpu.dot_dimension_numbers<[1], [0], [0], [1], [0, 0, 1, 1], [], []>} : vector<288x128xbf16>, vector<128x128xbf16>, vector<288x128xf32> -> vector<288x128xf32>
    %99 = arith.addf %94, %98 : vector<288x128xf32>
    %c43 = arith.constant 43 : index
    %c0_93 = arith.constant 0 : index
    %100 = vector.load %arg8[%c43, %c0_93] : memref<336x128xbf16, #tpu.memory_space<vmem>>, vector<288x128xbf16>
    %c6_94 = arith.constant 6 : index
    %c0_95 = arith.constant 0 : index
    %c0_96 = arith.constant 0 : index
    %101 = vector.load %arg3[%c6_94, %c0_95, %c0_96] : memref<9x128x128xbf16, #tpu.memory_space<vmem>>, vector<1x128x128xbf16>
    %102 = vector.shape_cast %101 : vector<1x128x128xbf16> to vector<128x128xbf16>
    %cst_97 = arith.constant dense<0.000000e+00> : vector<288x128xf32>
    %103 = tpu.matmul %100, %102, %cst_97 {dimension_numbers = #tpu.dot_dimension_numbers<[1], [0], [0], [1], [0, 0, 1, 1], [], []>} : vector<288x128xbf16>, vector<128x128xbf16>, vector<288x128xf32> -> vector<288x128xf32>
    %104 = arith.addf %99, %103 : vector<288x128xf32>
    %c44 = arith.constant 44 : index
    %c0_98 = arith.constant 0 : index
    %105 = vector.load %arg8[%c44, %c0_98] : memref<336x128xbf16, #tpu.memory_space<vmem>>, vector<288x128xbf16>
    %c7_99 = arith.constant 7 : index
    %c0_100 = arith.constant 0 : index
    %c0_101 = arith.constant 0 : index
    %106 = vector.load %arg3[%c7_99, %c0_100, %c0_101] : memref<9x128x128xbf16, #tpu.memory_space<vmem>>, vector<1x128x128xbf16>
    %107 = vector.shape_cast %106 : vector<1x128x128xbf16> to vector<128x128xbf16>
    %cst_102 = arith.constant dense<0.000000e+00> : vector<288x128xf32>
    %108 = tpu.matmul %105, %107, %cst_102 {dimension_numbers = #tpu.dot_dimension_numbers<[1], [0], [0], [1], [0, 0, 1, 1], [], []>} : vector<288x128xbf16>, vector<128x128xbf16>, vector<288x128xf32> -> vector<288x128xf32>
    %109 = arith.addf %104, %108 : vector<288x128xf32>
    %c45 = arith.constant 45 : index
    %c0_103 = arith.constant 0 : index
    %110 = vector.load %arg8[%c45, %c0_103] : memref<336x128xbf16, #tpu.memory_space<vmem>>, vector<288x128xbf16>
    %c8_104 = arith.constant 8 : index
    %c0_105 = arith.constant 0 : index
    %c0_106 = arith.constant 0 : index
    %111 = vector.load %arg3[%c8_104, %c0_105, %c0_106] : memref<9x128x128xbf16, #tpu.memory_space<vmem>>, vector<1x128x128xbf16>
    %112 = vector.shape_cast %111 : vector<1x128x128xbf16> to vector<128x128xbf16>
    %cst_107 = arith.constant dense<0.000000e+00> : vector<288x128xf32>
    %113 = tpu.matmul %110, %112, %cst_107 {dimension_numbers = #tpu.dot_dimension_numbers<[1], [0], [0], [1], [0, 0, 1, 1], [], []>} : vector<288x128xbf16>, vector<128x128xbf16>, vector<288x128xf32> -> vector<288x128xf32>
    %114 = arith.addf %109, %113 : vector<288x128xf32>
    %c2_108 = arith.constant 2 : index
    %c0_109 = arith.constant 0 : index
    %115 = vector.load %arg5[%c2_108, %c0_109] : memref<8x128xf32, #tpu.memory_space<vmem>>, vector<1x128xf32>
    %116 = vector.broadcast %115 : vector<1x128xf32> to vector<288x128xf32>
    %117 = arith.mulf %114, %116 : vector<288x128xf32>
    %c3_110 = arith.constant 3 : index
    %c0_111 = arith.constant 0 : index
    %118 = vector.load %arg5[%c3_110, %c0_111] : memref<8x128xf32, #tpu.memory_space<vmem>>, vector<1x128xf32>
    %119 = vector.broadcast %118 : vector<1x128xf32> to vector<288x128xf32>
    %120 = arith.addf %117, %119 : vector<288x128xf32>
    %c0_112 = arith.constant 0 : index
    %c37_113 = arith.constant 37 : index
    %c0_114 = arith.constant 0 : index
    %121 = vector.load %arg1[%c0_112, %c37_113, %c0_114] : memref<1x368x128xbf16, #tpu.memory_space<vmem>>, vector<1x288x128xbf16>
    %122 = vector.shape_cast %121 : vector<1x288x128xbf16> to vector<288x128xbf16>
    %c0_115 = arith.constant 0 : index
    %c0_116 = arith.constant 0 : index
    %123 = vector.load %arg4[%c0_115, %c0_116] : memref<128x128xbf16, #tpu.memory_space<vmem>>, vector<128x128xbf16>
    %cst_117 = arith.constant dense<0.000000e+00> : vector<288x128xf32>
    %124 = tpu.matmul %122, %123, %cst_117 {dimension_numbers = #tpu.dot_dimension_numbers<[1], [0], [0], [1], [0, 0, 1, 1], [], []>} : vector<288x128xbf16>, vector<128x128xbf16>, vector<288x128xf32> -> vector<288x128xf32>
    %c4_118 = arith.constant 4 : index
    %c0_119 = arith.constant 0 : index
    %125 = vector.load %arg5[%c4_118, %c0_119] : memref<8x128xf32, #tpu.memory_space<vmem>>, vector<1x128xf32>
    %126 = vector.broadcast %125 : vector<1x128xf32> to vector<288x128xf32>
    %127 = arith.mulf %124, %126 : vector<288x128xf32>
    %c5_120 = arith.constant 5 : index
    %c0_121 = arith.constant 0 : index
    %128 = vector.load %arg5[%c5_120, %c0_121] : memref<8x128xf32, #tpu.memory_space<vmem>>, vector<1x128xf32>
    %129 = vector.broadcast %128 : vector<1x128xf32> to vector<288x128xf32>
    %130 = arith.addf %127, %129 : vector<288x128xf32>
    %131 = arith.addf %120, %130 : vector<288x128xf32>
    %cst_122 = arith.constant 0.000000e+00 : f32
    %132 = vector.broadcast %cst_122 : f32 to vector<288x128xf32>
    %133 = arith.maximumf %131, %132 : vector<288x128xf32>
    %c0_123 = arith.constant 0 : index
    %c0_124 = arith.constant 0 : index
    %c0_125 = arith.constant 0 : index
    %134 = vector.load %arg7[%c0_123, %c0_124, %c0_125] : memref<1x288x128xf32, #tpu.memory_space<vmem>>, vector<1x288x128xf32>
    %135 = vector.shape_cast %134 : vector<1x288x128xf32> to vector<288x128xf32>
    %136 = vector.shape_cast %133 : vector<288x128xf32> to vector<1x288x128xf32>
    tpu.vector_store %arg7[%c0_123, %c0_124, %c0_125], %136 {strides = array<i32>} : memref<1x288x128xf32, #tpu.memory_space<vmem>>, vector<1x288x128xf32>,
    return
  }
  func.func @transform_0(%arg0: i32) -> (i32, i32, i32) {
    %c0_i32 = arith.constant 0 : i32
    %c0_i32_0 = arith.constant 0 : i32
    %c0_i32_1 = arith.constant 0 : i32
    return %arg0, %c0_i32, %c0_i32_0 : i32, i32, i32
  }
  func.func @transform_1(%arg0: i32) -> (i32, i32, i32) {
    %c0_i32 = arith.constant 0 : i32
    %c0_i32_0 = arith.constant 0 : i32
    %c0_i32_1 = arith.constant 0 : i32
    %c0_i32_2 = arith.constant 0 : i32
    return %c0_i32, %c0_i32_0, %c0_i32_1 : i32, i32, i32
  }
  func.func @transform_2(%arg0: i32) -> (i32, i32, i32) {
    %c0_i32 = arith.constant 0 : i32
    %c0_i32_0 = arith.constant 0 : i32
    %c0_i32_1 = arith.constant 0 : i32
    %c0_i32_2 = arith.constant 0 : i32
    return %c0_i32, %c0_i32_0, %c0_i32_1 : i32, i32, i32
  }
  func.func @transform_3(%arg0: i32) -> (i32, i32) {
    %c0_i32 = arith.constant 0 : i32
    %c0_i32_0 = arith.constant 0 : i32
    %c0_i32_1 = arith.constant 0 : i32
    return %c0_i32, %c0_i32_0 : i32, i32
  }
  func.func @transform_4(%arg0: i32) -> (i32, i32) {
    %c0_i32 = arith.constant 0 : i32
    %c0_i32_0 = arith.constant 0 : i32
    %c0_i32_1 = arith.constant 0 : i32
    return %c0_i32, %c0_i32_0 : i32, i32
  }
  func.func @transform_5(%arg0: i32) -> (i32, i32) {
    %c0_i32 = arith.constant 0 : i32
    %c0_i32_0 = arith.constant 0 : i32
    %c0_i32_1 = arith.constant 0 : i32
    return %c0_i32, %c0_i32_0 : i32, i32
  }
  func.func @transform_6(%arg0: i32) -> (i32, i32, i32) {
    %c0_i32 = arith.constant 0 : i32
    %c0_i32_0 = arith.constant 0 : i32
    %c0_i32_1 = arith.constant 0 : i32
    return %arg0, %c0_i32, %c0_i32_0 : i32, i32, i32
  }
}

</mosaic_0001>

<bundles_post_ra>
// kernel: tpu_custom_call.1
= control target key start
LH: loop header
LB: loop body
LE: loop exit
PB: predicated region body
PF: predicated region fallthrough
CT: control target
= control target key end

     0   :  { %s13299_s0 = inlined_call_operand.hbm [shape: bf16[2,368,128], index: 0, kind: input, shape index: {}]   ;;  %s13300_s1 = inlined_call_operand.hbm [shape: bf16[9,128,128], index: 1, kind: input, shape index: {}]   ;;  %s13301_s2 = inlined_call_operand.hbm [shape: bf16[9,128,128], index: 2, kind: input, shape index: {}]   ;;  %s13302_s3 = inlined_call_operand.hbm [shape: bf16[128,128], index: 3, kind: input, shape index: {}]   ;;  %s13303_s4 = inlined_call_operand.hbm [shape: f32[8,128], index: 4, kind: input, shape index: {}]   ;;  %s13304_s5 = inlined_call_operand.hbm [shape: f32[328,128], index: 5, kind: input, shape index: {}]   ;;  %s13305_s6 = inlined_call_operand.hbm [shape: f32[2,288,128], index: 6, kind: output, shape index: {}]  }
   0x1   :  { %13357 = sst [smem:[#allocation69_spill]] %s13300_s1 }
   0x2   :  { %13358 = sst [smem:[#allocation70_spill]] %s13301_s2 }
   0x3   :  { %13359 = sst [smem:[#allocation71_spill]] %s13302_s3 }
   0x4   :  { %11 = vsyncpa [#allocation4], 0 }
   0x5   :  { %13 = vsyncpa [#allocation4 + $0x1], 0 }
   0x6   :  { %14 = vsyncpa [#allocation7], 0 }
   0x7   :  { %15 = vsyncpa [#allocation10], 0 }
   0x8   :  { %16 = vsyncpa [#allocation13], 0 }
   0x9   :  { %17 = vsyncpa [#allocation5], 0 }
   0xa   :  { %19 = vsyncpa [#allocation5 + $0x1], 0  ;;  %s10377_s21 = smov 0   ;;  %s10379_s22 = smov 0  }
   0xb   :  { %s10381_s23 = smov 0   ;;  %s10383_s24 = smov 0  }
   0xc LB: > { %s13360_s1 = sld [smem:[#allocation69_spill]]  ;;  %s10401_s28 = sadd.s32 4294967295, %s10328_s24   ;;  %s10328_s24 = sphi %s10383_s24, %s13676_s24   ;;  %s10324_s23 = sphi %s10381_s23, %s13675_s23   ;;  %s10320_s22 = sphi %s10379_s22, %s13674_s22   ;;  %s10316_s21 = sphi %s10377_s21, %s13673_s21  }
   0xd   : > { %p8142_p0 = scmp.ge.s32.totalorder %s10328_s24, 1  ;;  %p46_p1 = scmp.eq.s32.totalorder %s10401_s28, 0 }
   0xe   : > { %p187_p2 = scmp.lt.s32.totalorder %s10328_s24, 3  ;;  %s10330_s30 = smov [#allocation6]  }
   0xf   : > { %s200_s7 = sshll.u32 %s10330_s30, 4  ;;  %s13362_s3 = sld [smem:[#allocation71_spill]]  ;;  %s201_s7 = int_to_ptr.vmem [resolvable:$true] %s200_s7 }
  0x10   : > { %p10406_p3 = pnand %p8142_p0, %p187_p2  ;;  %s13364_s2 = sld [smem:[#allocation70_spill]] }
  0x11   : > { %s10331_s15 = smov [#allocation9]   ;;  %s13306_s17 = smov 64  }
  0x12   : > { %s198_s27 = sshll.u32 %s13360_s1, 4  ;;  %p9931_p4 = pneg %p10406_p3  ;;  %s199_s27 = int_to_ptr.hbm [resolvable:$true] %s198_s27 }
  0x13   : > { %s228_s16 = sshll.u32 %s10331_s15, 4  ;;  %s13307_s18 = smov 4   ;;  %s229_s16 = int_to_ptr.vmem [resolvable:$true] %s228_s16 }
  0x14   : > { %p10418_p6 = pnand %p9931_p4, %p46_p1  ;;  %s241_s25 = sshll.u32 %s13303_s4, 4  ;;  %s242_s25 = int_to_ptr.hbm [resolvable:$true] %s241_s25 }
  0x15   : > { %s226_s10 = sshll.u32 %s13362_s3, 4  ;;  %s10334_s26 = smov [#allocation8]   ;;  %s227_s10 = int_to_ptr.hbm [resolvable:$true] %s226_s10 }
  0x16   : > { %s212_s14 = sshll.u32 %s13364_s2, 4  ;;  %s214_s30 = sshll.u32 %s10334_s26, 4  ;;  %s213_s14 = int_to_ptr.hbm [resolvable:$true] %s212_s14  ;;  %s215_s30 = int_to_ptr.vmem [resolvable:$true] %s214_s30 }
  0x17   : > { %9934 = dma.hbm_to_vmem [thread:$0]  (!%p10418_p6), %s199_s27, 9216, %s201_s7, [#allocation7], %s13306_s17, %s13306_s17, %s13307_s18  }
  0x18   : > { %9940 = dma.hbm_to_vmem [thread:$0]  (!%p10418_p6), %s227_s10, 1024, %s229_s16, [#allocation10], %s13306_s17, %s13306_s17, %s13307_s18  }
  0x19   : > { %9937 = dma.hbm_to_vmem [thread:$0]  (!%p10418_p6), %s213_s14, 9216, %s215_s30, [#allocation7], %s13306_s17, %s13306_s17, %s13307_s18  }
  0x1a   : > { %s10335_s27 = smov [#allocation11]   ;;  %s252_s10 = sshll.u32 %s13304_s5, 4  ;;  %s253_s10 = int_to_ptr.hbm [resolvable:$true] %s252_s10 }
  0x1b   : > { %s243_s7 = sshll.u32 %s10335_s27, 4  ;;  %s10336_s12 = smov [#allocation12]   ;;  %s244_s7 = int_to_ptr.vmem [resolvable:$true] %s243_s7 }
  0x1c   : > { %9943 = dma.hbm_to_vmem [thread:$0]  (!%p10418_p6), %s242_s25, 128, %s244_s7, [#allocation10]  }
  0x1d   : > { %s254_s13 = sshll.u32 %s10336_s12, 4  ;;  %s10337_s14 = smov 128   ;;  %s255_s13 = int_to_ptr.vmem [resolvable:$true] %s254_s13 }
  0x1e   : > { %s10338_s15 = smov 8   ;;  %s8141_s16 = sadd.s32 4294967294, %s10328_s24  }
  0x1f   : > { %9946 = dma.hbm_to_vmem [thread:$0]  (!%p10418_p6), %s253_s10, 5248, %s255_s13, [#allocation13], %s10337_s14, %s10337_s14, %s10338_s15  }
  0x20   : > { %s10452_s19 = sadd.s32 1, %s10328_s24   ;;  %s32_s20 = sadd.s32 1, %s10324_s23 }
  0x21   : > { %s29_s26 = ssub.s32 %s10328_s24, %s10452_s19  ;;  %p39_p7 = scmp.ne.s32.totalorder %s10324_s23, %s10320_s22 }
  0x22   : > { %p30_p8 = scmp.eq.s32.totalorder %s29_s26, 0  ;;  %p40_p9 = scmp.eq.s32.totalorder %s10328_s24, 0 }
  0x23   : > { %p45_p10 = scmp.ne.s32.totalorder %s10320_s22, %s10316_s21  ;;  %p174_p11 = scmp.eq.s32.totalorder %s10401_s28, 1 }
  0x24   : > { %s10464_s25 = scalar_select %p30_p8, %s10324_s23, %s32_s20  }
  0x25   : > { %p41_p12 = por %p40_p9, %p39_p7  ;;  %p10468_p13 = por %p46_p1, %p45_p10 }
  0x26   : > { %p10472_p0 = por %p174_p11, %p39_p7  ;;  %p180_p2 = scmp.eq.s32.totalorder %s8141_s16, 1 }
  0x27   : > { %p9960_p4 = scmp.lt.s32.totalorder %s10328_s24, 2  ;;  %s268_s27 = sand.u32 1, %s10324_s23  }
  0x28   : > { %p10478_p6 = por %p180_p2, %p45_p10  ;;  %s9902_s8 = smul.u32 184, %s268_s27 }
  0x29   : > { %p10482_p8 = pnand %p9960_p4, %p41_p12  ;;  %s9903_s10 = smul.u32 184, %s10328_s24 }
  0x2a   : > { %s272_s15 = scalar_lea.vmem [#allocation3], %s9902_s8  ;;  %s269_s26 = scalar_lea.sflag [#allocation4], %s268_s27 }
  0x2b   : > { %s277_s14 = scalar_lea.hbm %s13299_s0, %s9903_s10  ;;  %s280_s20 = sshll.u32 %s272_s15, 4  ;;  %s281_s20 = int_to_ptr.vmem [resolvable:$true] %s280_s20 }
  0x2c   : > { %s278_s16 = sshll.u32 %s277_s14, 4  ;;  %p10224_p9 = pneg %p10482_p8  ;;  %s279_s16 = int_to_ptr.hbm [resolvable:$true] %s278_s16 }
  0x2d   : > { %s10220_s17 = sshra.s32 %s279_s16, 4  ;;  %s10227_s3 = scalar_lea.hbm %s13299_s0, 368  ;;  %s10221_s17 = int_to_ptr.hbm [resolvable:$true] %s10220_s17 }
  0x2e   : > { %s10222_s18 = scalar_lea.hbm %s10221_s17, 184  ;;  %p10228_p12 = scmp.lt.s32.totalorder %s10221_s17, %s13299_s0 }
  0x2f   : > { %p10223_p7 = scmp.ne.s32.totalorder %s10221_s17, %s10222_s18  ;;  %p10229_p2 = scmp.lt.s32.totalorder %s10227_s3, %s10222_s18 }
  0x31   : > { %p10225_p10 = pnand %p10224_p9, %p10223_p7  ;;  %p10230_p4 = por %p10229_p2, %p10228_p12 }
  0x33   : > { %p10226_p11 = pneg %p10225_p10 }
  0x35   : > { %p10231_p5 = pnand %p10230_p4, %p10226_p11 }
  0x37   : > { %10234 = shalt.err (!%p10231_p5)
}
  0x38   : > { %s13369_s27 = smov 4   ;;  %s13370_s8 = smov 64  }
  0x39   : > { %9950 = dma.hbm_to_vmem [thread:$0]  (!%p10482_p8), %s279_s16, 2944, %s281_s20, %s269_s26, %s13370_s8, %s13370_s8, %s13369_s27  }
  0x3a   : > { %292 = sbr.rel (%p10406_p3) target bundleno = 2106 (0x83a), region = 44 }
  0x3f   : > { %s10506_s1 = sand.u32 1, %s10320_s22  }
  0x40   : > { %s9904_s2 = smul.u32 184, %s10506_s1  ;;  %s295_s3 = scalar_lea.sflag [#allocation4], %s10506_s1 }
  0x42   : > { %s10510_s17 = scalar_lea.vmem [#allocation3], %s9904_s2 }
  0x43   : > { %10295 = dma.done.wait (%p10468_p13), %s295_s3, 2944  }
  0x44   : > { %10297 = vsyncadd (%p10468_p13), %s295_s3, 4294964352 }
  0x45   : > { %10299 = dma.done.wait (%p46_p1), [#allocation7], 18432  }
  0x46   : > { %10301 = vsyncadd (%p46_p1), [#allocation7], 4294948864 }
  0x47   : > { %10303 = dma.done.wait (%p46_p1), [#allocation10], 1152  }
  0x48   : > { %10305 = vsyncadd (%p46_p1), [#allocation10], 4294966144 }
  0x49   : > { %10307 = dma.done.wait (%p46_p1), [#allocation13], 5248  }
  0x4a   : > { %10309 = vsyncadd (%p46_p1), [#allocation13], 4294962048  ;;  %v9309_v0 = vld [vmem:[#allocation6 + $0x78] sm:$0xff]  ;;  %v9308_v1 = vld [vmem:[#allocation6 + $0x70] sm:$0xff]  ;;  %vm534_vm0 = vsmask.f32 7424 }
  0x4b   : > { %771 = vmatpush.bf16.msra.mxu0 %v9309_v0  ;;  %v9301_v2 = vld [vmem:[#allocation6 + $0x38] sm:$0xff]  ;;  %v9307_v5 = vld [vmem:[#allocation6 + $0x68] sm:$0xff]  ;;  %v9306_v6 = vld [vmem:[#allocation6 + $0x60] sm:$0xff]  ;;  %vm1088_vm1 = vcmask 1046528   ;;  %vm2235_vm2 = vcmask 1045504   ;;  %vm3382_vm5 = vcmask 1044480  }
  0x4c   : > { %v10528_v3 = vld [vmem:[#allocation6 + $0xb8] sm:$0xff]  ;;  %9846 = vmatpush.bf16.msra.mxu1 %v9301_v2  ;;  %v9555_v8 = vld [vmem:[%s10510_s17] sm:$0xff]   ;;  %v10542_v22 = vld [vmem:[#allocation6 + $0xa0] sm:$0xff]  ;;  %vm2949_vm3 = vsmask.f32 5376  ;;  %s9905_s29 = smul.u32 288, %s10506_s1 }
  0x4d   : > { %v9344_v4 = vld [vmem:[#allocation6 + $0xf8] sm:$0xff]  ;;  %9854 = vmatpush.bf16.msra.mxu2 %v10528_v3  ;;  %v10532_v9 = vld [vmem:[#allocation6 + $0xb0] sm:$0xff]  ;;  %v538_v14 = vshll.u32 %v9555_v8, 16  ;;  %v10538_v15 = vld [vmem:[#allocation6 + $0xa8] sm:$0xff]  ;;  %v536_v19 = vshrl.u32 %v9555_v8, 16  ;;  %s9906_s11 = smul.u32 288, %s10401_s28 }
  0x4e   : > { %9862 = vmatpush.bf16.msra.mxu3 %v9344_v4  ;;  %v9305_v7 = vld [vmem:[#allocation6 + $0x58] sm:$0xff]  ;;  %v9343_v10 = vld [vmem:[#allocation6 + $0xf0] sm:$0xff]  ;;  %v9342_v16 = vld [vmem:[#allocation6 + $0xe8] sm:$0xff]  ;;  %vm1802_vm4 = vsmask.f32 6400  ;;  %s12977_s18 = scalar_lea.vmem [#allocation14], %s9905_s29 }
  0x4f   : > { %772 = vmatpush.bf16.msra.mxu0 %v9308_v1  ;;  %v9300_v11 = vld [vmem:[#allocation6 + $0x30] sm:$0xff]  ;;  %v9299_v17 = vld [vmem:[#allocation6 + $0x28] sm:$0xff]  ;;  %v540_v20 = vrot.slane %v538_v14, 1  ;;  %v10544_v23 = vld [vmem:[#allocation6 + $0xe0] sm:$0xff]  ;;  %vm4285_vm6 = vsmask.f32 4352  ;;  %s8016_s14 = scalar_lea.hbm %s13305_s6, %s9906_s11 }
  0x50   : > { %v9304_v12 = vld [vmem:[#allocation6 + $0x50] sm:$0xff]  ;;  %9847 = vmatpush.bf16.msra.mxu1 %v9300_v11  ;;  %v9303_v18 = vld [vmem:[#allocation6 + $0x48] sm:$0xff]  ;;  %v9298_v24 = vld [vmem:[#allocation6 + $0x20] sm:$0xff]  ;;  %s8017_s15 = sshll.u32 %s12977_s18, 4  ;;  %s8019_s20 = sshll.u32 %s8016_s14, 4  ;;  %s8018_s15 = int_to_ptr.vmem [resolvable:$true] %s8017_s15  ;;  %s8020_s20 = int_to_ptr.hbm [resolvable:$true] %s8019_s20 }
  0x51   : > { %v10535_v13 = vld [vmem:[%s10510_s17 + $0x8] sm:$0xff]  ;;  %9855 = vmatpush.bf16.msra.mxu2 %v10532_v9  ;;  %v9302_v25 = vld [vmem:[#allocation6 + $0x40] sm:$0xff]  ;;  %v541_v26 = vor.u32 %v540_v20, %v536_v19  ;;  %v10563_v36 = vld [vmem:[#allocation6 + $0x88] sm:$0xff]  ;;  %s8005_s28 = scalar_lea.sflag [#allocation5], %s10506_s1  ;;  %s10264_s16 = sshra.s32 %s8020_s20, 4  ;;  %s10265_s16 = int_to_ptr.hbm [resolvable:$true] %s10264_s16 }
  0x52   : > { %9863 = vmatpush.bf16.msra.mxu3 %v9343_v10  ;;  %v543_v21 = vshll.u32 %v10535_v13, 16  ;;  %v10547_v28 = vld [vmem:[#allocation6 + $0x98] sm:$0xff]  ;;  %v10555_v32 = vld [vmem:[#allocation6 + $0x90] sm:$0xff]  ;;  %v10566_v37 = vld [vmem:[#allocation6 + $0xc8] sm:$0xff]  ;;  %v547_v42 = vshrl.u32 %v10535_v13, 16  ;;  %s10266_s26 = scalar_lea.hbm %s10265_s16, 288  ;;  %p10271_p13 = scmp.lt.s32.totalorder %s10265_s16, %s13305_s6 }
  0x53   : > { %773 = vmatpush.bf16.msra.mxu0 %v9307_v5  ;;  %v10550_v29 = vld [vmem:[#allocation6 + $0xd8] sm:$0xff]  ;;  %v10557_v33 = vld [vmem:[#allocation6 + $0xd0] sm:$0xff]  ;;  %v10572_v39 = vld [vmem:[%s10510_s17 + $0x18] sm:$0xff]  ;;  %p10267_p1 = scmp.ne.s32.totalorder %s10265_s16, %s10266_s26  ;;  %s10270_s27 = scalar_lea.hbm %s13305_s6, 576 }
  0x54   : > { %9848 = vmatpush.bf16.msra.mxu1 %v9299_v17  ;;  %v545_v27 = vrot.slane %v543_v21, 1  ;;  %v9297_v31 = vld [vmem:[#allocation6 + $0x18] sm:$0xff]  ;;  %v9296_v35 = vld [vmem:[#allocation6 + $0x10] sm:$0xff]  ;;  %v9295_v44 = vld [vmem:[#allocation6 + $0x8] sm:$0xff]  ;;  %v13310_v46 = vrot.slane %v10572_v39, 1  ;;  %v559_v60 = vshll.u32 %v10572_v39, 16  ;;  %p10272_p8 = scmp.lt.s32.totalorder %s10270_s27, %s10266_s26 }
  0x55   : > { %9856 = vmatpush.bf16.msra.mxu2 %v10538_v15  ;;  %v10560_v34 = vld [vmem:[%s10510_s17 + $0x10] sm:$0xff]  ;;  %v10569_v38 = vld [vmem:[%s10510_s17 + $0x20] sm:$0xff]  ;;  %v9321_v41 = vld [vmem:[%s10510_s17 + $0x28] sm:$0xff]  ;;  %p10268_p3 = pnand %p10267_p1, %p10472_p0 }
  0x56   : > { %9864 = vmatpush.bf16.msra.mxu3 %v9342_v16  ;;  %v546_v30 = vsel %vm534_vm0, %v541_v26, %v545_v27  ;;  %v10575_v40 = vld [vmem:[%s10510_s17 + $0x20] sm:$0xff]  ;;  %v551_v43 = vshll.u32 %v10560_v34, 16  ;;  %v10581_v45 = vld [vmem:[#allocation6 + $0x80] sm:$0xff]  ;;  %v1096_v47 = vrot.slane %v10569_v38, 1  ;;  %v1524_v50 = vrot.slane %v9321_v41, 1  ;;  %v10600_v57 = vld [vmem:[%s10510_s17 + $0x28] sm:$0xff]  ;;  %p10273_p7 = por %p10272_p8, %p10271_p13 }
  0x57   : > { %774 = vmatpush.bf16.msra.mxu0 %v9306_v6  ;;  %v10586_v48 = vld [vmem:[#allocation6 + $0xc0] sm:$0xff]  ;;  %v13309_v49 = vrot.slane %v10575_v40, 1  ;;  %v549_v51 = vor.u32 %v547_v42, %v545_v27  ;;  %v555_v59 = vshrl.u32 %v10560_v34, 16  ;;  %v1098_v61 = vrot.slane %v10600_v57, 1  ;;  %v9324_v16 = vld [vmem:[%s10510_s17 + $0x40] sm:$0xff]  ;;  %p10269_p5 = pneg %p10268_p3 }
  0x58   : > { %9849 = vmatpush.bf16.msra.mxu1 %v9298_v24  ;;  %v553_v52 = vrot.slane %v551_v43, 1  ;;  %v1097_v53 = vsel %vm1088_vm1, %v13310_v46, %v1096_v47  ;;  %v9294_v54 = vld [vmem:[#allocation6] sm:$0xff]  ;;  %v561_v0 = vrot.slane %v559_v60, 1  ;;  %v567_v8 = vshll.u32 %v10569_v38, 16  ;;  %v9282_v27 = vld [vmem:[%s10510_s17 + $0x40] sm:$0xff] }
  0x59   : > { %9857 = vmatpush.bf16.msra.mxu2 %v10542_v22  ;;  %v1525_v55 = vsel %vm1088_vm1, %v13309_v49, %v1524_v50  ;;  %v9322_v58 = vld [vmem:[%s10510_s17 + $0x30] sm:$0xff]  ;;  %v1099_v1 = vsel %vm1088_vm1, %v1096_v47, %v1098_v61  ;;  %v9323_v6 = vld [vmem:[%s10510_s17 + $0x38] sm:$0xff]  ;;  %v1530_v20 = vrot.slane %v9324_v16, 1  ;;  %p10274_p9 = pnand %p10273_p7, %p10269_p5 }
  0x5a   : > { %9865 = vmatpush.bf16.msra.mxu3 %v10544_v23  ;;  %v554_v56 = vsel %vm534_vm0, %v549_v51, %v553_v52  ;;  %v1526_v62 = vrot.slane %v9322_v58, 1  ;;  %v557_v63 = vor.u32 %v555_v59, %v553_v52  ;;  %v9280_v5 = vld [vmem:[%s10510_s17 + $0x30] sm:$0xff]  ;;  %v1528_v10 = vrot.slane %v9323_v6, 1 }
  0x5b   : > { %775 = vmatpush.bf16.msra.mxu0 %v9305_v7  ;;  %v563_v7 = vshrl.u32 %v10572_v39, 16  ;;  %v599_v59 = vshll.u32 %v9282_v27, 16  ;;  %v9284_v60 = vld [vmem:[%s10510_s17 + $0x50] sm:$0xff]  ;;  %v603_v6 = vshrl.u32 %v9282_v27, 16 }
  0x5c   : > { %9850 = vmatpush.bf16.msra.mxu1 %v9297_v31  ;;  %v562_v4 = vsel %vm534_vm0, %v557_v63, %v561_v0  ;;  %v1529_v13 = vsel %vm1088_vm1, %v1526_v62, %v1528_v10 }
  0x5d   : > { %9858 = vmatpush.bf16.msra.mxu2 %v10547_v28  ;;  %v601_v63 = vrot.slane %v599_v59, 1 }
  0x5e   : > { %9866 = vmatpush.bf16.msra.mxu3 %v10550_v29 }
  0x5f   : > { %776 = vmatpush.bf16.msra.mxu0 %v9304_v12  ;;  %v569_v12 = vrot.slane %v567_v8, 1  ;;  %v10650_v8 = vld [vmem:[%s10510_s17 + $0x58] sm:$0xff] }
  0x60   : > { %9851 = vmatpush.bf16.msra.mxu1 %v9296_v35 }
  0x61   : > { %9859 = vmatpush.bf16.msra.mxu2 %v10555_v32 }
  0x62   : > { %9867 = vmatpush.bf16.msra.mxu3 %v10557_v33 }
  0x63   : > { %777 = vmatpush.bf16.msra.mxu0 %v9303_v18  ;;  %v575_v18 = vshll.u32 %v10600_v57, 16 }
  0x64   : > { %9852 = vmatpush.bf16.msra.mxu1 %v9295_v44 }
  0x65   : > { %9860 = vmatpush.bf16.msra.mxu2 %v10563_v36 }
  0x66   : > { %9868 = vmatpush.bf16.msra.mxu3 %v10566_v37 }
  0x67   : > { %778 = vmatpush.bf16.msra.mxu0 %v9302_v25  ;;  %v1531_v25 = vsel %vm1088_vm1, %v1528_v10, %v1530_v20  ;;  %v605_v10 = vor.u32 %v603_v6, %v601_v63 }
  0x68   : > { %9853 = vmatpush.bf16.msra.mxu1 %v9294_v54 }
  0x69   : > { %9861 = vmatpush.bf16.msra.mxu2 %v10581_v45 }
  0x6a   : > { %779 = vmatmul.bf16.vlgmr.msra.gmra.mxu0 %v546_v30  ;;  %9869 = vmatpush.bf16.msra.mxu3 %v10586_v48  ;;  %v579_v30 = vshrl.u32 %v10600_v57, 16 }
  0x6b   : > { %954 = vmatpush.bf16.msrb.mxu0 %v9301_v2  ;;  %977 = vmatmul.bf16.vlgmr.msra.gmra.mxu1 %v10572_v39  ;;  %v1527_v2 = vsel %vm1088_vm1, %v1524_v50, %v1526_v62 }
  0x6c   : > { %1222 = vmatmul.bf16.vlgmr.msra.gmra.mxu2 %v1097_v53 }
  0x6d   : > { %1650 = vmatmul.bf16.vlgmr.msra.gmra.mxu3 %v1525_v55 }
  0x6f   : > { %955 = vmatpush.bf16.msrb.mxu0 %v9300_v11  ;;  %v565_v11 = vor.u32 %v563_v7, %v561_v0 }
  0x71   : > { %v570_v14 = vsel %vm534_vm0, %v565_v11, %v569_v12 }
  0x73   : > { %956 = vmatpush.bf16.msrb.mxu0 %v9299_v17  ;;  %v571_v17 = vshrl.u32 %v10569_v38, 16 }
  0x75   : > { %v573_v21 = vor.u32 %v571_v17, %v569_v12 }
  0x77   : > { %957 = vmatpush.bf16.msrb.mxu0 %v9298_v24 }
  0x7a   : > { %784 = vmatmul.bf16.gmra.mxu0 %v554_v56 }
  0x7b   : > { %958 = vmatpush.bf16.msrb.mxu0 %v9297_v31  ;;  %982 = vmatmul.bf16.gmra.mxu1 %v10569_v38  ;;  %v583_v31 = vshll.u32 %v9280_v5, 16 }
  0x7c   : > { %1227 = vmatmul.bf16.gmra.mxu2 %v1099_v1  ;;  %v9327_v1 = vld [vmem:[%s10510_s17 + $0x58] sm:$0xff] }
  0x7d   : > { %1655 = vmatmul.bf16.gmra.mxu3 %v1527_v2  ;;  %v585_v38 = vrot.slane %v583_v31, 1  ;;  %v1536_v2 = vrot.slane %v9327_v1, 1 }
  0x7f   : > { %959 = vmatpush.bf16.msrb.mxu0 %v9296_v35 }
  0x83   : > { %960 = vmatpush.bf16.msrb.mxu0 %v9295_v44  ;;  %v9283_v44 = vld [vmem:[%s10510_s17 + $0x48] sm:$0xff] }
  0x84   : > { %v1106_v50 = vrot.slane %v9283_v44, 1  ;;  %v607_v7 = vshll.u32 %v9283_v44, 16 }
  0x86   : > { %v609_v11 = vrot.slane %v607_v7, 1 }
  0x87   : > { %961 = vmatpush.bf16.msrb.mxu0 %v9294_v54  ;;  %v9326_v54 = vld [vmem:[%s10510_s17 + $0x50] sm:$0xff] }
  0x88   : > { %v1534_v55 = vrot.slane %v9326_v54, 1 }
  0x8a   : > { %789 = vmatmul.bf16.gmra.mxu0 %v562_v4 }
  0x8b   : > { %1199 = vmatpush.bf16.msra.mxu0 %v10528_v3  ;;  %v1100_v3 = vrot.slane %v9280_v5, 1  ;;  %987 = vmatmul.bf16.gmra.mxu1 %v10600_v57 }
  0x8d   : > { %1660 = vmatmul.bf16.gmra.mxu3 %v1529_v13 }
  0x8f   : > { %1200 = vmatpush.bf16.msra.mxu0 %v10532_v9  ;;  %v1101_v9 = vsel %vm1088_vm1, %v1098_v61, %v1100_v3  ;;  %v1108_v61 = vrot.slane %v9284_v60, 1 }
  0x90   : > { %1232 = vmatmul.bf16.gmra.mxu2 %v1101_v9  ;;  %v9328_v9 = vld [vmem:[%s10510_s17 + $0x60] sm:$0xff] }
  0x91   : > { %v1109_v0 = vsel %vm1088_vm1, %v1106_v50, %v1108_v61  ;;  %v1538_v13 = vrot.slane %v9328_v9, 1 }
  0x93   : > { %1201 = vmatpush.bf16.msra.mxu0 %v10538_v15  ;;  %v9281_v15 = vld [vmem:[%s10510_s17 + $0x38] sm:$0xff]  ;;  %v1539_v16 = vsel %vm1088_vm1, %v1536_v2, %v1538_v13 }
  0x94   : > { %v1102_v19 = vrot.slane %v9281_v15, 1  ;;  %v591_v47 = vshll.u32 %v9281_v15, 16  ;;  %v595_v58 = vshrl.u32 %v9281_v15, 16 }
  0x96   : > { %v1103_v24 = vsel %vm1088_vm1, %v1100_v3, %v1102_v19  ;;  %v593_v52 = vrot.slane %v591_v47, 1  ;;  %v1110_v3 = vrot.slane %v10650_v8, 1 }
  0x97   : > { %1202 = vmatpush.bf16.msra.mxu0 %v10542_v22  ;;  %v577_v22 = vrot.slane %v575_v18, 1  ;;  %v611_v18 = vshrl.u32 %v9283_v44, 16 }
  0x98   : > { %v597_v62 = vor.u32 %v595_v58, %v593_v52  ;;  %v1111_v12 = vsel %vm1088_vm1, %v1108_v61, %v1110_v3 }
  0x99   : > { %v578_v26 = vsel %vm534_vm0, %v573_v21, %v577_v22 }
  0x9a   : > { %794 = vmatmul.bf16.gmra.mxu0 %v570_v14  ;;  %v602_v4 = vsel %vm534_vm0, %v597_v62, %v601_v63  ;;  %v627_v63 = vshrl.u32 %v10650_v8, 16 }
  0x9b   : > { %1203 = vmatpush.bf16.msra.mxu0 %v10547_v28  ;;  %992 = vmatmul.bf16.gmra.mxu1 %v9280_v5  ;;  %v9325_v28 = vld [vmem:[%s10510_s17 + $0x48] sm:$0xff] }
  0x9c   : > { %v1532_v35 = vrot.slane %v9325_v28, 1 }
  0x9d   : > { %1665 = vmatmul.bf16.gmra.mxu3 %v1531_v25 }
  0x9e   : > { %v1533_v42 = vsel %vm1088_vm1, %v1530_v20, %v1532_v35  ;;  %v1535_v57 = vsel %vm1088_vm1, %v1532_v35, %v1534_v55  ;;  %v10662_v20 = vld [vmem:[%s10510_s17 + $0x60] sm:$0xff] }
  0x9f   : > { %1204 = vmatpush.bf16.msra.mxu0 %v10555_v32  ;;  %v1104_v32 = vrot.slane %v9282_v27, 1  ;;  %v1112_v21 = vrot.slane %v10662_v20, 1 }
  0xa0   : > { %1237 = vmatmul.bf16.gmra.mxu2 %v1103_v24 }
  0xa1   : > { %v1105_v41 = vsel %vm1088_vm1, %v1102_v19, %v1104_v32  ;;  %v1107_v53 = vsel %vm1088_vm1, %v1104_v32, %v1106_v50  ;;  %v615_v19 = vshll.u32 %v9284_v60, 16  ;;  %v1113_v25 = vsel %vm1088_vm1, %v1110_v3, %v1112_v21 }
  0xa3   : > { %1205 = vmatpush.bf16.msra.mxu0 %v10563_v36  ;;  %v581_v36 = vor.u32 %v579_v30, %v577_v22  ;;  %v613_v22 = vor.u32 %v611_v18, %v609_v11  ;;  %v617_v24 = vrot.slane %v615_v19, 1 }
  0xa5   : > { %v586_v43 = vsel %vm534_vm0, %v581_v36, %v585_v38  ;;  %v618_v30 = vsel %vm534_vm0, %v613_v22, %v617_v24 }
  0xa7   : > { %1206 = vmatpush.bf16.msra.mxu0 %v10581_v45  ;;  %v587_v45 = vshrl.u32 %v9280_v5, 16  ;;  %v1537_v5 = vsel %vm1088_vm1, %v1534_v55, %v1536_v2 }
  0xa9   : > { %v589_v51 = vor.u32 %v587_v45, %v585_v38  ;;  %v10676_v45 = vld [vmem:[%s10510_s17 + $0x68] sm:$0xff] }
  0xaa   : > { %799 = vmatmul.bf16.gmra.mxu0 %v578_v26  ;;  %v9329_v26 = vld [vmem:[%s10510_s17 + $0x68] sm:$0xff] }
  0xab   : > { %997 = vmatmul.bf16.gmra.mxu1 %v9281_v15  ;;  %v594_v56 = vsel %vm534_vm0, %v589_v51, %v593_v52  ;;  %v610_v15 = vsel %vm534_vm0, %v605_v10, %v609_v11  ;;  %v1114_v52 = vrot.slane %v10676_v45, 1  ;;  %v9331_v10 = vld [vmem:[%s10510_s17 + $0x78] sm:$0xff] }
  0xad   : > { %1670 = vmatmul.bf16.gmra.mxu3 %v1533_v42  ;;  %v623_v42 = vshll.u32 %v10650_v8, 16  ;;  %v1115_v54 = vsel %vm1088_vm1, %v1112_v21, %v1114_v52 }
  0xaf   : > { %v625_v51 = vrot.slane %v623_v42, 1 }
  0xb0   : > { %1242 = vmatmul.bf16.gmra.mxu2 %v1105_v41  ;;  %v619_v41 = vshrl.u32 %v9284_v60, 16 }
  0xb1   : > { %v629_v6 = vor.u32 %v627_v63, %v625_v51 }
  0xb2   : > { %v621_v50 = vor.u32 %v619_v41, %v617_v24  ;;  %v10704_v41 = vld [vmem:[%s10510_s17 + $0x78] sm:$0xff] }
  0xba   : > { %804 = vmatmul.bf16.gmra.mxu0 %v586_v43 }
  0xbb   : > { %1002 = vmatmul.bf16.gmra.mxu1 %v9282_v27  ;;  %v1540_v27 = vrot.slane %v9329_v26, 1  ;;  %v639_v26 = vshll.u32 %v10676_v45, 16 }
  0xbd   : > { %1675 = vmatmul.bf16.gmra.mxu3 %v1535_v57  ;;  %v1541_v32 = vsel %vm1088_vm1, %v1538_v13, %v1540_v27  ;;  %v626_v57 = vsel %vm534_vm0, %v621_v50, %v625_v51  ;;  %v641_v50 = vrot.slane %v639_v26, 1  ;;  %v1118_v51 = vrot.slane %v10704_v41, 1 }
  0xc0   : > { %1247 = vmatmul.bf16.gmra.mxu2 %v1107_v53  ;;  %v9330_v53 = vld [vmem:[%s10510_s17 + $0x70] sm:$0xff] }
  0xc1   : > { %v1542_v55 = vrot.slane %v9330_v53, 1 }
  0xc3   : > { %v1543_v59 = vsel %vm1088_vm1, %v1540_v27, %v1542_v55 }
  0xca   : > { %809 = vmatmul.bf16.gmra.mxu0 %v594_v56 }
  0xcb   : > { %1007 = vmatmul.bf16.gmra.mxu1 %v9283_v44 }
  0xcd   : > { %1680 = vmatmul.bf16.gmra.mxu3 %v1537_v5 }
  0xd0   : > { %1252 = vmatmul.bf16.gmra.mxu2 %v1109_v0  ;;  %v631_v0 = vshll.u32 %v10662_v20, 16 }
  0xd2   : > { %v633_v7 = vrot.slane %v631_v0, 1 }
  0xd4   : > { %v634_v13 = vsel %vm534_vm0, %v629_v6, %v633_v7 }
  0xda   : > { %814 = vmatmul.bf16.gmra.mxu0 %v602_v4  ;;  %v10691_v4 = vld [vmem:[%s10510_s17 + $0x70] sm:$0xff] }
  0xdb   : > { %1012 = vmatmul.bf16.gmra.mxu1 %v9284_v60  ;;  %v1116_v3 = vrot.slane %v10691_v4, 1 }
  0xdd   : > { %1685 = vmatmul.bf16.gmra.mxu3 %v1539_v16  ;;  %v1117_v11 = vsel %vm1088_vm1, %v1114_v52, %v1116_v3  ;;  %v9332_v52 = vld [vmem:[%s10510_s17 + $0x80] sm:$0xff]  ;;  %v1119_v53 = vsel %vm1088_vm1, %v1116_v3, %v1118_v51  ;;  %v647_v3 = vshll.u32 %v10691_v4, 16 }
  0xe0   : > { %1257 = vmatmul.bf16.gmra.mxu2 %v1111_v12  ;;  %v1544_v12 = vrot.slane %v9331_v10, 1 }
  0xe7   : > { %v10655_v14 = vpop.f32.mrf.mxu0 }
  0xe8   : > { %v978_v31 = vpop.f32.mrf.mxu1 }
  0xea   : > { %819 = vmatmul.bf16.gmra.mxu0 %v610_v15  ;;  %v1545_v15 = vsel %vm1088_vm1, %v1542_v55, %v1544_v12 }
  0xeb   : > { %1017 = vmatmul.bf16.gmra.mxu1 %v10650_v8 }
  0xed   : > { %1690 = vmatmul.bf16.gmra.mxu3 %v1541_v32 }
  0xef   : > { %v10659_v17 = vpop.f32.mrf.mxu0  ;;  %v1223_v35 = vpop.f32.mrf.mxu2 }
  0xf0   : > { %1262 = vmatmul.bf16.gmra.mxu2 %v1113_v25  ;;  %v1651_v36 = vpop.f32.mrf.mxu3  ;;  %v980_v43 = vpop.f32.mrf.mxu1  ;;  %v635_v25 = vshrl.u32 %v10662_v20, 16 }
  0xf7   : > { %v10667_v28 = vpop.f32.mrf.mxu0  ;;  %v1225_v44 = vpop.f32.mrf.mxu2 }
  0xf8   : > { %v1653_v47 = vpop.f32.mrf.mxu3  ;;  %v983_v58 = vpop.f32.mrf.mxu1 }
  0xfa   : > { %824 = vmatmul.bf16.gmra.mxu0 %v618_v30 }
  0xfb   : > { %1022 = vmatmul.bf16.gmra.mxu1 %v10662_v20  ;;  %v1546_v20 = vrot.slane %v9332_v52, 1  ;;  %v651_v52 = vshrl.u32 %v10691_v4, 16 }
  0xfd   : > { %1695 = vmatmul.bf16.gmra.mxu3 %v1543_v59 }
  0xff   : > { %v10672_v38 = vpop.f32.mrf.mxu0  ;;  %v1228_v60 = vpop.f32.mrf.mxu2 }
 0x100   : > { %1267 = vmatmul.bf16.gmra.mxu2 %v1115_v54  ;;  %v1656_v61 = vpop.f32.mrf.mxu3  ;;  %v985_v1 = vpop.f32.mrf.mxu1 }
 0x107   : > { %v10681_v56 = vpop.f32.mrf.mxu0  ;;  %v1230_v2 = vpop.f32.mrf.mxu2 }
 0x108   : > { %v1658_v5 = vpop.f32.mrf.mxu3  ;;  %v988_v8 = vpop.f32.mrf.mxu1 }
 0x10a   : > { %829 = vmatmul.bf16.gmra.mxu0 %v626_v57 }
 0x10b   : > { %1027 = vmatmul.bf16.gmra.mxu1 %v10676_v45 }
 0x10d   : > { %1700 = vmatmul.bf16.gmra.mxu3 %v1545_v15  ;;  %v649_v15 = vrot.slane %v647_v3, 1 }
 0x10f   : > { %v10686_v62 = vpop.f32.mrf.mxu0 }
 0x110   : > { %1272 = vmatmul.bf16.gmra.mxu2 %v1117_v11  ;;  %v1661_v21 = vpop.f32.mrf.mxu3  ;;  %v990_v27 = vpop.f32.mrf.mxu1 }
 0x113   : > { %v1233_v18 = vpop.f32.mrf.mxu2 }
 0x117   : > { %v795_v9 = vpop.f32.mrf.mxu0 }
 0x118   : > { %v979_v16 = vadd.f32 %v978_v31, %v795_v9  ;;  %v10706_v42 = vpop.f32.mrf.mxu3  ;;  %v993_v55 = vpop.f32.mrf.mxu1 }
 0x11a   : > { %v1318_v19 = vadd.f32 %v1223_v35, %v979_v16  ;;  %834 = vmatmul.bf16.gmra.mxu0 %v634_v13  ;;  %v637_v35 = vor.u32 %v635_v25, %v633_v7  ;;  %v643_v7 = vshrl.u32 %v10676_v45, 16 }
 0x11b   : > { %v1235_v32 = vpop.f32.mrf.mxu2  ;;  %1032 = vmatmul.bf16.gmra.mxu1 %v10691_v4 }
 0x11c   : > { %v10699_v22 = vadd.f32 %v1651_v36, %v1318_v19  ;;  %v9333_v19 = vld [vmem:[%s10510_s17 + $0x88] sm:$0xff] }
 0x11d   : > { %v1548_v45 = vrot.slane %v9333_v19, 1 }
 0x11f   : > { %v797_v24 = vpop.f32.mrf.mxu0 }
 0x120   : > { %v981_v30 = vadd.f32 %v980_v43, %v797_v24  ;;  %1277 = vmatmul.bf16.gmra.mxu2 %v1119_v53  ;;  %v642_v43 = vsel %vm534_vm0, %v637_v35, %v641_v50  ;;  %v995_v10 = vpop.f32.mrf.mxu1  ;;  %v655_v53 = vshll.u32 %v10704_v41, 16 }
 0x122   : > { %v1319_v31 = vadd.f32 %v1225_v44, %v981_v30  ;;  %v1547_v44 = vsel %vm1088_vm1, %v1544_v12, %v1546_v20  ;;  %v10721_v12 = vld [vmem:[%s10510_s17 + $0x80] sm:$0xff] }
 0x123   : > { %1705 = vmatmul.bf16.gmra.mxu3 %v1547_v44  ;;  %v1238_v59 = vpop.f32.mrf.mxu2  ;;  %v1120_v16 = vrot.slane %v10721_v12, 1 }
 0x124   : > { %v10710_v36 = vadd.f32 %v1653_v47, %v1319_v31  ;;  %v1666_v47 = vpop.f32.mrf.mxu3 }
 0x125   : > { %v1121_v24 = vsel %vm1088_vm1, %v1118_v51, %v1120_v16 }
 0x127   : > { %v800_v54 = vpop.f32.mrf.mxu0 }
 0x128   : > { %v984_v57 = vadd.f32 %v983_v58, %v800_v54  ;;  %v998_v26 = vpop.f32.mrf.mxu1 }
 0x12a   : > { %v1320_v63 = vadd.f32 %v1228_v60, %v984_v57  ;;  %839 = vmatmul.bf16.gmra.mxu0 %v642_v43  ;;  %v645_v60 = vor.u32 %v643_v7, %v641_v50  ;;  %v9334_v7 = vld [vmem:[%s10510_s17 + $0x90] sm:$0xff] }
 0x12b   : > { %v1240_v9 = vpop.f32.mrf.mxu2  ;;  %1037 = vmatmul.bf16.gmra.mxu1 %v10704_v41  ;;  %v1550_v3 = vrot.slane %v9334_v7, 1 }
 0x12c   : > { %v10716_v0 = vadd.f32 %v1656_v61, %v1320_v63  ;;  %v10723_v13 = vpop.f32.mrf.mxu3  ;;  %v657_v63 = vrot.slane %v655_v53, 1  ;;  %v9335_v53 = vld [vmem:[%s10510_s17 + $0x98] sm:$0xff] }
 0x12f   : > { %v802_v6 = vpop.f32.mrf.mxu0 }
 0x130   : > { %v986_v11 = vadd.f32 %v985_v1, %v802_v6  ;;  %1282 = vmatmul.bf16.gmra.mxu2 %v1121_v24  ;;  %v650_v1 = vsel %vm534_vm0, %v645_v60, %v649_v15  ;;  %v1000_v54 = vpop.f32.mrf.mxu1 }
 0x132   : > { %v1321_v58 = vadd.f32 %v1230_v2, %v986_v11  ;;  %v1549_v2 = vsel %vm1088_vm1, %v1546_v20, %v1548_v45  ;;  %v10738_v20 = vld [vmem:[%s10510_s17 + $0x88] sm:$0xff] }
 0x133   : > { %1710 = vmatmul.bf16.gmra.mxu3 %v1549_v2  ;;  %v1243_v31 = vpop.f32.mrf.mxu2  ;;  %v1122_v6 = vrot.slane %v10738_v20, 1 }
 0x134   : > { %v10727_v61 = vadd.f32 %v1658_v5, %v1321_v58  ;;  %v1671_v5 = vpop.f32.mrf.mxu3 }
 0x135   : > { %v1123_v4 = vsel %vm1088_vm1, %v1120_v16, %v1122_v6 }
 0x137   : > { %v805_v25 = vpop.f32.mrf.mxu0 }
 0x138   : > { %v989_v30 = vadd.f32 %v988_v8, %v805_v25  ;;  %v1003_v58 = vpop.f32.mrf.mxu1  ;;  %v659_v25 = vshrl.u32 %v10704_v41, 16 }
 0x13a   : > { %v1322_v35 = vadd.f32 %v1233_v18, %v989_v30  ;;  %844 = vmatmul.bf16.gmra.mxu0 %v650_v1  ;;  %v653_v18 = vor.u32 %v651_v52, %v649_v15  ;;  %v663_v1 = vshll.u32 %v10721_v12, 16 }
 0x13b   : > { %v1245_v44 = vpop.f32.mrf.mxu2  ;;  %1042 = vmatmul.bf16.gmra.mxu1 %v10721_v12 }
 0x13c   : > { %v10733_v50 = vadd.f32 %v1661_v21, %v1322_v35  ;;  %v10740_v57 = vpop.f32.mrf.mxu3  ;;  %v661_v35 = vor.u32 %v659_v25, %v657_v63 }
 0x13f   : > { %v807_v51 = vpop.f32.mrf.mxu0 }
 0x140   : > { %v991_v43 = vadd.f32 %v990_v27, %v807_v51  ;;  %1287 = vmatmul.bf16.gmra.mxu2 %v1123_v4  ;;  %v658_v27 = vsel %vm534_vm0, %v653_v18, %v657_v63  ;;  %v10755_v2 = vpop.f32.mrf.mxu1  ;;  %v665_v51 = vrot.slane %v663_v1, 1 }
 0x142   : > { %v1323_v8 = vadd.f32 %v1235_v32, %v991_v43  ;;  %v1551_v32 = vsel %vm1088_vm1, %v1548_v45, %v1550_v3  ;;  %v666_v18 = vsel %vm534_vm0, %v661_v35, %v665_v51 }
 0x143   : > { %1715 = vmatmul.bf16.gmra.mxu3 %v1551_v32  ;;  %v1248_v15 = vpop.f32.mrf.mxu2  ;;  %v667_v32 = vshrl.u32 %v10721_v12, 16 }
 0x144   : > { %v10745_v21 = vadd.f32 %v10706_v42, %v1323_v8  ;;  %v1676_v42 = vpop.f32.mrf.mxu3  ;;  %v1552_v8 = vrot.slane %v9335_v53, 1 }
 0x145   : > { %v669_v25 = vor.u32 %v667_v32, %v665_v51  ;;  %v675_v32 = vshrl.u32 %v10738_v20, 16 }
 0x147   : > { %v810_v11 = vpop.f32.mrf.mxu0 }
 0x148   : > { %v994_v60 = vadd.f32 %v993_v55, %v810_v11  ;;  %v10760_v55 = vld [vmem:[%s10510_s17 + $0x90] sm:$0xff]  ;;  %v10771_v7 = vpop.f32.mrf.mxu1 }
 0x14a   : > { %v1324_v19 = vadd.f32 %v1238_v59, %v994_v60  ;;  %849 = vmatmul.bf16.gmra.mxu0 %v658_v27  ;;  %v671_v60 = vshll.u32 %v10738_v20, 16 }
 0x14b   : > { %v10757_v45 = vpop.f32.mrf.mxu2  ;;  %1047 = vmatmul.bf16.gmra.mxu1 %v10738_v20 }
 0x14c   : > { %v10751_v24 = vadd.f32 %v1666_v47, %v1324_v19  ;;  %v10762_v52 = vpop.f32.mrf.mxu3  ;;  %v1124_v47 = vrot.slane %v10760_v55, 1  ;;  %v673_v1 = vrot.slane %v671_v60, 1  ;;  %v679_v60 = vshll.u32 %v10760_v55, 16 }
 0x14e   : > { %v1125_v41 = vsel %vm1088_vm1, %v1122_v6, %v1124_v47 }
 0x14f   : > { %v812_v16 = vpop.f32.mrf.mxu0 }
 0x150   : > { %v996_v30 = vadd.f32 %v995_v10, %v812_v16  ;;  %1292 = vmatmul.bf16.gmra.mxu2 %v1125_v41  ;;  %v10783_v19 = vpop.f32.mrf.mxu1  ;;  %v10788_v16 = vld [vmem:[%s10510_s17 + $0x98] sm:$0xff]  ;;  %v674_v41 = vsel %vm534_vm0, %v669_v25, %v673_v1  ;;  %v1394_v25 = vld [vmem:[%s10510_s17 + $0xac] sm:$0x1] }
 0x152   : > { %v1325_v59 = vadd.f32 %v1240_v9, %v996_v30  ;;  %v1553_v9 = vsel %vm1088_vm1, %v1550_v3, %v1552_v8 }
 0x153   : > { %1720 = vmatmul.bf16.gmra.mxu3 %v1553_v9  ;;  %v10774_v4 = vpop.f32.mrf.mxu2 }
 0x154   : > { %v10767_v43 = vadd.f32 %v10723_v13, %v1325_v59  ;;  %v10777_v13 = vpop.f32.mrf.mxu3  ;;  %v9336_v59 = vld [vmem:[%s10510_s17 + $0xa0] sm:$0xff] }
 0x157   : > { %v815_v10 = vpop.f32.mrf.mxu0 }
 0x158   : > { %v999_v63 = vadd.f32 %v998_v26, %v815_v10 }
 0x15a   : > { %v1326_v11 = vadd.f32 %v1243_v31, %v999_v63  ;;  %854 = vmatmul.bf16.gmra.mxu0 %v666_v18  ;;  %v394_v63 = vld [vmem:[%s10510_s17 + $0xa0] sm:$0xf] }
 0x15b   : > { %v10785_v3 = vpop.f32.mrf.mxu2  ;;  %1052 = vmatmul.bf16.gmra.mxu1 %v10760_v55 }
 0x15c   : > { %v10779_v6 = vadd.f32 %v1671_v5, %v1326_v11  ;;  %v10790_v30 = vpop.f32.mrf.mxu3  ;;  %v1126_v5 = vrot.slane %v10788_v16, 1  ;;  %v411_v11 = vld [vmem:[%s10510_s17 + $0xa4] sm:$0x1] }
 0x15e   : > { %v1127_v12 = vsel %vm1088_vm1, %v1124_v47, %v1126_v5 }
 0x15f   : > { %v817_v27 = vpop.f32.mrf.mxu0 }
 0x160   : > { %v1001_v26 = vadd.f32 %v1000_v54, %v817_v27  ;;  %v1554_v54 = vrot.slane %v9336_v59, 1  ;;  %1297 = vmatmul.bf16.gmra.mxu2 %v1127_v12 }
 0x162   : > { %v1327_v31 = vadd.f32 %v1245_v44, %v1001_v26  ;;  %v1013_v44 = vpop.f32.mrf.mxu1  ;;  %v1555_v51 = vsel %vm1088_vm1, %v1552_v8, %v1554_v54  ;;  %v512_v26 = vunpack.c.l.b16 %v411_v11 }
 0x163   : > { %1725 = vmatmul.bf16.gmra.mxu3 %v1555_v51  ;;  %v1258_v18 = vpop.f32.mrf.mxu2  ;;  %v681_v51 = vrot.slane %v679_v60, 1 }
 0x164   : > { %v10795_v35 = vadd.f32 %v10740_v57, %v1327_v31  ;;  %v1686_v57 = vpop.f32.mrf.mxu3 }
 0x167   : > { %v820_v53 = vpop.f32.mrf.mxu0 }
 0x168   : > { %v1004_v10 = vadd.f32 %v1003_v58, %v820_v53  ;;  %v511_v58 = vunpack.c.l.b16 %v394_v63  ;;  %v1495_v53 = vunpack.c.l.b16 %v1394_v25 }
 0x16a   : > { %v1328_v9 = vadd.f32 %v1248_v15, %v1004_v10  ;;  %859 = vmatmul.bf16.gmra.mxu0 %v674_v41  ;;  %v10807_v8 = vpop.f32.mrf.mxu1  ;;  %v10811_v15 = vld [vmem:[%s10510_s17 + $0xa8] sm:$0xf]  ;;  %v677_v41 = vor.u32 %v675_v32, %v673_v1 }
 0x16b   : > { %v10814_v59 = vpop.f32.mrf.mxu2  ;;  %v13308_v12 = vunpack.c.l.b16 %v10811_v15  ;;  %1057 = vmatmul.bf16.gmra.mxu1 %v10788_v16 }
 0x16c   : > { %v10801_v47 = vadd.f32 %v1676_v42, %v1328_v9  ;;  %v10816_v42 = vpack.c.b16 %v512_v26, %v511_v58  ;;  %v10820_v10 = vpop.f32.mrf.mxu3  ;;  %v682_v25 = vsel %vm534_vm0, %v677_v41, %v681_v51  ;;  %v687_v41 = vshll.u32 %v10788_v16, 16 }
 0x16e   : > { %v1128_v9 = vrot.slane %v10816_v42, 1 }
 0x16f   : > { %v822_v27 = vpop.f32.mrf.mxu0 }
 0x170   : > { %v1006_v31 = vadd.f32 %v10755_v2, %v822_v27  ;;  %v1516_v2 = vpack.c.b16 %v1495_v53, %v13308_v12  ;;  %v1129_v11 = vsel %vm1088_vm1, %v1126_v5, %v1128_v9 }
 0x171   : > { %1302 = vmatmul.bf16.gmra.mxu2 %v1129_v11  ;;  %v689_v11 = vrot.slane %v687_v41, 1 }
 0x172   : > { %v1329_v20 = vadd.f32 %v10757_v45, %v1006_v31  ;;  %v1556_v27 = vrot.slane %v1516_v2, 1  ;;  %v1018_v45 = vpop.f32.mrf.mxu1 }
 0x173   : > { %v1263_v60 = vpop.f32.mrf.mxu2 }
 0x174   : > { %v10826_v63 = vadd.f32 %v10762_v52, %v1329_v20  ;;  %v1557_v1 = vsel %vm1088_vm1, %v1554_v54, %v1556_v27  ;;  %v1691_v52 = vpop.f32.mrf.mxu3  ;;  %v683_v20 = vshrl.u32 %v10760_v55, 16 }
 0x175   : > { %1730 = vmatmul.bf16.gmra.mxu3 %v1557_v1 }
 0x176   : > { %v685_v2 = vor.u32 %v683_v20, %v681_v51  ;;  %v691_v51 = vshrl.u32 %v10788_v16, 16 }
 0x177   : > { %v825_v26 = vpop.f32.mrf.mxu0 }
 0x178   : > { %v1009_v32 = vadd.f32 %v10771_v7, %v825_v26 }
 0x17a   : > { %v1330_v31 = vadd.f32 %v10774_v4, %v1009_v32  ;;  %864 = vmatmul.bf16.gmra.mxu0 %v682_v25  ;;  %v10841_v54 = vpop.f32.mrf.mxu1  ;;  %v690_v25 = vsel %vm534_vm0, %v685_v2, %v689_v11  ;;  %v884_v32 = vpack.c.b16 %v511_v58, %v511_v58 }
 0x17b   : > { %13371 = vst [vmem:[#allocation20_spill] sm:$0xff] %v10841_v54  ;;  %v10843_v7 = vpop.f32.mrf.mxu2 }
 0x17c   : > { %v10835_v5 = vadd.f32 %v10777_v13, %v1330_v31  ;;  %13372 = vst [vmem:[#allocation21_spill] sm:$0xff] %v10843_v7  ;;  %v10845_v4 = vpop.f32.mrf.mxu3  ;;  %1062 = vmatmul.bf16.gmra.mxu1 %v884_v32 }
 0x17d   : > { %13373 = vst [vmem:[#allocation22_spill] sm:$0xff] %v10845_v4 }
 0x17f   : > { %v10837_v53 = vpop.f32.mrf.mxu0 }
 0x181   : > { %1307 = vmatmul.bf16.gmra.mxu2 %v1128_v9  ;;  %v695_v9 = vshll.u32 %v10816_v42, 16 }
 0x182   : > { %v1023_v13 = vpop.f32.mrf.mxu1 }
 0x183   : > { %v1268_v31 = vpop.f32.mrf.mxu2 }
 0x184   : > { %v1696_v12 = vpop.f32.mrf.mxu3 }
 0x185   : > { %1735 = vmatmul.bf16.gmra.mxu3 %v1556_v27  ;;  %v697_v27 = vrot.slane %v695_v9, 1 }
 0x187   : > { %v830_v26 = vpop.f32.mrf.mxu0 }
 0x188   : > { %v1014_v1 = vadd.f32 %v1013_v44, %v830_v26  ;;  %v693_v44 = vor.u32 %v691_v51, %v689_v11  ;;  %v699_v11 = vshrl.u32 %v10816_v42, 16 }
 0x18a   : > { %v1332_v55 = vadd.f32 %v1258_v18, %v1014_v1  ;;  %869 = vmatmul.bf16.gmra.mxu0 %v690_v25  ;;  %v10854_v20 = vpop.f32.mrf.mxu1  ;;  %v698_v2 = vsel %vm534_vm0, %v693_v44, %v697_v27  ;;  %v701_v9 = vor.u32 %v699_v11, %v697_v27 }
 0x18b   : > { %13374 = vst [vmem:[#allocation23_spill] sm:$0xff] %v10854_v20  ;;  %v10856_v41 = vpop.f32.mrf.mxu2 }
 0x18c   : > { %v10848_v49 = vadd.f32 %v1686_v57, %v1332_v55  ;;  %13375 = vst [vmem:[#allocation24_spill] sm:$0xff] %v10856_v41  ;;  %v10858_v58 = vpop.f32.mrf.mxu3 }
 0x18d   : > { %13376 = vst [vmem:[#allocation25_spill] sm:$0xff] %v10858_v58 }
 0x18f   : > { %v10850_v46 = vpop.f32.mrf.mxu0 }
 0x192   : > { %v1028_v26 = vpop.f32.mrf.mxu1 }
 0x193   : > { %v1273_v25 = vpop.f32.mrf.mxu2 }
 0x194   : > { %v1701_v32 = vpop.f32.mrf.mxu3 }
 0x197   : > { %v835_v18 = vpop.f32.mrf.mxu0 }
 0x198   : > { %v1019_v57 = vadd.f32 %v1018_v45, %v835_v18 }
 0x19a   : > { %v1334_v1 = vadd.f32 %v1263_v60, %v1019_v57  ;;  %874 = vmatmul.bf16.gmra.mxu0 %v698_v2  ;;  %v10865_v20 = vpop.f32.mrf.mxu1 }
 0x19b   : > { %13378 = vst [vmem:[#allocation27_spill] sm:$0xff] %v10865_v20  ;;  %v10867_v41 = vpop.f32.mrf.mxu2 }
 0x19c   : > { %v10861_v16 = vadd.f32 %v1691_v52, %v1334_v1  ;;  %13379 = vst [vmem:[#allocation28_spill] sm:$0xff] %v10867_v41  ;;  %v10870_v51 = vpop.f32.mrf.mxu3 }
 0x19d   : > { %13380 = vst [vmem:[#allocation29_spill] sm:$0xff] %v10870_v51 }
 0x19e   : > { %13377 = vst [vmem:[#allocation26_spill] sm:$0xff] %v10861_v16 }
 0x19f   : > { %v10863_v55 = vpop.f32.mrf.mxu0 }
 0x1a2   : > { %v1033_v58 = vpop.f32.mrf.mxu1 }
 0x1a3   : > { %v1278_v60 = vpop.f32.mrf.mxu2 }
 0x1a6   : > { %v1706_v52 = vpop.f32.mrf.mxu3 }
 0x1a7   : > { %v840_v44 = vpop.f32.mrf.mxu0 }
 0x1a8   : > { %v1024_v45 = vadd.f32 %v1023_v13, %v840_v44  ;;  %v10017_v13 = vld [vmem:[%s10510_s17] sm:$0xff]  }
 0x1aa   : > { %v1336_v18 = vadd.f32 %v1268_v31, %v1024_v45  ;;  %879 = vmatmul.bf16.gmra.mxu0 %v701_v9  ;;  %v10876_v1 = vpop.f32.mrf.mxu1  ;;  %v10018_v9 = vld [vmem:[#allocation6 + $0xf8] sm:$0xff] }
 0x1ab   : > { %13383 = vst [vmem:[#allocation32_spill] sm:$0xff] %v10876_v1  ;;  %v10878_v41 = vpop.f32.mrf.mxu2 }
 0x1ac   : > { %v10872_v2 = vadd.f32 %v1696_v12, %v1336_v18  ;;  %13384 = vst [vmem:[#allocation33_spill] sm:$0xff] %v10878_v41  ;;  %v10019_v18 = vld [vmem:[#allocation6 + $0xf0] sm:$0xff] }
 0x1ae   : > { %13381 = vst [vmem:[#allocation30_spill] sm:$0xff] %v10872_v2  ;;  %v10880_v42 = vpop.f32.mrf.mxu3  ;;  %v9403_v2 = vld [vmem:[#allocation6 + $0x238] sm:$0xff] }
 0x1af   : > { %v10874_v57 = vpop.f32.mrf.mxu0  ;;  %13385 = vst [vmem:[#allocation34_spill] sm:$0xff] %v10880_v42  ;;  %v9387_v42 = vld [vmem:[#allocation6 + $0x1b8] sm:$0xff] }
 0x1b0   : > { %13382 = vst [vmem:[#allocation31_spill] sm:$0xff] %v10874_v57  ;;  %2774 = vmatpush.bf16.msrb.mxu2 %v9387_v42 }
 0x1b2   : > { %v1038_v27 = vpop.f32.mrf.mxu1 }
 0x1b3   : > { %v1283_v20 = vpop.f32.mrf.mxu2 }
 0x1b6   : > { %v1711_v31 = vpop.f32.mrf.mxu3 }
 0x1b7   : > { %v845_v51 = vpop.f32.mrf.mxu0 }
 0x1b8   : > { %v1029_v11 = vadd.f32 %v1028_v26, %v845_v51  ;;  %v9395_v51 = vld [vmem:[#allocation6 + $0x1f8] sm:$0xff] }
 0x1b9   : > { %3207 = vmatpush.bf16.msrb.mxu3 %v9395_v51 }
 0x1ba   : > { %v1338_v4 = vadd.f32 %v1273_v25, %v1029_v11  ;;  %962 = vmatmul.bf16.vlgmr.msrb.gmra.mxu0 %v10017_v13  ;;  %v10887_v45 = vpop.f32.mrf.mxu1  ;;  %v10020_v25 = vld [vmem:[#allocation6 + $0xe8] sm:$0xff]  ;;  %v9360_v11 = vld [vmem:[#allocation6 + $0x178] sm:$0xff] }
 0x1bb   : > { %1627 = vmatpush.bf16.msrb.mxu0 %v10018_v9  ;;  %13388 = vst [vmem:[#allocation37_spill] sm:$0xff] %v10887_v45  ;;  %v10889_v41 = vpop.f32.mrf.mxu2  ;;  %2346 = vmatpush.bf16.msrb.mxu1 %v9360_v11  ;;  %v10021_v45 = vld [vmem:[%s10510_s17 + $0x8] sm:$0xff] }
 0x1bc   : > { %v10883_v12 = vadd.f32 %v1701_v32, %v1338_v4  ;;  %13389 = vst [vmem:[#allocation38_spill] sm:$0xff] %v10889_v41  ;;  %v1090_v1 = vrot.slane %v10021_v45, 1 }
 0x1be   : > { %13386 = vst [vmem:[#allocation35_spill] sm:$0xff] %v10883_v12  ;;  %v10891_v26 = vpop.f32.mrf.mxu3 }
 0x1bf   : > { %v10885_v44 = vpop.f32.mrf.mxu0  ;;  %1628 = vmatpush.bf16.msrb.mxu0 %v10019_v18  ;;  %13390 = vst [vmem:[#allocation39_spill] sm:$0xff] %v10891_v26 }
 0x1c0   : > { %13387 = vst [vmem:[#allocation36_spill] sm:$0xff] %v10885_v44 }
 0x1c2   : > { %v1043_v32 = vpop.f32.mrf.mxu1 }
 0x1c3   : > { %1629 = vmatpush.bf16.msrb.mxu0 %v10020_v25  ;;  %v1288_v9 = vpop.f32.mrf.mxu2 }
 0x1c6   : > { %v1716_v41 = vpop.f32.mrf.mxu3 }
 0x1c7   : > { %v850_v4 = vpop.f32.mrf.mxu0  ;;  %1630 = vmatpush.bf16.msrb.mxu0 %v10544_v23 }
 0x1c8   : > { %v1034_v13 = vadd.f32 %v1033_v58, %v850_v4 }
 0x1ca   : > { %v1340_v18 = vadd.f32 %v1278_v60, %v1034_v13  ;;  %967 = vmatmul.bf16.gmra.mxu0 %v10021_v45  ;;  %v10900_v25 = vpop.f32.mrf.mxu1 }
 0x1cb   : > { %1631 = vmatpush.bf16.msrb.mxu0 %v10550_v29  ;;  %13393 = vst [vmem:[#allocation42_spill] sm:$0xff] %v10900_v25  ;;  %v10903_v51 = vpop.f32.mrf.mxu2 }
 0x1cc   : > { %v10896_v26 = vadd.f32 %v1706_v52, %v1340_v18  ;;  %13394 = vst [vmem:[#allocation43_spill] sm:$0xff] %v10903_v51  ;;  %v9726_v18 = vld [vmem:[%s10510_s17] sm:$0xf0] }
 0x1ce   : > { %13391 = vst [vmem:[#allocation40_spill] sm:$0xff] %v10896_v26  ;;  %v10905_v23 = vpop.f32.mrf.mxu3 }
 0x1cf   : > { %v10898_v42 = vpop.f32.mrf.mxu0  ;;  %1632 = vmatpush.bf16.msrb.mxu0 %v10557_v33  ;;  %13395 = vst [vmem:[#allocation44_spill] sm:$0xff] %v10905_v23  ;;  %v9727_v33 = vld [vmem:[%s10510_s17] sm:$0xe] }
 0x1d0   : > { %13392 = vst [vmem:[#allocation41_spill] sm:$0xff] %v10898_v42  ;;  %v9728_v51 = vor.u32 %v9727_v33, %v9726_v18  ;;  %v9359_v18 = vld [vmem:[#allocation6 + $0x170] sm:$0xff] }
 0x1d1   : > { %2347 = vmatpush.bf16.msrb.mxu1 %v9359_v18 }
 0x1d2   : > { %v1048_v60 = vpop.f32.mrf.mxu1  ;;  %v1089_v26 = vrot.slane %v9728_v51, 1 }
 0x1d3   : > { %1633 = vmatpush.bf16.msrb.mxu0 %v10566_v37  ;;  %v1293_v52 = vpop.f32.mrf.mxu2 }
 0x1d6   : > { %v1721_v4 = vpop.f32.mrf.mxu3 }
 0x1d7   : > { %v855_v58 = vpop.f32.mrf.mxu0  ;;  %1634 = vmatpush.bf16.msrb.mxu0 %v10586_v48 }
 0x1d8   : > { %v1039_v29 = vadd.f32 %v1038_v27, %v855_v58  ;;  %v9386_v27 = vld [vmem:[#allocation6 + $0x1b0] sm:$0xff] }
 0x1d9   : > { %2775 = vmatpush.bf16.msrb.mxu2 %v9386_v27 }
 0x1da   : > { %v1342_v11 = vadd.f32 %v1283_v20, %v1039_v29  ;;  %972 = vmatmul.bf16.gmra.mxu0 %v10560_v34  ;;  %v10916_v23 = vpop.f32.mrf.mxu1  ;;  %v1091_v34 = vsel %vm1088_vm1, %v1089_v26, %v1090_v1  ;;  %v9394_v29 = vld [vmem:[#allocation6 + $0x1f0] sm:$0xff] }
 0x1db   : > { %13398 = vst [vmem:[#allocation47_spill] sm:$0xff] %v10916_v23  ;;  %v10918_v37 = vpop.f32.mrf.mxu2  ;;  %3208 = vmatpush.bf16.msrb.mxu3 %v9394_v29 }
 0x1dc   : > { %v10910_v13 = vadd.f32 %v1711_v31, %v1342_v11  ;;  %13399 = vst [vmem:[#allocation48_spill] sm:$0xff] %v10918_v37 }
 0x1de   : > { %13396 = vst [vmem:[#allocation45_spill] sm:$0xff] %v10910_v13  ;;  %v10920_v48 = vpop.f32.mrf.mxu3 }
 0x1df   : > { %v10914_v25 = vpop.f32.mrf.mxu0  ;;  %13400 = vst [vmem:[#allocation49_spill] sm:$0xff] %v10920_v48  ;;  %v10022_v48 = vld [vmem:[%s10510_s17 + $0x10] sm:$0xff] }
 0x1e0   : > { %13397 = vst [vmem:[#allocation46_spill] sm:$0xff] %v10914_v25  ;;  %v1092_v26 = vrot.slane %v10022_v48, 1 }
 0x1e2   : > { %v1053_v31 = vpop.f32.mrf.mxu1 }
 0x1e3   : > { %v1298_v11 = vpop.f32.mrf.mxu2 }
 0x1e6   : > { %v1726_v33 = vpop.f32.mrf.mxu3 }
 0x1e7   : > { %v860_v20 = vpop.f32.mrf.mxu0 }
 0x1e8   : > { %v1044_v58 = vadd.f32 %v1043_v32, %v860_v20 }
 0x1ea   : > { %v1344_v13 = vadd.f32 %v1288_v9, %v1044_v58  ;;  %1207 = vmatmul.bf16.vlgmr.msra.gmra.mxu0 %v1091_v34  ;;  %v10927_v51 = vpop.f32.mrf.mxu1  ;;  %v1093_v9 = vsel %vm1088_vm1, %v1090_v1, %v1092_v26 }
 0x1eb   : > { %13403 = vst [vmem:[#allocation52_spill] sm:$0xff] %v10927_v51  ;;  %v10929_v27 = vpop.f32.mrf.mxu2 }
 0x1ec   : > { %v10923_v37 = vadd.f32 %v1716_v41, %v1344_v13  ;;  %13404 = vst [vmem:[#allocation53_spill] sm:$0xff] %v10929_v27  ;;  %v9352_v41 = vld [vmem:[#allocation6 + $0x138] sm:$0xff] }
 0x1ed   : > { %2060 = vmatpush.bf16.msra.mxu0 %v9352_v41  ;;  %v10952_v41 = vld [vmem:[%s10510_s17 + $0xc] sm:$0xf] }
 0x1ee   : > { %13401 = vst [vmem:[#allocation50_spill] sm:$0xff] %v10923_v37  ;;  %v10932_v23 = vpop.f32.mrf.mxu3  ;;  %v9357_v37 = vld [vmem:[#allocation6 + $0x160] sm:$0xff] }
 0x1ef   : > { %v10925_v45 = vpop.f32.mrf.mxu0  ;;  %13405 = vst [vmem:[#allocation54_spill] sm:$0xff] %v10932_v23  ;;  %v9351_v23 = vld [vmem:[#allocation6 + $0x130] sm:$0xff] }
 0x1f0   : > { %13402 = vst [vmem:[#allocation51_spill] sm:$0xff] %v10925_v45 }
 0x1f1   : > { %2061 = vmatpush.bf16.msra.mxu0 %v9351_v23  ;;  %v9385_v23 = vld [vmem:[#allocation6 + $0x1a8] sm:$0xff] }
 0x1f2   : > { %v1058_v20 = vpop.f32.mrf.mxu1  ;;  %2776 = vmatpush.bf16.msrb.mxu2 %v9385_v23 }
 0x1f4   : > { %v1303_v58 = vpop.f32.mrf.mxu2 }
 0x1f7   : > { %v865_v32 = vpop.f32.mrf.mxu0 }
 0x1f8   : > { %v1049_v34 = vadd.f32 %v1048_v60, %v865_v32  ;;  %v1731_v13 = vpop.f32.mrf.mxu3  ;;  %v9350_v60 = vld [vmem:[#allocation6 + $0x128] sm:$0xff]  ;;  %v13411_v32 = vrot.slane %v10572_v39, 1 }
 0x1f9   : > { %2062 = vmatpush.bf16.msra.mxu0 %v9350_v60  ;;  %v13311_v60 = vunpack.c.l.b16 %v10952_v41 }
 0x1fa   : > { %v1346_v29 = vadd.f32 %v1293_v52, %v1049_v34  ;;  %1212 = vmatmul.bf16.gmra.mxu0 %v1093_v9  ;;  %v10939_v48 = vpop.f32.mrf.mxu1  ;;  %v1095_v9 = vsel %vm1088_vm1, %v1092_v26, %v13411_v32  ;;  %v9393_v26 = vld [vmem:[#allocation6 + $0x1e8] sm:$0xff]  ;;  %v9349_v32 = vld [vmem:[#allocation6 + $0x120] sm:$0xff] }
 0x1fb   : > { %13408 = vst [vmem:[#allocation57_spill] sm:$0xff] %v10939_v48  ;;  %3209 = vmatpush.bf16.msrb.mxu3 %v9393_v26 }
 0x1fc   : > { %v10935_v18 = vadd.f32 %v1721_v4, %v1346_v29  ;;  %v10941_v51 = vpop.f32.mrf.mxu2  ;;  %v1353_v29 = vld [vmem:[%s10510_s17 + $0x8] sm:$0xe] }
 0x1fd   : > { %13409 = vst [vmem:[#allocation58_spill] sm:$0xff] %v10941_v51  ;;  %2063 = vmatpush.bf16.msra.mxu0 %v9349_v32  ;;  %v9392_v32 = vld [vmem:[#allocation6 + $0x1e0] sm:$0xff] }
 0x1fe   : > { %13406 = vst [vmem:[#allocation55_spill] sm:$0xff] %v10935_v18 }
 0x1ff   : > { %v10937_v27 = vpop.f32.mrf.mxu0  ;;  %3210 = vmatpush.bf16.msrb.mxu3 %v9392_v32  ;;  %v10982_v32 = vld [vmem:[%s10510_s17 + $0x18] sm:$0xff] }
 0x200   : > { %13407 = vst [vmem:[#allocation56_spill] sm:$0xff] %v10937_v27  ;;  %v10943_v1 = vpop.f32.mrf.mxu3  ;;  %v10964_v27 = vld [vmem:[%s10510_s17 + $0x10] sm:$0xff] }
 0x201   : > { %13410 = vst [vmem:[#allocation59_spill] sm:$0xff] %v10943_v1  ;;  %v1454_v1 = vunpack.c.l.b16 %v1353_v29  ;;  %v1518_v23 = vrot.slane %v10964_v27, 1 }
 0x202   : > { %v10948_v4 = vpop.f32.mrf.mxu1 }
 0x204   : > { %v10954_v48 = vpop.f32.mrf.mxu2 }
 0x207   : > { %v870_v52 = vpop.f32.mrf.mxu0 }
 0x208   : > { %v1054_v34 = vadd.f32 %v1053_v31, %v870_v52  ;;  %v10957_v18 = vpop.f32.mrf.mxu3  ;;  %v9358_v31 = vld [vmem:[#allocation6 + $0x168] sm:$0xff] }
 0x209   : > { %2348 = vmatpush.bf16.msrb.mxu1 %v9358_v31  ;;  %v9347_v31 = vld [vmem:[#allocation6 + $0x110] sm:$0xff] }
 0x20a   : > { %v1348_v51 = vadd.f32 %v1298_v11, %v1054_v34  ;;  %1217 = vmatmul.bf16.gmra.mxu0 %v1095_v9  ;;  %v10968_v11 = vpack.c.b16 %v13311_v60, %v1454_v1  ;;  %v9348_v9 = vld [vmem:[#allocation6 + $0x118] sm:$0xff]  ;;  %v9384_v34 = vld [vmem:[#allocation6 + $0x1a0] sm:$0xff]  ;;  %v1065_v29 = vpop.f32.mrf.mxu1 }
 0x20b   : > { %2777 = vmatpush.bf16.msrb.mxu2 %v9384_v34  ;;  %2064 = vmatpush.bf16.msra.mxu0 %v9348_v9  ;;  %v9383_v1 = vld [vmem:[#allocation6 + $0x198] sm:$0xff] }
 0x20c   : > { %v10959_v39 = vadd.f32 %v1726_v33, %v1348_v51  ;;  %v1310_v33 = vpop.f32.mrf.mxu2  ;;  %v1517_v51 = vrot.slane %v10968_v11, 1  ;;  %v9391_v9 = vld [vmem:[#allocation6 + $0x1d8] sm:$0xff] }
 0x20d   : > { %2349 = vmatpush.bf16.msrb.mxu1 %v9357_v37  ;;  %v9356_v29 = vld [vmem:[#allocation6 + $0x158] sm:$0xff]  ;;  %v9382_v33 = vld [vmem:[#allocation6 + $0x190] sm:$0xff]  ;;  %3211 = vmatpush.bf16.msrb.mxu3 %v9391_v9  ;;  %v9354_v9 = vld [vmem:[#allocation6 + $0x148] sm:$0xff] }
 0x20e   : > { %13412 = vst [vmem:[#allocation60_spill] sm:$0xff] %v10959_v39 }
 0x20f   : > { %v10961_v52 = vpop.f32.mrf.mxu0  ;;  %2778 = vmatpush.bf16.msrb.mxu2 %v9383_v1  ;;  %2065 = vmatpush.bf16.msra.mxu0 %v9347_v31  ;;  %v9345_v31 = vld [vmem:[#allocation6 + $0x100] sm:$0xff] }
 0x210   : > { %13413 = vst [vmem:[#allocation61_spill] sm:$0xff] %v10961_v52  ;;  %v1738_v26 = vpop.f32.mrf.mxu3  ;;  %v1519_v52 = vsel %vm1088_vm1, %v1517_v51, %v1518_v23  ;;  %v9390_v51 = vld [vmem:[#allocation6 + $0x1d0] sm:$0xff] }
 0x211   : > { %v9346_v26 = vld [vmem:[#allocation6 + $0x108] sm:$0xff]  ;;  %2350 = vmatpush.bf16.msrb.mxu1 %v9356_v29  ;;  %3212 = vmatpush.bf16.msrb.mxu3 %v9390_v51 }
 0x212   : > { %v9361_v29 = vld [vmem:[%s10510_s17 + $0x18] sm:$0xff] }
 0x213   : > { %2779 = vmatpush.bf16.msrb.mxu2 %v9382_v33  ;;  %2066 = vmatpush.bf16.msra.mxu0 %v9346_v26  ;;  %v2665_v25 = vrot.slane %v9361_v29, 2 }
 0x217   : > { %v875_v39 = vpop.f32.mrf.mxu0  ;;  %2067 = vmatpush.bf16.msra.mxu0 %v9345_v31 }
 0x218   : > { %v1059_v60 = vadd.f32 %v1058_v20, %v875_v39  ;;  %v2500_v20 = vld [vmem:[%s10510_s17 + $0x10] sm:$0xc]  ;;  %v10977_v39 = vld [vmem:[%s10510_s17 + $0x14] sm:$0xf] }
 0x219   : > { %13415 = vst [vmem:[#allocation63_spill] sm:$0xff] %v10977_v39  ;;  %v13312_v1 = vunpack.c.l.b16 %v10977_v39 }
 0x21a   : > { %v1350_v34 = vadd.f32 %v1303_v58, %v1059_v60  ;;  %1635 = vmatmul.bf16.vlgmr.msrb.gmra.mxu0 %v1519_v52  ;;  %v9355_v58 = vld [vmem:[#allocation6 + $0x150] sm:$0xff]  ;;  %v9381_v60 = vld [vmem:[#allocation6 + $0x188] sm:$0xff]  ;;  %v2601_v52 = vunpack.c.l.b16 %v2500_v20  ;;  %v9388_v20 = vld [vmem:[#allocation6 + $0x1c0] sm:$0xff] }
 0x21b   : > { %2351 = vmatpush.bf16.msrb.mxu1 %v9355_v58  ;;  %2780 = vmatpush.bf16.msrb.mxu2 %v9381_v60  ;;  %v2959_v58 = vshrl.u32 %v9361_v29, 16  ;;  %v2214_v60 = vld [vmem:[%s10510_s17 + $0x8] sm:$0xc] }
 0x21c   : > { %v10973_v45 = vadd.f32 %v1731_v13, %v1350_v34  ;;  %v9389_v13 = vld [vmem:[#allocation6 + $0x1c8] sm:$0xff]  ;;  %v9380_v34 = vld [vmem:[#allocation6 + $0x180] sm:$0xff]  ;;  %v2643_v33 = vpack.c.b16 %v13312_v1, %v2601_v52  ;;  %3493 = vmatpush.bf16.msrb.mxu0 %v9403_v2 }
 0x21d   : > { %3213 = vmatpush.bf16.msrb.mxu3 %v9389_v13  ;;  %v9353_v1 = vld [vmem:[#allocation6 + $0x140] sm:$0xff] }
 0x21e   : > { %13414 = vst [vmem:[#allocation62_spill] sm:$0xff] %v10973_v45  ;;  %v1520_v45 = vrot.slane %v10982_v32, 1  ;;  %v2951_v26 = vshrl.u32 %v2643_v33, 16  ;;  %v2954_v51 = vshll.u32 %v2643_v33, 16 }
 0x21f   : > { %v10979_v37 = vpop.f32.mrf.mxu0  ;;  %2352 = vmatpush.bf16.msrb.mxu1 %v9354_v9  ;;  %2781 = vmatpush.bf16.msrb.mxu2 %v9380_v34  ;;  %v2961_v9 = vrot.slane %v2959_v58, 2  ;;  %v2962_v34 = vshll.u32 %v9361_v29, 16 }
 0x220   : > { %13416 = vst [vmem:[#allocation64_spill] sm:$0xff] %v10979_v37  ;;  %v2664_v37 = vrot.slane %v2643_v33, 2  ;;  %v1521_v12 = vsel %vm1088_vm1, %v1518_v23, %v1520_v45  ;;  %v2953_v44 = vrot.slane %v2951_v26, 2  ;;  %v2956_v13 = vrot.slane %v2954_v51, 3 }
 0x221   : > { %3214 = vmatpush.bf16.msrb.mxu3 %v9388_v20  ;;  %v2233_v33 = vunpack.c.l.b16 %v2214_v60  ;;  %v2964_v23 = vrot.slane %v2962_v34, 3  ;;  %v13417_v20 = vunpack.c.l.b16 %v10952_v41  ;;  %v2237_v26 = vrot.slane %v10964_v27, 2 }
 0x222   : > { %v2666_v52 = vsel %vm2235_vm2, %v2664_v37, %v2665_v25  ;;  %v2957_v57 = vor.u32 %v2956_v13, %v2953_v44  ;;  %v9362_v44 = vld [vmem:[%s10510_s17 + $0x20] sm:$0xff]  ;;  %v1807_v34 = vshll.u32 %v10968_v11, 16 }
 0x223   : > { %2782 = vmatmul.bf16.vlgmr.msrb.gmra.mxu2 %v2666_v52  ;;  %2353 = vmatpush.bf16.msrb.mxu1 %v9353_v1  ;;  %v2234_v37 = vpack.c.b16 %v13417_v20, %v2233_v33  ;;  %v2968_v29 = vshrl.u32 %v9362_v44, 16  ;;  %v2971_v41 = vshll.u32 %v9362_v44, 16  ;;  %v2667_v58 = vrot.slane %v9362_v44, 2 }
 0x224   : > { %v1812_v33 = vshrl.u32 %v10964_v27, 16 }
 0x225   : > { %v2970_v60 = vrot.slane %v2968_v29, 2  ;;  %v2973_v52 = vrot.slane %v2971_v41, 3 }
 0x227   : > { %v880_v42 = vpop.f32.mrf.mxu0 }
 0x228   : > { %v1064_v31 = vadd.f32 %v10948_v4, %v880_v42  ;;  %v2965_v42 = vor.u32 %v2964_v23, %v2961_v9  ;;  %v2236_v4 = vrot.slane %v2234_v37, 2  ;;  %v1804_v9 = vshrl.u32 %v10968_v11, 16 }
 0x229   : > { %v1815_v23 = vshll.u32 %v10964_v27, 16  ;;  %v1809_v37 = vrot.slane %v1807_v34, 2  ;;  %v1824_v34 = vshll.u32 %v10982_v32, 16 }
 0x22a   : > { %v1352_v39 = vadd.f32 %v10954_v48, %v1064_v31  ;;  %1640 = vmatmul.bf16.gmra.mxu0 %v1521_v12  ;;  %v2966_v48 = vsel %vm2949_vm3, %v2957_v57, %v2965_v42  ;;  %v2238_v12 = vsel %vm2235_vm2, %v2236_v4, %v2237_v26  ;;  %v2974_v57 = vor.u32 %v2973_v52, %v2970_v60 }
 0x22b   : > { %3215 = vmatmul.bf16.vlgmr.msrb.gmra.mxu3 %v2966_v48  ;;  %2354 = vmatmul.bf16.vlgmr.msrb.gmra.mxu1 %v2238_v12  ;;  %v2239_v31 = vrot.slane %v10982_v32, 2  ;;  %v1814_v4 = vrot.slane %v1812_v33, 1  ;;  %v9363_v48 = vld [vmem:[%s10510_s17 + $0x28] sm:$0xff] }
 0x22c   : > { %v10998_v51 = vadd.f32 %v10957_v18, %v1352_v39  ;;  %v13419_v18 = vrot.slane %v10575_v40, 1  ;;  %v2668_v39 = vsel %vm2235_vm2, %v2665_v25, %v2667_v58  ;;  %v2975_v40 = vsel %vm2949_vm3, %v2965_v42, %v2974_v57 }
 0x22d   : > { %v1806_v25 = vrot.slane %v1804_v9, 1  ;;  %v2977_v44 = vshrl.u32 %v9363_v48, 16  ;;  %v2980_v29 = vshll.u32 %v9363_v48, 16  ;;  %v2669_v27 = vrot.slane %v9363_v48, 2 }
 0x22e   : > { %13418 = vst [vmem:[#allocation65_spill] sm:$0xff] %v10998_v51  ;;  %v1523_v2 = vsel %vm1088_vm1, %v1520_v45, %v13419_v18  ;;  %v2240_v45 = vsel %vm2235_vm2, %v2237_v26, %v2239_v31  ;;  %v1821_v9 = vshrl.u32 %v10982_v32, 16 }
 0x22f   : > { %v882_v1 = vpop.f32.mrf.mxu0  ;;  %v1810_v12 = vor.u32 %v1809_v37, %v1806_v25  ;;  %v2979_v41 = vrot.slane %v2977_v44, 2  ;;  %v2982_v42 = vrot.slane %v2980_v29, 3  ;;  %v2670_v52 = vsel %vm2235_vm2, %v2667_v58, %v2669_v27  ;;  %v9402_v58 = vld [vmem:[#allocation6 + $0x230] sm:$0xff]  ;;  %v9364_v37 = vld [vmem:[%s10510_s17 + $0x30] sm:$0xff] }
 0x230   : > { %v1817_v1 = vrot.slane %v1815_v23, 2  ;;  %v1826_v25 = vrot.slane %v1824_v34, 2  ;;  %3494 = vmatpush.bf16.msrb.mxu0 %v9402_v58  ;;  %v2989_v48 = vshll.u32 %v9364_v37, 16 }
 0x231   : > { %v2983_v18 = vor.u32 %v2982_v42, %v2979_v41  ;;  %v10024_v42 = vld [vmem:[%s10510_s17 + $0x28] sm:$0xff] }
 0x232   : > { %v1818_v11 = vor.u32 %v1817_v1, %v1814_v4  ;;  %v2986_v1 = vshrl.u32 %v9364_v37, 16  ;;  %v2991_v32 = vrot.slane %v2989_v48, 3 }
 0x233   : > { %2787 = vmatmul.bf16.gmra.mxu2 %v2668_v39  ;;  %v2984_v33 = vsel %vm2949_vm3, %v2974_v57, %v2983_v18 }
 0x234   : > { %v1819_v26 = vsel %vm1802_vm4, %v1810_v12, %v1818_v11  ;;  %v2671_v12 = vrot.slane %v9364_v37, 2  ;;  %v2988_v44 = vrot.slane %v2986_v1, 2 }
 0x236   : > { %v2992_v41 = vor.u32 %v2991_v32, %v2988_v44 }
 0x237   : > { %v11003_v13 = vpop.f32.mrf.mxu0 }
 0x238   : > { %v2993_v34 = vsel %vm2949_vm3, %v2983_v18, %v2992_v41 }
 0x23a   : > { %1645 = vmatmul.bf16.gmra.mxu0 %v1523_v2  ;;  %v10023_v2 = vld [vmem:[%s10510_s17 + $0x20] sm:$0xff] }
 0x23b   : > { %3220 = vmatmul.bf16.gmra.mxu3 %v2975_v40  ;;  %2359 = vmatmul.bf16.gmra.mxu1 %v2240_v45  ;;  %v2241_v39 = vrot.slane %v10023_v2, 2  ;;  %v1823_v45 = vrot.slane %v1821_v9, 1  ;;  %v1833_v9 = vshll.u32 %v10023_v2, 16 }
 0x23d   : > { %v2242_v23 = vsel %vm2235_vm2, %v2239_v31, %v2241_v39  ;;  %v1827_v4 = vor.u32 %v1826_v25, %v1823_v45  ;;  %v2672_v31 = vsel %vm2235_vm2, %v2669_v27, %v2671_v12  ;;  %v1835_v25 = vrot.slane %v1833_v9, 2 }
 0x23f   : > { %v11016_v20 = vpop.f32.mrf.mxu0  ;;  %v1828_v57 = vsel %vm1802_vm4, %v1818_v11, %v1827_v4  ;;  %v9365_v11 = vld [vmem:[%s10510_s17 + $0x38] sm:$0xff] }
 0x240   : > { %v2995_v58 = vshrl.u32 %v9365_v11, 16  ;;  %v2998_v37 = vshll.u32 %v9365_v11, 16  ;;  %v2673_v1 = vrot.slane %v9365_v11, 2 }
 0x242   : > { %v2997_v48 = vrot.slane %v2995_v58, 2  ;;  %v3000_v44 = vrot.slane %v2998_v37, 3  ;;  %v2674_v32 = vsel %vm2235_vm2, %v2671_v12, %v2673_v1  ;;  %v9366_v58 = vld [vmem:[%s10510_s17 + $0x40] sm:$0xff] }
 0x243   : > { %2792 = vmatmul.bf16.gmra.mxu2 %v2670_v52  ;;  %v1830_v52 = vshrl.u32 %v10023_v2, 16  ;;  %v964_v2 = vadd.f32 %v11003_v13, %v10655_v14  ;;  %v966_v13 = vadd.f32 %v11016_v20, %v10659_v17 }
 0x245   : > { %v1832_v45 = vrot.slane %v1830_v52, 1  ;;  %v10025_v52 = vld [vmem:[%s10510_s17 + $0x30] sm:$0xff] }
 0x246   : > { %v2245_v9 = vrot.slane %v10025_v52, 2 }
 0x247   : > { %v11019_v60 = vpop.f32.mrf.mxu0  ;;  %v1836_v27 = vor.u32 %v1835_v25, %v1832_v45 }
 0x24a   : > { %2068 = vmatmul.bf16.vlgmr.msra.gmra.mxu0 %v1819_v26  ;;  %v2243_v26 = vrot.slane %v10024_v42, 2 }
 0x24b   : > { %3225 = vmatmul.bf16.gmra.mxu3 %v2984_v33  ;;  %2364 = vmatmul.bf16.gmra.mxu1 %v2242_v23 }
 0x24c   : > { %v2244_v33 = vsel %vm2235_vm2, %v2241_v39, %v2243_v26  ;;  %v1837_v39 = vsel %vm1802_vm4, %v1827_v4, %v1836_v27  ;;  %v2246_v14 = vsel %vm2235_vm2, %v2243_v26, %v2245_v9 }
 0x24f   : > { %v11028_v40 = vpop.f32.mrf.mxu0 }
 0x253   : > { %2797 = vmatmul.bf16.gmra.mxu2 %v2672_v31  ;;  %v3001_v31 = vor.u32 %v3000_v44, %v2997_v48  ;;  %v3004_v48 = vshrl.u32 %v9366_v58, 16 }
 0x255   : > { %v3002_v45 = vsel %vm2949_vm3, %v2992_v41, %v3001_v31  ;;  %v3006_v44 = vrot.slane %v3004_v48, 2  ;;  %v969_v41 = vadd.f32 %v11019_v60, %v10667_v28 }
 0x257   : > { %v11031_v29 = vpop.f32.mrf.mxu0 }
 0x25a   : > { %2073 = vmatmul.bf16.gmra.mxu0 %v1828_v57 }
 0x25b   : > { %3230 = vmatmul.bf16.gmra.mxu3 %v2993_v34  ;;  %2369 = vmatmul.bf16.gmra.mxu1 %v2244_v33  ;;  %v1839_v34 = vshrl.u32 %v10024_v42, 16  ;;  %v1842_v33 = vshll.u32 %v10024_v42, 16  ;;  %v2675_v42 = vrot.slane %v9366_v58, 2 }
 0x25d   : > { %v1841_v25 = vrot.slane %v1839_v34, 1  ;;  %v1844_v12 = vrot.slane %v1842_v33, 2  ;;  %v2676_v20 = vsel %vm2235_vm2, %v2673_v1, %v2675_v42  ;;  %v10026_v34 = vld [vmem:[%s10510_s17 + $0x38] sm:$0xff] }
 0x25e   : > { %v2247_v33 = vrot.slane %v10026_v34, 2 }
 0x25f   : > { %v11038_v23 = vpop.f32.mrf.mxu0  ;;  %v1845_v37 = vor.u32 %v1844_v12, %v1841_v25 }
 0x260   : > { %v2248_v60 = vsel %vm2235_vm2, %v2245_v9, %v2247_v33 }
 0x261   : > { %v1846_v17 = vsel %vm1802_vm4, %v1836_v27, %v1845_v37  ;;  %v971_v27 = vadd.f32 %v11028_v40, %v10672_v38 }
 0x263   : > { %2802 = vmatmul.bf16.gmra.mxu2 %v2674_v32 }
 0x267   : > { %v1208_v18 = vpop.f32.mrf.mxu0 }
 0x268   : > { %v11045_v57 = vadd.f32 %v1208_v18, %v964_v2  ;;  %v3007_v2 = vshll.u32 %v9366_v58, 16  ;;  %v9367_v58 = vld [vmem:[%s10510_s17 + $0x48] sm:$0xff] }
 0x26a   : > { %2078 = vmatmul.bf16.gmra.mxu0 %v1837_v39  ;;  %v3009_v26 = vrot.slane %v3007_v2, 3  ;;  %v3013_v2 = vshrl.u32 %v9367_v58, 16 }
 0x26b   : > { %3235 = vmatmul.bf16.gmra.mxu3 %v3002_v45  ;;  %2374 = vmatmul.bf16.gmra.mxu1 %v2246_v14  ;;  %v9401_v45 = vld [vmem:[#allocation6 + $0x228] sm:$0xff]  ;;  %v1848_v14 = vshrl.u32 %v10025_v52, 16 }
 0x26c   : > { %v3010_v32 = vor.u32 %v3009_v26, %v3006_v44  ;;  %3495 = vmatpush.bf16.msrb.mxu0 %v9401_v45  ;;  %v2677_v44 = vrot.slane %v9367_v58, 2 }
 0x26e   : > { %v3011_v28 = vsel %vm2949_vm3, %v3001_v31, %v3010_v32  ;;  %v974_v31 = vadd.f32 %v11031_v29, %v10681_v56  ;;  %v2678_v40 = vsel %vm2235_vm2, %v2675_v42, %v2677_v44  ;;  %v976_v29 = vadd.f32 %v11038_v23, %v10686_v62 }
 0x26f   : > { %v1210_v4 = vpop.f32.mrf.mxu0 }
 0x270   : > { %v11052_v11 = vadd.f32 %v1210_v4, %v966_v13  ;;  %v1851_v13 = vshll.u32 %v10025_v52, 16  ;;  %v1850_v4 = vrot.slane %v1848_v14, 1  ;;  %v3016_v52 = vshll.u32 %v9367_v58, 16 }
 0x271   : > { %v1857_v14 = vshrl.u32 %v10026_v34, 16 }
 0x272   : > { %v1853_v25 = vrot.slane %v1851_v13, 2  ;;  %v3018_v9 = vrot.slane %v3016_v52, 3  ;;  %v1860_v13 = vshll.u32 %v10026_v34, 16 }
 0x273   : > { %2807 = vmatmul.bf16.gmra.mxu2 %v2676_v20  ;;  %v10027_v20 = vld [vmem:[%s10510_s17 + $0x40] sm:$0xff] }
 0x274   : > { %v1854_v48 = vor.u32 %v1853_v25, %v1850_v4  ;;  %v2249_v45 = vrot.slane %v10027_v20, 2  ;;  %v1862_v42 = vrot.slane %v1860_v13, 2 }
 0x276   : > { %v1855_v38 = vsel %vm1802_vm4, %v1845_v37, %v1854_v48  ;;  %v2250_v56 = vsel %vm2235_vm2, %v2247_v33, %v2249_v45 }
 0x277   : > { %v1213_v18 = vpop.f32.mrf.mxu0 }
 0x278   : > { %v11059_v39 = vadd.f32 %v1213_v18, %v969_v41  ;;  %v3015_v41 = vrot.slane %v3013_v2, 2 }
 0x27a   : > { %2083 = vmatmul.bf16.gmra.mxu0 %v1846_v17  ;;  %v3019_v17 = vor.u32 %v3018_v9, %v3015_v41 }
 0x27b   : > { %3240 = vmatmul.bf16.gmra.mxu3 %v3011_v28  ;;  %2379 = vmatmul.bf16.gmra.mxu1 %v2248_v60  ;;  %v1859_v60 = vrot.slane %v1857_v14, 1 }
 0x27c   : > { %v3020_v28 = vsel %vm2949_vm3, %v3010_v32, %v3019_v17 }
 0x27d   : > { %v1863_v4 = vor.u32 %v1862_v42, %v1859_v60 }
 0x27f   : > { %v1215_v1 = vpop.f32.mrf.mxu0  ;;  %v1864_v33 = vsel %vm1802_vm4, %v1854_v48, %v1863_v4 }
 0x280   : > { %v11066_v12 = vadd.f32 %v1215_v1, %v971_v27  ;;  %v9368_v1 = vld [vmem:[%s10510_s17 + $0x50] sm:$0xff] }
 0x281   : > { %v3022_v25 = vshrl.u32 %v9368_v1, 16  ;;  %v3025_v58 = vshll.u32 %v9368_v1, 16  ;;  %v2679_v34 = vrot.slane %v9368_v1, 2 }
 0x283   : > { %2812 = vmatmul.bf16.gmra.mxu2 %v2678_v40  ;;  %v3024_v2 = vrot.slane %v3022_v25, 2  ;;  %v3027_v32 = vrot.slane %v3025_v58, 3  ;;  %v2680_v62 = vsel %vm2235_vm2, %v2677_v44, %v2679_v34 }
 0x285   : > { %v3028_v41 = vor.u32 %v3027_v32, %v3024_v2  ;;  %v10029_v2 = vld [vmem:[%s10510_s17 + $0x50] sm:$0xff] }
 0x286   : > { %v2253_v32 = vrot.slane %v10029_v2, 2 }
 0x287   : > { %v1218_v26 = vpop.f32.mrf.mxu0  ;;  %v3029_v40 = vsel %vm2949_vm3, %v3019_v17, %v3028_v41 }
 0x288   : > { %v11073_v18 = vadd.f32 %v1218_v26, %v974_v31  ;;  %v10028_v31 = vld [vmem:[%s10510_s17 + $0x48] sm:$0xff]  ;;  %v1866_v26 = vshrl.u32 %v10027_v20, 16 }
 0x289   : > { %v2251_v9 = vrot.slane %v10028_v31, 2 }
 0x28a   : > { %2088 = vmatmul.bf16.gmra.mxu0 %v1855_v38  ;;  %v1869_v38 = vshll.u32 %v10027_v20, 16 }
 0x28b   : > { %3245 = vmatmul.bf16.gmra.mxu3 %v3020_v28  ;;  %2384 = vmatmul.bf16.gmra.mxu1 %v2250_v56  ;;  %v2252_v14 = vsel %vm2235_vm2, %v2249_v45, %v2251_v9  ;;  %v1868_v28 = vrot.slane %v1866_v26, 1 }
 0x28c   : > { %v1871_v48 = vrot.slane %v1869_v38, 2 }
 0x28e   : > { %v1872_v56 = vor.u32 %v1871_v48, %v1868_v28 }
 0x28f   : > { %v1220_v37 = vpop.f32.mrf.mxu0 }
 0x290   : > { %v11080_v27 = vadd.f32 %v1220_v37, %v976_v29  ;;  %v1873_v17 = vsel %vm1802_vm4, %v1863_v4, %v1872_v56 }
 0x293   : > { %2817 = vmatmul.bf16.gmra.mxu2 %v2680_v62 }
 0x297   : > { %v1636_v52 = vpop.f32.mrf.mxu0 }
 0x298   : > { %v11086_v23 = vadd.f32 %v1636_v52, %v11045_v57  ;;  %v9369_v57 = vld [vmem:[%s10510_s17 + $0x58] sm:$0xff]  ;;  %v1875_v52 = vshrl.u32 %v10028_v31, 16 }
 0x299   : > { %v3031_v29 = vshrl.u32 %v9369_v57, 16  ;;  %v3034_v37 = vshll.u32 %v9369_v57, 16  ;;  %v2681_v60 = vrot.slane %v9369_v57, 2 }
 0x29a   : > { %2093 = vmatmul.bf16.gmra.mxu0 %v1864_v33  ;;  %v1878_v33 = vshll.u32 %v10028_v31, 16 }
 0x29b   : > { %3250 = vmatmul.bf16.gmra.mxu3 %v3029_v40  ;;  %2389 = vmatmul.bf16.gmra.mxu1 %v2252_v14  ;;  %v3033_v42 = vrot.slane %v3031_v29, 2  ;;  %v3036_v20 = vrot.slane %v3034_v37, 3  ;;  %v2682_v45 = vsel %vm2235_vm2, %v2679_v34, %v2681_v60  ;;  %v2254_v34 = vsel %vm2235_vm2, %v2251_v9, %v2253_v32 }
 0x29c   : > { %v1880_v40 = vrot.slane %v1878_v33, 2  ;;  %v1884_v33 = vshrl.u32 %v10029_v2, 16 }
 0x29d   : > { %v3037_v58 = vor.u32 %v3036_v20, %v3033_v42 }
 0x29f   : > { %v1638_v13 = vpop.f32.mrf.mxu0  ;;  %v3038_v4 = vsel %vm2949_vm3, %v3028_v41, %v3037_v58 }
 0x2a0   : > { %v11092_v44 = vadd.f32 %v1638_v13, %v11052_v11  ;;  %v9400_v11 = vld [vmem:[#allocation6 + $0x220] sm:$0xff]  ;;  %v9370_v13 = vld [vmem:[%s10510_s17 + $0x60] sm:$0xff] }
 0x2a1   : > { %3496 = vmatpush.bf16.msrb.mxu0 %v9400_v11  ;;  %v3040_v57 = vshrl.u32 %v9370_v13, 16  ;;  %v3043_v29 = vshll.u32 %v9370_v13, 16  ;;  %v2683_v41 = vrot.slane %v9370_v13, 2  ;;  %v10030_v11 = vld [vmem:[%s10510_s17 + $0x58] sm:$0xff] }
 0x2a2   : > { %v1893_v7 = vshrl.u32 %v10030_v11, 16  ;;  %v1896_v16 = vshll.u32 %v10030_v11, 16 }
 0x2a3   : > { %2822 = vmatmul.bf16.gmra.mxu2 %v2682_v45  ;;  %v3042_v42 = vrot.slane %v3040_v57, 2  ;;  %v3045_v9 = vrot.slane %v3043_v29, 3  ;;  %v9371_v29 = vld [vmem:[%s10510_s17 + $0x68] sm:$0xff] }
 0x2a5   : > { %v3046_v45 = vor.u32 %v3045_v9, %v3042_v42 }
 0x2a6   : > { %v11101_v62 = vpop.f32.mrf.mxu2 }
 0x2a7   : > { %v1641_v1 = vpop.f32.mrf.mxu0 }
 0x2a8   : > { %v11098_v25 = vadd.f32 %v1641_v1, %v11059_v39  ;;  %v2355_v26 = vpop.f32.mrf.mxu1  ;;  %v1877_v39 = vrot.slane %v1875_v52, 1  ;;  %v2255_v52 = vrot.slane %v10030_v11, 2  ;;  %v9372_v11 = vld [vmem:[%s10510_s17 + $0x70] sm:$0xff] }
 0x2aa   : > { %2098 = vmatmul.bf16.gmra.mxu0 %v1873_v17  ;;  %v1881_v28 = vor.u32 %v1880_v40, %v1877_v39 }
 0x2ab   : > { %3255 = vmatmul.bf16.gmra.mxu3 %v3038_v4  ;;  %2394 = vmatmul.bf16.gmra.mxu1 %v2254_v34  ;;  %v1887_v4 = vshll.u32 %v10029_v2, 16 }
 0x2ac   : > { %v1882_v1 = vsel %vm1802_vm4, %v1872_v56, %v1881_v28  ;;  %v3047_v56 = vsel %vm2949_vm3, %v3037_v58, %v3046_v45 }
 0x2ad   : > { %v1889_v13 = vrot.slane %v1887_v4, 2 }
 0x2ae   : > { %v3216_v31 = vpop.f32.mrf.mxu3  ;;  %v11109_v48 = vpop.f32.mrf.mxu2 }
 0x2af   : > { %v1643_v38 = vpop.f32.mrf.mxu0 }
 0x2b0   : > { %v11106_v14 = vadd.f32 %v1643_v38, %v11066_v12  ;;  %v2357_v37 = vpop.f32.mrf.mxu1  ;;  %v2684_v12 = vsel %vm2235_vm2, %v2681_v60, %v2683_v41  ;;  %v2256_v60 = vsel %vm2235_vm2, %v2253_v32, %v2255_v52  ;;  %v2685_v32 = vrot.slane %v9371_v29, 2 }
 0x2b3   : > { %2827 = vmatmul.bf16.gmra.mxu2 %v2684_v12 }
 0x2b6   : > { %v3218_v34 = vpop.f32.mrf.mxu3  ;;  %v11117_v38 = vpop.f32.mrf.mxu2 }
 0x2b7   : > { %v1646_v20 = vpop.f32.mrf.mxu0 }
 0x2b8   : > { %v11114_v17 = vadd.f32 %v1646_v20, %v11073_v18  ;;  %v11119_v39 = vpop.f32.mrf.mxu1  ;;  %v1886_v18 = vrot.slane %v1884_v33, 1  ;;  %v3049_v20 = vshrl.u32 %v9371_v29, 16 }
 0x2ba   : > { %2103 = vmatmul.bf16.gmra.mxu0 %v1882_v1  ;;  %v1890_v2 = vor.u32 %v1889_v13, %v1886_v18  ;;  %v3052_v1 = vshll.u32 %v9371_v29, 16  ;;  %v3051_v12 = vrot.slane %v3049_v20, 2  ;;  %v10031_v18 = vld [vmem:[%s10510_s17 + $0x60] sm:$0xff] }
 0x2bb   : > { %3260 = vmatmul.bf16.gmra.mxu3 %v3047_v56  ;;  %2399 = vmatmul.bf16.gmra.mxu1 %v2256_v60  ;;  %v2686_v56 = vsel %vm2235_vm2, %v2683_v41, %v2685_v32  ;;  %v2257_v13 = vrot.slane %v10031_v18, 2 }
 0x2bc   : > { %v3054_v33 = vrot.slane %v3052_v1, 3 }
 0x2be   : > { %v11127_v42 = vpop.f32.mrf.mxu3  ;;  %v11129_v9 = vpop.f32.mrf.mxu2 }
 0x2bf   : > { %v1648_v40 = vpop.f32.mrf.mxu0 }
 0x2c0   : > { %v11124_v57 = vadd.f32 %v1648_v40, %v11080_v27  ;;  %v11131_v58 = vpop.f32.mrf.mxu1  ;;  %v1891_v27 = vsel %vm1802_vm4, %v1881_v28, %v1890_v2  ;;  %v3055_v40 = vor.u32 %v3054_v33, %v3051_v12  ;;  %v1898_v33 = vrot.slane %v1896_v16, 2 }
 0x2c1   : > { %v2687_v16 = vrot.slane %v9372_v11, 2 }
 0x2c2   : > { %v3056_v41 = vsel %vm2949_vm3, %v3046_v45, %v3055_v40  ;;  %v3058_v45 = vshrl.u32 %v9372_v11, 16 }
 0x2c3   : > { %2832 = vmatmul.bf16.gmra.mxu2 %v2686_v56  ;;  %v9399_v56 = vld [vmem:[#allocation6 + $0x218] sm:$0xff] }
 0x2c4   : > { %3497 = vmatpush.bf16.msrb.mxu0 %v9399_v56 }
 0x2c6   : > { %v11137_v54 = vpop.f32.mrf.mxu3  ;;  %v11139_v29 = vpop.f32.mrf.mxu2 }
 0x2c7   : > { %v2069_v4 = vpop.f32.mrf.mxu0 }
 0x2c8   : > { %v2173_v60 = vadd.f32 %v2069_v4, %v11086_v23  ;;  %v11142_v28 = vpop.f32.mrf.mxu1  ;;  %v2258_v23 = vsel %vm2235_vm2, %v2255_v52, %v2257_v13  ;;  %v3061_v52 = vshll.u32 %v9372_v11, 16  ;;  %v1902_v11 = vshrl.u32 %v10031_v18, 16 }
 0x2ca   : > { %v2459_v51 = vadd.f32 %v2355_v26, %v2173_v60  ;;  %2108 = vmatmul.bf16.gmra.mxu0 %v1891_v27  ;;  %v1895_v26 = vrot.slane %v1893_v7, 1 }
 0x2cb   : > { %3265 = vmatmul.bf16.gmra.mxu3 %v3056_v41  ;;  %2404 = vmatmul.bf16.gmra.mxu1 %v2258_v23  ;;  %v3063_v41 = vrot.slane %v3061_v52, 3 }
 0x2cc   : > { %v2887_v20 = vadd.f32 %v11101_v62, %v2459_v51  ;;  %v1899_v60 = vor.u32 %v1898_v33, %v1895_v26 }
 0x2ce   : > { %v11146_v1 = vadd.f32 %v3216_v31, %v2887_v20  ;;  %v11150_v51 = vpop.f32.mrf.mxu3  ;;  %v11152_v62 = vpop.f32.mrf.mxu2  ;;  %v1900_v23 = vsel %vm1802_vm4, %v1890_v2, %v1899_v60 }
 0x2cf   : > { %v2071_v12 = vpop.f32.mrf.mxu0 }
 0x2d0   : > { %13420 = vst [vmem:[#allocation66_spill] sm:$0xff] %v11146_v1  ;;  %v2174_v4 = vadd.f32 %v2071_v12, %v11092_v44  ;;  %v11155_v7 = vpop.f32.mrf.mxu1  ;;  %v3060_v44 = vrot.slane %v3058_v45, 2  ;;  %v2688_v12 = vsel %vm2235_vm2, %v2685_v32, %v2687_v16 }
 0x2d2   : > { %v2460_v27 = vadd.f32 %v2357_v37, %v2174_v4  ;;  %v3064_v33 = vor.u32 %v3063_v41, %v3060_v44  ;;  %v10032_v4 = vld [vmem:[%s10510_s17 + $0x68] sm:$0xff]  ;;  %v9373_v41 = vld [vmem:[%s10510_s17 + $0x78] sm:$0xff] }
 0x2d3   : > { %2837 = vmatmul.bf16.gmra.mxu2 %v2688_v12  ;;  %v2259_v1 = vrot.slane %v10032_v4, 2 }
 0x2d4   : > { %v2888_v31 = vadd.f32 %v11109_v48, %v2460_v27  ;;  %v1905_v27 = vshll.u32 %v10031_v18, 16 }
 0x2d5   : > { %v2260_v32 = vsel %vm2235_vm2, %v2257_v13, %v2259_v1  ;;  %v3067_v13 = vshrl.u32 %v9373_v41, 16 }
 0x2d6   : > { %v11157_v20 = vadd.f32 %v3218_v34, %v2888_v31  ;;  %v11164_v34 = vpop.f32.mrf.mxu3  ;;  %v11166_v56 = vpop.f32.mrf.mxu2  ;;  %v1904_v31 = vrot.slane %v1902_v11, 1  ;;  %v1907_v44 = vrot.slane %v1905_v27, 2 }
 0x2d7   : > { %v2074_v37 = vpop.f32.mrf.mxu0  ;;  %v3069_v27 = vrot.slane %v3067_v13, 2 }
 0x2d8   : > { %v2175_v26 = vadd.f32 %v2074_v37, %v11098_v25  ;;  %v11169_v45 = vpop.f32.mrf.mxu1  ;;  %v3065_v25 = vsel %vm2949_vm3, %v3055_v40, %v3064_v33 }
 0x2da   : > { %v2461_v48 = vadd.f32 %v11119_v39, %v2175_v26  ;;  %2113 = vmatmul.bf16.gmra.mxu0 %v1900_v23  ;;  %v1908_v23 = vor.u32 %v1907_v44, %v1904_v31  ;;  %v3070_v26 = vshll.u32 %v9373_v41, 16 }
 0x2db   : > { %3270 = vmatmul.bf16.gmra.mxu3 %v3065_v25  ;;  %2409 = vmatmul.bf16.gmra.mxu1 %v2260_v32 }
 0x2dc   : > { %v2889_v2 = vadd.f32 %v11117_v38, %v2461_v48  ;;  %v9411_v38 = vld [vmem:[#allocation8 + $0x38] sm:$0xff]  ;;  %v3072_v25 = vrot.slane %v3070_v26, 3 }
 0x2dd   : > { %4522 = vmatpush.bf16.msra.mxu2 %v9411_v38  ;;  %v9445_v48 = vld [vmem:[#allocation8 + $0xb8] sm:$0xff]  ;;  %v1914_v38 = vshll.u32 %v10032_v4, 16 }
 0x2de   : > { %v11174_v52 = vadd.f32 %v11127_v42, %v2889_v2  ;;  %v11179_v12 = vpop.f32.mrf.mxu3  ;;  %v11181_v40 = vpop.f32.mrf.mxu2  ;;  %4982 = vmatpush.bf16.msra.mxu3 %v9445_v48  ;;  %v3073_v44 = vor.u32 %v3072_v25, %v3069_v27  ;;  %v9374_v25 = vld [vmem:[%s10510_s17 + $0x80] sm:$0xff] }
 0x2df   : > { %v2076_v39 = vpop.f32.mrf.mxu0 }
 0x2e0   : > { %v2176_v18 = vadd.f32 %v2076_v39, %v11106_v14  ;;  %v11184_v11 = vpop.f32.mrf.mxu1  ;;  %v2689_v14 = vrot.slane %v9373_v41, 2  ;;  %v1909_v39 = vsel %vm1802_vm4, %v1899_v60, %v1908_v23 }
 0x2e2   : > { %v2462_v37 = vadd.f32 %v11131_v58, %v2176_v18  ;;  %v9419_v58 = vld [vmem:[#allocation8 + $0x78] sm:$0xff]  ;;  %v2690_v31 = vsel %vm2235_vm2, %v2687_v16, %v2689_v14 }
 0x2e3   : > { %4165 = vmatpush.bf16.msra.mxu1 %v9419_v58  ;;  %2842 = vmatmul.bf16.gmra.mxu2 %v2690_v31  ;;  %v10033_v18 = vld [vmem:[%s10510_s17 + $0x70] sm:$0xff]  ;;  %v1916_v58 = vrot.slane %v1914_v38, 2  ;;  %v3079_v31 = vshll.u32 %v9374_v25, 16 }
 0x2e4   : > { %v2890_v42 = vadd.f32 %v11129_v9, %v2462_v37  ;;  %v2261_v37 = vrot.slane %v10033_v18, 2 }
 0x2e5   : > { %v3081_v38 = vrot.slane %v3079_v31, 3 }
 0x2e6   : > { %v11187_v2 = vadd.f32 %v11137_v54, %v2890_v42  ;;  %v1911_v54 = vshrl.u32 %v10032_v4, 16  ;;  %v11194_v13 = vpop.f32.mrf.mxu3  ;;  %v11196_v26 = vpop.f32.mrf.mxu2  ;;  %v2262_v42 = vsel %vm2235_vm2, %v2259_v1, %v2261_v37  ;;  %v3076_v1 = vshrl.u32 %v9374_v25, 16 }
 0x2e7   : > { %v2079_v32 = vpop.f32.mrf.mxu0 }
 0x2e8   : > { %v2177_v9 = vadd.f32 %v2079_v32, %v11114_v17  ;;  %v11199_v16 = vpop.f32.mrf.mxu1  ;;  %v3074_v17 = vsel %vm2949_vm3, %v3064_v33, %v3073_v44  ;;  %v1913_v27 = vrot.slane %v1911_v54, 1  ;;  %v3078_v54 = vrot.slane %v3076_v1, 2  ;;  %v9398_v1 = vld [vmem:[#allocation6 + $0x210] sm:$0xff] }
 0x2e9   : > { %3498 = vmatpush.bf16.msrb.mxu0 %v9398_v1 }
 0x2ea   : > { %v2463_v41 = vadd.f32 %v11142_v28, %v2177_v9  ;;  %2118 = vmatmul.bf16.gmra.mxu0 %v1909_v39 }
 0x2eb   : > { %3275 = vmatmul.bf16.gmra.mxu3 %v3074_v17  ;;  %2414 = vmatmul.bf16.gmra.mxu1 %v2262_v42 }
 0x2ec   : > { %v2891_v60 = vadd.f32 %v11139_v29, %v2463_v41  ;;  %v1917_v29 = vor.u32 %v1916_v58, %v1913_v27  ;;  %v2691_v41 = vrot.slane %v9374_v25, 2  ;;  %v10034_v27 = vld [vmem:[%s10510_s17 + $0x78] sm:$0xff]  ;;  %v1923_v25 = vshll.u32 %v10033_v18, 16 }
 0x2ed   : > { %v2263_v58 = vrot.slane %v10034_v27, 2 }
 0x2ee   : > { %v11204_v48 = vadd.f32 %v11150_v51, %v2891_v60  ;;  %v11209_v39 = vpop.f32.mrf.mxu3  ;;  %v11211_v33 = vpop.f32.mrf.mxu2  ;;  %v2692_v17 = vsel %vm2235_vm2, %v2689_v14, %v2691_v41 }
 0x2ef   : > { %v2081_v28 = vpop.f32.mrf.mxu0  ;;  %v2264_v31 = vsel %vm2235_vm2, %v2261_v37, %v2263_v58 }
 0x2f0   : > { %v2178_v4 = vadd.f32 %v2081_v28, %v11124_v57  ;;  %v11214_v9 = vpop.f32.mrf.mxu1  ;;  %v3082_v28 = vor.u32 %v3081_v38, %v3078_v54  ;;  %v1925_v54 = vrot.slane %v1923_v25, 2 }
 0x2f2   : > { %v2464_v32 = vadd.f32 %v11155_v7, %v2178_v4  ;;  %v1918_v7 = vsel %vm1802_vm4, %v1908_v23, %v1917_v29  ;;  %v1920_v4 = vshrl.u32 %v10033_v18, 16 }
 0x2f3   : > { %2847 = vmatmul.bf16.gmra.mxu2 %v2692_v17 }
 0x2f4   : > { %v2892_v51 = vadd.f32 %v11152_v62, %v2464_v32  ;;  %v1922_v18 = vrot.slane %v1920_v4, 1 }
 0x2f6   : > { %v11217_v57 = vadd.f32 %v11164_v34, %v2892_v51  ;;  %v11224_v34 = vpop.f32.mrf.mxu3  ;;  %v11226_v32 = vpop.f32.mrf.mxu2 }
 0x2f7   : > { %v2084_v60 = vpop.f32.mrf.mxu0 }
 0x2f8   : > { %v2179_v42 = vadd.f32 %v2084_v60, %v10699_v22  ;;  %v11229_v14 = vpop.f32.mrf.mxu1  ;;  %v3083_v22 = vsel %vm2949_vm3, %v3073_v44, %v3082_v28  ;;  %v9375_v60 = vld [vmem:[%s10510_s17 + $0x88] sm:$0xff] }
 0x2f9   : > { %v3085_v37 = vshrl.u32 %v9375_v60, 16  ;;  %v2693_v4 = vrot.slane %v9375_v60, 2 }
 0x2fa   : > { %v2465_v62 = vadd.f32 %v11169_v45, %v2179_v42  ;;  %2123 = vmatmul.bf16.gmra.mxu0 %v1918_v7  ;;  %v1926_v7 = vor.u32 %v1925_v54, %v1922_v18  ;;  %v10035_v18 = vld [vmem:[%s10510_s17 + $0x80] sm:$0xff] }
 0x2fb   : > { %3280 = vmatmul.bf16.gmra.mxu3 %v3083_v22  ;;  %2419 = vmatmul.bf16.gmra.mxu1 %v2264_v31  ;;  %v3087_v25 = vrot.slane %v3085_v37, 2  ;;  %v2694_v22 = vsel %vm2235_vm2, %v2691_v41, %v2693_v4  ;;  %v2265_v54 = vrot.slane %v10035_v18, 2 }
 0x2fc   : > { %v2893_v23 = vadd.f32 %v11166_v56, %v2465_v62 }
 0x2fe   : > { %v11234_v51 = vadd.f32 %v11179_v12, %v2893_v23  ;;  %v11239_v17 = vpop.f32.mrf.mxu3  ;;  %v11241_v44 = vpop.f32.mrf.mxu2  ;;  %v3088_v12 = vshll.u32 %v9375_v60, 16  ;;  %v1932_v60 = vshll.u32 %v10034_v27, 16 }
 0x2ff   : > { %v2086_v45 = vpop.f32.mrf.mxu0 }
 0x300   : > { %v2180_v38 = vadd.f32 %v2086_v45, %v10710_v36  ;;  %v11244_v62 = vpop.f32.mrf.mxu1  ;;  %v3090_v23 = vrot.slane %v3088_v12, 3  ;;  %v2266_v12 = vsel %vm2235_vm2, %v2263_v58, %v2265_v54 }
 0x302   : > { %v2466_v56 = vadd.f32 %v11184_v11, %v2180_v38  ;;  %v1927_v11 = vsel %vm1802_vm4, %v1917_v29, %v1926_v7  ;;  %v3091_v45 = vor.u32 %v3090_v23, %v3087_v25  ;;  %v1929_v38 = vshrl.u32 %v10034_v27, 16  ;;  %v9410_v29 = vld [vmem:[#allocation8 + $0x30] sm:$0xff] }
 0x303   : > { %2852 = vmatmul.bf16.gmra.mxu2 %v2694_v22  ;;  %v1934_v23 = vrot.slane %v1932_v60, 2 }
 0x304   : > { %v2894_v42 = vadd.f32 %v11181_v40, %v2466_v56  ;;  %4523 = vmatpush.bf16.msra.mxu2 %v9410_v29  ;;  %v1931_v25 = vrot.slane %v1929_v38, 1 }
 0x306   : > { %v11247_v36 = vadd.f32 %v11194_v13, %v2894_v42  ;;  %v11254_v56 = vpop.f32.mrf.mxu3  ;;  %v11256_v13 = vpop.f32.mrf.mxu2 }
 0x307   : > { %v2089_v1 = vpop.f32.mrf.mxu0 }
 0x308   : > { %v2181_v31 = vadd.f32 %v2089_v1, %v10716_v0  ;;  %v11259_v41 = vpop.f32.mrf.mxu1  ;;  %v3092_v0 = vsel %vm2949_vm3, %v3082_v28, %v3091_v45  ;;  %v1935_v28 = vor.u32 %v1934_v23, %v1931_v25  ;;  %v10036_v23 = vld [vmem:[%s10510_s17 + $0x88] sm:$0xff] }
 0x30a   : > { %v2467_v40 = vadd.f32 %v11199_v16, %v2181_v31  ;;  %2128 = vmatmul.bf16.gmra.mxu0 %v1927_v11  ;;  %v9444_v16 = vld [vmem:[#allocation8 + $0xb0] sm:$0xff]  ;;  %v9376_v11 = vld [vmem:[%s10510_s17 + $0x90] sm:$0xff] }
 0x30b   : > { %3285 = vmatmul.bf16.gmra.mxu3 %v3092_v0  ;;  %2424 = vmatmul.bf16.gmra.mxu1 %v2266_v12  ;;  %v3094_v31 = vshrl.u32 %v9376_v11, 16  ;;  %v1936_v12 = vsel %vm1802_vm4, %v1926_v7, %v1935_v28 }
 0x30c   : > { %v2895_v37 = vadd.f32 %v11196_v26, %v2467_v40  ;;  %v9418_v26 = vld [vmem:[#allocation8 + $0x70] sm:$0xff]  ;;  %4983 = vmatpush.bf16.msra.mxu3 %v9444_v16  ;;  %v3097_v40 = vshll.u32 %v9376_v11, 16 }
 0x30d   : > { %4166 = vmatpush.bf16.msra.mxu1 %v9418_v26  ;;  %v1938_v26 = vshrl.u32 %v10035_v18, 16 }
 0x30e   : > { %v11264_v42 = vadd.f32 %v11209_v39, %v2895_v37  ;;  %v11269_v58 = vpop.f32.mrf.mxu3  ;;  %v11271_v39 = vpop.f32.mrf.mxu2  ;;  %v3096_v37 = vrot.slane %v3094_v31, 2  ;;  %v3099_v0 = vrot.slane %v3097_v40, 3 }
 0x30f   : > { %v2091_v27 = vpop.f32.mrf.mxu0 }
 0x310   : > { %v2182_v1 = vadd.f32 %v2091_v27, %v10727_v61  ;;  %v11274_v60 = vpop.f32.mrf.mxu1  ;;  %v2695_v61 = vrot.slane %v9376_v11, 2  ;;  %v3100_v25 = vor.u32 %v3099_v0, %v3096_v37  ;;  %v1941_v11 = vshll.u32 %v10035_v18, 16  ;;  %v9377_v0 = vld [vmem:[%s10510_s17 + $0x98] sm:$0xff] }
 0x312   : > { %v2468_v22 = vadd.f32 %v11214_v9, %v2182_v1  ;;  %v2696_v16 = vsel %vm2235_vm2, %v2693_v4, %v2695_v61  ;;  %v2267_v1 = vrot.slane %v10036_v23, 2  ;;  %v1943_v37 = vrot.slane %v1941_v11, 2  ;;  %v9397_v11 = vld [vmem:[#allocation6 + $0x208] sm:$0xff] }
 0x313   : > { %2857 = vmatmul.bf16.gmra.mxu2 %v2696_v16  ;;  %3499 = vmatpush.bf16.msrb.mxu0 %v9397_v11 }
 0x314   : > { %v2896_v38 = vadd.f32 %v11211_v33, %v2468_v22  ;;  %v2268_v4 = vsel %vm2235_vm2, %v2265_v54, %v2267_v1  ;;  %v3106_v54 = vshll.u32 %v9377_v0, 16 }
 0x316   : > { %v11277_v29 = vadd.f32 %v11224_v34, %v2896_v38  ;;  %v11284_v34 = vpop.f32.mrf.mxu3  ;;  %v11286_v22 = vpop.f32.mrf.mxu2  ;;  %v1940_v38 = vrot.slane %v1938_v26, 1 }
 0x317   : > { %v2094_v9 = vpop.f32.mrf.mxu0 }
 0x318   : > { %v2183_v27 = vadd.f32 %v2094_v9, %v10733_v50  ;;  %v11289_v31 = vpop.f32.mrf.mxu1  ;;  %v3101_v50 = vsel %vm2949_vm3, %v3091_v45, %v3100_v25  ;;  %v3103_v45 = vshrl.u32 %v9377_v0, 16 }
 0x31a   : > { %v2469_v33 = vadd.f32 %v11229_v14, %v2183_v27  ;;  %2133 = vmatmul.bf16.gmra.mxu0 %v1936_v12  ;;  %v3105_v26 = vrot.slane %v3103_v45, 2 }
 0x31b   : > { %3290 = vmatmul.bf16.gmra.mxu3 %v3101_v50  ;;  %2429 = vmatmul.bf16.gmra.mxu1 %v2268_v4 }
 0x31c   : > { %v2897_v7 = vadd.f32 %v11226_v32, %v2469_v33  ;;  %v1944_v32 = vor.u32 %v1943_v37, %v1940_v38  ;;  %v2697_v33 = vrot.slane %v9377_v0, 2  ;;  %v1950_v0 = vshll.u32 %v10036_v23, 16 }
 0x31e   : > { %v11294_v40 = vadd.f32 %v11239_v17, %v2897_v7  ;;  %v11299_v12 = vpop.f32.mrf.mxu3  ;;  %v11301_v16 = vpop.f32.mrf.mxu2  ;;  %v3108_v7 = vrot.slane %v3106_v54, 3  ;;  %v1945_v50 = vsel %vm1802_vm4, %v1935_v28, %v1944_v32  ;;  %v2698_v4 = vsel %vm2235_vm2, %v2695_v61, %v2697_v33 }
 0x31f   : > { %v2096_v14 = vpop.f32.mrf.mxu0  ;;  %v1952_v11 = vrot.slane %v1950_v0, 2  ;;  %v9409_v0 = vld [vmem:[#allocation8 + $0x28] sm:$0xff] }
 0x320   : > { %v2184_v18 = vadd.f32 %v2096_v14, %v10745_v21  ;;  %v11304_v27 = vpop.f32.mrf.mxu1  ;;  %v3109_v38 = vor.u32 %v3108_v7, %v3105_v26  ;;  %v9378_v7 = vld [vmem:[%s10510_s17 + $0xa0] sm:$0xff]  ;;  %4524 = vmatpush.bf16.msra.mxu2 %v9409_v0 }
 0x322   : > { %v2470_v9 = vadd.f32 %v11244_v62, %v2184_v18 }
 0x323   : > { %2862 = vmatmul.bf16.gmra.mxu2 %v2698_v4 }
 0x324   : > { %v2898_v17 = vadd.f32 %v11241_v44, %v2470_v9  ;;  %v10037_v44 = vld [vmem:[%s10510_s17 + $0x90] sm:$0xff] }
 0x325   : > { %v2269_v37 = vrot.slane %v10037_v44, 2 }
 0x326   : > { %v11307_v21 = vadd.f32 %v11254_v56, %v2898_v17  ;;  %v1947_v56 = vshrl.u32 %v10036_v23, 16  ;;  %v11314_v9 = vpop.f32.mrf.mxu3  ;;  %v11316_v45 = vpop.f32.mrf.mxu2 }
 0x327   : > { %v2099_v62 = vpop.f32.mrf.mxu0  ;;  %v2270_v54 = vsel %vm2235_vm2, %v2267_v1, %v2269_v37  ;;  %v3115_v1 = vshll.u32 %v9378_v7, 16 }
 0x328   : > { %v2185_v14 = vadd.f32 %v2099_v62, %v10751_v24  ;;  %v11319_v61 = vpop.f32.mrf.mxu1  ;;  %v3110_v24 = vsel %vm2949_vm3, %v3100_v25, %v3109_v38  ;;  %v1949_v26 = vrot.slane %v1947_v56, 1  ;;  %v3112_v25 = vshrl.u32 %v9378_v7, 16 }
 0x32a   : > { %v2471_v18 = vadd.f32 %v11259_v41, %v2185_v14  ;;  %2138 = vmatmul.bf16.gmra.mxu0 %v1945_v50  ;;  %v3114_v56 = vrot.slane %v3112_v25, 2  ;;  %v1959_v25 = vshll.u32 %v10037_v44, 16 }
 0x32b   : > { %3295 = vmatmul.bf16.gmra.mxu3 %v3110_v24  ;;  %2434 = vmatmul.bf16.gmra.mxu1 %v2270_v54 }
 0x32c   : > { %v2899_v28 = vadd.f32 %v11256_v13, %v2471_v18  ;;  %v1953_v13 = vor.u32 %v1952_v11, %v1949_v26  ;;  %v2699_v18 = vrot.slane %v9378_v7, 2  ;;  %v9443_v26 = vld [vmem:[#allocation8 + $0xa8] sm:$0xff] }
 0x32d   : > { %v10038_v11 = vld [vmem:[%s10510_s17 + $0x98] sm:$0xff]  ;;  %4984 = vmatpush.bf16.msra.mxu3 %v9443_v26 }
 0x32e   : > { %v11324_v17 = vadd.f32 %v11269_v58, %v2899_v28  ;;  %v11329_v50 = vpop.f32.mrf.mxu3  ;;  %v11331_v4 = vpop.f32.mrf.mxu2  ;;  %v3117_v28 = vrot.slane %v3115_v1, 3  ;;  %v1954_v24 = vsel %vm1802_vm4, %v1944_v32, %v1953_v13  ;;  %v2700_v54 = vsel %vm2235_vm2, %v2697_v33, %v2699_v18 }
 0x32f   : > { %v2101_v41 = vpop.f32.mrf.mxu0 }
 0x330   : > { %v2186_v23 = vadd.f32 %v2101_v41, %v10767_v43  ;;  %v11334_v14 = vpop.f32.mrf.mxu1 }
 0x332   : > { %v2472_v62 = vadd.f32 %v11274_v60, %v2186_v23  ;;  %v2271_v23 = vrot.slane %v10038_v11, 2 }
 0x333   : > { %2867 = vmatmul.bf16.gmra.mxu2 %v2700_v54 }
 0x334   : > { %v2900_v58 = vadd.f32 %v11271_v39, %v2472_v62  ;;  %v3118_v39 = vor.u32 %v3117_v28, %v3114_v56  ;;  %v1956_v62 = vshrl.u32 %v10037_v44, 16  ;;  %v2272_v56 = vsel %vm2235_vm2, %v2269_v37, %v2271_v23 }
 0x336   : > { %v11337_v43 = vadd.f32 %v11284_v34, %v2900_v58  ;;  %v9417_v34 = vld [vmem:[#allocation8 + $0x68] sm:$0xff]  ;;  %v11344_v1 = vpop.f32.mrf.mxu3  ;;  %v11346_v32 = vpop.f32.mrf.mxu2  ;;  %v3119_v58 = vsel %vm2949_vm3, %v3109_v38, %v3118_v39  ;;  %v1958_v28 = vrot.slane %v1956_v62, 1 }
 0x337   : > { %v2104_v60 = vpop.f32.mrf.mxu0  ;;  %4167 = vmatpush.bf16.msra.mxu1 %v9417_v34 }
 0x338   : > { %v2187_v41 = vadd.f32 %v2104_v60, %v10779_v6  ;;  %v11349_v33 = vpop.f32.mrf.mxu1  ;;  %v1961_v60 = vrot.slane %v1959_v25, 2 }
 0x33a   : > { %v2473_v7 = vadd.f32 %v11289_v31, %v2187_v41  ;;  %2143 = vmatmul.bf16.gmra.mxu0 %v1954_v24  ;;  %v11358_v24 = vld [vmem:[%s10510_s17 + $0xa8] sm:$0xff]  ;;  %v11361_v54 = vor.u32 %v1961_v60, %v1958_v28  ;;  %v1965_v60 = vshrl.u32 %v10038_v11, 16 }
 0x33b   : > { %3300 = vmatmul.bf16.gmra.mxu3 %v3119_v58  ;;  %2439 = vmatmul.bf16.gmra.mxu1 %v2272_v56  ;;  %v3124_v37 = vshll.u32 %v11358_v24, 16 }
 0x33c   : > { %v2901_v6 = vadd.f32 %v11286_v22, %v2473_v7  ;;  %v2701_v7 = vrot.slane %v11358_v24, 2 }
 0x33d   : > { %v3126_v62 = vrot.slane %v3124_v37, 3  ;;  %v2540_v37 = vld [vmem:[%s10510_s17 + $0xb0] sm:$0xf] }
 0x33e   : > { %v11354_v31 = vadd.f32 %v11299_v12, %v2901_v6  ;;  %v11363_v41 = vpop.f32.mrf.mxu3  ;;  %v11365_v38 = vpop.f32.mrf.mxu2  ;;  %v3121_v12 = vshrl.u32 %v11358_v24, 16  ;;  %v1963_v6 = vsel %vm1802_vm4, %v1953_v13, %v11361_v54  ;;  %v2702_v58 = vsel %vm2235_vm2, %v2699_v18, %v2701_v7 }
 0x33f   : > { %v2106_v0 = vpop.f32.mrf.mxu0  ;;  %13421 = vst [vmem:[#allocation67_spill] sm:$0xff] %v11365_v38 }
 0x340   : > { %v2188_v44 = vadd.f32 %v2106_v0, %v10795_v35  ;;  %v11370_v35 = vpop.f32.mrf.mxu1  ;;  %v3123_v34 = vrot.slane %v3121_v12, 2  ;;  %v11383_v0 = vld [vmem:[%s10510_s17 + $0xa0] sm:$0xff] }
 0x341   : > { %v2273_v28 = vrot.slane %v11383_v0, 2 }
 0x342   : > { %v2474_v22 = vadd.f32 %v11304_v27, %v2188_v44  ;;  %v1968_v44 = vshll.u32 %v10038_v11, 16 }
 0x343   : > { %2872 = vmatmul.bf16.gmra.mxu2 %v2702_v58  ;;  %v2274_v12 = vsel %vm2235_vm2, %v2271_v23, %v2273_v28  ;;  %v1781_v58 = vld [vmem:[%s10510_s17 + $0xac] sm:$0x3] }
 0x344   : > { %v2902_v26 = vadd.f32 %v11301_v16, %v2474_v22  ;;  %v11380_v16 = vor.u32 %v3126_v62, %v3123_v34  ;;  %v1967_v34 = vrot.slane %v1965_v60, 1  ;;  %v1970_v62 = vrot.slane %v1968_v44, 2 }
 0x345   : > { %v1800_v23 = vunpack.c.l.b16 %v1781_v58 }
 0x346   : > { %v11374_v27 = vadd.f32 %v11314_v9, %v2902_v26  ;;  %v11387_v13 = vpop.f32.mrf.mxu3  ;;  %v11389_v18 = vpop.f32.mrf.mxu2  ;;  %v3128_v22 = vsel %vm2949_vm3, %v3118_v39, %v11380_v16  ;;  %v2928_v26 = vld [vmem:[%s10510_s17 + $0xb4] sm:$0x7] }
 0x347   : > { %v2109_v25 = vpop.f32.mrf.mxu0  ;;  %13422 = vst [vmem:[#allocation68_spill] sm:$0xff] %v11387_v13 }
 0x348   : > { %v2189_v56 = vadd.f32 %v2109_v25, %v10801_v47  ;;  %v11392_v24 = vpop.f32.mrf.mxu1  ;;  %v2641_v25 = vunpack.c.l.b16 %v2540_v37 }
 0x34a   : > { %v2475_v9 = vadd.f32 %v11319_v61, %v2189_v56  ;;  %2148 = vmatmul.bf16.gmra.mxu0 %v1963_v6  ;;  %v2947_v6 = vunpack.c.l.b16 %v2928_v26  ;;  %v9396_v56 = vld [vmem:[#allocation6 + $0x200] sm:$0xff] }
 0x34b   : > { %3305 = vmatmul.bf16.gmra.mxu3 %v3128_v22  ;;  %2444 = vmatmul.bf16.gmra.mxu1 %v2274_v12 }
 0x34c   : > { %v2903_v47 = vadd.f32 %v11316_v45, %v2475_v9  ;;  %v2541_v9 = vld [vmem:[%s10510_s17 + $0xb4] sm:$0x3]  ;;  %v11405_v13 = vpack.c.b16 %v2947_v6, %v2641_v25  ;;  %3500 = vmatpush.bf16.msrb.mxu0 %v9396_v56  ;;  %v13423_v6 = vunpack.c.l.b16 %v10811_v15  ;;  %v1977_v15 = vshll.u32 %v11383_v0, 16 }
 0x34d   : > { %v2642_v39 = vunpack.c.l.b16 %v2541_v9 }
 0x34e   : > { %v11398_v61 = vadd.f32 %v11329_v50, %v2903_v47  ;;  %v1971_v47 = vor.u32 %v1970_v62, %v1967_v34  ;;  %v11408_v38 = vpop.f32.mrf.mxu3  ;;  %v11410_v60 = vpop.f32.mrf.mxu2  ;;  %v3130_v37 = vshrl.u32 %v11405_v13, 16  ;;  %v3133_v22 = vshll.u32 %v11405_v13, 16 }
 0x34f   : > { %v2111_v11 = vpop.f32.mrf.mxu0  ;;  %v2663_v44 = vpack.c.b16 %v2642_v39, %v2641_v25  ;;  %v1801_v25 = vpack.c.b16 %v1800_v23, %v13423_v6 }
 0x350   : > { %v2190_v45 = vadd.f32 %v2111_v11, %v10826_v63  ;;  %v11415_v12 = vpop.f32.mrf.mxu1  ;;  %v3132_v11 = vrot.slane %v3130_v37, 2  ;;  %v3135_v62 = vrot.slane %v3133_v22, 3  ;;  %v1979_v22 = vrot.slane %v1977_v15, 2 }
 0x351   : > { %v2703_v26 = vrot.slane %v2663_v44, 2  ;;  %v2275_v39 = vrot.slane %v1801_v25, 2 }
 0x352   : > { %v2476_v50 = vadd.f32 %v11334_v14, %v2190_v45  ;;  %v1011_v14 = vadd.f32 %v10783_v19, %v10837_v53  ;;  %v3136_v9 = vor.u32 %v3135_v62, %v3132_v11  ;;  %v9408_v11 = vld [vmem:[#allocation8 + $0x20] sm:$0xff] }
 0x353   : > { %v2704_v45 = vsel %vm2235_vm2, %v2701_v7, %v2703_v26  ;;  %v2276_v44 = vsel %vm2235_vm2, %v2273_v28, %v2275_v39  ;;  %4525 = vmatpush.bf16.msra.mxu2 %v9408_v11  ;;  %v9416_v28 = vld [vmem:[#allocation8 + $0x60] sm:$0xff]  ;;  %v13426_v11 = vld [vmem:[#allocation21_spill] sm:$0xff] }
 0x354   : > { %v2904_v63 = vadd.f32 %v11331_v4, %v2476_v50  ;;  %v1972_v4 = vsel %vm1802_vm4, %v11361_v54, %v1971_v47  ;;  %2877 = vmatmul.bf16.gmra.mxu2 %v2704_v45  ;;  %v1331_v19 = vadd.f32 %v10785_v3, %v1011_v14  ;;  %4168 = vmatpush.bf16.msra.mxu1 %v9416_v28 }
 0x356   : > { %v11420_v34 = vadd.f32 %v11344_v1, %v2904_v63  ;;  %v1974_v1 = vshrl.u32 %v11383_v0, 16  ;;  %v11432_v50 = vpop.f32.mrf.mxu3  ;;  %v2838_v23 = vpop.f32.mrf.mxu2  ;;  %v1759_v3 = vadd.f32 %v10790_v30, %v1331_v19  ;;  %v1983_v19 = vshrl.u32 %v1801_v25, 16 }
 0x357   : > { %v2114_v58 = vpop.f32.mrf.mxu0 }
 0x358   : > { %v2191_v56 = vadd.f32 %v2114_v58, %v10835_v5  ;;  %v2410_v7 = vpop.f32.mrf.mxu1  ;;  %v3137_v5 = vsel %vm2949_vm3, %v11380_v16, %v3136_v9  ;;  %v1976_v63 = vrot.slane %v1974_v1, 1 }
 0x35a   : > { %v2477_v53 = vadd.f32 %v11349_v33, %v2191_v56  ;;  %2153 = vmatmul.bf16.gmra.mxu0 %v1972_v4  ;;  %v1980_v14 = vor.u32 %v1979_v22, %v1976_v63  ;;  %v13425_v63 = vld [vmem:[#allocation26_spill] sm:$0xff] }
 0x35b   : > { %3310 = vmatmul.bf16.gmra.mxu3 %v3137_v5  ;;  %2449 = vmatmul.bf16.gmra.mxu1 %v2276_v44 }
 0x35c   : > { %v2905_v54 = vadd.f32 %v11346_v32, %v2477_v53  ;;  %v9442_v32 = vld [vmem:[#allocation8 + $0xa0] sm:$0xff]  ;;  %v1981_v58 = vsel %vm1802_vm4, %v1971_v47, %v1980_v14  ;;  %v1986_v53 = vshll.u32 %v1801_v25, 16 }
 0x35d   : > { %4985 = vmatpush.bf16.msra.mxu3 %v9442_v32 }
 0x35e   : > { %v11440_v33 = vadd.f32 %v11363_v41, %v2905_v54  ;;  %v3271_v62 = vpop.f32.mrf.mxu3  ;;  %v11444_v16 = vpop.f32.mrf.mxu2  ;;  %v1016_v41 = vadd.f32 %v10807_v8, %v10850_v46  ;;  %v1988_v5 = vrot.slane %v1986_v53, 2 }
 0x35f   : > { %v2116_v37 = vpop.f32.mrf.mxu0 }
 0x360   : > { %v11442_v0 = vadd.f32 %v2116_v37, %v1759_v3  ;;  %v11446_v30 = vpop.f32.mrf.mxu1  ;;  %v1333_v45 = vadd.f32 %v10814_v59, %v1016_v41 }
 0x362   : > { %v1761_v8 = vadd.f32 %v10820_v10, %v1333_v45 }
 0x364   : > { %2882 = vmatmul.bf16.gmra.mxu2 %v2703_v26  ;;  %v1985_v26 = vrot.slane %v1983_v19, 1 }
 0x366   : > { %v11454_v1 = vpop.f32.mrf.mxu3  ;;  %v2843_v15 = vpop.f32.mrf.mxu2 }
 0x367   : > { %v2119_v6 = vpop.f32.mrf.mxu0 }
 0x368   : > { %v2193_v4 = vadd.f32 %v2119_v6, %v10848_v49  ;;  %v2415_v46 = vpop.f32.mrf.mxu1 }
 0x36a   : > { %v2479_v56 = vadd.f32 %v11392_v24, %v2193_v4  ;;  %2158 = vmatmul.bf16.gmra.mxu0 %v1981_v58  ;;  %v1989_v24 = vor.u32 %v1988_v5, %v1985_v26  ;;  %v13427_v58 = vld [vmem:[#allocation22_spill] sm:$0xff] }
 0x36b   : > { %3315 = vmatmul.bf16.gmra.mxu3 %v3136_v9  ;;  %2454 = vmatmul.bf16.gmra.mxu1 %v2275_v39  ;;  %v13432_v26 = vld [vmem:[#allocation30_spill] sm:$0xff] }
 0x36c   : > { %v2907_v54 = vadd.f32 %v11389_v18, %v2479_v56  ;;  %v13424_v18 = vld [vmem:[#allocation20_spill] sm:$0xff] }
 0x36d   : > { %v1021_v37 = vadd.f32 %v13424_v18, %v10863_v55  ;;  %v13433_v18 = vld [vmem:[#allocation24_spill] sm:$0xff] }
 0x36e   : > { %v11459_v47 = vadd.f32 %v11408_v38, %v2907_v54  ;;  %v3276_v25 = vpop.f32.mrf.mxu3  ;;  %v11463_v44 = vpop.f32.mrf.mxu2  ;;  %v1990_v38 = vsel %vm1802_vm4, %v1980_v14, %v1989_v24  ;;  %v13431_v54 = vld [vmem:[#allocation23_spill] sm:$0xff] }
 0x36f   : > { %v2121_v49 = vpop.f32.mrf.mxu0  ;;  %v1335_v32 = vadd.f32 %v13426_v11, %v1021_v37 }
 0x370   : > { %v11461_v59 = vadd.f32 %v2121_v49, %v1761_v8  ;;  %v11465_v3 = vpop.f32.mrf.mxu1 }
 0x371   : > { %v1763_v4 = vadd.f32 %v13427_v58, %v1335_v32  ;;  %v9441_v32 = vld [vmem:[#allocation8 + $0x98] sm:$0xff] }
 0x372   : > { %4986 = vmatpush.bf16.msra.mxu3 %v9441_v32 }
 0x376   : > { %v11472_v9 = vpop.f32.mrf.mxu3  ;;  %v2848_v39 = vpop.f32.mrf.mxu2 }
 0x377   : > { %v2124_v10 = vpop.f32.mrf.mxu0 }
 0x378   : > { %v2195_v22 = vadd.f32 %v2124_v10, %v13425_v63  ;;  %v2420_v6 = vpop.f32.mrf.mxu1 }
 0x37a   : > { %v2481_v28 = vadd.f32 %v2410_v7, %v2195_v22  ;;  %2163 = vmatmul.bf16.gmra.mxu0 %v1990_v38  ;;  %v13430_v7 = vld [vmem:[#allocation31_spill] sm:$0xff] }
 0x37b   : > { %v1026_v8 = vadd.f32 %v13431_v54, %v13430_v7  ;;  %v13436_v54 = vld [vmem:[#allocation63_spill] sm:$0xff] }
 0x37c   : > { %v2909_v41 = vadd.f32 %v2838_v23, %v2481_v28  ;;  %v3361_v23 = vld [vmem:[%s10510_s17 + $0x10] sm:$0x8] }
 0x37d   : > { %v1337_v37 = vadd.f32 %v13433_v18, %v1026_v8  ;;  %v3380_v38 = vunpack.c.l.b16 %v3361_v23 }
 0x37e   : > { %v11475_v45 = vadd.f32 %v3271_v62, %v2909_v41  ;;  %v3281_v14 = vpop.f32.mrf.mxu3  ;;  %v11479_v19 = vpop.f32.mrf.mxu2  ;;  %v9407_v62 = vld [vmem:[#allocation8 + $0x18] sm:$0xff] }
 0x37f   : > { %v2126_v55 = vpop.f32.mrf.mxu0  ;;  %13428 = vst [vmem:[#allocation20_spill] sm:$0xff] %v11479_v19  ;;  %4526 = vmatpush.bf16.msra.mxu2 %v9407_v62  ;;  %v13435_v41 = vld [vmem:[#allocation25_spill] sm:$0xff] }
 0x380   : > { %v11477_v56 = vadd.f32 %v2126_v55, %v1763_v4  ;;  %v11481_v53 = vpop.f32.mrf.mxu1  ;;  %v1765_v58 = vadd.f32 %v13435_v41, %v1337_v37  ;;  %v9415_v55 = vld [vmem:[#allocation8 + $0x58] sm:$0xff]  ;;  %v13441_v37 = vld [vmem:[#allocation27_spill] sm:$0xff]  ;;  %v13443_v41 = vld [vmem:[#allocation28_spill] sm:$0xff] }
 0x381   : > { %13429 = vst [vmem:[#allocation26_spill] sm:$0xff] %v11481_v53  ;;  %4169 = vmatpush.bf16.msra.mxu1 %v9415_v55 }
 0x386   : > { %v11488_v63 = vpop.f32.mrf.mxu3  ;;  %v2853_v22 = vpop.f32.mrf.mxu2 }
 0x387   : > { %v2129_v49 = vpop.f32.mrf.mxu0  ;;  %13434 = vst [vmem:[#allocation21_spill] sm:$0xff] %v11488_v63 }
 0x388   : > { %v2197_v5 = vadd.f32 %v2129_v49, %v13432_v26  ;;  %v2425_v28 = vpop.f32.mrf.mxu1  ;;  %v10040_v26 = vld [vmem:[%s10510_s17 + $0x18] sm:$0xff] }
 0x38a   : > { %v2483_v10 = vadd.f32 %v2415_v46, %v2197_v5  ;;  %2168 = vmatmul.bf16.gmra.mxu0 %v1989_v24  ;;  %v13437_v46 = vunpack.c.l.b16 %v13436_v54  ;;  %v3384_v5 = vrot.slane %v10040_v26, 3  ;;  %v13445_v26 = vld [vmem:[#allocation29_spill] sm:$0xff] }
 0x38c   : > { %v2911_v11 = vadd.f32 %v2843_v15, %v2483_v10  ;;  %v3381_v24 = vpack.c.b16 %v13437_v46, %v3380_v38  ;;  %v13442_v38 = vld [vmem:[#allocation35_spill] sm:$0xff] }
 0x38e   : > { %v11491_v4 = vadd.f32 %v3276_v25, %v2911_v11  ;;  %v3383_v49 = vrot.slane %v3381_v24, 3  ;;  %v3286_v15 = vpop.f32.mrf.mxu3  ;;  %v11498_v23 = vpop.f32.mrf.mxu2  ;;  %v13440_v25 = vld [vmem:[#allocation36_spill] sm:$0xff] }
 0x38f   : > { %v2131_v7 = vpop.f32.mrf.mxu0  ;;  %13438 = vst [vmem:[#allocation22_spill] sm:$0xff] %v11498_v23  ;;  %v1031_v10 = vadd.f32 %v13441_v37, %v13440_v25  ;;  %v10041_v37 = vld [vmem:[%s10510_s17 + $0x20] sm:$0xff] }
 0x390   : > { %v11495_v8 = vadd.f32 %v2131_v7, %v1765_v58  ;;  %v11500_v18 = vpop.f32.mrf.mxu1  ;;  %v3385_v11 = vsel %vm3382_vm5, %v3383_v49, %v3384_v5  ;;  %v3386_v49 = vrot.slane %v10041_v37, 3 }
 0x391   : > { %13439 = vst [vmem:[#allocation31_spill] sm:$0xff] %v11500_v18  ;;  %v1339_v58 = vadd.f32 %v13443_v41, %v1031_v10  ;;  %v13451_v41 = vld [vmem:[#allocation40_spill] sm:$0xff] }
 0x393   : > { %v1767_v23 = vadd.f32 %v13445_v26, %v1339_v58  ;;  %v13452_v58 = vld [vmem:[#allocation33_spill] sm:$0xff] }
 0x396   : > { %v11507_v7 = vpop.f32.mrf.mxu3  ;;  %v2858_v54 = vpop.f32.mrf.mxu2 }
 0x397   : > { %v2134_v62 = vpop.f32.mrf.mxu0  ;;  %13444 = vst [vmem:[#allocation23_spill] sm:$0xff] %v11507_v7 }
 0x398   : > { %v2199_v32 = vadd.f32 %v2134_v62, %v13442_v38  ;;  %v2430_v24 = vpop.f32.mrf.mxu1 }
 0x39a   : > { %v2485_v55 = vadd.f32 %v2420_v6, %v2199_v32  ;;  %3501 = vmatmul.bf16.vlgmr.msrb.gmra.mxu0 %v3385_v11  ;;  %v13449_v6 = vld [vmem:[#allocation41_spill] sm:$0xff]  ;;  %v13450_v11 = vld [vmem:[#allocation32_spill] sm:$0xff]  ;;  %v3387_v32 = vsel %vm3382_vm5, %v3384_v5, %v3386_v49 }
 0x39b   : > { %v1036_v38 = vadd.f32 %v13450_v11, %v13449_v6  ;;  %v10042_v11 = vld [vmem:[%s10510_s17 + $0x28] sm:$0xff] }
 0x39c   : > { %v2913_v46 = vadd.f32 %v2848_v39, %v2485_v55  ;;  %v3388_v5 = vrot.slane %v10042_v11, 3 }
 0x39d   : > { %v1341_v55 = vadd.f32 %v13452_v58, %v1036_v38  ;;  %v9406_v38 = vld [vmem:[#allocation8 + $0x10] sm:$0xff] }
 0x39e   : > { %v11510_v18 = vadd.f32 %v3281_v14, %v2913_v46  ;;  %v3291_v19 = vpop.f32.mrf.mxu3  ;;  %v11515_v62 = vpop.f32.mrf.mxu2  ;;  %4527 = vmatpush.bf16.msra.mxu2 %v9406_v38  ;;  %v13464_v38 = vld [vmem:[#allocation39_spill] sm:$0xff] }
 0x39f   : > { %v2136_v63 = vpop.f32.mrf.mxu0  ;;  %13447 = vst [vmem:[#allocation24_spill] sm:$0xff] %v11515_v62  ;;  %v13454_v62 = vld [vmem:[#allocation34_spill] sm:$0xff] }
 0x3a0   : > { %13446 = vst [vmem:[#allocation30_spill] sm:$0xff] %v11510_v18  ;;  %v11512_v25 = vadd.f32 %v2136_v63, %v1767_v23  ;;  %v11517_v10 = vpop.f32.mrf.mxu1 }
 0x3a1   : > { %13448 = vst [vmem:[#allocation25_spill] sm:$0xff] %v11517_v10  ;;  %v1769_v10 = vadd.f32 %v13454_v62, %v1341_v55  ;;  %v13461_v62 = vld [vmem:[#allocation45_spill] sm:$0xff]  ;;  %v13462_v55 = vld [vmem:[#allocation38_spill] sm:$0xff] }
 0x3a6   : > { %v11524_v23 = vpop.f32.mrf.mxu3  ;;  %v2863_v46 = vpop.f32.mrf.mxu2 }
 0x3a7   : > { %v2139_v39 = vpop.f32.mrf.mxu0  ;;  %13453 = vst [vmem:[#allocation63_spill] sm:$0xff] %v11524_v23 }
 0x3a8   : > { %v2201_v14 = vadd.f32 %v2139_v39, %v13451_v41  ;;  %v2435_v37 = vpop.f32.mrf.mxu1  ;;  %v13460_v41 = vld [vmem:[#allocation37_spill] sm:$0xff] }
 0x3aa   : > { %v2487_v63 = vadd.f32 %v2425_v28, %v2201_v14  ;;  %3506 = vmatmul.bf16.gmra.mxu0 %v3387_v32  ;;  %v13459_v32 = vld [vmem:[#allocation46_spill] sm:$0xff] }
 0x3ab   : > { %v1041_v14 = vadd.f32 %v13460_v41, %v13459_v32 }
 0x3ac   : > { %v2915_v26 = vadd.f32 %v2853_v22, %v2487_v63  ;;  %v9440_v22 = vld [vmem:[#allocation8 + $0x90] sm:$0xff] }
 0x3ad   : > { %4987 = vmatpush.bf16.msra.mxu3 %v9440_v22  ;;  %v1343_v63 = vadd.f32 %v13462_v55, %v1041_v14  ;;  %v13469_v14 = vld [vmem:[#allocation51_spill] sm:$0xff]  ;;  %v13471_v55 = vld [vmem:[#allocation50_spill] sm:$0xff] }
 0x3ae   : > { %v11527_v7 = vadd.f32 %v3286_v15, %v2915_v26  ;;  %v3296_v53 = vpop.f32.mrf.mxu3  ;;  %v11532_v39 = vpop.f32.mrf.mxu2  ;;  %v3389_v15 = vsel %vm3382_vm5, %v3386_v49, %v3388_v5 }
 0x3af   : > { %v2141_v18 = vpop.f32.mrf.mxu0  ;;  %13457 = vst [vmem:[#allocation35_spill] sm:$0xff] %v11532_v39  ;;  %v1771_v41 = vadd.f32 %v13464_v38, %v1343_v63 }
 0x3b0   : > { %13455 = vst [vmem:[#allocation36_spill] sm:$0xff] %v11527_v7  ;;  %v11529_v6 = vadd.f32 %v2141_v18, %v1769_v10  ;;  %v11534_v28 = vpop.f32.mrf.mxu1  ;;  %v9414_v10 = vld [vmem:[#allocation8 + $0x50] sm:$0xff] }
 0x3b1   : > { %13458 = vst [vmem:[#allocation28_spill] sm:$0xff] %v11534_v28  ;;  %4170 = vmatpush.bf16.msra.mxu1 %v9414_v10 }
 0x3b2   : > { %13456 = vst [vmem:[#allocation27_spill] sm:$0xff] %v11529_v6 }
 0x3b6   : > { %v11541_v11 = vpop.f32.mrf.mxu3  ;;  %v2868_v28 = vpop.f32.mrf.mxu2 }
 0x3b7   : > { %v2144_v58 = vpop.f32.mrf.mxu0  ;;  %13463 = vst [vmem:[#allocation29_spill] sm:$0xff] %v11541_v11 }
 0x3b8   : > { %v2203_v18 = vadd.f32 %v2144_v58, %v13461_v62  ;;  %v2440_v32 = vpop.f32.mrf.mxu1  ;;  %v10043_v58 = vld [vmem:[%s10510_s17 + $0x30] sm:$0xff] }
 0x3b9   : > { %v3390_v22 = vrot.slane %v10043_v58, 3 }
 0x3ba   : > { %v2489_v26 = vadd.f32 %v2430_v24, %v2203_v18  ;;  %3511 = vmatmul.bf16.gmra.mxu0 %v3389_v15  ;;  %v13470_v15 = vld [vmem:[#allocation42_spill] sm:$0xff] }
 0x3bb   : > { %v3391_v10 = vsel %vm3382_vm5, %v3388_v5, %v3390_v22 }
 0x3bc   : > { %v2917_v39 = vadd.f32 %v2858_v54, %v2489_v26  ;;  %v1046_v54 = vadd.f32 %v13470_v15, %v13469_v14  ;;  %v10044_v15 = vld [vmem:[%s10510_s17 + $0x38] sm:$0xff] }
 0x3bd   : > { %v3392_v5 = vrot.slane %v10044_v15, 3 }
 0x3be   : > { %v11544_v23 = vadd.f32 %v3291_v19, %v2917_v39  ;;  %v3301_v62 = vpop.f32.mrf.mxu3  ;;  %v11549_v6 = vpop.f32.mrf.mxu2  ;;  %v13472_v39 = vld [vmem:[#allocation43_spill] sm:$0xff] }
 0x3bf   : > { %v2146_v49 = vpop.f32.mrf.mxu0  ;;  %13467 = vst [vmem:[#allocation40_spill] sm:$0xff] %v11549_v6  ;;  %v1345_v63 = vadd.f32 %v13472_v39, %v1046_v54  ;;  %v13474_v6 = vld [vmem:[#allocation44_spill] sm:$0xff]  ;;  %v13481_v39 = vld [vmem:[#allocation55_spill] sm:$0xff] }
 0x3c0   : > { %13465 = vst [vmem:[#allocation41_spill] sm:$0xff] %v11544_v23  ;;  %v11546_v7 = vadd.f32 %v2146_v49, %v1771_v41  ;;  %v11551_v24 = vpop.f32.mrf.mxu1 }
 0x3c1   : > { %13468 = vst [vmem:[#allocation33_spill] sm:$0xff] %v11551_v24  ;;  %v1773_v24 = vadd.f32 %v13474_v6, %v1345_v63 }
 0x3c2   : > { %13466 = vst [vmem:[#allocation32_spill] sm:$0xff] %v11546_v7 }
 0x3c6   : > { %v11558_v38 = vpop.f32.mrf.mxu3  ;;  %v2873_v49 = vpop.f32.mrf.mxu2 }
 0x3c7   : > { %v2149_v18 = vpop.f32.mrf.mxu0  ;;  %13473 = vst [vmem:[#allocation34_spill] sm:$0xff] %v11558_v38 }
 0x3c8   : > { %v2205_v19 = vadd.f32 %v2149_v18, %v13471_v55  ;;  %v2445_v58 = vpop.f32.mrf.mxu1 }
 0x3ca   : > { %v2491_v26 = vadd.f32 %v2435_v37, %v2205_v19  ;;  %3516 = vmatmul.bf16.gmra.mxu0 %v3391_v10  ;;  %v13479_v37 = vld [vmem:[#allocation56_spill] sm:$0xff]  ;;  %v13480_v10 = vld [vmem:[#allocation47_spill] sm:$0xff]  ;;  %v3393_v19 = vsel %vm3382_vm5, %v3390_v22, %v3392_v5 }
 0x3cb   : > { %v1051_v55 = vadd.f32 %v13480_v10, %v13479_v37  ;;  %v9405_v37 = vld [vmem:[#allocation8 + $0x8] sm:$0xff] }
 0x3cc   : > { %v2919_v41 = vadd.f32 %v2863_v46, %v2491_v26  ;;  %4528 = vmatpush.bf16.msra.mxu2 %v9405_v37  ;;  %v9439_v22 = vld [vmem:[#allocation8 + $0x88] sm:$0xff] }
 0x3cd   : > { %4988 = vmatpush.bf16.msra.mxu3 %v9439_v22 }
 0x3ce   : > { %v11561_v11 = vadd.f32 %v3296_v53, %v2919_v41  ;;  %v3306_v7 = vpop.f32.mrf.mxu3  ;;  %v11566_v18 = vpop.f32.mrf.mxu2  ;;  %v13482_v53 = vld [vmem:[#allocation48_spill] sm:$0xff] }
 0x3cf   : > { %v2151_v23 = vpop.f32.mrf.mxu0  ;;  %13477 = vst [vmem:[#allocation45_spill] sm:$0xff] %v11566_v18  ;;  %v1347_v63 = vadd.f32 %v13482_v53, %v1051_v55  ;;  %v13484_v18 = vld [vmem:[#allocation49_spill] sm:$0xff]  ;;  %v9413_v55 = vld [vmem:[#allocation8 + $0x48] sm:$0xff] }
 0x3d0   : > { %13475 = vst [vmem:[#allocation46_spill] sm:$0xff] %v11561_v11  ;;  %v11563_v14 = vadd.f32 %v2151_v23, %v1773_v24  ;;  %v11568_v54 = vpop.f32.mrf.mxu1  ;;  %4171 = vmatpush.bf16.msra.mxu1 %v9413_v55 }
 0x3d1   : > { %13478 = vst [vmem:[#allocation38_spill] sm:$0xff] %v11568_v54  ;;  %v1775_v54 = vadd.f32 %v13484_v18, %v1347_v63  ;;  %v13490_v18 = vld [vmem:[#allocation52_spill] sm:$0xff] }
 0x3d2   : > { %13476 = vst [vmem:[#allocation37_spill] sm:$0xff] %v11563_v14  ;;  %v13491_v63 = vld [vmem:[#allocation60_spill] sm:$0xff] }
 0x3d6   : > { %v11575_v24 = vpop.f32.mrf.mxu3 }
 0x3d7   : > { %v2154_v46 = vpop.f32.mrf.mxu0  ;;  %13483 = vst [vmem:[#allocation39_spill] sm:$0xff] %v11575_v24  ;;  %v2878_v41 = vpop.f32.mrf.mxu2  ;;  %v13494_v24 = vld [vmem:[#allocation54_spill] sm:$0xff] }
 0x3d8   : > { %v2207_v6 = vadd.f32 %v2154_v46, %v13481_v39  ;;  %v2450_v15 = vpop.f32.mrf.mxu1  ;;  %v10045_v46 = vld [vmem:[%s10510_s17 + $0x40] sm:$0xff] }
 0x3da   : > { %v2493_v23 = vadd.f32 %v2440_v32, %v2207_v6  ;;  %3521 = vmatmul.bf16.gmra.mxu0 %v3393_v19  ;;  %v3394_v32 = vrot.slane %v10045_v46, 3  ;;  %v13489_v6 = vld [vmem:[#allocation61_spill] sm:$0xff] }
 0x3dc   : > { %v2921_v26 = vadd.f32 %v2868_v28, %v2493_v23 }
 0x3de   : > { %v11578_v38 = vadd.f32 %v3301_v62, %v2921_v26  ;;  %v3311_v19 = vpop.f32.mrf.mxu3  ;;  %v1056_v62 = vadd.f32 %v13490_v18, %v13489_v6  ;;  %v13492_v26 = vld [vmem:[#allocation53_spill] sm:$0xff] }
 0x3df   : > { %v2156_v10 = vpop.f32.mrf.mxu0  ;;  %v11583_v39 = vpop.f32.mrf.mxu2  ;;  %v10046_v18 = vld [vmem:[%s10510_s17 + $0x48] sm:$0xff] }
 0x3e0   : > { %13485 = vst [vmem:[#allocation51_spill] sm:$0xff] %v11578_v38  ;;  %v11580_v11 = vadd.f32 %v2156_v10, %v1775_v54  ;;  %v11585_v28 = vpop.f32.mrf.mxu1  ;;  %v3395_v54 = vsel %vm3382_vm5, %v3392_v5, %v3394_v32  ;;  %v1349_v37 = vadd.f32 %v13492_v26, %v1056_v62  ;;  %v3396_v5 = vrot.slane %v10046_v18, 3  ;;  %v13498_v26 = vld [vmem:[#allocation62_spill] sm:$0xff] }
 0x3e1   : > { %13487 = vst [vmem:[#allocation50_spill] sm:$0xff] %v11583_v39 }
 0x3e2   : > { %13486 = vst [vmem:[#allocation42_spill] sm:$0xff] %v11580_v11 }
 0x3e3   : > { %13488 = vst [vmem:[#allocation43_spill] sm:$0xff] %v11585_v28  ;;  %v1777_v28 = vadd.f32 %v13494_v24, %v1349_v37  ;;  %v13499_v24 = vld [vmem:[#allocation58_spill] sm:$0xff] }
 0x3e6   : > { %v11592_v22 = vpop.f32.mrf.mxu3 }
 0x3e7   : > { %v2159_v53 = vpop.f32.mrf.mxu0  ;;  %13493 = vst [vmem:[#allocation44_spill] sm:$0xff] %v11592_v22  ;;  %v2883_v46 = vpop.f32.mrf.mxu2 }
 0x3e8   : > { %v2209_v23 = vadd.f32 %v2159_v53, %v13491_v63  ;;  %v2455_v39 = vpop.f32.mrf.mxu1 }
 0x3ea   : > { %v2495_v10 = vadd.f32 %v2445_v58, %v2209_v23  ;;  %3526 = vmatmul.bf16.gmra.mxu0 %v3395_v54  ;;  %v13496_v58 = vld [vmem:[#allocation64_spill] sm:$0xff]  ;;  %v13497_v54 = vld [vmem:[#allocation57_spill] sm:$0xff] }
 0x3eb   : > { %v1061_v63 = vadd.f32 %v13497_v54, %v13496_v58  ;;  %v10047_v58 = vld [vmem:[%s10510_s17 + $0x50] sm:$0xff] }
 0x3ec   : > { %v2923_v55 = vadd.f32 %v2873_v49, %v2495_v10  ;;  %v3397_v49 = vsel %vm3382_vm5, %v3394_v32, %v3396_v5  ;;  %v3398_v54 = vrot.slane %v10047_v58, 3 }
 0x3ee   : > { %v11595_v38 = vadd.f32 %v3306_v7, %v2923_v55  ;;  %v3316_v14 = vpop.f32.mrf.mxu3  ;;  %v1351_v7 = vadd.f32 %v13499_v24, %v1061_v63  ;;  %v13500_v55 = vld [vmem:[#allocation59_spill] sm:$0xff]  ;;  %v13502_v63 = vld [vmem:[#allocation65_spill] sm:$0xff] }
 0x3ef   : > { %v2161_v11 = vpop.f32.mrf.mxu0  ;;  %v2885_v53 = vpop.f32.mrf.mxu2 }
 0x3f0   : > { %13495 = vst [vmem:[#allocation56_spill] sm:$0xff] %v11595_v38  ;;  %v11597_v6 = vadd.f32 %v2161_v11, %v1777_v28  ;;  %v2457_v62 = vpop.f32.mrf.mxu1  ;;  %v1779_v18 = vadd.f32 %v13500_v55, %v1351_v7  ;;  %v10339_v38 = vmov 0   ;;  %v9412_v7 = vld [vmem:[#allocation8 + $0x40] sm:$0xff] }
 0x3f1   : > { %3856 = vst [vmem:[#allocation2] sm:$0xf] %v10339_v38  ;;  %4172 = vmatpush.bf16.msra.mxu1 %v9412_v7 }
 0x3f6   : > { %v3318_v11 = vpop.f32.mrf.mxu3 }
 0x3f7   : > { %v2164_v23 = vpop.f32.mrf.mxu0  ;;  %v9438_v11 = vld [vmem:[#allocation8 + $0x80] sm:$0xff] }
 0x3f8   : > { %v2211_v10 = vadd.f32 %v2164_v23, %v13498_v26  ;;  %v3399_v23 = vsel %vm3382_vm5, %v3396_v5, %v3398_v54  ;;  %4989 = vmatpush.bf16.msra.mxu3 %v9438_v11  ;;  %v3939_v7 = vld [vmem:[#allocation2] sm:$0x8] }
 0x3fa   : > { %v2497_v37 = vadd.f32 %v2450_v15, %v2211_v10  ;;  %3531 = vmatmul.bf16.gmra.mxu0 %v3397_v49 }
 0x3fc   : > { %v2925_v28 = vadd.f32 %v2878_v41, %v2497_v37  ;;  %v9404_v37 = vld [vmem:[#allocation8] sm:$0xff] }
 0x3fd   : > { %4529 = vmatpush.bf16.msra.mxu2 %v9404_v37 }
 0x3fe   : > { %v11606_v22 = vadd.f32 %v3311_v19, %v2925_v28  ;;  %v10048_v19 = vld [vmem:[%s10510_s17 + $0x58] sm:$0xff] }
 0x3ff   : > { %v2166_v53 = vpop.f32.mrf.mxu0  ;;  %v3400_v24 = vrot.slane %v10048_v19, 3  ;;  %v11616_v28 = vld [vmem:[#allocation11] ss:$0 sm:$0xff] }
 0x400   : > { %13501 = vst [vmem:[#allocation47_spill] sm:$0xff] %v11606_v22  ;;  %v11608_v62 = vadd.f32 %v2166_v53, %v1779_v18  ;;  %v3774_v53 = vld [vmem:[#allocation12] sm:$0xff] }
 0x401   : > { %v3401_v5 = vsel %vm3382_vm5, %v3398_v54, %v3400_v24 }
 0x407   : > { %v2169_v32 = vpop.f32.mrf.mxu0 }
 0x408   : > { %v2213_v15 = vadd.f32 %v2169_v32, %v13502_v63 }
 0x40a   : > { %v2499_v49 = vadd.f32 %v2455_v39, %v2213_v15  ;;  %3536 = vmatmul.bf16.gmra.mxu0 %v3399_v23  ;;  %v13504_v39 = vld [vmem:[#allocation66_spill] sm:$0xff] }
 0x40c   : > { %v2927_v41 = vadd.f32 %v2883_v46, %v2499_v49  ;;  %v11620_v46 = vld [vmem:[#allocation11 + $0x1] ss:$0 sm:$0xff]  ;;  %v10049_v49 = vld [vmem:[%s10510_s17 + $0x60] sm:$0xff] }
 0x40e   : > { %v11613_v26 = vadd.f32 %v3316_v14, %v2927_v41  ;;  %v3402_v41 = vrot.slane %v10049_v49, 3 }
 0x40f   : > { %v2171_v10 = vpop.f32.mrf.mxu0 }
 0x410   : > { %13503 = vst [vmem:[#allocation55_spill] sm:$0xff] %v11613_v26  ;;  %v3403_v19 = vsel %vm3382_vm5, %v3400_v24, %v3402_v41 }
 0x417   : > { %v3502_v38 = vpop.f32.mrf.mxu0 }
 0x418   : > { %v3606_v55 = vadd.f32 %v3502_v38, %v13504_v39 }
 0x41a   : > { %v3649_v14 = vmul.f32 %v11616_v28, %v3606_v55  ;;  %3541 = vmatmul.bf16.gmra.mxu0 %v3401_v5  ;;  %v4265_v5 = vunpack.c.l.b16 %v3939_v7 }
 0x41c   : > { %v3692_v18 = vadd.f32 %v11620_v46, %v3649_v14 }
 0x41e   : > { %v3733_v58 = vmax.f32 %v3692_v18, 0.0  ;;  %v3775_v18 = vld [vmem:[#allocation12 + $0x8] sm:$0xff] }
 0x41f   : > { %v3504_v32 = vpop.f32.mrf.mxu0 }
 0x420   : > { %v3815_v23 = vmul.f32 %v3774_v53, %v3733_v58  ;;  %v3607_v63 = vadd.f32 %v3504_v32, %v11157_v20  ;;  %v3776_v53 = vld [vmem:[#allocation12 + $0x10] sm:$0xff] }
 0x422   : > { %v3857_v15 = vpack.c.bf16 %v3815_v23, %v3815_v23  ;;  %v3650_v54 = vmul.f32 %v11616_v28, %v3607_v63 }
 0x424   : > { %3898 = vst [vmem:[#allocation2 + $0x4] sm:$0xf] %v3857_v15  ;;  %v3693_v37 = vadd.f32 %v11620_v46, %v3650_v54 }
 0x426   : > { %v3734_v39 = vmax.f32 %v3693_v37, 0.0 }
 0x427   : > { %v3507_v10 = vpop.f32.mrf.mxu0 }
 0x428   : > { %v3608_v11 = vadd.f32 %v3507_v10, %v11174_v52  ;;  %v3816_v23 = vmul.f32 %v3775_v18, %v3734_v39  ;;  %v10050_v10 = vld [vmem:[%s10510_s17 + $0x68] sm:$0xff] }
 0x42a   : > { %v3651_v38 = vmul.f32 %v11616_v28, %v3608_v11  ;;  %3546 = vmatmul.bf16.gmra.mxu0 %v3403_v19  ;;  %v3404_v19 = vrot.slane %v10050_v10, 3 }
 0x42b   : > { %v3940_v20 = vld [vmem:[#allocation2 + $0x4] sm:$0xf] }
 0x42c   : > { %v3694_v55 = vadd.f32 %v11620_v46, %v3651_v38  ;;  %v4045_v14 = vunpack.c.l.b16 %v3940_v20  ;;  %v3405_v39 = vsel %vm3382_vm5, %v3402_v41, %v3404_v19 }
 0x42e   : > { %v3735_v58 = vmax.f32 %v3694_v55, 0.0  ;;  %v4266_v32 = vpack.c.b16 %v4045_v14, %v4265_v5 }
 0x42f   : > { %v3509_v24 = vpop.f32.mrf.mxu0 }
 0x430   : > { %v3817_v63 = vmul.f32 %v3776_v53, %v3735_v58  ;;  %v3609_v15 = vadd.f32 %v3509_v24, %v11187_v2  ;;  %v4287_v52 = vshrl.u32 %v4266_v32, 16  ;;  %v4290_v49 = vshll.u32 %v4266_v32, 16  ;;  %v9478_v58 = vld [vmem:[#allocation8 + $0x138] sm:$0xff] }
 0x431   : > { %v9486_v32 = vld [vmem:[#allocation8 + $0x178] sm:$0xff]  ;;  %5737 = vmatpush.bf16.msrb.mxu2 %v9478_v58 }
 0x432   : > { %v9561_v54 = vpack.c.bf16 %v3817_v63, %v3816_v23  ;;  %v3652_v7 = vmul.f32 %v11616_v28, %v3609_v15  ;;  %v4289_v38 = vrot.slane %v4287_v52, 3  ;;  %v4292_v20 = vrot.slane %v4290_v49, 4  ;;  %v9470_v24 = vld [vmem:[#allocation8 + $0xf8] sm:$0xff]  ;;  %6044 = vmatpush.bf16.msrb.mxu3 %v9486_v32 }
 0x433   : > { %5478 = vmatpush.bf16.msrb.mxu1 %v9470_v24 }
 0x434   : > { %9729 = vst [vmem:[#allocation2 + $0x8] sm:$0xff] %v9561_v54   ;;  %v9660_v37 = vunpack.c.l.b16 %v9561_v54  ;;  %v4295_v11 = vshrl.u32 %v9561_v54, 16  ;;  %v4298_v26 = vshll.u32 %v9561_v54, 16  ;;  %v3695_v2 = vadd.f32 %v11620_v46, %v3652_v7 }
 0x435   : > { %v4293_v23 = vor.u32 %v4292_v20, %v4289_v38 }
 0x436   : > { %v4081_v55 = vpack.c.b16 %v9660_v37, %v4045_v14  ;;  %v4297_v5 = vrot.slane %v4295_v11, 3  ;;  %v4300_v18 = vrot.slane %v4298_v26, 4  ;;  %v3736_v26 = vmax.f32 %v3695_v2, 0.0  ;;  %v10051_v11 = vld [vmem:[%s10510_s17 + $0x70] sm:$0xff] }
 0x437   : > { %v3512_v22 = vpop.f32.mrf.mxu0  ;;  %v3406_v38 = vrot.slane %v10051_v11, 3 }
 0x438   : > { %v3610_v53 = vadd.f32 %v3512_v22, %v11204_v48  ;;  %4173 = vmatmul.bf16.vlgmr.msra.gmra.mxu1 %v4081_v55  ;;  %v4301_v63 = vor.u32 %v4300_v18, %v4297_v5  ;;  %v3777_v48 = vld [vmem:[#allocation12 + $0x18] sm:$0xff]  ;;  %v3778_v22 = vld [vmem:[#allocation12 + $0x20] sm:$0xff] }
 0x439   : > { %v3818_v54 = vmul.f32 %v3777_v48, %v3736_v26  ;;  %v3407_v58 = vsel %vm3382_vm5, %v3404_v19, %v3406_v38  ;;  %v3779_v19 = vld [vmem:[#allocation12 + $0x28] sm:$0xff] }
 0x43a   : > { %v3653_v15 = vmul.f32 %v11616_v28, %v3610_v53  ;;  %3551 = vmatmul.bf16.gmra.mxu0 %v3405_v39  ;;  %v4302_v14 = vsel %vm4285_vm6, %v4293_v23, %v4301_v63 }
 0x43b   : > { %4530 = vmatmul.bf16.vlgmr.msra.gmra.mxu2 %v4302_v14  ;;  %v9420_v20 = vld [vmem:[#allocation2 + $0x4] sm:$0xff] }
 0x43c   : > { %v3696_v41 = vadd.f32 %v11620_v46, %v3653_v15  ;;  %v4771_v32 = vshll.u32 %v9420_v20, 16 }
 0x43e   : > { %v3737_v52 = vmax.f32 %v3696_v41, 0.0  ;;  %v4773_v48 = vrot.slane %v4771_v32, 1 }
 0x43f   : > { %v3514_v49 = vpop.f32.mrf.mxu0 }
 0x440   : > { %v3819_v10 = vmul.f32 %v3778_v22, %v3737_v52  ;;  %v3611_v7 = vadd.f32 %v3514_v49, %v11217_v57  ;;  %v3780_v49 = vld [vmem:[#allocation12 + $0x30] sm:$0xff] }
 0x442   : > { %v9566_v37 = vpack.c.bf16 %v3819_v10, %v3818_v54  ;;  %v3654_v55 = vmul.f32 %v11616_v28, %v3611_v7  ;;  %v4769_v54 = vshrl.u32 %v9420_v20, 16 }
 0x444   : > { %9730 = vst [vmem:[#allocation2 + $0x10] sm:$0xff] %v9566_v37   ;;  %v4304_v5 = vshrl.u32 %v9566_v37, 16  ;;  %v4307_v39 = vshll.u32 %v9566_v37, 16  ;;  %v3697_v24 = vadd.f32 %v11620_v46, %v3654_v55  ;;  %v4774_v37 = vor.u32 %v4773_v48, %v4769_v54 }
 0x446   : > { %v4306_v18 = vrot.slane %v4304_v5, 3  ;;  %v4309_v2 = vrot.slane %v4307_v39, 4  ;;  %v3738_v22 = vmax.f32 %v3697_v24, 0.0 }
 0x447   : > { %v3517_v53 = vpop.f32.mrf.mxu0 }
 0x448   : > { %v3612_v23 = vadd.f32 %v3517_v53, %v11234_v51  ;;  %v4310_v57 = vor.u32 %v4309_v2, %v4306_v18  ;;  %v3820_v55 = vmul.f32 %v3779_v19, %v3738_v22  ;;  %v10052_v2 = vld [vmem:[%s10510_s17 + $0x78] sm:$0xff]  ;;  %v9477_v22 = vld [vmem:[#allocation8 + $0x130] sm:$0xff] }
 0x449   : > { %v3408_v53 = vrot.slane %v10052_v2, 3  ;;  %5738 = vmatpush.bf16.msrb.mxu2 %v9477_v22 }
 0x44a   : > { %v3655_v15 = vmul.f32 %v11616_v28, %v3612_v23  ;;  %3556 = vmatmul.bf16.gmra.mxu0 %v3407_v58  ;;  %v4311_v14 = vsel %vm4285_vm6, %v4301_v63, %v4310_v57 }
 0x44b   : > { %v9872_v26 = vld [vmem:[#allocation2 + $0xc] sm:$0xff]   ;;  %4535 = vmatmul.bf16.gmra.mxu2 %v4311_v14  ;;  %v3409_v14 = vsel %vm3382_vm5, %v3406_v38, %v3408_v53  ;;  %v3781_v38 = vld [vmem:[#allocation12 + $0x38] sm:$0xff] }
 0x44c   : > { %v9421_v41 = vld [vmem:[#allocation2 + $0xc] sm:$0xff]  ;;  %v3698_v52 = vadd.f32 %v11620_v46, %v3655_v15  ;;  %4178 = vmatmul.bf16.gmra.mxu1 %v9872_v26 }
 0x44d   : > { %v4776_v10 = vshll.u32 %v9421_v41, 16 }
 0x44e   : > { %v3739_v51 = vmax.f32 %v3698_v52, 0.0 }
 0x44f   : > { %v3519_v7 = vpop.f32.mrf.mxu0  ;;  %v4778_v11 = vrot.slane %v4776_v10, 1 }
 0x450   : > { %v3821_v5 = vmul.f32 %v3780_v49, %v3739_v51  ;;  %v3613_v63 = vadd.f32 %v3519_v7, %v11247_v36  ;;  %v3782_v7 = vld [vmem:[#allocation12 + $0x40] sm:$0xff] }
 0x451   : > { %v4779_v39 = vsel %vm534_vm0, %v4774_v37, %v4778_v11  ;;  %v4780_v37 = vshrl.u32 %v9421_v41, 16 }
 0x452   : > { %v9571_v18 = vpack.c.bf16 %v3821_v5, %v3820_v55  ;;  %4990 = vmatmul.bf16.vlgmr.msra.gmra.mxu3 %v4779_v39  ;;  %v3656_v58 = vmul.f32 %v11616_v28, %v3613_v63 }
 0x453   : > { %v4782_v63 = vor.u32 %v4780_v37, %v4778_v11 }
 0x454   : > { %9731 = vst [vmem:[#allocation2 + $0x18] sm:$0xff] %v9571_v18   ;;  %v4313_v32 = vshrl.u32 %v9571_v18, 16  ;;  %v4316_v20 = vshll.u32 %v9571_v18, 16  ;;  %v3699_v26 = vadd.f32 %v11620_v46, %v3656_v58 }
 0x456   : > { %v4315_v24 = vrot.slane %v4313_v32, 3  ;;  %v4318_v23 = vrot.slane %v4316_v20, 4  ;;  %v3740_v10 = vmax.f32 %v3699_v26, 0.0  ;;  %v11663_v20 = vld [vmem:[%s10510_s17 + $0x80] sm:$0xff] }
 0x457   : > { %v3522_v15 = vpop.f32.mrf.mxu0  ;;  %v9469_v26 = vld [vmem:[#allocation8 + $0xf0] sm:$0xff] }
 0x458   : > { %v3614_v36 = vadd.f32 %v3522_v15, %v11264_v42  ;;  %v4319_v48 = vor.u32 %v4318_v23, %v4315_v24  ;;  %v3822_v18 = vmul.f32 %v3781_v38, %v3740_v10  ;;  %v3410_v24 = vrot.slane %v11663_v20, 3  ;;  %5479 = vmatpush.bf16.msrb.mxu1 %v9469_v26 }
 0x45a   : > { %v3657_v52 = vmul.f32 %v11616_v28, %v3614_v36  ;;  %3561 = vmatmul.bf16.gmra.mxu0 %v3409_v14  ;;  %v4320_v19 = vsel %vm4285_vm6, %v4310_v57, %v4319_v48  ;;  %v9485_v14 = vld [vmem:[#allocation8 + $0x170] sm:$0xff]  ;;  %v6697_v36 = vld [vmem:[#allocation2 + $0x14] sm:$0xc] }
 0x45b   : > { %v9874_v49 = vld [vmem:[#allocation2 + $0x14] sm:$0xff]   ;;  %4540 = vmatmul.bf16.gmra.mxu2 %v4320_v19  ;;  %6045 = vmatpush.bf16.msrb.mxu3 %v9485_v14 }
 0x45c   : > { %v9422_v54 = vld [vmem:[#allocation2 + $0x14] sm:$0xff]  ;;  %v3700_v51 = vadd.f32 %v11620_v46, %v3657_v52  ;;  %4183 = vmatmul.bf16.gmra.mxu1 %v9874_v49  ;;  %v3411_v49 = vsel %vm3382_vm5, %v3408_v53, %v3410_v24 }
 0x45d   : > { %v4784_v42 = vshll.u32 %v9422_v54, 16  ;;  %v11666_v23 = vld [vmem:[#allocation2 + $0x18] sm:$0xf] }
 0x45e   : > { %v3741_v55 = vmax.f32 %v3700_v51, 0.0  ;;  %v13322_v52 = vunpack.c.l.b16 %v11666_v23 }
 0x45f   : > { %v3524_v5 = vpop.f32.mrf.mxu0  ;;  %v4786_v39 = vrot.slane %v4784_v42, 1 }
 0x460   : > { %v3823_v2 = vmul.f32 %v3782_v7, %v3741_v55  ;;  %v3615_v57 = vadd.f32 %v3524_v5, %v11277_v29  ;;  %v6716_v7 = vunpack.c.l.b16 %v6697_v36 }
 0x461   : > { %v4787_v58 = vsel %vm534_vm0, %v4782_v63, %v4786_v39 }
 0x462   : > { %v9576_v32 = vpack.c.bf16 %v3823_v2, %v3822_v18  ;;  %4995 = vmatmul.bf16.gmra.mxu3 %v4787_v58  ;;  %v3658_v41 = vmul.f32 %v11616_v28, %v3615_v57  ;;  %v6717_v55 = vpack.c.b16 %v13322_v52, %v6716_v7  ;;  %v3783_v57 = vld [vmem:[#allocation12 + $0x48] sm:$0xff]  ;;  %v3784_v58 = vld [vmem:[#allocation12 + $0x50] sm:$0xff] }
 0x464   : > { %9732 = vst [vmem:[#allocation2 + $0x20] sm:$0xff] %v9576_v32   ;;  %v4322_v15 = vshrl.u32 %v9576_v32, 16  ;;  %v4325_v11 = vshll.u32 %v9576_v32, 16  ;;  %v3701_v10 = vadd.f32 %v11620_v46, %v3658_v41 }
 0x466   : > { %v4324_v22 = vrot.slane %v4322_v15, 3  ;;  %v4327_v29 = vrot.slane %v4325_v11, 4  ;;  %v3742_v53 = vmax.f32 %v3701_v10, 0.0  ;;  %v6978_v15 = vshrl.u32 %v6717_v55, 16 }
 0x467   : > { %v3527_v19 = vpop.f32.mrf.mxu0 }
 0x468   : > { %v3616_v51 = vadd.f32 %v3527_v19, %v11294_v40  ;;  %v4328_v38 = vor.u32 %v4327_v29, %v4324_v22  ;;  %v4788_v40 = vshrl.u32 %v9422_v54, 16  ;;  %v6981_v22 = vshll.u32 %v6717_v55, 16 }
 0x469   : > { %v3824_v29 = vmul.f32 %v3783_v57, %v3742_v53 }
 0x46a   : > { %v3659_v37 = vmul.f32 %v11616_v28, %v3616_v51  ;;  %3566 = vmatmul.bf16.gmra.mxu0 %v3411_v49  ;;  %v4329_v42 = vsel %vm4285_vm6, %v4319_v48, %v4328_v38  ;;  %v4790_v48 = vor.u32 %v4788_v40, %v4786_v39  ;;  %v6718_v51 = vrot.slane %v6717_v55, 2  ;;  %v11691_v39 = vld [vmem:[%s10510_s17 + $0x88] sm:$0xff] }
 0x46b   : > { %v9876_v5 = vld [vmem:[#allocation2 + $0x1c] sm:$0xff]   ;;  %4545 = vmatmul.bf16.gmra.mxu2 %v4329_v42 }
 0x46c   : > { %v11679_v63 = vld [vmem:[#allocation2 + $0x1c] sm:$0xff]  ;;  %v3702_v2 = vadd.f32 %v11620_v46, %v3659_v37  ;;  %4188 = vmatmul.bf16.gmra.mxu1 %v9876_v5  ;;  %v3412_v37 = vrot.slane %v11691_v39, 3  ;;  %v6980_v5 = vrot.slane %v6978_v15, 2 }
 0x46d   : > { %v11681_v18 = vld [vmem:[#allocation2 + $0x1c] sm:$0xff]  ;;  %v4792_v32 = vshll.u32 %v11679_v63, 16 }
 0x46e   : > { %v3743_v41 = vmax.f32 %v3702_v2, 0.0  ;;  %v13321_v26 = vshrl.u32 %v11681_v18, 16  ;;  %v6719_v36 = vrot.slane %v11681_v18, 2  ;;  %v13320_v49 = vshll.u32 %v11681_v18, 16 }
 0x46f   : > { %v3529_v11 = vpop.f32.mrf.mxu0  ;;  %v4794_v14 = vrot.slane %v4792_v32, 1  ;;  %v6983_v2 = vrot.slane %v6981_v22, 3  ;;  %v3413_v15 = vsel %vm3382_vm5, %v3410_v24, %v3412_v37 }
 0x470   : > { %v3825_v19 = vmul.f32 %v3784_v58, %v3743_v41  ;;  %v3617_v54 = vadd.f32 %v3529_v11, %v11307_v21  ;;  %v11695_v42 = vsel %vm2235_vm2, %v6718_v51, %v6719_v36  ;;  %v6985_v53 = vrot.slane %v13321_v26, 2 }
 0x471   : > { %v4795_v10 = vsel %vm534_vm0, %v4790_v48, %v4794_v14  ;;  %v6986_v55 = vrot.slane %v13320_v49, 3  ;;  %v6984_v11 = vor.u32 %v6983_v2, %v6980_v5  ;;  %v3785_v2 = vld [vmem:[#allocation12 + $0x58] sm:$0xff] }
 0x472   : > { %v9581_v7 = vpack.c.bf16 %v3825_v19, %v3824_v29  ;;  %5000 = vmatmul.bf16.gmra.mxu3 %v4795_v10  ;;  %v3660_v21 = vmul.f32 %v11616_v28, %v3617_v54 }
 0x473   : > { %v6987_v41 = vor.u32 %v6986_v55, %v6985_v53 }
 0x474   : > { %9733 = vst [vmem:[#allocation2 + $0x28] sm:$0xff] %v9581_v7   ;;  %v4331_v40 = vshrl.u32 %v9581_v7, 16  ;;  %v4334_v57 = vshll.u32 %v9581_v7, 16  ;;  %v3703_v22 = vadd.f32 %v11620_v46, %v3660_v21  ;;  %v4796_v21 = vshrl.u32 %v11679_v63, 16  ;;  %v11727_v63 = vld [vmem:[%s10510_s17 + $0x90] sm:$0xff] }
 0x475   : > { %v11710_v54 = vsel %vm2949_vm3, %v6984_v11, %v6987_v41 }
 0x476   : > { %v4333_v58 = vrot.slane %v4331_v40, 3  ;;  %v4336_v32 = vrot.slane %v4334_v57, 4  ;;  %v3744_v24 = vmax.f32 %v3703_v22, 0.0 }
 0x477   : > { %v3532_v48 = vpop.f32.mrf.mxu0 }
 0x478   : > { %v3618_v29 = vadd.f32 %v3532_v48, %v11324_v17  ;;  %v4337_v19 = vor.u32 %v4336_v32, %v4333_v58  ;;  %v3786_v17 = vld [vmem:[#allocation12 + $0x60] sm:$0xff] }
 0x47a   : > { %v3661_v10 = vmul.f32 %v11616_v28, %v3618_v29  ;;  %3571 = vmatmul.bf16.gmra.mxu0 %v3413_v15  ;;  %v4338_v51 = vsel %vm4285_vm6, %v4328_v38, %v4337_v19  ;;  %v4798_v38 = vor.u32 %v4796_v21, %v4794_v14  ;;  %v3826_v15 = vmul.f32 %v3785_v2, %v3744_v24  ;;  %v9484_v21 = vld [vmem:[#allocation8 + $0x168] sm:$0xff] }
 0x47b   : > { %v9878_v7 = vld [vmem:[#allocation2 + $0x24] sm:$0xff]   ;;  %4550 = vmatmul.bf16.gmra.mxu2 %v4338_v51  ;;  %6046 = vmatpush.bf16.msrb.mxu3 %v9484_v21 }
 0x47c   : > { %v11714_v53 = vld [vmem:[#allocation2 + $0x24] sm:$0xff]  ;;  %v3704_v5 = vadd.f32 %v11620_v46, %v3661_v10  ;;  %4193 = vmatmul.bf16.gmra.mxu1 %v9878_v7  ;;  %v3414_v7 = vrot.slane %v11727_v63, 3 }
 0x47d   : > { %v11716_v20 = vld [vmem:[#allocation2 + $0x24] sm:$0xff]  ;;  %v4800_v40 = vshll.u32 %v11714_v53, 16 }
 0x47e   : > { %v3745_v57 = vmax.f32 %v3704_v5, 0.0  ;;  %v13315_v32 = vshrl.u32 %v11716_v20, 16  ;;  %v6721_v48 = vrot.slane %v11716_v20, 2  ;;  %v13314_v10 = vshll.u32 %v11716_v20, 16 }
 0x47f   : > { %v3534_v55 = vpop.f32.mrf.mxu0  ;;  %v4802_v58 = vrot.slane %v4800_v40, 1  ;;  %v9468_v40 = vld [vmem:[#allocation8 + $0xe8] sm:$0xff] }
 0x480   : > { %v3827_v11 = vmul.f32 %v3786_v17, %v3745_v57  ;;  %v3619_v22 = vadd.f32 %v3534_v55, %v11337_v43  ;;  %v11731_v14 = vsel %vm2235_vm2, %v6719_v36, %v6721_v48  ;;  %v6989_v5 = vrot.slane %v13315_v32, 2  ;;  %v9476_v17 = vld [vmem:[#allocation8 + $0x128] sm:$0xff]  ;;  %5480 = vmatpush.bf16.msrb.mxu1 %v9468_v40  ;;  %v3788_v40 = vld [vmem:[#allocation12 + $0x70] sm:$0xff] }
 0x481   : > { %v4803_v29 = vsel %vm534_vm0, %v4798_v38, %v4802_v58  ;;  %13505 = vst [vmem:[#allocation48_spill] sm:$0xff] %v11731_v14  ;;  %v6990_v57 = vrot.slane %v13314_v10, 3  ;;  %5739 = vmatpush.bf16.msrb.mxu2 %v9476_v17 }
 0x482   : > { %v9586_v51 = vpack.c.bf16 %v3827_v11, %v3826_v15  ;;  %5005 = vmatmul.bf16.gmra.mxu3 %v4803_v29  ;;  %v3662_v24 = vmul.f32 %v11616_v28, %v3619_v22  ;;  %v3415_v15 = vsel %vm3382_vm5, %v3412_v37, %v3414_v7 }
 0x483   : > { %v6991_v11 = vor.u32 %v6990_v57, %v6989_v5 }
 0x484   : > { %9734 = vst [vmem:[#allocation2 + $0x30] sm:$0xff] %v9586_v51   ;;  %v4340_v43 = vshrl.u32 %v9586_v51, 16  ;;  %v4343_v2 = vshll.u32 %v9586_v51, 16  ;;  %v3705_v22 = vadd.f32 %v11620_v46, %v3662_v24  ;;  %v3787_v24 = vld [vmem:[#allocation12 + $0x68] sm:$0xff] }
 0x485   : > { %v11746_v10 = vsel %vm2949_vm3, %v6987_v41, %v6991_v11 }
 0x486   : > { %v4342_v55 = vrot.slane %v4340_v43, 3  ;;  %v4345_v38 = vrot.slane %v4343_v2, 4  ;;  %13506 = vst [vmem:[#allocation49_spill] sm:$0xff] %v11746_v10  ;;  %v3746_v37 = vmax.f32 %v3705_v22, 0.0 }
 0x487   : > { %v3537_v36 = vpop.f32.mrf.mxu0 }
 0x488   : > { %v3620_v29 = vadd.f32 %v3537_v36, %v11354_v31  ;;  %v4346_v51 = vor.u32 %v4345_v38, %v4342_v55  ;;  %v4804_v31 = vshrl.u32 %v11714_v53, 16  ;;  %v11760_v53 = vld [vmem:[%s10510_s17 + $0x98] sm:$0xff] }
 0x48a   : > { %v3663_v43 = vmul.f32 %v11616_v28, %v3620_v29  ;;  %3576 = vmatmul.bf16.gmra.mxu0 %v3415_v15  ;;  %v4347_v2 = vsel %vm4285_vm6, %v4337_v19, %v4346_v51  ;;  %v4806_v38 = vor.u32 %v4804_v31, %v4802_v58  ;;  %v3828_v29 = vmul.f32 %v3787_v24, %v3746_v37 }
 0x48b   : > { %v9880_v17 = vld [vmem:[#allocation2 + $0x2c] sm:$0xff]   ;;  %4555 = vmatmul.bf16.gmra.mxu2 %v4347_v2 }
 0x48c   : > { %v9425_v21 = vld [vmem:[#allocation2 + $0x2c] sm:$0xff]  ;;  %v3706_v5 = vadd.f32 %v11620_v46, %v3663_v43  ;;  %4198 = vmatmul.bf16.gmra.mxu1 %v9880_v17 }
 0x48d   : > { %v11750_v39 = vld [vmem:[#allocation2 + $0x2c] sm:$0xff]  ;;  %v4808_v41 = vshll.u32 %v9425_v21, 16 }
 0x48e   : > { %v3747_v57 = vmax.f32 %v3706_v5, 0.0  ;;  %v13317_v19 = vshrl.u32 %v11750_v39, 16  ;;  %v6723_v15 = vrot.slane %v11750_v39, 2  ;;  %v13316_v2 = vshll.u32 %v11750_v39, 16 }
 0x48f   : > { %v3539_v55 = vpop.f32.mrf.mxu0  ;;  %v4810_v36 = vrot.slane %v4808_v41, 1  ;;  %v3416_v5 = vrot.slane %v11760_v53, 3 }
 0x490   : > { %v3829_v22 = vmul.f32 %v3788_v40, %v3747_v57  ;;  %v3621_v43 = vadd.f32 %v3539_v55, %v11374_v27  ;;  %v11764_v58 = vsel %vm2235_vm2, %v6721_v48, %v6723_v15  ;;  %v6993_v31 = vrot.slane %v13317_v19, 2 }
 0x491   : > { %v4811_v17 = vsel %vm534_vm0, %v4806_v38, %v4810_v36  ;;  %13507 = vst [vmem:[#allocation61_spill] sm:$0xff] %v11764_v58  ;;  %v6994_v40 = vrot.slane %v13316_v2, 3  ;;  %v3417_v48 = vsel %vm3382_vm5, %v3414_v7, %v3416_v5 }
 0x492   : > { %v9591_v32 = vpack.c.bf16 %v3829_v22, %v3828_v29  ;;  %5010 = vmatmul.bf16.gmra.mxu3 %v4811_v17  ;;  %v3664_v37 = vmul.f32 %v11616_v28, %v3621_v43 }
 0x493   : > { %v6995_v55 = vor.u32 %v6994_v40, %v6993_v31 }
 0x494   : > { %9735 = vst [vmem:[#allocation2 + $0x38] sm:$0xff] %v9591_v32   ;;  %v4349_v27 = vshrl.u32 %v9591_v32, 16  ;;  %v4352_v24 = vshll.u32 %v9591_v32, 16  ;;  %v3707_v29 = vadd.f32 %v11620_v46, %v3664_v37  ;;  %v3789_v37 = vld [vmem:[#allocation12 + $0x78] sm:$0xff] }
 0x495   : > { %v11777_v43 = vsel %vm2949_vm3, %v6991_v11, %v6995_v55  ;;  %v4812_v11 = vshrl.u32 %v9425_v21, 16  ;;  %v11793_v21 = vld [vmem:[%s10510_s17 + $0xa0] sm:$0xff] }
 0x496   : > { %v4351_v41 = vrot.slane %v4349_v27, 3  ;;  %v4354_v57 = vrot.slane %v4352_v24, 4  ;;  %13508 = vst [vmem:[#allocation52_spill] sm:$0xff] %v11777_v43  ;;  %v3748_v63 = vmax.f32 %v3707_v29, 0.0 }
 0x497   : > { %v3542_v38 = vpop.f32.mrf.mxu0 }
 0x498   : > { %v3622_v22 = vadd.f32 %v3542_v38, %v11398_v61  ;;  %v4355_v17 = vor.u32 %v4354_v57, %v4351_v41  ;;  %v3790_v61 = vld [vmem:[#allocation12 + $0x80] sm:$0xff]  ;;  %v4814_v38 = vor.u32 %v4812_v11, %v4810_v36  ;;  %v3830_v2 = vmul.f32 %v3789_v37, %v3748_v63  ;;  %v9475_v11 = vld [vmem:[#allocation8 + $0x120] sm:$0xff] }
 0x499   : > { %5740 = vmatpush.bf16.msrb.mxu2 %v9475_v11 }
 0x49a   : > { %v3665_v32 = vmul.f32 %v11616_v28, %v3622_v22  ;;  %3581 = vmatmul.bf16.gmra.mxu0 %v3417_v48  ;;  %v4356_v53 = vsel %vm4285_vm6, %v4346_v51, %v4355_v17 }
 0x49b   : > { %v9882_v27 = vld [vmem:[#allocation2 + $0x34] sm:$0xff]   ;;  %4560 = vmatmul.bf16.gmra.mxu2 %v4356_v53 }
 0x49c   : > { %v11781_v31 = vld [vmem:[#allocation2 + $0x34] sm:$0xff]  ;;  %v3708_v7 = vadd.f32 %v11620_v46, %v3665_v32  ;;  %4203 = vmatmul.bf16.gmra.mxu1 %v9882_v27 }
 0x49d   : > { %v11783_v24 = vld [vmem:[#allocation2 + $0x34] sm:$0xff]  ;;  %v4816_v40 = vshll.u32 %v11781_v31, 16 }
 0x49e   : > { %v3749_v41 = vmax.f32 %v3708_v7, 0.0  ;;  %v13319_v48 = vshrl.u32 %v11783_v24, 16  ;;  %v6725_v22 = vrot.slane %v11783_v24, 2  ;;  %v13318_v53 = vshll.u32 %v11783_v24, 16 }
 0x49f   : > { %v3544_v57 = vpop.f32.mrf.mxu0  ;;  %v4818_v51 = vrot.slane %v4816_v40, 1  ;;  %v3418_v7 = vrot.slane %v11793_v21, 3  ;;  %v2478_v40 = vadd.f32 %v11370_v35, %v11442_v0  ;;  %v13511_v0 = vld [vmem:[#allocation67_spill] sm:$0xff] }
 0x4a0   : > { %v3831_v29 = vmul.f32 %v3790_v61, %v3749_v41  ;;  %v3623_v32 = vadd.f32 %v3544_v57, %v11420_v34  ;;  %v11799_v36 = vsel %vm2235_vm2, %v6723_v15, %v6725_v22  ;;  %v6997_v63 = vrot.slane %v13319_v48, 2  ;;  %v9467_v48 = vld [vmem:[#allocation8 + $0xe0] sm:$0xff] }
 0x4a1   : > { %v4819_v27 = vsel %vm534_vm0, %v4814_v38, %v4818_v51  ;;  %13509 = vst [vmem:[#allocation60_spill] sm:$0xff] %v11799_v36  ;;  %5481 = vmatpush.bf16.msrb.mxu1 %v9467_v48 }
 0x4a2   : > { %v9596_v19 = vpack.c.bf16 %v3831_v29, %v3830_v2  ;;  %5015 = vmatmul.bf16.gmra.mxu3 %v4819_v27  ;;  %v3666_v34 = vmul.f32 %v11616_v28, %v3623_v32  ;;  %v6998_v2 = vrot.slane %v13318_v53, 3  ;;  %v3419_v29 = vsel %vm3382_vm5, %v3416_v5, %v3418_v7  ;;  %v9483_v53 = vld [vmem:[#allocation8 + $0x160] sm:$0xff] }
 0x4a3   : > { %6047 = vmatpush.bf16.msrb.mxu3 %v9483_v53  ;;  %v13512_v53 = vld [vmem:[#allocation68_spill] sm:$0xff] }
 0x4a4   : > { %9736 = vst [vmem:[#allocation2 + $0x40] sm:$0xff] %v9596_v19   ;;  %v4358_v37 = vshrl.u32 %v9596_v19, 16  ;;  %v4361_v61 = vshll.u32 %v9596_v19, 16  ;;  %v11808_v15 = vor.u32 %v6998_v2, %v6997_v63  ;;  %v3709_v32 = vadd.f32 %v11620_v46, %v3666_v34  ;;  %v9511_v34 = vld [vmem:[#allocation8 + $0x1b8] sm:$0xff] }
 0x4a5   : > { %v2906_v63 = vadd.f32 %v13511_v0, %v2478_v40  ;;  %6562 = vmatpush.bf16.msra.mxu0 %v9511_v34  ;;  %v3791_v40 = vld [vmem:[#allocation12 + $0x88] sm:$0xff] }
 0x4a6   : > { %v4360_v41 = vrot.slane %v4358_v37, 3  ;;  %v4363_v57 = vrot.slane %v4361_v61, 4  ;;  %v11819_v35 = vsel %vm2949_vm3, %v6995_v55, %v11808_v15  ;;  %v3750_v2 = vmax.f32 %v3709_v32, 0.0 }
 0x4a7   : > { %v3547_v38 = vpop.f32.mrf.mxu0  ;;  %13510 = vst [vmem:[#allocation53_spill] sm:$0xff] %v11819_v35 }
 0x4a8   : > { %v3624_v19 = vadd.f32 %v3547_v38, %v11440_v33  ;;  %v11815_v27 = vor.u32 %v4363_v57, %v4360_v41  ;;  %v3792_v41 = vld [vmem:[#allocation12 + $0x90] sm:$0xff]  ;;  %v4820_v57 = vshrl.u32 %v11781_v31, 16  ;;  %v3339_v38 = vadd.f32 %v13512_v53, %v2906_v63  ;;  %v9509_v63 = vld [vmem:[#allocation8 + $0x1a8] sm:$0xff] }
 0x4a9   : > { %v11839_v53 = vld [vmem:[%s10510_s17 + $0xa8] sm:$0xff] }
 0x4aa   : > { %v3667_v37 = vmul.f32 %v11616_v28, %v3624_v19  ;;  %3586 = vmatmul.bf16.gmra.mxu0 %v3419_v29  ;;  %v4365_v5 = vsel %vm4285_vm6, %v4355_v17, %v11815_v27  ;;  %v9510_v19 = vld [vmem:[#allocation8 + $0x1b0] sm:$0xff]  ;;  %v4822_v0 = vor.u32 %v4820_v57, %v4818_v51  ;;  %v3420_v51 = vrot.slane %v11839_v53, 3 }
 0x4ab   : > { %v9884_v61 = vld [vmem:[#allocation2 + $0x3c] sm:$0xff]   ;;  %4565 = vmatmul.bf16.gmra.mxu2 %v4365_v5  ;;  %v3832_v5 = vmul.f32 %v3791_v40, %v3750_v2  ;;  %6563 = vmatpush.bf16.msra.mxu0 %v9510_v19 }
 0x4ac   : > { %v11825_v33 = vld [vmem:[#allocation2 + $0x3c] sm:$0xff]  ;;  %v3710_v55 = vadd.f32 %v11620_v46, %v3667_v37  ;;  %4208 = vmatmul.bf16.gmra.mxu1 %v9884_v61 }
 0x4ad   : > { %v11827_v11 = vld [vmem:[#allocation2 + $0x3c] sm:$0xff]  ;;  %v4824_v17 = vshll.u32 %v11825_v33, 16 }
 0x4ae   : > { %v3751_v29 = vmax.f32 %v3710_v55, 0.0  ;;  %v13331_v32 = vshrl.u32 %v11827_v11, 16  ;;  %v6727_v37 = vrot.slane %v11827_v11, 2  ;;  %v13323_v31 = vshll.u32 %v11827_v11, 16  ;;  %v9508_v19 = vld [vmem:[#allocation8 + $0x1a0] sm:$0xff] }
 0x4af   : > { %v3549_v48 = vpop.f32.mrf.mxu0  ;;  %v4826_v49 = vrot.slane %v4824_v17, 1  ;;  %6564 = vmatpush.bf16.msra.mxu0 %v9509_v63  ;;  %v2480_v17 = vadd.f32 %v11415_v12, %v11461_v59 }
 0x4b0   : > { %v3833_v34 = vmul.f32 %v3792_v41, %v3751_v29  ;;  %v3625_v26 = vadd.f32 %v3549_v48, %v3339_v38  ;;  %v11847_v2 = vsel %vm2235_vm2, %v6725_v22, %v6727_v37  ;;  %v7001_v40 = vrot.slane %v13331_v32, 2 }
 0x4b1   : > { %v4827_v61 = vsel %vm534_vm0, %v4822_v0, %v4826_v49  ;;  %13513 = vst [vmem:[#allocation54_spill] sm:$0xff] %v11847_v2  ;;  %v2908_v59 = vadd.f32 %v11410_v60, %v2480_v17  ;;  %v3794_v60 = vld [vmem:[#allocation12 + $0xa0] sm:$0xff] }
 0x4b2   : > { %v9601_v52 = vpack.c.bf16 %v3833_v34, %v3832_v5  ;;  %5020 = vmatmul.bf16.gmra.mxu3 %v4827_v61  ;;  %v3668_v55 = vmul.f32 %v11616_v28, %v3625_v26  ;;  %v7002_v26 = vrot.slane %v13323_v31, 3 }
 0x4b3   : > { %6565 = vmatpush.bf16.msra.mxu0 %v9508_v19 }
 0x4b4   : > { %9737 = vst [vmem:[#allocation2 + $0x48] sm:$0xff] %v9601_v52   ;;  %v4367_v41 = vshrl.u32 %v9601_v52, 16  ;;  %v4370_v57 = vshll.u32 %v9601_v52, 16  ;;  %v11855_v48 = vor.u32 %v7002_v26, %v7001_v40  ;;  %v3711_v22 = vadd.f32 %v11620_v46, %v3668_v55 }
 0x4b5   : > { %v3421_v52 = vsel %vm3382_vm5, %v3418_v7, %v3420_v51  ;;  %v4174_v34 = vpop.f32.mrf.mxu1  ;;  %v9507_v7 = vld [vmem:[#allocation8 + $0x198] sm:$0xff]  ;;  %v4828_v26 = vshrl.u32 %v11825_v33, 16 }
 0x4b6   : > { %v4369_v38 = vrot.slane %v4367_v41, 3  ;;  %v4372_v29 = vrot.slane %v4370_v57, 4  ;;  %v11869_v12 = vsel %vm2949_vm3, %v11808_v15, %v11855_v48  ;;  %v3793_v57 = vld [vmem:[#allocation12 + $0x98] sm:$0xff] }
 0x4b7   : > { %v3552_v0 = vpop.f32.mrf.mxu0  ;;  %13514 = vst [vmem:[#allocation64_spill] sm:$0xff] %v11869_v12  ;;  %6566 = vmatpush.bf16.msra.mxu0 %v9507_v7  ;;  %v9479_v12 = vld [vmem:[#allocation8 + $0x140] sm:$0xff] }
 0x4b8   : > { %v3626_v5 = vadd.f32 %v3552_v0, %v11459_v47  ;;  %v11864_v61 = vor.u32 %v4372_v29, %v4369_v38  ;;  %v3752_v47 = vmax.f32 %v3711_v22, 0.0  ;;  %v9506_v29 = vld [vmem:[#allocation8 + $0x190] sm:$0xff]  ;;  %v4830_v0 = vor.u32 %v4828_v26, %v4826_v49 }
 0x4ba   : > { %v3669_v63 = vmul.f32 %v11616_v28, %v3626_v5  ;;  %3591 = vmatmul.bf16.gmra.mxu0 %v3421_v52  ;;  %v4374_v21 = vsel %vm4285_vm6, %v11815_v27, %v11864_v61  ;;  %v3341_v27 = vadd.f32 %v11432_v50, %v2908_v59  ;;  %v3834_v19 = vmul.f32 %v3793_v57, %v3752_v47 }
 0x4bb   : > { %v9886_v55 = vld [vmem:[#allocation2 + $0x44] sm:$0xff]   ;;  %4570 = vmatmul.bf16.gmra.mxu2 %v4374_v21  ;;  %6567 = vmatpush.bf16.msra.mxu0 %v9506_v29 }
 0x4bc   : > { %v11876_v40 = vld [vmem:[#allocation2 + $0x44] sm:$0xff]  ;;  %v3712_v15 = vadd.f32 %v11620_v46, %v3669_v63  ;;  %4213 = vmatmul.bf16.gmra.mxu1 %v9886_v55 }
 0x4bd   : > { %v11878_v41 = vld [vmem:[#allocation2 + $0x44] sm:$0xff]  ;;  %v4832_v17 = vshll.u32 %v11876_v40, 16  ;;  %v4176_v49 = vpop.f32.mrf.mxu1 }
 0x4be   : > { %v3753_v38 = vmax.f32 %v3712_v15, 0.0  ;;  %v4531_v5 = vpop.f32.mrf.mxu2  ;;  %v6729_v63 = vrot.slane %v11878_v41, 2  ;;  %v13329_v33 = vshrl.u32 %v11878_v41, 16  ;;  %v13328_v59 = vshll.u32 %v11878_v41, 16  ;;  %v9505_v55 = vld [vmem:[#allocation8 + $0x188] sm:$0xff] }
 0x4bf   : > { %v3554_v22 = vpop.f32.mrf.mxu0  ;;  %v11884_v52 = vrot.slane %v4832_v17, 1  ;;  %v11887_v31 = vadd.f32 %v4531_v5, %v4174_v34  ;;  %v3422_v15 = vrot.slane %v11405_v13, 3  ;;  %6568 = vmatpush.bf16.msra.mxu0 %v9505_v55  ;;  %v9482_v55 = vld [vmem:[#allocation8 + $0x158] sm:$0xff]  ;;  %v3798_v13 = vld [vmem:[#allocation12 + $0xc0] sm:$0xff] }
 0x4c0   : > { %v3835_v21 = vmul.f32 %v3794_v60, %v3753_v38  ;;  %v3627_v7 = vadd.f32 %v3554_v22, %v3341_v27  ;;  %v11900_v34 = vsel %vm2235_vm2, %v6727_v37, %v6729_v63  ;;  %v7005_v17 = vrot.slane %v13329_v33, 2  ;;  %v9504_v22 = vld [vmem:[#allocation8 + $0x180] sm:$0xff]  ;;  %6048 = vmatpush.bf16.msrb.mxu3 %v9482_v55 }
 0x4c1   : > { %v4835_v50 = vsel %vm534_vm0, %v4830_v0, %v11884_v52  ;;  %13515 = vst [vmem:[#allocation57_spill] sm:$0xff] %v11900_v34  ;;  %v7006_v27 = vrot.slane %v13328_v59, 3  ;;  %v2482_v38 = vadd.f32 %v11446_v30, %v11477_v56  ;;  %v3423_v5 = vsel %vm3382_vm5, %v3420_v51, %v3422_v15  ;;  %v9474_v56 = vld [vmem:[#allocation8 + $0x118] sm:$0xff]  ;;  %v9473_v59 = vld [vmem:[#allocation8 + $0x110] sm:$0xff] }
 0x4c2   : > { %v9606_v47 = vpack.c.bf16 %v3835_v21, %v3834_v19  ;;  %5025 = vmatmul.bf16.gmra.mxu3 %v4835_v50  ;;  %v3670_v57 = vmul.f32 %v11616_v28, %v3627_v7  ;;  %5741 = vmatpush.bf16.msrb.mxu2 %v9474_v56 }
 0x4c3   : > { %v11914_v7 = vor.u32 %v7006_v27, %v7005_v17  ;;  %6569 = vmatpush.bf16.msra.mxu0 %v9504_v22  ;;  %v2910_v53 = vadd.f32 %v11444_v16, %v2482_v38  ;;  %v4836_v38 = vshrl.u32 %v11876_v40, 16 }
 0x4c4   : > { %9738 = vst [vmem:[#allocation2 + $0x50] sm:$0xff] %v9606_v47   ;;  %v4376_v60 = vshrl.u32 %v9606_v47, 16  ;;  %v4379_v26 = vshll.u32 %v9606_v47, 16  ;;  %v3713_v0 = vadd.f32 %v11620_v46, %v3670_v57 }
 0x4c5   : > { %v11924_v57 = vsel %vm2949_vm3, %v11855_v48, %v11914_v7  ;;  %v3795_v48 = vld [vmem:[#allocation12 + $0xa8] sm:$0xff] }
 0x4c6   : > { %v4378_v29 = vrot.slane %v4376_v60, 3  ;;  %v4381_v19 = vrot.slane %v4379_v26, 4  ;;  %v4533_v21 = vpop.f32.mrf.mxu2  ;;  %v9466_v60 = vld [vmem:[#allocation8 + $0xd8] sm:$0xff]  ;;  %13516 = vst [vmem:[#allocation62_spill] sm:$0xff] %v11924_v57  ;;  %5742 = vmatpush.bf16.msrb.mxu2 %v9473_v59 }
 0x4c7   : > { %v3557_v37 = vpop.f32.mrf.mxu0  ;;  %v11917_v47 = vadd.f32 %v4533_v21, %v4176_v49  ;;  %v3754_v49 = vmax.f32 %v3713_v0, 0.0  ;;  %5482 = vmatpush.bf16.msrb.mxu1 %v9466_v60 }
 0x4c8   : > { %v3628_v50 = vadd.f32 %v3557_v37, %v11475_v45  ;;  %v11919_v30 = vor.u32 %v4381_v19, %v4378_v29 }
 0x4c9   : > { %v4179_v26 = vpop.f32.mrf.mxu1  ;;  %v3836_v0 = vmul.f32 %v3795_v48, %v3754_v49  ;;  %v11946_v49 = vld [vmem:[#allocation11] ss:$0 sm:$0xff] }
 0x4ca   : > { %v3671_v51 = vmul.f32 %v11616_v28, %v3628_v50  ;;  %3596 = vmatmul.bf16.gmra.mxu0 %v3423_v5  ;;  %v4383_v45 = vsel %vm4285_vm6, %v11864_v61, %v11919_v30  ;;  %v3796_v28 = vld [vmem:[#allocation12 + $0xb0] sm:$0xff]  ;;  %v3343_v61 = vadd.f32 %v11454_v1, %v2910_v53  ;;  %v4838_v5 = vor.u32 %v4836_v38, %v11884_v52 }
 0x4cb   : > { %v9888_v17 = vld [vmem:[#allocation2 + $0x4c] sm:$0xff]   ;;  %4575 = vmatmul.bf16.gmra.mxu2 %v4383_v45  ;;  %v6179_v38 = vld [vmem:[#allocation2 + $0x14] sm:$0xe] }
 0x4cc   : > { %v11931_v27 = vld [vmem:[#allocation2 + $0x4c] sm:$0xff]  ;;  %v3714_v16 = vadd.f32 %v11620_v46, %v3671_v51  ;;  %4218 = vmatmul.bf16.gmra.mxu1 %v9888_v17 }
 0x4cd   : > { %v11933_v29 = vld [vmem:[#allocation2 + $0x4c] sm:$0xff]  ;;  %v4840_v19 = vshll.u32 %v11931_v27, 16 }
 0x4ce   : > { %v3755_v22 = vmax.f32 %v3714_v16, 0.0  ;;  %v4536_v50 = vpop.f32.mrf.mxu2  ;;  %v6731_v56 = vrot.slane %v11933_v29, 2  ;;  %v13325_v51 = vshrl.u32 %v11933_v29, 16  ;;  %v13324_v45 = vshll.u32 %v11933_v29, 16 }
 0x4cf   : > { %v3559_v37 = vpop.f32.mrf.mxu0  ;;  %v4842_v21 = vrot.slane %v4840_v19, 1  ;;  %v11941_v60 = vadd.f32 %v4536_v50, %v4179_v26 }
 0x4d0   : > { %v3837_v55 = vmul.f32 %v3796_v28, %v3755_v22  ;;  %v3629_v46 = vadd.f32 %v3559_v37, %v3343_v61  ;;  %v11954_v26 = vsel %vm2235_vm2, %v6729_v63, %v6731_v56  ;;  %v7009_v16 = vrot.slane %v13325_v51, 2  ;;  %v11965_v37 = vld [vmem:[#allocation11 + $0x1] ss:$0 sm:$0xff] }
 0x4d1   : > { %v4843_v40 = vsel %vm534_vm0, %v4838_v5, %v4842_v21  ;;  %v4181_v53 = vpop.f32.mrf.mxu1  ;;  %13517 = vst [vmem:[#allocation58_spill] sm:$0xff] %v11954_v26  ;;  %v7010_v19 = vrot.slane %v13324_v45, 3  ;;  %v2484_v61 = vadd.f32 %v11465_v3, %v11495_v8  ;;  %v6270_v3 = vunpack.c.l.b16 %v6179_v38 }
 0x4d2   : > { %v9611_v1 = vpack.c.bf16 %v3837_v55, %v3836_v0  ;;  %5030 = vmatmul.bf16.gmra.mxu3 %v4843_v40  ;;  %v3672_v52 = vmul.f32 %v11946_v49, %v3629_v46 }
 0x4d3   : > { %v11968_v46 = vor.u32 %v7010_v19, %v7009_v16 }
 0x4d4   : > { %9739 = vst [vmem:[#allocation2 + $0x58] sm:$0xff] %v9611_v1   ;;  %v4385_v17 = vshrl.u32 %v9611_v1, 16  ;;  %v4388_v48 = vshll.u32 %v9611_v1, 16  ;;  %v3715_v5 = vadd.f32 %v11965_v37, %v3672_v52 }
 0x4d5   : > { %v4991_v28 = vpop.f32.mrf.mxu3  ;;  %v11978_v8 = vsel %vm2949_vm3, %v11914_v7, %v11968_v46  ;;  %v3797_v7 = vld [vmem:[#allocation12 + $0xb8] sm:$0xff] }
 0x4d6   : > { %v11963_v22 = vadd.f32 %v4991_v28, %v11887_v31  ;;  %v4387_v0 = vrot.slane %v4385_v17, 3  ;;  %v4390_v63 = vrot.slane %v4388_v48, 4  ;;  %v4538_v55 = vpop.f32.mrf.mxu2  ;;  %13518 = vst [vmem:[#allocation59_spill] sm:$0xff] %v11978_v8  ;;  %v2912_v31 = vadd.f32 %v11463_v44, %v2484_v61 }
 0x4d7   : > { %v3562_v50 = vpop.f32.mrf.mxu0  ;;  %v11971_v1 = vadd.f32 %v4538_v55, %v4181_v53  ;;  %v13519_v53 = vunpack.c.l.b16 %v11666_v23  ;;  %v3756_v16 = vmax.f32 %v3715_v5, 0.0  ;;  %v4844_v61 = vshrl.u32 %v11931_v27, 16 }
 0x4d8   : > { %v3630_v40 = vadd.f32 %v3562_v50, %v11491_v4  ;;  %v11973_v45 = vor.u32 %v4390_v63, %v4387_v0  ;;  %v3345_v23 = vadd.f32 %v11472_v9, %v2912_v31 }
 0x4d9   : > { %v4184_v17 = vpop.f32.mrf.mxu1  ;;  %v6307_v48 = vpack.c.b16 %v13519_v53, %v6270_v3  ;;  %v3838_v50 = vmul.f32 %v3797_v7, %v3756_v16  ;;  %v13521_v16 = vshll.u32 %v11681_v18, 16 }
 0x4da   : > { %v3673_v52 = vmul.f32 %v11946_v49, %v3630_v40  ;;  %3601 = vmatmul.bf16.gmra.mxu0 %v3422_v15  ;;  %v4392_v4 = vsel %vm4285_vm6, %v11919_v30, %v11973_v45  ;;  %v4846_v40 = vor.u32 %v4844_v61, %v4842_v21 }
 0x4db   : > { %v9890_v28 = vld [vmem:[#allocation2 + $0x54] sm:$0xff]   ;;  %4580 = vmatmul.bf16.gmra.mxu2 %v4392_v4  ;;  %v6327_v5 = vshrl.u32 %v6307_v48, 16  ;;  %v6330_v4 = vshll.u32 %v6307_v48, 16  ;;  %v6340_v7 = vrot.slane %v13521_v16, 2 }
 0x4dc   : > { %v11989_v38 = vld [vmem:[#allocation2 + $0x54] sm:$0xff]  ;;  %v3716_v44 = vadd.f32 %v11965_v37, %v3673_v52  ;;  %4223 = vmatmul.bf16.gmra.mxu1 %v9890_v28 }
 0x4dd   : > { %v11992_v19 = vld [vmem:[#allocation2 + $0x54] sm:$0xff]  ;;  %v4993_v15 = vpop.f32.mrf.mxu3  ;;  %v4848_v30 = vshll.u32 %v11989_v38, 16 }
 0x4de   : > { %v3757_v0 = vmax.f32 %v3716_v44, 0.0  ;;  %v11998_v63 = vadd.f32 %v4993_v15, %v11917_v47  ;;  %v4541_v52 = vpop.f32.mrf.mxu2  ;;  %v13326_v27 = vshrl.u32 %v11992_v19, 16  ;;  %v13520_v47 = vshrl.u32 %v11681_v18, 16 }
 0x4df   : > { %v3564_v55 = vpop.f32.mrf.mxu0  ;;  %v12000_v3 = vrot.slane %v4848_v30, 1  ;;  %v12002_v51 = vadd.f32 %v4541_v52, %v4184_v17  ;;  %v13327_v21 = vshll.u32 %v11992_v19, 16  ;;  %v6329_v17 = vrot.slane %v6327_v5, 1 }
 0x4e0   : > { %v3839_v53 = vmul.f32 %v3798_v13, %v3757_v0  ;;  %v3631_v28 = vadd.f32 %v3564_v55, %v3345_v23  ;;  %v6337_v31 = vrot.slane %v13520_v47, 1  ;;  %v6332_v15 = vrot.slane %v6330_v4, 2 }
 0x4e1   : > { %v4851_v9 = vsel %vm534_vm0, %v4846_v40, %v12000_v3  ;;  %v4186_v48 = vpop.f32.mrf.mxu1  ;;  %v6733_v61 = vrot.slane %v11992_v19, 2  ;;  %v7013_v0 = vrot.slane %v13326_v27, 2  ;;  %v7014_v5 = vrot.slane %v13327_v21, 3  ;;  %v13523_v40 = vld [vmem:[#allocation26_spill] sm:$0xff] }
 0x4e2   : > { %v9616_v44 = vpack.c.bf16 %v3839_v53, %v3838_v50  ;;  %5035 = vmatmul.bf16.gmra.mxu3 %v4851_v9  ;;  %v3674_v13 = vmul.f32 %v11946_v49, %v3631_v28  ;;  %v12016_v18 = vor.u32 %v6340_v7, %v6337_v31  ;;  %v2486_v52 = vadd.f32 %v13523_v40, %v11512_v25 }
 0x4e3   : > { %v12023_v50 = vsel %vm2235_vm2, %v6731_v56, %v6733_v61  ;;  %v6333_v31 = vor.u32 %v6332_v15, %v6329_v17  ;;  %v12033_v7 = vor.u32 %v7014_v5, %v7013_v0  ;;  %v13524_v56 = vld [vmem:[#allocation30_spill] sm:$0xff]  ;;  %v3799_v5 = vld [vmem:[#allocation12 + $0xc8] sm:$0xff] }
 0x4e4   : > { %9740 = vst [vmem:[#allocation2 + $0x60] sm:$0xff] %v9616_v44   ;;  %v4394_v30 = vshrl.u32 %v9616_v44, 16  ;;  %v4397_v23 = vshll.u32 %v9616_v44, 16  ;;  %v3717_v9 = vadd.f32 %v11965_v37, %v3674_v13  ;;  %v13526_v13 = vld [vmem:[#allocation20_spill] sm:$0xff] }
 0x4e5   : > { %v4996_v55 = vpop.f32.mrf.mxu3  ;;  %13522 = vst [vmem:[#allocation65_spill] sm:$0xff] %v12023_v50  ;;  %v6342_v25 = vsel %vm1802_vm4, %v6333_v31, %v12016_v18  ;;  %v2914_v17 = vadd.f32 %v13526_v13, %v2486_v52  ;;  %v3800_v52 = vld [vmem:[#allocation12 + $0xd0] sm:$0xff] }
 0x4e6   : > { %v12030_v4 = vadd.f32 %v4996_v55, %v11941_v60  ;;  %v4396_v53 = vrot.slane %v4394_v30, 3  ;;  %v4399_v28 = vrot.slane %v4397_v23, 4  ;;  %v4543_v16 = vpop.f32.mrf.mxu2  ;;  %v12045_v60 = vsel %vm2949_vm3, %v11968_v46, %v12033_v7  ;;  %v13527_v31 = vld [vmem:[#allocation21_spill] sm:$0xff] }
 0x4e7   : > { %v3567_v47 = vpop.f32.mrf.mxu0  ;;  %v12036_v27 = vadd.f32 %v4543_v16, %v4186_v48  ;;  %13525 = vst [vmem:[#allocation66_spill] sm:$0xff] %v12045_v60  ;;  %v3758_v23 = vmax.f32 %v3717_v9, 0.0  ;;  %v13537_v60 = vshrl.u32 %v11750_v39, 16 }
 0x4e8   : > { %v3632_v44 = vadd.f32 %v3567_v47, %v13524_v56  ;;  %v12038_v21 = vor.u32 %v4399_v28, %v4396_v53  ;;  %v4852_v28 = vshrl.u32 %v11989_v38, 16 }
 0x4e9   : > { %v4189_v30 = vpop.f32.mrf.mxu1  ;;  %v3840_v16 = vmul.f32 %v3799_v5, %v3758_v23 }
 0x4ea   : > { %v3675_v15 = vmul.f32 %v11946_v49, %v3632_v44  ;;  %6570 = vmatmul.bf16.vlgmr.msra.gmra.mxu0 %v6342_v25  ;;  %v4401_v48 = vsel %vm4285_vm6, %v11973_v45, %v12038_v21  ;;  %v3347_v45 = vadd.f32 %v13527_v31, %v2914_v17  ;;  %v4854_v44 = vor.u32 %v4852_v28, %v12000_v3  ;;  %v9481_v31 = vld [vmem:[#allocation8 + $0x150] sm:$0xff] }
 0x4eb   : > { %v9892_v0 = vld [vmem:[#allocation2 + $0x5c] sm:$0xff]   ;;  %4585 = vmatmul.bf16.gmra.mxu2 %v4401_v48  ;;  %v13528_v17 = vshrl.u32 %v11716_v20, 16  ;;  %6049 = vmatpush.bf16.msrb.mxu3 %v9481_v31 }
 0x4ec   : > { %v12052_v55 = vld [vmem:[#allocation2 + $0x5c] sm:$0xff]  ;;  %v3718_v40 = vadd.f32 %v11965_v37, %v3675_v15  ;;  %4228 = vmatmul.bf16.gmra.mxu1 %v9892_v0 }
 0x4ed   : > { %v12055_v46 = vld [vmem:[#allocation2 + $0x5c] sm:$0xff]  ;;  %v4998_v53 = vpop.f32.mrf.mxu3  ;;  %v4856_v47 = vshll.u32 %v12052_v55, 16 }
 0x4ee   : > { %v3759_v59 = vmax.f32 %v3718_v40, 0.0  ;;  %v12061_v9 = vadd.f32 %v4998_v53, %v11971_v1  ;;  %v4546_v13 = vpop.f32.mrf.mxu2  ;;  %v13330_v38 = vshrl.u32 %v12055_v46, 16  ;;  %v6346_v40 = vrot.slane %v13528_v17, 1 }
 0x4ef   : > { %v3569_v56 = vpop.f32.mrf.mxu0  ;;  %v4858_v25 = vrot.slane %v4856_v47, 1  ;;  %v12064_v33 = vadd.f32 %v4546_v13, %v4189_v30  ;;  %v13529_v1 = vshll.u32 %v11716_v20, 16  ;;  %v13333_v23 = vshll.u32 %v12055_v46, 16  ;;  %v13531_v13 = vld [vmem:[#allocation27_spill] sm:$0xff] }
 0x4f0   : > { %v3841_v15 = vmul.f32 %v3800_v52, %v3759_v59  ;;  %v3633_v48 = vadd.f32 %v3569_v56, %v3347_v45  ;;  %v13332_v30 = vrot.slane %v12055_v46, 2  ;;  %v9465_v45 = vld [vmem:[#allocation8 + $0xd0] sm:$0xff]  ;;  %v7017_v59 = vrot.slane %v13330_v38, 2 }
 0x4f1   : > { %v4859_v0 = vsel %vm534_vm0, %v4854_v44, %v4858_v25  ;;  %v6349_v53 = vrot.slane %v13529_v1, 2  ;;  %v4191_v3 = vpop.f32.mrf.mxu1  ;;  %v7018_v44 = vrot.slane %v13333_v23, 3  ;;  %5483 = vmatpush.bf16.msrb.mxu1 %v9465_v45 }
 0x4f2   : > { %v9621_v5 = vpack.c.bf16 %v3841_v15, %v3840_v16  ;;  %5040 = vmatmul.bf16.gmra.mxu3 %v4859_v0  ;;  %v3676_v52 = vmul.f32 %v11946_v49, %v3633_v48  ;;  %v12084_v16 = vsel %vm2235_vm2, %v6733_v61, %v13332_v30  ;;  %v13532_v15 = vld [vmem:[#allocation31_spill] sm:$0xff]  ;;  %v13533_v61 = vld [vmem:[#allocation36_spill] sm:$0xff] }
 0x4f3   : > { %v12077_v20 = vor.u32 %v6349_v53, %v6346_v40  ;;  %13530 = vst [vmem:[#allocation67_spill] sm:$0xff] %v12084_v16  ;;  %v2488_v48 = vadd.f32 %v13532_v15, %v13531_v13  ;;  %v12094_v38 = vor.u32 %v7018_v44, %v7017_v59  ;;  %v3802_v15 = vld [vmem:[#allocation12 + $0xe0] sm:$0xff] }
 0x4f4   : > { %9741 = vst [vmem:[#allocation2 + $0x68] sm:$0xff] %v9621_v5   ;;  %v4403_v28 = vshrl.u32 %v9621_v5, 16  ;;  %v4406_v47 = vshll.u32 %v9621_v5, 16  ;;  %v3719_v40 = vadd.f32 %v11965_v37, %v3676_v52  ;;  %v13535_v52 = vld [vmem:[#allocation22_spill] sm:$0xff] }
 0x4f5   : > { %v5001_v56 = vpop.f32.mrf.mxu3 }
 0x4f6   : > { %v12091_v0 = vadd.f32 %v5001_v56, %v12002_v51  ;;  %v4405_v17 = vrot.slane %v4403_v28, 3  ;;  %v4408_v1 = vrot.slane %v4406_v47, 4  ;;  %v4548_v5 = vpop.f32.mrf.mxu2  ;;  %v6351_v51 = vsel %vm1802_vm4, %v12016_v18, %v12077_v20  ;;  %v3801_v18 = vld [vmem:[#allocation12 + $0xd8] sm:$0xff] }
 0x4f7   : > { %v3572_v53 = vpop.f32.mrf.mxu0  ;;  %v12097_v30 = vadd.f32 %v4548_v5, %v4191_v3  ;;  %v12107_v28 = vsel %vm2949_vm3, %v12033_v7, %v12094_v38  ;;  %v2916_v47 = vadd.f32 %v13535_v52, %v2488_v48  ;;  %v3760_v59 = vmax.f32 %v3719_v40, 0.0 }
 0x4f8   : > { %v3634_v32 = vadd.f32 %v3572_v53, %v13533_v61  ;;  %v12099_v23 = vor.u32 %v4408_v1, %v4405_v17  ;;  %13534 = vst [vmem:[#allocation68_spill] sm:$0xff] %v12107_v28  ;;  %v13536_v1 = vld [vmem:[#allocation23_spill] sm:$0xff] }
 0x4f9   : > { %v4194_v45 = vpop.f32.mrf.mxu1  ;;  %v3349_v53 = vadd.f32 %v13536_v1, %v2916_v47  ;;  %v3842_v5 = vmul.f32 %v3801_v18, %v3760_v59  ;;  %v6355_v47 = vrot.slane %v13537_v60, 1 }
 0x4fa   : > { %v3677_v31 = vmul.f32 %v11946_v49, %v3634_v32  ;;  %6575 = vmatmul.bf16.gmra.mxu0 %v6351_v51  ;;  %v4410_v3 = vsel %vm4285_vm6, %v12038_v21, %v12099_v23  ;;  %v4860_v32 = vshrl.u32 %v12052_v55, 16 }
 0x4fb   : > { %v9894_v56 = vld [vmem:[#allocation2 + $0x64] sm:$0xff]   ;;  %4590 = vmatmul.bf16.gmra.mxu2 %v4410_v3 }
 0x4fc   : > { %v12114_v44 = vld [vmem:[#allocation2 + $0x64] sm:$0xff]  ;;  %v3720_v13 = vadd.f32 %v11965_v37, %v3677_v31  ;;  %4233 = vmatmul.bf16.gmra.mxu1 %v9894_v56  ;;  %v4862_v51 = vor.u32 %v4860_v32, %v4858_v25 }
 0x4fd   : > { %v12117_v7 = vld [vmem:[#allocation2 + $0x64] sm:$0xff]  ;;  %v5003_v48 = vpop.f32.mrf.mxu3  ;;  %v4864_v17 = vshll.u32 %v12114_v44, 16 }
 0x4fe   : > { %v3761_v21 = vmax.f32 %v3720_v13, 0.0  ;;  %v12123_v40 = vadd.f32 %v5003_v48, %v12036_v27  ;;  %v4551_v31 = vpop.f32.mrf.mxu2  ;;  %v13334_v56 = vshrl.u32 %v12117_v7, 16  ;;  %v13538_v13 = vshll.u32 %v11750_v39, 16 }
 0x4ff   : > { %v3574_v61 = vpop.f32.mrf.mxu0  ;;  %v4866_v52 = vrot.slane %v4864_v17, 1  ;;  %v12125_v16 = vadd.f32 %v4551_v31, %v4194_v45  ;;  %v13336_v59 = vshll.u32 %v12117_v7, 16  ;;  %v13539_v39 = vrot.slane %v12055_v46, 2 }
 0x500   : > { %v3843_v3 = vmul.f32 %v3802_v15, %v3761_v21  ;;  %v3635_v28 = vadd.f32 %v3574_v61, %v3349_v53  ;;  %v6358_v27 = vrot.slane %v13538_v13, 2  ;;  %v13335_v15 = vrot.slane %v12117_v7, 2 }
 0x501   : > { %v4867_v55 = vsel %vm534_vm0, %v4862_v51, %v4866_v52  ;;  %v4196_v25 = vpop.f32.mrf.mxu1  ;;  %v7021_v17 = vrot.slane %v13334_v56, 2  ;;  %v7022_v21 = vrot.slane %v13336_v59, 3  ;;  %v13547_v59 = vshrl.u32 %v11783_v24, 16 }
 0x502   : > { %v9626_v18 = vpack.c.bf16 %v3843_v3, %v3842_v5  ;;  %5045 = vmatmul.bf16.gmra.mxu3 %v4867_v55  ;;  %v3678_v45 = vmul.f32 %v11946_v49, %v3635_v28  ;;  %v12138_v60 = vor.u32 %v6358_v27, %v6355_v47  ;;  %v12145_v53 = vsel %vm2235_vm2, %v13539_v39, %v13335_v15  ;;  %v13541_v5 = vld [vmem:[#allocation32_spill] sm:$0xff]  ;;  %v13542_v28 = vld [vmem:[#allocation25_spill] sm:$0xff] }
 0x503   : > { %13540 = vst [vmem:[#allocation26_spill] sm:$0xff] %v12145_v53  ;;  %v2490_v61 = vadd.f32 %v13542_v28, %v13541_v5  ;;  %v12154_v13 = vor.u32 %v7022_v21, %v7021_v17 }
 0x504   : > { %9742 = vst [vmem:[#allocation2 + $0x70] sm:$0xff] %v9626_v18   ;;  %v4412_v48 = vshrl.u32 %v9626_v18, 16  ;;  %v4415_v32 = vshll.u32 %v9626_v18, 16  ;;  %v3721_v27 = vadd.f32 %v11965_v37, %v3678_v45  ;;  %v13543_v18 = vld [vmem:[#allocation41_spill] sm:$0xff]  ;;  %v6360_v5 = vsel %vm1802_vm4, %v12077_v20, %v12138_v60 }
 0x505   : > { %v5006_v1 = vpop.f32.mrf.mxu3 }
 0x506   : > { %v12152_v51 = vadd.f32 %v5006_v1, %v12064_v33  ;;  %v4414_v31 = vrot.slane %v4412_v48, 3  ;;  %v4417_v3 = vrot.slane %v4415_v32, 4  ;;  %v4553_v47 = vpop.f32.mrf.mxu2  ;;  %v12168_v33 = vsel %vm2949_vm3, %v12094_v38, %v12154_v13  ;;  %v13545_v48 = vld [vmem:[#allocation24_spill] sm:$0xff]  ;;  %v3804_v38 = vld [vmem:[#allocation12 + $0xf0] sm:$0xff] }
 0x507   : > { %v3577_v55 = vpop.f32.mrf.mxu0  ;;  %v12158_v56 = vadd.f32 %v4553_v47, %v4196_v25  ;;  %13544 = vst [vmem:[#allocation30_spill] sm:$0xff] %v12168_v33  ;;  %v2918_v32 = vadd.f32 %v13545_v48, %v2490_v61  ;;  %v3762_v28 = vmax.f32 %v3721_v27, 0.0  ;;  %v4868_v61 = vshrl.u32 %v12114_v44, 16 }
 0x508   : > { %v3636_v39 = vadd.f32 %v3577_v55, %v13543_v18  ;;  %v12160_v15 = vor.u32 %v4417_v3, %v4414_v31  ;;  %v3803_v31 = vld [vmem:[#allocation12 + $0xe8] sm:$0xff]  ;;  %v13546_v18 = vld [vmem:[#allocation63_spill] sm:$0xff] }
 0x509   : > { %v4199_v45 = vpop.f32.mrf.mxu1  ;;  %v4870_v48 = vor.u32 %v4868_v61, %v4866_v52  ;;  %v3844_v33 = vmul.f32 %v3803_v31, %v3762_v28 }
 0x50a   : > { %v3679_v17 = vmul.f32 %v11946_v49, %v3636_v39  ;;  %6580 = vmatmul.bf16.gmra.mxu0 %v6360_v5  ;;  %v4419_v25 = vsel %vm4285_vm6, %v12099_v23, %v12160_v15  ;;  %v3351_v39 = vadd.f32 %v13546_v18, %v2918_v32  ;;  %v9480_v18 = vld [vmem:[#allocation8 + $0x148] sm:$0xff] }
 0x50b   : > { %v9896_v1 = vld [vmem:[#allocation2 + $0x6c] sm:$0xff]   ;;  %4595 = vmatmul.bf16.gmra.mxu2 %v4419_v25  ;;  %6050 = vmatpush.bf16.msrb.mxu3 %v9480_v18 }
 0x50c   : > { %v12175_v21 = vld [vmem:[#allocation2 + $0x6c] sm:$0xff]  ;;  %v3722_v20 = vadd.f32 %v11965_v37, %v3679_v17  ;;  %4238 = vmatmul.bf16.gmra.mxu1 %v9896_v1  ;;  %v6364_v1 = vrot.slane %v13547_v59, 1 }
 0x50d   : > { %v5008_v3 = vpop.f32.mrf.mxu3  ;;  %v4872_v55 = vshll.u32 %v12175_v21, 16  ;;  %v12180_v47 = vld [vmem:[#allocation2 + $0x6c] sm:$0xff] }
 0x50e   : > { %v3763_v23 = vmax.f32 %v3722_v20, 0.0  ;;  %v12184_v5 = vadd.f32 %v5008_v3, %v12097_v30  ;;  %v4556_v25 = vpop.f32.mrf.mxu2  ;;  %v13548_v20 = vshll.u32 %v11783_v24, 16  ;;  %v13338_v3 = vshrl.u32 %v12180_v47, 16 }
 0x50f   : > { %v3579_v27 = vpop.f32.mrf.mxu0  ;;  %v12186_v17 = vrot.slane %v4872_v55, 1  ;;  %v12190_v50 = vadd.f32 %v4556_v25, %v4199_v45  ;;  %v13339_v52 = vshll.u32 %v12180_v47, 16  ;;  %v13337_v28 = vrot.slane %v12180_v47, 2  ;;  %v13551_v25 = vld [vmem:[#allocation37_spill] sm:$0xff]  ;;  %6051 = vmatpush.bf16.msrb.mxu3 %v9479_v12 }
 0x510   : > { %v3845_v44 = vmul.f32 %v3804_v38, %v3763_v23  ;;  %v3637_v53 = vadd.f32 %v3579_v27, %v3351_v39  ;;  %v6367_v30 = vrot.slane %v13548_v20, 2  ;;  %v9472_v38 = vld [vmem:[#allocation8 + $0x108] sm:$0xff]  ;;  %v13549_v27 = vrot.slane %v12117_v7, 2 }
 0x511   : > { %v4875_v32 = vsel %vm534_vm0, %v4870_v48, %v12186_v17  ;;  %v4201_v55 = vpop.f32.mrf.mxu1  ;;  %v9464_v39 = vld [vmem:[#allocation8 + $0xc8] sm:$0xff]  ;;  %v7026_v48 = vrot.slane %v13339_v52, 3  ;;  %5743 = vmatpush.bf16.msrb.mxu2 %v9472_v38 }
 0x512   : > { %v9631_v61 = vpack.c.bf16 %v3845_v44, %v3844_v33  ;;  %5050 = vmatmul.bf16.gmra.mxu3 %v4875_v32  ;;  %v3680_v59 = vmul.f32 %v11946_v49, %v3637_v53  ;;  %v12200_v24 = vor.u32 %v6367_v30, %v6364_v1  ;;  %v12207_v33 = vsel %vm2235_vm2, %v13549_v27, %v13337_v28  ;;  %v13552_v44 = vld [vmem:[#allocation28_spill] sm:$0xff] }
 0x513   : > { %13550 = vst [vmem:[#allocation20_spill] sm:$0xff] %v12207_v33  ;;  %v7025_v53 = vrot.slane %v13338_v3, 2  ;;  %v2492_v32 = vadd.f32 %v13552_v44, %v13551_v25  ;;  %5484 = vmatpush.bf16.msrb.mxu1 %v9464_v39  ;;  %v13553_v3 = vld [vmem:[#allocation46_spill] sm:$0xff]  ;;  %v13556_v44 = vld [vmem:[#allocation29_spill] sm:$0xff] }
 0x514   : > { %9743 = vst [vmem:[#allocation2 + $0x78] sm:$0xff] %v9631_v61   ;;  %v4421_v45 = vshrl.u32 %v9631_v61, 16  ;;  %v4424_v31 = vshll.u32 %v9631_v61, 16  ;;  %v3723_v61 = vadd.f32 %v11965_v37, %v3680_v59  ;;  %v13555_v59 = vld [vmem:[#allocation35_spill] sm:$0xff] }
 0x515   : > { %v5011_v23 = vpop.f32.mrf.mxu3  ;;  %v12219_v33 = vor.u32 %v7026_v48, %v7025_v53  ;;  %v3806_v53 = vld [vmem:[#allocation12 + $0x100] sm:$0xff] }
 0x516   : > { %v12216_v20 = vadd.f32 %v5011_v23, %v12125_v16  ;;  %v4423_v1 = vrot.slane %v4421_v45, 3  ;;  %v4426_v30 = vrot.slane %v4424_v31, 4  ;;  %v4558_v28 = vpop.f32.mrf.mxu2  ;;  %v6369_v16 = vsel %vm1802_vm4, %v12138_v60, %v12200_v24  ;;  %v3805_v60 = vld [vmem:[#allocation12 + $0xf8] sm:$0xff] }
 0x517   : > { %v3582_v27 = vpop.f32.mrf.mxu0  ;;  %v12222_v52 = vadd.f32 %v4558_v28, %v4201_v55  ;;  %v12232_v45 = vsel %vm2949_vm3, %v12154_v13, %v12219_v33  ;;  %v2920_v31 = vadd.f32 %v13555_v59, %v2492_v32  ;;  %v3764_v55 = vmax.f32 %v3723_v61, 0.0 }
 0x518   : > { %v3638_v8 = vadd.f32 %v3582_v27, %v13553_v3  ;;  %v12224_v26 = vor.u32 %v4426_v30, %v4423_v1  ;;  %13554 = vst [vmem:[#allocation21_spill] sm:$0xff] %v12232_v45 }
 0x519   : > { %v4204_v18 = vpop.f32.mrf.mxu1  ;;  %v3353_v32 = vadd.f32 %v13556_v44, %v2920_v31  ;;  %v3846_v30 = vmul.f32 %v3805_v60, %v3764_v55  ;;  %v13557_v31 = vshrl.u32 %v11827_v11, 16 }
 0x51a   : > { %v3681_v38 = vmul.f32 %v11946_v49, %v3638_v8  ;;  %6585 = vmatmul.bf16.gmra.mxu0 %v6369_v16  ;;  %v4428_v3 = vsel %vm4285_vm6, %v12160_v15, %v12224_v26  ;;  %v4876_v8 = vshrl.u32 %v12175_v21, 16 }
 0x51b   : > { %v9898_v28 = vld [vmem:[#allocation2 + $0x74] sm:$0xff]   ;;  %4600 = vmatmul.bf16.gmra.mxu2 %v4428_v3 }
 0x51c   : > { %v12239_v39 = vld [vmem:[#allocation2 + $0x74] sm:$0xff]  ;;  %v3724_v23 = vadd.f32 %v11965_v37, %v3681_v38  ;;  %4243 = vmatmul.bf16.gmra.mxu1 %v9898_v28  ;;  %v4878_v27 = vor.u32 %v4876_v8, %v12186_v17 }
 0x51d   : > { %v12242_v13 = vld [vmem:[#allocation2 + $0x74] sm:$0xff]  ;;  %v5013_v48 = vpop.f32.mrf.mxu3  ;;  %v4880_v25 = vshll.u32 %v12239_v39, 16 }
 0x51e   : > { %v3765_v15 = vmax.f32 %v3724_v23, 0.0  ;;  %v12248_v1 = vadd.f32 %v5013_v48, %v12158_v56  ;;  %v4561_v59 = vpop.f32.mrf.mxu2  ;;  %v13340_v21 = vshrl.u32 %v12242_v13, 16  ;;  %v6373_v23 = vrot.slane %v13557_v31, 1 }
 0x51f   : > { %v3584_v61 = vpop.f32.mrf.mxu0  ;;  %v4882_v16 = vrot.slane %v4880_v25, 1  ;;  %v12251_v45 = vadd.f32 %v4561_v59, %v4204_v18  ;;  %v13558_v56 = vshll.u32 %v11827_v11, 16  ;;  %v13342_v55 = vshll.u32 %v12242_v13, 16  ;;  %v13562_v59 = vld [vmem:[#allocation33_spill] sm:$0xff] }
 0x520   : > { %v3847_v38 = vmul.f32 %v3806_v53, %v3765_v15  ;;  %v3639_v3 = vadd.f32 %v3584_v61, %v3353_v32  ;;  %v13341_v53 = vrot.slane %v12242_v13, 2  ;;  %v7029_v44 = vrot.slane %v13340_v21, 2  ;;  %v13563_v21 = vld [vmem:[#allocation51_spill] sm:$0xff] }
 0x521   : > { %v4883_v28 = vsel %vm534_vm0, %v4878_v27, %v4882_v16  ;;  %v6376_v48 = vrot.slane %v13558_v56, 2  ;;  %v4206_v17 = vpop.f32.mrf.mxu1  ;;  %v13559_v11 = vrot.slane %v12180_v47, 2  ;;  %v7030_v61 = vrot.slane %v13342_v55, 3  ;;  %v13561_v27 = vld [vmem:[#allocation42_spill] sm:$0xff] }
 0x522   : > { %v9636_v60 = vpack.c.bf16 %v3847_v38, %v3846_v30  ;;  %5055 = vmatmul.bf16.gmra.mxu3 %v4883_v28  ;;  %v3682_v18 = vmul.f32 %v11946_v49, %v3639_v3  ;;  %v2494_v38 = vadd.f32 %v13562_v59, %v13561_v27  ;;  %v3807_v59 = vld [vmem:[#allocation12 + $0x108] sm:$0xff]  ;;  %v13567_v55 = vshrl.u32 %v11878_v41, 16 }
 0x523   : > { %v12264_v15 = vor.u32 %v6376_v48, %v6373_v23  ;;  %v12271_v30 = vsel %vm2235_vm2, %v13559_v11, %v13341_v53  ;;  %v12280_v48 = vor.u32 %v7030_v61, %v7029_v44 }
 0x524   : > { %9744 = vst [vmem:[#allocation2 + $0x80] sm:$0xff] %v9636_v60   ;;  %v4430_v8 = vshrl.u32 %v9636_v60, 16  ;;  %v4433_v25 = vshll.u32 %v9636_v60, 16  ;;  %v3725_v60 = vadd.f32 %v11965_v37, %v3682_v18 }
 0x525   : > { %v5016_v32 = vpop.f32.mrf.mxu3  ;;  %13560 = vst [vmem:[#allocation27_spill] sm:$0xff] %v12271_v30  ;;  %v6378_v27 = vsel %vm1802_vm4, %v12200_v24, %v12264_v15 }
 0x526   : > { %v12278_v3 = vadd.f32 %v5016_v32, %v12190_v50  ;;  %v4432_v28 = vrot.slane %v4430_v8, 3  ;;  %v4435_v31 = vrot.slane %v4433_v25, 4  ;;  %v4563_v56 = vpop.f32.mrf.mxu2  ;;  %v12294_v50 = vsel %vm2949_vm3, %v12219_v33, %v12280_v48  ;;  %v13565_v8 = vld [vmem:[#allocation40_spill] sm:$0xff]  ;;  %v3808_v33 = vld [vmem:[#allocation12 + $0x110] sm:$0xff] }
 0x527   : > { %v3587_v23 = vpop.f32.mrf.mxu0  ;;  %v12284_v53 = vadd.f32 %v4563_v56, %v4206_v17  ;;  %13564 = vst [vmem:[#allocation31_spill] sm:$0xff] %v12294_v50  ;;  %v2922_v25 = vadd.f32 %v13565_v8, %v2494_v38  ;;  %v3766_v61 = vmax.f32 %v3725_v60, 0.0  ;;  %v4884_v38 = vshrl.u32 %v12239_v39, 16  ;;  %v13566_v56 = vld [vmem:[#allocation34_spill] sm:$0xff] }
 0x528   : > { %v3640_v11 = vadd.f32 %v3587_v23, %v13563_v21  ;;  %v12286_v30 = vor.u32 %v4435_v31, %v4432_v28 }
 0x529   : > { %v4209_v18 = vpop.f32.mrf.mxu1  ;;  %v4886_v8 = vor.u32 %v4884_v38, %v4882_v16  ;;  %v3848_v50 = vmul.f32 %v3807_v59, %v3766_v61 }
 0x52a   : > { %v3683_v44 = vmul.f32 %v11946_v49, %v3640_v11  ;;  %6590 = vmatmul.bf16.gmra.mxu0 %v6378_v27  ;;  %v4437_v21 = vsel %vm4285_vm6, %v12224_v26, %v12286_v30  ;;  %v3355_v11 = vadd.f32 %v13566_v56, %v2922_v25 }
 0x52b   : > { %v9900_v17 = vld [vmem:[#allocation2 + $0x7c] sm:$0xff]   ;;  %4605 = vmatmul.bf16.gmra.mxu2 %v4437_v21 }
 0x52c   : > { %v12301_v32 = vld [vmem:[#allocation2 + $0x7c] sm:$0xff]  ;;  %v3726_v24 = vadd.f32 %v11965_v37, %v3683_v44  ;;  %4248 = vmatmul.bf16.gmra.mxu1 %v9900_v17  ;;  %v6382_v17 = vrot.slane %v13567_v55, 1 }
 0x52d   : > { %v5018_v28 = vpop.f32.mrf.mxu3  ;;  %v4888_v31 = vshll.u32 %v12301_v32, 16  ;;  %v12306_v23 = vld [vmem:[#allocation2 + $0x7c] sm:$0xff] }
 0x52e   : > { %v3767_v26 = vmax.f32 %v3726_v24, 0.0  ;;  %v12310_v27 = vadd.f32 %v5018_v28, %v12222_v52  ;;  %v4566_v21 = vpop.f32.mrf.mxu2  ;;  %v13568_v24 = vshll.u32 %v11878_v41, 16  ;;  %v13344_v28 = vshrl.u32 %v12306_v23, 16  ;;  %v9471_v41 = vld [vmem:[#allocation8 + $0x100] sm:$0xff] }
 0x52f   : > { %v3589_v60 = vpop.f32.mrf.mxu0  ;;  %v12312_v44 = vrot.slane %v4888_v31, 1  ;;  %v12316_v34 = vadd.f32 %v4566_v21, %v4209_v18  ;;  %v13345_v16 = vshll.u32 %v12306_v23, 16  ;;  %v13343_v61 = vrot.slane %v12306_v23, 2  ;;  %5744 = vmatpush.bf16.msrb.mxu2 %v9471_v41 }
 0x530   : > { %v3849_v39 = vmul.f32 %v3808_v33, %v3767_v26  ;;  %v3641_v57 = vadd.f32 %v3589_v60, %v3355_v11  ;;  %v6385_v52 = vrot.slane %v13568_v24, 2  ;;  %v13571_v60 = vld [vmem:[#allocation38_spill] sm:$0xff] }
 0x531   : > { %v4891_v25 = vsel %vm534_vm0, %v4886_v8, %v12312_v44  ;;  %v4211_v31 = vpop.f32.mrf.mxu1  ;;  %v7034_v26 = vrot.slane %v13345_v16, 3  ;;  %v2496_v8 = vadd.f32 %v13571_v60, %v11597_v6  ;;  %v9463_v6 = vld [vmem:[#allocation8 + $0xc0] sm:$0xff] }
 0x532   : > { %v12324_v38 = vpack.c.bf16 %v3849_v39, %v3848_v50  ;;  %5060 = vmatmul.bf16.gmra.mxu3 %v4891_v25  ;;  %v3684_v55 = vmul.f32 %v11946_v49, %v3641_v57  ;;  %v12331_v56 = vor.u32 %v6385_v52, %v6382_v17  ;;  %v13569_v50 = vrot.slane %v12242_v13, 2  ;;  %5485 = vmatpush.bf16.msrb.mxu1 %v9463_v6 }
 0x533   : > { %v7033_v57 = vrot.slane %v13344_v28, 2 }
 0x534   : > { %9745 = vst [vmem:[#allocation2 + $0x88] sm:$0xff] %v12324_v38   ;;  %v4439_v18 = vshrl.u32 %v12324_v38, 16  ;;  %v4442_v59 = vshll.u32 %v12324_v38, 16  ;;  %v12338_v11 = vsel %vm2235_vm2, %v13569_v50, %v13343_v61  ;;  %v3727_v25 = vadd.f32 %v11965_v37, %v3684_v55  ;;  %v13572_v61 = vld [vmem:[#allocation56_spill] sm:$0xff] }
 0x535   : > { %v5021_v33 = vpop.f32.mrf.mxu3  ;;  %13570 = vst [vmem:[#allocation36_spill] sm:$0xff] %v12338_v11  ;;  %v12350_v50 = vor.u32 %v7034_v26, %v7033_v57 }
 0x536   : > { %v12347_v21 = vadd.f32 %v5021_v33, %v12251_v45  ;;  %v4441_v17 = vrot.slane %v4439_v18, 3  ;;  %v4444_v39 = vrot.slane %v4442_v59, 4  ;;  %v4568_v52 = vpop.f32.mrf.mxu2  ;;  %v6387_v45 = vsel %vm1802_vm4, %v12264_v15, %v12331_v56  ;;  %v13574_v18 = vld [vmem:[#allocation45_spill] sm:$0xff] }
 0x537   : > { %v3592_v24 = vpop.f32.mrf.mxu0  ;;  %v12353_v11 = vadd.f32 %v4568_v52, %v4211_v31  ;;  %v12363_v55 = vsel %vm2949_vm3, %v12280_v48, %v12350_v50  ;;  %v2924_v59 = vadd.f32 %v13574_v18, %v2496_v8  ;;  %v3768_v33 = vmax.f32 %v3727_v25, 0.0  ;;  %v3809_v48 = vld [vmem:[#allocation12 + $0x118] sm:$0xff]  ;;  %v3810_v8 = vld [vmem:[#allocation12 + $0x120] sm:$0xff] }
 0x538   : > { %v3642_v28 = vadd.f32 %v3592_v24, %v13572_v61  ;;  %v12355_v16 = vor.u32 %v4444_v39, %v4441_v17  ;;  %13573 = vst [vmem:[#allocation22_spill] sm:$0xff] %v12363_v55  ;;  %v4892_v17 = vshrl.u32 %v12301_v32, 16 }
 0x539   : > { %v4214_v31 = vpop.f32.mrf.mxu1  ;;  %v3850_v52 = vmul.f32 %v3809_v48, %v3768_v33  ;;  %v13577_v33 = vshll.u32 %v11933_v29, 16 }
 0x53a   : > { %v3685_v41 = vmul.f32 %v11946_v49, %v3642_v28  ;;  %6595 = vmatmul.bf16.gmra.mxu0 %v6387_v45  ;;  %v4446_v61 = vsel %vm4285_vm6, %v12286_v30, %v12355_v16  ;;  %v13575_v30 = vld [vmem:[#allocation39_spill] sm:$0xff]  ;;  %v4894_v45 = vor.u32 %v4892_v17, %v12312_v44 }
 0x53b   : > { %v9901_v57 = vld [vmem:[#allocation2 + $0x84] sm:$0xff]   ;;  %4610 = vmatmul.bf16.gmra.mxu2 %v4446_v61  ;;  %v3357_v12 = vadd.f32 %v13575_v30, %v2924_v59  ;;  %v6394_v48 = vrot.slane %v13577_v33, 2  ;;  %v12395_v30 = vld [vmem:[#allocation2 + $0xc] sm:$0xff]  }
 0x53c   : > { %v12370_v26 = vld [vmem:[#allocation2 + $0x84] sm:$0xff]  ;;  %v3728_v60 = vadd.f32 %v11965_v37, %v3685_v41  ;;  %4253 = vmatmul.bf16.gmra.mxu1 %v9901_v57 }
 0x53d   : > { %v12372_v15 = vld [vmem:[#allocation2 + $0x84] sm:$0xff]  ;;  %v5023_v28 = vpop.f32.mrf.mxu3  ;;  %v4896_v39 = vshll.u32 %v12370_v26, 16 }
 0x53e   : > { %v3769_v25 = vmax.f32 %v3728_v60, 0.0  ;;  %v12379_v24 = vadd.f32 %v5023_v28, %v12284_v53  ;;  %v4571_v41 = vpop.f32.mrf.mxu2  ;;  %v13347_v61 = vshrl.u32 %v12372_v15, 16  ;;  %v13346_v32 = vshll.u32 %v12372_v15, 16  ;;  %v13578_v17 = vld [vmem:[#allocation43_spill] sm:$0xff] }
 0x53f   : > { %v3594_v6 = vpop.f32.mrf.mxu0  ;;  %v4898_v18 = vrot.slane %v4896_v39, 1  ;;  %v12383_v2 = vadd.f32 %v4571_v41, %v4214_v31  ;;  %v13576_v60 = vshrl.u32 %v11933_v29, 16  ;;  %v2498_v39 = vadd.f32 %v13578_v17, %v11608_v62 }
 0x540   : > { %v3851_v55 = vmul.f32 %v3810_v8, %v3769_v25  ;;  %v3643_v57 = vadd.f32 %v3594_v6, %v3357_v12  ;;  %v13348_v31 = vrot.slane %v12372_v15, 2  ;;  %v12397_v12 = vld [vmem:[#allocation2 + $0xc] sm:$0xf0]  ;;  %v7037_v25 = vrot.slane %v13347_v61, 2 }
 0x541   : > { %v4899_v59 = vsel %vm534_vm0, %v4894_v45, %v4898_v18  ;;  %v6391_v53 = vrot.slane %v13576_v60, 1  ;;  %v4216_v44 = vpop.f32.mrf.mxu1  ;;  %v7038_v29 = vrot.slane %v13346_v32, 3  ;;  %v13579_v62 = vrot.slane %v12306_v23, 2  ;;  %v3812_v61 = vld [vmem:[#allocation12 + $0x130] sm:$0xff] }
 0x542   : > { %v9646_v28 = vpack.c.bf16 %v3851_v55, %v3850_v52  ;;  %5065 = vmatmul.bf16.gmra.mxu3 %v4899_v59  ;;  %v3686_v8 = vmul.f32 %v11946_v49, %v3643_v57  ;;  %v13581_v57 = vld [vmem:[#allocation50_spill] sm:$0xff] }
 0x543   : > { %v12403_v52 = vor.u32 %v6394_v48, %v6391_v53  ;;  %v12410_v6 = vsel %vm2235_vm2, %v13579_v62, %v13348_v31  ;;  %v12415_v41 = vor.u32 %v7038_v29, %v7037_v25  ;;  %v2926_v59 = vadd.f32 %v13581_v57, %v2498_v39  ;;  %v13582_v53 = vld [vmem:[#allocation47_spill] sm:$0xff] }
 0x544   : > { %9746 = vst [vmem:[#allocation2 + $0x90] sm:$0xff] %v9646_v28   ;;  %v3729_v60 = vadd.f32 %v11965_v37, %v3686_v8  ;;  %v13584_v8 = vld [vmem:[#allocation44_spill] sm:$0xff] }
 0x545   : > { %v5026_v55 = vpop.f32.mrf.mxu3  ;;  %13580 = vst [vmem:[#allocation23_spill] sm:$0xff] %v12410_v6  ;;  %v12425_v62 = vsel %vm2949_vm3, %v12350_v50, %v12415_v41  ;;  %v3359_v29 = vadd.f32 %v13584_v8, %v2926_v59  ;;  %v9725_v50 = vunpack.c.h.b16 %v12324_v38 }
 0x546   : > { %v12413_v45 = vadd.f32 %v5026_v55, %v12316_v34  ;;  %v4573_v28 = vpop.f32.mrf.mxu2  ;;  %13583 = vst [vmem:[#allocation32_spill] sm:$0xff] %v12425_v62  ;;  %v6396_v34 = vsel %vm1802_vm4, %v12331_v56, %v12403_v52  ;;  %v3770_v55 = vmax.f32 %v3729_v60, 0.0  ;;  %v4900_v56 = vshrl.u32 %v12370_v26, 16 }
 0x547   : > { %v3597_v33 = vpop.f32.mrf.mxu0  ;;  %v12420_v17 = vadd.f32 %v4573_v28, %v4216_v44  ;;  %v3811_v44 = vld [vmem:[#allocation12 + $0x128] sm:$0xff]  ;;  %v13586_v60 = vshll.u32 %v11992_v19, 16 }
 0x548   : > { %v3644_v48 = vadd.f32 %v3597_v33, %v13582_v53  ;;  %v4902_v36 = vor.u32 %v4900_v56, %v4898_v18 }
 0x549   : > { %v4219_v39 = vpop.f32.mrf.mxu1  ;;  %v6403_v8 = vrot.slane %v13586_v60, 2  ;;  %v9527_v60 = vld [vmem:[#allocation8 + $0x238] sm:$0xff] }
 0x54a   : > { %v3687_v25 = vmul.f32 %v11946_v49, %v3644_v48  ;;  %6600 = vmatmul.bf16.gmra.mxu0 %v6396_v34  ;;  %v13585_v34 = vshrl.u32 %v11992_v19, 16  ;;  %7128 = vmatpush.bf16.msra.mxu2 %v9527_v60 }
 0x54b   : > { %v3975_v57 = vld [vmem:[#allocation2 + $0x90] sm:$0xf]  ;;  %v4657_v32 = vld [vmem:[#allocation2 + $0x94] sm:$0x1] }
 0x54c   : > { %v12432_v33 = vld [vmem:[#allocation2 + $0x8c] sm:$0xff]  ;;  %v3730_v28 = vadd.f32 %v11965_v37, %v3687_v25  ;;  %v4080_v53 = vunpack.c.l.b16 %v3975_v57  ;;  %v6400_v59 = vrot.slane %v13585_v34, 1  ;;  %v3852_v57 = vmul.f32 %v3811_v44, %v3770_v55 }
 0x54d   : > { %v5028_v31 = vpop.f32.mrf.mxu3  ;;  %v4904_v48 = vshll.u32 %v12432_v33, 16  ;;  %v4748_v58 = vunpack.c.l.b16 %v4657_v32  ;;  %v9519_v32 = vld [vmem:[#allocation8 + $0x1f8] sm:$0xff] }
 0x54e   : > { %v3771_v62 = vmax.f32 %v3730_v28, 0.0  ;;  %v12443_v6 = vadd.f32 %v5028_v31, %v12353_v11  ;;  %v4098_v25 = vpack.c.b16 %v4080_v53, %v9725_v50  ;;  %v4284_v38 = vpack.c.b16 %v4080_v53, %v4080_v53  ;;  %v4576_v26 = vpop.f32.mrf.mxu2  ;;  %v12451_v28 = vld [vmem:[#allocation2 + $0x8c] sm:$0xff]  ;;  %6821 = vmatpush.bf16.msra.mxu1 %v9519_v32 }
 0x54f   : > { %v3599_v35 = vpop.f32.mrf.mxu0  ;;  %v12445_v43 = vrot.slane %v4904_v48, 1  ;;  %v12447_v34 = vadd.f32 %v4576_v26, %v4219_v39  ;;  %v9553_v50 = vld [vmem:[#allocation9 + $0x38] sm:$0xff]  ;;  %v13352_v56 = vshrl.u32 %v12451_v28, 16  ;;  %v13349_v48 = vshll.u32 %v12451_v28, 16  ;;  %v13587_v26 = vld [vmem:[#allocation55_spill] sm:$0xff] }
 0x550   : > { %v3853_v10 = vmul.f32 %v3812_v61, %v3771_v62  ;;  %v3645_v14 = vadd.f32 %v3599_v35, %v3359_v29  ;;  %4258 = vmatmul.bf16.gmra.mxu1 %v4098_v25  ;;  %v4448_v19 = vshrl.u32 %v4284_v38, 16  ;;  %v4451_v31 = vshll.u32 %v4284_v38, 16  ;;  %v12453_v35 = vld [vmem:[#allocation2 + $0x14] sm:$0xff]  ;;  %7721 = vmatpush.bf16.msra.mxu3 %v9553_v50 }
 0x551   : > { %v4907_v11 = vsel %vm534_vm0, %v4902_v36, %v12445_v43  ;;  %v4221_v18 = vpop.f32.mrf.mxu1  ;;  %v5267_v62 = vshll.u32 %v12395_v30, 16  ;;  %v12457_v29 = vor.u32 %v6403_v8, %v6400_v59  ;;  %v4767_v36 = vpack.c.b16 %v4748_v58, %v4748_v58 }
 0x552   : > { %v9651_v55 = vpack.c.bf16 %v3853_v10, %v3852_v57  ;;  %5070 = vmatmul.bf16.gmra.mxu3 %v4907_v11  ;;  %v4450_v44 = vrot.slane %v4448_v19, 3  ;;  %v4453_v61 = vrot.slane %v4451_v31, 4  ;;  %v3688_v39 = vmul.f32 %v11946_v49, %v3645_v14 }
 0x553   : > { %v6747_v25 = vrot.slane %v12451_v28, 2  ;;  %v5269_v59 = vrot.slane %v5267_v62, 1  ;;  %v5272_v58 = vshll.u32 %v12453_v35, 16  ;;  %v6405_v60 = vsel %vm1802_vm4, %v12403_v52, %v12457_v29 }
 0x554   : > { %9747 = vst [vmem:[#allocation2 + $0x98] sm:$0xff] %v9651_v55   ;;  %v4454_v53 = vor.u32 %v4453_v61, %v4450_v44  ;;  %v3731_v8 = vadd.f32 %v11965_v37, %v3688_v39  ;;  %v7041_v37 = vrot.slane %v13352_v56, 2  ;;  %v7042_v55 = vrot.slane %v13349_v48, 3  ;;  %v10061_v44 = vld [vmem:[#allocation11] ss:$0 sm:$0xff] }
 0x555   : > { %v5031_v10 = vpop.f32.mrf.mxu3  ;;  %v5265_v32 = vshrl.u32 %v12395_v30, 16  ;;  %v12489_v61 = vrot.slane %v5272_v58, 1  ;;  %v4908_v62 = vshrl.u32 %v12432_v33, 16 }
 0x556   : > { %v12463_v38 = vadd.f32 %v5031_v10, %v12383_v2  ;;  %v4455_v14 = vsel %vm4285_vm6, %v12355_v16, %v4454_v53  ;;  %v4578_v49 = vpop.f32.mrf.mxu2  ;;  %v4912_v2 = vshll.u32 %v4767_v36, 16  ;;  %v13588_v16 = vrot.slane %v12372_v15, 2  ;;  %v10062_v10 = vld [vmem:[#allocation11 + $0x1] ss:$0 sm:$0xff] }
 0x557   : > { %v3602_v57 = vpop.f32.mrf.mxu0  ;;  %4615 = vmatmul.bf16.gmra.mxu2 %v4455_v14  ;;  %v12473_v11 = vadd.f32 %v4578_v49, %v4221_v18  ;;  %v10068_v18 = vld [vmem:[#allocation2 + $0xc] sm:$0xe]  ;;  %v7043_v39 = vor.u32 %v7042_v55, %v7041_v37  ;;  %v3772_v36 = vmax.f32 %v3731_v8, 0.0  ;;  %v3813_v14 = vld [vmem:[#allocation12 + $0x138] sm:$0xff]  ;;  %v3814_v49 = vld [vmem:[#allocation12 + $0x140] sm:$0xff] }
 0x558   : > { %v3646_v19 = vadd.f32 %v3602_v57, %v13587_v26  ;;  %v12480_v31 = vsel %vm2235_vm2, %v13588_v16, %v6747_v25  ;;  %v4914_v16 = vrot.slane %v4912_v2, 1  ;;  %v10069_v37 = vor.u32 %v10068_v18, %v12397_v12 }
 0x559   : > { %13589 = vst [vmem:[#allocation25_spill] sm:$0xff] %v12480_v31  ;;  %v4224_v52 = vpop.f32.mrf.mxu1  ;;  %v3854_v55 = vmul.f32 %v3813_v14, %v3772_v36  ;;  %v13590_v2 = vshrl.u32 %v12055_v46, 16  ;;  %v13353_v18 = vrot.slane %v12453_v35, 1  ;;  %v12511_v36 = vld [vmem:[#allocation2 + $0x1c] sm:$0xff] }
 0x55a   : > { %v3689_v50 = vmul.f32 %v10061_v44, %v3646_v19  ;;  %6605 = vmatmul.bf16.gmra.mxu0 %v6405_v60  ;;  %v5270_v19 = vor.u32 %v5269_v59, %v5265_v32  ;;  %v4910_v60 = vor.u32 %v4908_v62, %v12445_v43 }
 0x55b   : > { %v12492_v57 = vld [vmem:[#allocation2 + $0x94] sm:$0xff] }
 0x55c   : > { %v3732_v53 = vadd.f32 %v10062_v10, %v3689_v50  ;;  %v5275_v33 = vsel %vm534_vm0, %v5270_v19, %v12489_v61  ;;  %v13351_v59 = vshrl.u32 %v12492_v57, 16  ;;  %v4915_v43 = vsel %vm534_vm0, %v4910_v60, %v4914_v16 }
 0x55d   : > { %v5033_v26 = vpop.f32.mrf.mxu3  ;;  %v13350_v62 = vshll.u32 %v12492_v57, 16  ;;  %v6749_v14 = vrot.slane %v12492_v57, 2  ;;  %v5276_v60 = vshrl.u32 %v12453_v35, 16 }
 0x55e   : > { %v3773_v30 = vmax.f32 %v3732_v53, 0.0  ;;  %v12496_v44 = vadd.f32 %v5033_v26, %v12420_v17  ;;  %v4581_v8 = vpop.f32.mrf.mxu2  ;;  %v6409_v17 = vrot.slane %v13590_v2, 1 }
 0x55f   : > { %v3604_v48 = vpop.f32.mrf.mxu0  ;;  %v12501_v10 = vadd.f32 %v4581_v8, %v4224_v52  ;;  %v12515_v52 = vsel %vm2949_vm3, %v12415_v41, %v7043_v39  ;;  %v12526_v16 = vsel %vm2235_vm2, %v6747_v25, %v6749_v14  ;;  %v7046_v41 = vrot.slane %v13350_v62, 3 }
 0x560   : > { %v3855_v50 = vmul.f32 %v3814_v49, %v3773_v30  ;;  %5486 = vmatmul.bf16.vlgmr.msrb.gmra.mxu1 %v5275_v33  ;;  %v13591_v48 = vshll.u32 %v12055_v46, 16  ;;  %13592 = vst [vmem:[#allocation41_spill] sm:$0xff] %v12515_v52  ;;  %v5634_v49 = vrot.slane %v10069_v37, 1  ;;  %v7045_v46 = vrot.slane %v13351_v59, 2 }
 0x561   : > { %v4226_v12 = vpop.f32.mrf.mxu1  ;;  %13593 = vst [vmem:[#allocation24_spill] sm:$0xff] %v12526_v16  ;;  %v5894_v33 = vshrl.u32 %v10069_v37, 16 }
 0x562   : > { %v6412_v32 = vrot.slane %v13591_v48, 2  ;;  %v9656_v53 = vpack.c.bf16 %v3855_v50, %v3854_v55  ;;  %5075 = vmatmul.bf16.gmra.mxu3 %v4915_v43  ;;  %v5636_v8 = vsel %vm1088_vm1, %v5634_v49, %v13353_v18  ;;  %v5280_v50 = vshll.u32 %v12511_v36, 16 }
 0x563   : > { %v5897_v43 = vshll.u32 %v10069_v37, 16  ;;  %v7047_v2 = vor.u32 %v7046_v41, %v7045_v46  ;;  %v5901_v48 = vrot.slane %v5276_v60, 1  ;;  %v5278_v41 = vor.u32 %v5276_v60, %v12489_v61 }
 0x564   : > { %9748 = vst [vmem:[#allocation2 + $0xa0] sm:$0xff] %v9656_v53   ;;  %v12520_v19 = vor.u32 %v6412_v32, %v6409_v17  ;;  %v5282_v49 = vrot.slane %v5280_v50, 1 }
 0x565   : > { %v5036_v26 = vpop.f32.mrf.mxu3  ;;  %v12545_v32 = vsel %vm2949_vm3, %v7043_v39, %v7047_v2  ;;  %v5899_v37 = vrot.slane %v5897_v43, 2 }
 0x566   : > { %v12531_v30 = vadd.f32 %v5036_v26, %v12447_v34  ;;  %v4583_v55 = vpop.f32.mrf.mxu2  ;;  %v6414_v25 = vsel %vm1802_vm4, %v12457_v29, %v12520_v19  ;;  %v5902_v34 = vrot.slane %v5272_v58, 2  ;;  %13594 = vst [vmem:[#allocation63_spill] sm:$0xff] %v12545_v32  ;;  %v5896_v26 = vrot.slane %v5894_v33, 1 }
 0x567   : > { %5745 = vmatmul.bf16.vlgmr.msrb.gmra.mxu2 %v5636_v8  ;;  %v12537_v17 = vadd.f32 %v4583_v55, %v4226_v12  ;;  %v5283_v33 = vsel %vm534_vm0, %v5278_v41, %v5282_v49  ;;  %v13597_v41 = vshll.u32 %v12117_v7, 16 }
 0x568   : > { %v5903_v29 = vor.u32 %v5902_v34, %v5901_v48  ;;  %v5900_v43 = vor.u32 %v5899_v37, %v5896_v26 }
 0x569   : > { %v4229_v53 = vpop.f32.mrf.mxu1  ;;  %v6421_v26 = vrot.slane %v13597_v41, 2 }
 0x56a   : > { %6610 = vmatmul.bf16.gmra.mxu0 %v6414_v25 }
 0x56b   : > { %v12547_v46 = vld [vmem:[#allocation2 + $0x9c] sm:$0xff]  ;;  %v6215_v12 = vld [vmem:[#allocation2 + $0xa4] sm:$0x3] }
 0x56c   : > { %v6306_v8 = vunpack.c.l.b16 %v6215_v12  ;;  %v13355_v62 = vshrl.u32 %v12547_v46, 16  ;;  %v13354_v58 = vshll.u32 %v12547_v46, 16  ;;  %v6751_v39 = vrot.slane %v12547_v46, 2 }
 0x56d   : > { %v5038_v55 = vpop.f32.mrf.mxu3  ;;  %v13596_v12 = vshrl.u32 %v12117_v7, 16 }
 0x56e   : > { %v12554_v25 = vadd.f32 %v5038_v55, %v12473_v11  ;;  %v12556_v59 = vpack.c.b16 %v6306_v8, %v6306_v8  ;;  %v4586_v56 = vpop.f32.mrf.mxu2  ;;  %v12560_v61 = vsel %vm2235_vm2, %v6749_v14, %v6751_v39  ;;  %v7049_v60 = vrot.slane %v13355_v62, 2  ;;  %v9526_v55 = vld [vmem:[#allocation8 + $0x230] sm:$0xff] }
 0x56f   : > { %13595 = vst [vmem:[#allocation37_spill] sm:$0xff] %v12560_v61  ;;  %v4587_v48 = vadd.f32 %v4586_v56, %v4229_v53  ;;  %v7050_v34 = vrot.slane %v13354_v58, 3  ;;  %v5904_v11 = vsel %vm1802_vm4, %v5900_v43, %v5903_v29  ;;  %v6418_v8 = vrot.slane %v13596_v12, 1  ;;  %v12575_v53 = vld [vmem:[#allocation2 + $0x24] sm:$0xff]  ;;  %7129 = vmatpush.bf16.msra.mxu2 %v9526_v55 }
 0x570   : > { %5491 = vmatmul.bf16.gmra.mxu1 %v5283_v33  ;;  %v6753_v37 = vrot.slane %v12556_v59, 2  ;;  %v5637_v56 = vrot.slane %v12511_v36, 1  ;;  %v9552_v55 = vld [vmem:[#allocation9 + $0x30] sm:$0xff] }
 0x571   : > { %v4231_v14 = vpop.f32.mrf.mxu1  ;;  %v12572_v18 = vor.u32 %v7050_v34, %v7049_v60  ;;  %v6422_v12 = vor.u32 %v6421_v26, %v6418_v8  ;;  %v13601_v60 = vrot.slane %v12453_v35, 1  ;;  %v9518_v62 = vld [vmem:[#allocation8 + $0x1f0] sm:$0xff]  ;;  %v5906_v26 = vrot.slane %v5280_v50, 2  ;;  %7722 = vmatpush.bf16.msra.mxu3 %v9552_v55 }
 0x572   : > { %6052 = vmatmul.bf16.vlgmr.msrb.gmra.mxu3 %v5904_v11  ;;  %v12578_v33 = vsel %vm2235_vm2, %v6751_v39, %v6753_v37  ;;  %v5284_v11 = vshrl.u32 %v12511_v36, 16  ;;  %v5288_v39 = vshll.u32 %v12575_v53, 16  ;;  %6822 = vmatpush.bf16.msra.mxu1 %v9518_v62  ;;  %v13602_v50 = vshrl.u32 %v12180_v47, 16 }
 0x573   : > { %13598 = vst [vmem:[#allocation28_spill] sm:$0xff] %v12572_v18  ;;  %v12582_v43 = vsel %vm2949_vm3, %v7047_v2, %v12572_v18  ;;  %v5638_v34 = vsel %vm1088_vm1, %v13601_v60, %v5637_v56  ;;  %v6423_v2 = vsel %vm1802_vm4, %v12520_v19, %v6422_v12  ;;  %v13603_v55 = vshll.u32 %v12180_v47, 16 }
 0x574   : > { %13599 = vst [vmem:[#allocation46_spill] sm:$0xff] %v12578_v33  ;;  %v5905_v8 = vrot.slane %v5284_v11, 1 }
 0x575   : > { %13600 = vst [vmem:[#allocation35_spill] sm:$0xff] %v12582_v43  ;;  %v5041_v7 = vpop.f32.mrf.mxu3  ;;  %v6430_v33 = vrot.slane %v13603_v55, 2  ;;  %v12612_v43 = vpop.f32.mrf.mxu0 }
 0x576   : > { %v12586_v41 = vadd.f32 %v5041_v7, %v12501_v10  ;;  %v4588_v58 = vpop.f32.mrf.mxu2  ;;  %v5290_v10 = vrot.slane %v5288_v39, 1  ;;  %v5286_v7 = vor.u32 %v5284_v11, %v5282_v49  ;;  %v5907_v60 = vor.u32 %v5906_v26, %v5905_v8  ;;  %v12604_v11 = vld [vmem:[#allocation2 + $0x2c] sm:$0xff]  ;;  %13604 = vst [vmem:[#allocation29_spill] sm:$0xff] %v12612_v43 }
 0x577   : > { %5750 = vmatmul.bf16.gmra.mxu2 %v5638_v34  ;;  %v4589_v37 = vadd.f32 %v4588_v58, %v4231_v14  ;;  %v5639_v49 = vrot.slane %v12575_v53, 1  ;;  %v5292_v26 = vshrl.u32 %v12575_v53, 16 }
 0x578   : > { %v5291_v58 = vsel %vm534_vm0, %v5286_v7, %v5290_v10  ;;  %v5908_v19 = vsel %vm1802_vm4, %v5903_v29, %v5907_v60  ;;  %v5296_v7 = vshll.u32 %v12604_v11, 16 }
 0x579   : > { %v4234_v36 = vpop.f32.mrf.mxu1  ;;  %v5640_v29 = vsel %vm1088_vm1, %v5637_v56, %v5639_v49  ;;  %v5294_v53 = vor.u32 %v5292_v26, %v5290_v10  ;;  %v5641_v10 = vrot.slane %v12604_v11, 1 }
 0x57a   : > { %6615 = vmatmul.bf16.gmra.mxu0 %v6423_v2  ;;  %v6427_v2 = vrot.slane %v13602_v50, 1  ;;  %v5298_v55 = vrot.slane %v5296_v7, 1 }
 0x57c   : > { %v6431_v8 = vor.u32 %v6430_v33, %v6427_v2  ;;  %v5299_v56 = vsel %vm534_vm0, %v5294_v53, %v5298_v55 }
 0x57d   : > { %v5043_v35 = vpop.f32.mrf.mxu3 }
 0x57e   : > { %v12595_v18 = vadd.f32 %v5043_v35, %v12537_v17  ;;  %v4591_v14 = vpop.f32.mrf.mxu2 }
 0x57f   : > { %v4592_v34 = vadd.f32 %v4591_v14, %v4234_v36  ;;  %v5909_v14 = vrot.slane %v5292_v26, 1  ;;  %v12623_v26 = vld [vmem:[#allocation2 + $0x34] sm:$0xff] }
 0x580   : > { %5496 = vmatmul.bf16.gmra.mxu1 %v5291_v58  ;;  %v6432_v58 = vsel %vm1802_vm4, %v6422_v12, %v6431_v8  ;;  %v13605_v12 = vshrl.u32 %v12242_v13, 16 }
 0x581   : > { %v4236_v62 = vpop.f32.mrf.mxu1 }
 0x582   : > { %6057 = vmatmul.bf16.gmra.mxu3 %v5908_v19  ;;  %v5910_v19 = vrot.slane %v5288_v39, 2  ;;  %v6436_v39 = vrot.slane %v13605_v12, 1 }
 0x585   : > { %v5046_v17 = vpop.f32.mrf.mxu3 }
 0x586   : > { %v12607_v35 = vadd.f32 %v5046_v17, %v4587_v48  ;;  %v4593_v36 = vpop.f32.mrf.mxu2  ;;  %v5911_v48 = vor.u32 %v5910_v19, %v5909_v14  ;;  %v5300_v19 = vshrl.u32 %v12604_v11, 16  ;;  %v9551_v11 = vld [vmem:[#allocation9 + $0x28] sm:$0xff] }
 0x587   : > { %5755 = vmatmul.bf16.gmra.mxu2 %v5640_v29  ;;  %v4594_v47 = vadd.f32 %v4593_v36, %v4236_v62  ;;  %v13606_v36 = vshll.u32 %v12242_v13, 16  ;;  %v5304_v13 = vshll.u32 %v12623_v26, 16  ;;  %7723 = vmatpush.bf16.msra.mxu3 %v9551_v11  ;;  %v13610_v11 = vshll.u32 %v12306_v23, 16 }
 0x588   : > { %v5912_v62 = vsel %vm1802_vm4, %v5907_v60, %v5911_v48  ;;  %v5642_v60 = vsel %vm1088_vm1, %v5639_v49, %v5641_v10  ;;  %v5913_v12 = vrot.slane %v5300_v19, 1  ;;  %v5302_v49 = vor.u32 %v5300_v19, %v5298_v55  ;;  %v12644_v19 = vld [vmem:[#allocation2 + $0x3c] sm:$0xff] }
 0x589   : > { %v4239_v50 = vpop.f32.mrf.mxu1  ;;  %v5306_v32 = vrot.slane %v5304_v13, 1 }
 0x58a   : > { %6620 = vmatmul.bf16.gmra.mxu0 %v6432_v58  ;;  %v6439_v58 = vrot.slane %v13606_v36, 2  ;;  %v5914_v36 = vrot.slane %v5296_v7, 2 }
 0x58c   : > { %v6440_v14 = vor.u32 %v6439_v58, %v6436_v39  ;;  %v9517_v58 = vld [vmem:[#allocation8 + $0x1e8] sm:$0xff] }
 0x58d   : > { %v5048_v33 = vpop.f32.mrf.mxu3  ;;  %6823 = vmatpush.bf16.msra.mxu1 %v9517_v58  ;;  %v6448_v58 = vrot.slane %v13610_v11, 2 }
 0x58e   : > { %v12614_v2 = vadd.f32 %v5048_v33, %v4589_v37  ;;  %v4596_v17 = vpop.f32.mrf.mxu2  ;;  %v12626_v33 = vpop.f32.mrf.mxu0 }
 0x58f   : > { %v4597_v29 = vadd.f32 %v4596_v17, %v4239_v50  ;;  %13607 = vst [vmem:[#allocation42_spill] sm:$0xff] %v12626_v33  ;;  %v9525_v17 = vld [vmem:[#allocation8 + $0x228] sm:$0xff] }
 0x590   : > { %5501 = vmatmul.bf16.gmra.mxu1 %v5299_v56  ;;  %7130 = vmatpush.bf16.msra.mxu2 %v9525_v17  ;;  %v13609_v17 = vshrl.u32 %v12306_v23, 16 }
 0x591   : > { %v4241_v61 = vpop.f32.mrf.mxu1 }
 0x592   : > { %6062 = vmatmul.bf16.gmra.mxu3 %v5912_v62  ;;  %v6441_v62 = vsel %vm1802_vm4, %v6431_v8, %v6440_v14 }
 0x595   : > { %v5051_v37 = vpop.f32.mrf.mxu3 }
 0x596   : > { %v12628_v50 = vadd.f32 %v5051_v37, %v4592_v34  ;;  %v4598_v53 = vpop.f32.mrf.mxu2  ;;  %v5915_v37 = vor.u32 %v5914_v36, %v5913_v12 }
 0x597   : > { %5760 = vmatmul.bf16.gmra.mxu2 %v5642_v60  ;;  %v4599_v56 = vadd.f32 %v4598_v53, %v4241_v61  ;;  %v5307_v61 = vsel %vm534_vm0, %v5302_v49, %v5306_v32  ;;  %v12636_v53 = vpop.f32.mrf.mxu0 }
 0x598   : > { %13608 = vst [vmem:[#allocation33_spill] sm:$0xff] %v12636_v53  ;;  %v5916_v7 = vsel %vm1802_vm4, %v5911_v48, %v5915_v37 }
 0x599   : > { %v4244_v39 = vpop.f32.mrf.mxu1 }
 0x59a   : > { %6625 = vmatmul.bf16.gmra.mxu0 %v6441_v62  ;;  %v6445_v62 = vrot.slane %v13609_v17, 1  ;;  %v5918_v17 = vrot.slane %v5304_v13, 2 }
 0x59c   : > { %v6449_v36 = vor.u32 %v6448_v58, %v6445_v62 }
 0x59d   : > { %v5053_v34 = vpop.f32.mrf.mxu3 }
 0x59e   : > { %v12633_v16 = vadd.f32 %v5053_v34, %v4594_v47  ;;  %v4601_v60 = vpop.f32.mrf.mxu2  ;;  %v5643_v47 = vrot.slane %v12623_v26, 1  ;;  %v5308_v34 = vshrl.u32 %v12623_v26, 16 }
 0x59f   : > { %v4602_v8 = vadd.f32 %v4601_v60, %v4244_v39  ;;  %v6450_v60 = vsel %vm1802_vm4, %v6440_v14, %v6449_v36  ;;  %v12652_v11 = vpop.f32.mrf.mxu0  ;;  %v13612_v14 = vshrl.u32 %v12372_v15, 16 }
 0x5a0   : > { %5506 = vmatmul.bf16.gmra.mxu1 %v5307_v61  ;;  %v5644_v48 = vsel %vm1088_vm1, %v5641_v10, %v5643_v47  ;;  %v5312_v61 = vshll.u32 %v12644_v19, 16  ;;  %13611 = vst [vmem:[#allocation51_spill] sm:$0xff] %v12652_v11  ;;  %v5310_v26 = vor.u32 %v5308_v34, %v5306_v32  ;;  %v5645_v32 = vrot.slane %v12644_v19, 1 }
 0x5a1   : > { %v4246_v55 = vpop.f32.mrf.mxu1  ;;  %v6454_v13 = vrot.slane %v13612_v14, 1 }
 0x5a2   : > { %6067 = vmatmul.bf16.gmra.mxu3 %v5916_v7  ;;  %v5917_v7 = vrot.slane %v5308_v34, 1  ;;  %v5314_v62 = vrot.slane %v5312_v61, 1  ;;  %v12663_v34 = vld [vmem:[#allocation2 + $0x44] sm:$0xff]  ;;  %v5922_v14 = vrot.slane %v5312_v61, 2 }
 0x5a4   : > { %v5315_v10 = vsel %vm534_vm0, %v5310_v26, %v5314_v62 }
 0x5a5   : > { %v5056_v12 = vpop.f32.mrf.mxu3 }
 0x5a6   : > { %v12647_v49 = vadd.f32 %v5056_v12, %v4597_v29  ;;  %v4603_v39 = vpop.f32.mrf.mxu2  ;;  %v5919_v29 = vor.u32 %v5918_v17, %v5917_v7 }
 0x5a7   : > { %5765 = vmatmul.bf16.gmra.mxu2 %v5644_v48  ;;  %v4604_v23 = vadd.f32 %v4603_v39, %v4246_v55  ;;  %v13613_v39 = vshll.u32 %v12372_v15, 16  ;;  %v5320_v15 = vshll.u32 %v12663_v34, 16 }
 0x5a8   : > { %v5920_v55 = vsel %vm1802_vm4, %v5915_v37, %v5919_v29  ;;  %v5646_v37 = vsel %vm1088_vm1, %v5643_v47, %v5645_v32  ;;  %v9524_v47 = vld [vmem:[#allocation8 + $0x220] sm:$0xff] }
 0x5a9   : > { %v4249_v52 = vpop.f32.mrf.mxu1  ;;  %7131 = vmatpush.bf16.msra.mxu2 %v9524_v47 }
 0x5aa   : > { %6630 = vmatmul.bf16.gmra.mxu0 %v6450_v60  ;;  %v6457_v60 = vrot.slane %v13613_v39, 2 }
 0x5ac   : > { %v6458_v17 = vor.u32 %v6457_v60, %v6454_v13 }
 0x5ad   : > { %v5058_v58 = vpop.f32.mrf.mxu3 }
 0x5ae   : > { %v12654_v12 = vadd.f32 %v5058_v58, %v4599_v56  ;;  %v4606_v31 = vpop.f32.mrf.mxu2  ;;  %v12665_v56 = vpop.f32.mrf.mxu0 }
 0x5af   : > { %v4607_v48 = vadd.f32 %v4606_v31, %v4249_v52  ;;  %13614 = vst [vmem:[#allocation40_spill] sm:$0xff] %v12665_v56  ;;  %v5316_v31 = vshrl.u32 %v12644_v19, 16  ;;  %v5322_v56 = vrot.slane %v5320_v15, 1 }
 0x5b0   : > { %5511 = vmatmul.bf16.gmra.mxu1 %v5315_v10  ;;  %v6459_v10 = vsel %vm1802_vm4, %v6449_v36, %v6458_v17  ;;  %v9516_v36 = vld [vmem:[#allocation8 + $0x1e0] sm:$0xff] }
 0x5b1   : > { %v4251_v11 = vpop.f32.mrf.mxu1  ;;  %v5318_v13 = vor.u32 %v5316_v31, %v5314_v62  ;;  %v13617_v62 = vshll.u32 %v12451_v28, 16  ;;  %6824 = vmatpush.bf16.msra.mxu1 %v9516_v36 }
 0x5b2   : > { %6072 = vmatmul.bf16.gmra.mxu3 %v5920_v55  ;;  %v5921_v55 = vrot.slane %v5316_v31, 1 }
 0x5b3   : > { %v6466_v31 = vrot.slane %v13617_v62, 2 }
 0x5b4   : > { %v5923_v60 = vor.u32 %v5922_v14, %v5921_v55 }
 0x5b5   : > { %v5061_v7 = vpop.f32.mrf.mxu3 }
 0x5b6   : > { %v12668_v52 = vadd.f32 %v5061_v7, %v4602_v8  ;;  %v4608_v58 = vpop.f32.mrf.mxu2  ;;  %v12673_v19 = vpop.f32.mrf.mxu0  ;;  %v5323_v7 = vsel %vm534_vm0, %v5318_v13, %v5322_v56  ;;  %v5924_v61 = vsel %vm1802_vm4, %v5919_v29, %v5923_v60 }
 0x5b7   : > { %5770 = vmatmul.bf16.gmra.mxu2 %v5646_v37  ;;  %v4609_v26 = vadd.f32 %v4608_v58, %v4251_v11  ;;  %13615 = vst [vmem:[#allocation34_spill] sm:$0xff] %v12673_v19  ;;  %v9550_v37 = vld [vmem:[#allocation9 + $0x20] sm:$0xff]  ;;  %v13616_v58 = vshrl.u32 %v12451_v28, 16 }
 0x5b8   : > { %7724 = vmatpush.bf16.msra.mxu3 %v9550_v37 }
 0x5b9   : > { %v4254_v39 = vpop.f32.mrf.mxu1 }
 0x5ba   : > { %6635 = vmatmul.bf16.gmra.mxu0 %v6459_v10  ;;  %v6463_v10 = vrot.slane %v13616_v58, 1  ;;  %v5926_v58 = vrot.slane %v5320_v15, 2 }
 0x5bd   : > { %v5063_v53 = vpop.f32.mrf.mxu3 }
 0x5be   : > { %v12675_v8 = vadd.f32 %v5063_v53, %v4604_v23  ;;  %v4611_v33 = vpop.f32.mrf.mxu2  ;;  %v5647_v53 = vrot.slane %v12663_v34, 1  ;;  %v12684_v23 = vld [vmem:[#allocation2 + $0x4c] sm:$0xff] }
 0x5bf   : > { %v4612_v11 = vadd.f32 %v4611_v33, %v4254_v39  ;;  %v6467_v33 = vor.u32 %v6466_v31, %v6463_v10  ;;  %v5324_v39 = vshrl.u32 %v12663_v34, 16  ;;  %v5328_v28 = vshll.u32 %v12684_v23, 16 }
 0x5c0   : > { %5516 = vmatmul.bf16.gmra.mxu1 %v5323_v7  ;;  %v5648_v29 = vsel %vm1088_vm1, %v5645_v32, %v5647_v53  ;;  %v12691_v7 = vpop.f32.mrf.mxu0 }
 0x5c1   : > { %v4256_v55 = vpop.f32.mrf.mxu1  ;;  %13618 = vst [vmem:[#allocation38_spill] sm:$0xff] %v12691_v7  ;;  %v6468_v36 = vsel %vm1802_vm4, %v6458_v17, %v6467_v33  ;;  %v5330_v62 = vrot.slane %v5328_v28, 1  ;;  %v5326_v34 = vor.u32 %v5324_v39, %v5322_v56  ;;  %v13620_v17 = vshll.u32 %v12492_v57, 16  ;;  %v12705_v56 = vld [vmem:[#allocation2 + $0x54] sm:$0xff] }
 0x5c2   : > { %6077 = vmatmul.bf16.gmra.mxu3 %v5924_v61  ;;  %v5925_v61 = vrot.slane %v5324_v39, 1 }
 0x5c3   : > { %v5331_v32 = vsel %vm534_vm0, %v5326_v34, %v5330_v62  ;;  %v5336_v34 = vshll.u32 %v12705_v56, 16 }
 0x5c5   : > { %v5066_v14 = vpop.f32.mrf.mxu3 }
 0x5c6   : > { %v12687_v13 = vadd.f32 %v5066_v14, %v4607_v48  ;;  %v4613_v47 = vpop.f32.mrf.mxu2  ;;  %v5927_v48 = vor.u32 %v5926_v58, %v5925_v61  ;;  %v5332_v58 = vshrl.u32 %v12684_v23, 16 }
 0x5c7   : > { %5775 = vmatmul.bf16.gmra.mxu2 %v5648_v29  ;;  %v4614_v37 = vadd.f32 %v4613_v47, %v4256_v55  ;;  %v13619_v29 = vshrl.u32 %v12492_v57, 16  ;;  %v6475_v47 = vrot.slane %v13620_v17, 2  ;;  %v5338_v17 = vrot.slane %v5336_v34, 1 }
 0x5c8   : > { %v5928_v19 = vsel %vm1802_vm4, %v5923_v60, %v5927_v48  ;;  %v12702_v15 = vpop.f32.mrf.mxu0 }
 0x5c9   : > { %v6472_v55 = vrot.slane %v13619_v29, 1  ;;  %13621 = vst [vmem:[#allocation56_spill] sm:$0xff] %v12702_v15 }
 0x5ca   : > { %6640 = vmatmul.bf16.gmra.mxu0 %v6468_v36  ;;  %v5649_v36 = vrot.slane %v12684_v23, 1  ;;  %v5334_v23 = vor.u32 %v5332_v58, %v5330_v62 }
 0x5cb   : > { %v6476_v61 = vor.u32 %v6475_v47, %v6472_v55 }
 0x5cc   : > { %v5650_v60 = vsel %vm1088_vm1, %v5647_v53, %v5649_v36 }
 0x5cd   : > { %v4259_v10 = vpop.f32.mrf.mxu1  ;;  %v5068_v31 = vpop.f32.mrf.mxu3  ;;  %v6477_v57 = vsel %vm1802_vm4, %v6467_v33, %v6476_v61  ;;  %v9523_v33 = vld [vmem:[#allocation8 + $0x218] sm:$0xff] }
 0x5ce   : > { %v12694_v14 = vadd.f32 %v5068_v31, %v4609_v26  ;;  %7132 = vmatpush.bf16.msra.mxu2 %v9523_v33 }
 0x5d0   : > { %5521 = vmatmul.bf16.gmra.mxu1 %v5331_v32  ;;  %v5929_v32 = vrot.slane %v5332_v58, 1  ;;  %v12713_v15 = vpop.f32.mrf.mxu0  ;;  %v5651_v58 = vrot.slane %v12705_v56, 1 }
 0x5d1   : > { %13622 = vst [vmem:[#allocation45_spill] sm:$0xff] %v12713_v15  ;;  %v13624_v15 = vshll.u32 %v12547_v46, 16 }
 0x5d2   : > { %6082 = vmatmul.bf16.gmra.mxu3 %v5928_v19  ;;  %v5930_v19 = vrot.slane %v5328_v28, 2 }
 0x5d5   : > { %v4261_v26 = vpop.f32.mrf.mxu1  ;;  %v5071_v39 = vpop.f32.mrf.mxu3 }
 0x5d6   : > { %v12708_v31 = vadd.f32 %v5071_v39, %v4612_v11  ;;  %v5931_v11 = vor.u32 %v5930_v19, %v5929_v32  ;;  %v9549_v32 = vld [vmem:[#allocation9 + $0x18] sm:$0xff] }
 0x5d7   : > { %5780 = vmatmul.bf16.gmra.mxu2 %v5650_v60  ;;  %v5339_v60 = vsel %vm534_vm0, %v5334_v23, %v5338_v17  ;;  %7725 = vmatpush.bf16.msra.mxu3 %v9549_v32  ;;  %v6488_v32 = vshrl.u32 %v12556_v59, 16 }
 0x5d8   : > { %v5932_v28 = vsel %vm1802_vm4, %v5927_v48, %v5931_v11  ;;  %v5340_v48 = vshrl.u32 %v12705_v56, 16 }
 0x5da   : > { %6645 = vmatmul.bf16.gmra.mxu0 %v6477_v57  ;;  %v4616_v29 = vpop.f32.mrf.mxu2  ;;  %v13623_v57 = vshrl.u32 %v12547_v46, 16 }
 0x5db   : > { %v4617_v7 = vadd.f32 %v4616_v29, %v4259_v10  ;;  %v6484_v10 = vrot.slane %v13624_v15, 2  ;;  %v9515_v15 = vld [vmem:[#allocation8 + $0x1d8] sm:$0xff] }
 0x5dc   : > { %v6481_v43 = vrot.slane %v13623_v57, 1  ;;  %6825 = vmatpush.bf16.msra.mxu1 %v9515_v15 }
 0x5dd   : > { %v5487_v55 = vpop.f32.mrf.mxu1  ;;  %v5073_v47 = vpop.f32.mrf.mxu3 }
 0x5de   : > { %v5577_v39 = vadd.f32 %v5487_v55, %v11963_v22  ;;  %v12716_v53 = vadd.f32 %v5073_v47, %v4614_v37  ;;  %v12725_v22 = vld [vmem:[#allocation2 + $0x5c] sm:$0xff]  ;;  %v6485_v55 = vor.u32 %v6484_v10, %v6481_v43  ;;  %v12728_v47 = vpop.f32.mrf.mxu0  ;;  %v5934_v43 = vrot.slane %v5336_v34, 2 }
 0x5df   : > { %v5344_v33 = vshll.u32 %v12725_v22, 16 }
 0x5e0   : > { %5526 = vmatmul.bf16.gmra.mxu1 %v5339_v60  ;;  %v5652_v60 = vsel %vm1088_vm1, %v5649_v36, %v5651_v58  ;;  %v6491_v36 = vshll.u32 %v12556_v59, 16 }
 0x5e1   : > { %v5346_v57 = vrot.slane %v5344_v33, 1 }
 0x5e2   : > { %6087 = vmatmul.bf16.gmra.mxu3 %v5932_v28  ;;  %v4618_v62 = vpop.f32.mrf.mxu2  ;;  %v5933_v28 = vrot.slane %v5340_v48, 1 }
 0x5e3   : > { %v4619_v37 = vadd.f32 %v4618_v62, %v4261_v26  ;;  %v6486_v26 = vsel %vm1802_vm4, %v6476_v61, %v6485_v55 }
 0x5e5   : > { %v5489_v19 = vpop.f32.mrf.mxu1  ;;  %v5076_v29 = vpop.f32.mrf.mxu3 }
 0x5e6   : > { %v5578_v23 = vadd.f32 %v5489_v19, %v11998_v63  ;;  %v12731_v46 = vadd.f32 %v5076_v29, %v4617_v7  ;;  %v5342_v7 = vor.u32 %v5340_v48, %v5338_v17  ;;  %v5935_v19 = vor.u32 %v5934_v43, %v5933_v28  ;;  %v12742_v15 = vpop.f32.mrf.mxu0  ;;  %v12746_v28 = vld [vmem:[#allocation2 + $0x64] sm:$0xff] }
 0x5e7   : > { %5785 = vmatmul.bf16.gmra.mxu2 %v5652_v60  ;;  %v5653_v48 = vrot.slane %v12725_v22, 1 }
 0x5e8   : > { %v5347_v61 = vsel %vm534_vm0, %v5342_v7, %v5346_v57  ;;  %v5936_v34 = vsel %vm1802_vm4, %v5931_v11, %v5935_v19  ;;  %v5352_v7 = vshll.u32 %v12746_v28, 16 }
 0x5e9   : > { %v5654_v11 = vsel %vm1088_vm1, %v5651_v58, %v5653_v48 }
 0x5ea   : > { %6650 = vmatmul.bf16.gmra.mxu0 %v6486_v26  ;;  %v5746_v56 = vpop.f32.mrf.mxu2  ;;  %v6493_v26 = vrot.slane %v6491_v36, 2 }
 0x5eb   : > { %v5836_v10 = vadd.f32 %v5746_v56, %v5577_v39  ;;  %v6490_v39 = vrot.slane %v6488_v32, 1  ;;  %v5348_v56 = vshrl.u32 %v12725_v22, 16 }
 0x5ed   : > { %v5492_v62 = vpop.f32.mrf.mxu1  ;;  %v5078_v63 = vpop.f32.mrf.mxu3  ;;  %v5937_v36 = vrot.slane %v5348_v56, 1 }
 0x5ee   : > { %v5579_v29 = vadd.f32 %v5492_v62, %v12030_v4  ;;  %v12739_v60 = vadd.f32 %v5078_v63, %v4619_v37  ;;  %v6494_v37 = vor.u32 %v6493_v26, %v6490_v39  ;;  %v5354_v39 = vrot.slane %v5352_v7, 1 }
 0x5f0   : > { %5531 = vmatmul.bf16.gmra.mxu1 %v5347_v61  ;;  %v6495_v32 = vsel %vm1802_vm4, %v6485_v55, %v6494_v37  ;;  %v5938_v61 = vrot.slane %v5344_v33, 2  ;;  %v5655_v37 = vrot.slane %v12746_v28, 1 }
 0x5f2   : > { %6092 = vmatmul.bf16.gmra.mxu3 %v5936_v34  ;;  %v5748_v17 = vpop.f32.mrf.mxu2  ;;  %v12755_v34 = vpop.f32.mrf.mxu0 }
 0x5f3   : > { %v5837_v59 = vadd.f32 %v5748_v17, %v5578_v23  ;;  %13625 = vst [vmem:[#allocation39_spill] sm:$0xff] %v12755_v34 }
 0x5f5   : > { %v5494_v43 = vpop.f32.mrf.mxu1  ;;  %v6053_v4 = vpop.f32.mrf.mxu3 }
 0x5f6   : > { %v5580_v62 = vadd.f32 %v5494_v43, %v12061_v9  ;;  %v12750_v63 = vadd.f32 %v6053_v4, %v5836_v10  ;;  %v5350_v9 = vor.u32 %v5348_v56, %v5346_v57  ;;  %v5939_v10 = vor.u32 %v5938_v61, %v5937_v36  ;;  %v9522_v56 = vld [vmem:[#allocation8 + $0x210] sm:$0xff] }
 0x5f7   : > { %5790 = vmatmul.bf16.gmra.mxu2 %v5654_v11  ;;  %v12763_v11 = vld [vmem:[#allocation2 + $0x6c] sm:$0xff]  ;;  %v5356_v57 = vshrl.u32 %v12746_v28, 16  ;;  %v5656_v36 = vsel %vm1088_vm1, %v5653_v48, %v5655_v37 }
 0x5f8   : > { %v5355_v4 = vsel %vm534_vm0, %v5350_v9, %v5354_v39  ;;  %v5940_v55 = vsel %vm1802_vm4, %v5935_v19, %v5939_v10  ;;  %v5360_v19 = vshll.u32 %v12763_v11, 16  ;;  %v9548_v61 = vld [vmem:[#allocation9 + $0x10] sm:$0xff]  ;;  %v5942_v9 = vrot.slane %v5352_v7, 2  ;;  %7133 = vmatpush.bf16.msra.mxu2 %v9522_v56 }
 0x5f9   : > { %7726 = vmatpush.bf16.msra.mxu3 %v9548_v61  ;;  %v5657_v56 = vrot.slane %v12763_v11, 1  ;;  %v12777_v61 = vld [vmem:[#allocation2 + $0x74] sm:$0xff] }
 0x5fa   : > { %6655 = vmatmul.bf16.gmra.mxu0 %v6495_v32  ;;  %v5751_v23 = vpop.f32.mrf.mxu2 }
 0x5fb   : > { %v5838_v26 = vadd.f32 %v5751_v23, %v5579_v29 }
 0x5fd   : > { %v5497_v22 = vpop.f32.mrf.mxu1  ;;  %v6055_v17 = vpop.f32.mrf.mxu3 }
 0x5fe   : > { %v5581_v43 = vadd.f32 %v5497_v22, %v12091_v0  ;;  %v12758_v58 = vadd.f32 %v6055_v17, %v5837_v59  ;;  %v9514_v22 = vld [vmem:[#allocation8 + $0x1d0] sm:$0xff]  ;;  %v5941_v17 = vrot.slane %v5356_v57, 1 }
 0x5ff   : > { %6826 = vmatpush.bf16.msra.mxu1 %v9514_v22 }
 0x600   : > { %5536 = vmatmul.bf16.gmra.mxu1 %v5355_v4  ;;  %v5362_v4 = vrot.slane %v5360_v19, 1 }
 0x602   : > { %6097 = vmatmul.bf16.gmra.mxu3 %v5940_v55  ;;  %v5753_v33 = vpop.f32.mrf.mxu2 }
 0x603   : > { %v5839_v29 = vadd.f32 %v5753_v33, %v5580_v62  ;;  %v5943_v33 = vor.u32 %v5942_v9, %v5941_v17  ;;  %v5368_v17 = vshll.u32 %v12777_v61, 16  ;;  %v5946_v9 = vrot.slane %v5360_v19, 2 }
 0x604   : > { %v5659_v19 = vrot.slane %v12777_v61, 1 }
 0x605   : > { %v5499_v32 = vpop.f32.mrf.mxu1  ;;  %v6058_v23 = vpop.f32.mrf.mxu3 }
 0x606   : > { %v5582_v0 = vadd.f32 %v5499_v32, %v12123_v40  ;;  %v12767_v59 = vadd.f32 %v6058_v23, %v5838_v26  ;;  %v5358_v26 = vor.u32 %v5356_v57, %v5354_v39  ;;  %v5364_v39 = vshrl.u32 %v12763_v11, 16 }
 0x607   : > { %5795 = vmatmul.bf16.gmra.mxu2 %v5656_v36  ;;  %v5944_v36 = vsel %vm1802_vm4, %v5939_v10, %v5943_v33  ;;  %v5658_v57 = vsel %vm1088_vm1, %v5655_v37, %v5657_v56 }
 0x608   : > { %v5363_v23 = vsel %vm534_vm0, %v5358_v26, %v5362_v4  ;;  %v5945_v10 = vrot.slane %v5364_v39, 1 }
 0x60a   : > { %v5756_v62 = vpop.f32.mrf.mxu2 }
 0x60b   : > { %v5840_v28 = vadd.f32 %v5756_v62, %v5581_v43 }
 0x60d   : > { %v5502_v55 = vpop.f32.mrf.mxu1  ;;  %v6060_v40 = vpop.f32.mrf.mxu3 }
 0x60e   : > { %v5583_v32 = vadd.f32 %v5502_v55, %v12152_v51  ;;  %v12772_v48 = vadd.f32 %v6060_v40, %v5839_v29  ;;  %v5370_v40 = vrot.slane %v5368_v17, 1 }
 0x610   : > { %5541 = vmatmul.bf16.gmra.mxu1 %v5363_v23 }
 0x612   : > { %6102 = vmatmul.bf16.gmra.mxu3 %v5944_v36  ;;  %v5758_v7 = vpop.f32.mrf.mxu2  ;;  %v5366_v36 = vor.u32 %v5364_v39, %v5362_v4  ;;  %v5372_v4 = vshrl.u32 %v12777_v61, 16  ;;  %v5660_v39 = vsel %vm1088_vm1, %v5657_v56, %v5659_v19  ;;  %v9513_v56 = vld [vmem:[#allocation8 + $0x1c8] sm:$0xff] }
 0x613   : > { %v5841_v43 = vadd.f32 %v5758_v7, %v5582_v0  ;;  %v5947_v7 = vor.u32 %v5946_v9, %v5945_v10  ;;  %6827 = vmatpush.bf16.msra.mxu1 %v9513_v56 }
 0x614   : > { %v5949_v9 = vrot.slane %v5372_v4, 1  ;;  %v5374_v61 = vor.u32 %v5372_v4, %v5370_v40 }
 0x615   : > { %v5504_v22 = vpop.f32.mrf.mxu1  ;;  %v6063_v62 = vpop.f32.mrf.mxu3  ;;  %v5948_v37 = vsel %vm1802_vm4, %v5943_v33, %v5947_v7  ;;  %v9521_v33 = vld [vmem:[#allocation8 + $0x208] sm:$0xff] }
 0x616   : > { %v5584_v51 = vadd.f32 %v5504_v22, %v12184_v5  ;;  %v12781_v29 = vadd.f32 %v6063_v62, %v5840_v28  ;;  %v5371_v5 = vsel %vm534_vm0, %v5366_v36, %v5370_v40  ;;  %v12791_v22 = vld [vmem:[#allocation2 + $0x7c] sm:$0xff]  ;;  %7134 = vmatpush.bf16.msra.mxu2 %v9521_v33 }
 0x617   : > { %5800 = vmatmul.bf16.gmra.mxu2 %v5658_v57  ;;  %v5376_v10 = vshll.u32 %v12791_v22, 16  ;;  %v9547_v36 = vld [vmem:[#allocation9 + $0x8] sm:$0xff] }
 0x618   : > { %7727 = vmatpush.bf16.msra.mxu3 %v9547_v36 }
 0x619   : > { %v5954_v36 = vrot.slane %v5376_v10, 2 }
 0x61a   : > { %v5761_v55 = vpop.f32.mrf.mxu2 }
 0x61b   : > { %v5842_v26 = vadd.f32 %v5761_v55, %v5583_v32  ;;  %v5950_v55 = vrot.slane %v5368_v17, 2 }
 0x61d   : > { %v5507_v23 = vpop.f32.mrf.mxu1  ;;  %v6065_v0 = vpop.f32.mrf.mxu3 }
 0x61e   : > { %v5585_v11 = vadd.f32 %v5507_v23, %v12216_v20  ;;  %v12786_v34 = vadd.f32 %v6065_v0, %v5841_v43  ;;  %v5378_v0 = vrot.slane %v5376_v10, 1 }
 0x620   : > { %5546 = vmatmul.bf16.gmra.mxu1 %v5371_v5 }
 0x622   : > { %6107 = vmatmul.bf16.gmra.mxu3 %v5948_v37  ;;  %v5763_v28 = vpop.f32.mrf.mxu2 }
 0x623   : > { %v5843_v32 = vadd.f32 %v5763_v28, %v5584_v51  ;;  %v5951_v28 = vor.u32 %v5950_v55, %v5949_v9 }
 0x625   : > { %v5509_v62 = vpop.f32.mrf.mxu1  ;;  %v6068_v57 = vpop.f32.mrf.mxu3  ;;  %v5952_v17 = vsel %vm1802_vm4, %v5947_v7, %v5951_v28 }
 0x626   : > { %v5586_v20 = vadd.f32 %v5509_v62, %v12248_v1  ;;  %v12795_v43 = vadd.f32 %v6068_v57, %v5842_v26  ;;  %v5379_v62 = vsel %vm534_vm0, %v5374_v61, %v5378_v0 }
 0x627   : > { %5805 = vmatmul.bf16.gmra.mxu2 %v5660_v39  ;;  %v12805_v39 = vld [vmem:[#allocation2 + $0x84] sm:$0xff] }
 0x628   : > { %v5384_v7 = vshll.u32 %v12805_v39, 16  ;;  %v5663_v10 = vrot.slane %v12805_v39, 1 }
 0x62a   : > { %v5766_v23 = vpop.f32.mrf.mxu2 }
 0x62b   : > { %v5844_v51 = vadd.f32 %v5766_v23, %v5585_v11  ;;  %v5661_v11 = vrot.slane %v12791_v22, 1 }
 0x62d   : > { %v5512_v5 = vpop.f32.mrf.mxu1  ;;  %v6070_v37 = vpop.f32.mrf.mxu3  ;;  %v5662_v55 = vsel %vm1088_vm1, %v5659_v19, %v5661_v11 }
 0x62e   : > { %v5587_v1 = vadd.f32 %v5512_v5, %v12278_v3  ;;  %v12800_v26 = vadd.f32 %v6070_v37, %v5843_v32  ;;  %v5380_v3 = vshrl.u32 %v12791_v22, 16  ;;  %v5386_v37 = vrot.slane %v5384_v7, 1 }
 0x630   : > { %5551 = vmatmul.bf16.gmra.mxu1 %v5379_v62  ;;  %v5953_v23 = vrot.slane %v5380_v3, 1  ;;  %v5382_v62 = vor.u32 %v5380_v3, %v5378_v0  ;;  %v5388_v0 = vshrl.u32 %v12805_v39, 16  ;;  %v5664_v3 = vsel %vm1088_vm1, %v5661_v11, %v5663_v10  ;;  %v9546_v11 = vld [vmem:[#allocation9] sm:$0xff] }
 0x631   : > { %7728 = vmatpush.bf16.msra.mxu3 %v9546_v11  ;;  %v5153_v11 = vld [vmem:[#allocation2 + $0x9c] sm:$0x1] }
 0x632   : > { %6112 = vmatmul.bf16.gmra.mxu3 %v5952_v17  ;;  %v5768_v57 = vpop.f32.mrf.mxu2  ;;  %v5955_v17 = vor.u32 %v5954_v36, %v5953_v23  ;;  %v5958_v36 = vrot.slane %v5384_v7, 2 }
 0x633   : > { %v5845_v40 = vadd.f32 %v5768_v57, %v5586_v20 }
 0x634   : > { %v5956_v19 = vsel %vm1802_vm4, %v5951_v28, %v5955_v17  ;;  %v5957_v28 = vrot.slane %v5388_v0, 1 }
 0x635   : > { %v5514_v4 = vpop.f32.mrf.mxu1  ;;  %v6073_v33 = vpop.f32.mrf.mxu3 }
 0x636   : > { %v5588_v32 = vadd.f32 %v5514_v4, %v12310_v27  ;;  %v12809_v9 = vadd.f32 %v6073_v33, %v5844_v51  ;;  %v5387_v27 = vsel %vm534_vm0, %v5382_v62, %v5386_v37  ;;  %v12819_v4 = vld [vmem:[#allocation2 + $0x8c] sm:$0xff] }
 0x637   : > { %5810 = vmatmul.bf16.gmra.mxu2 %v5662_v55  ;;  %v5392_v23 = vshll.u32 %v12819_v4, 16 }
 0x63a   : > { %v5771_v5 = vpop.f32.mrf.mxu2 }
 0x63b   : > { %v5846_v61 = vadd.f32 %v5771_v5, %v5587_v1 }
 0x63d   : > { %v5517_v56 = vpop.f32.mrf.mxu1  ;;  %v6075_v20 = vpop.f32.mrf.mxu3 }
 0x63e   : > { %v5589_v22 = vadd.f32 %v5517_v56, %v12347_v21  ;;  %v12814_v57 = vadd.f32 %v6075_v20, %v5845_v40  ;;  %v5394_v56 = vrot.slane %v5392_v23, 1 }
 0x640   : > { %5556 = vmatmul.bf16.gmra.mxu1 %v5387_v27  ;;  %v5390_v27 = vor.u32 %v5388_v0, %v5386_v37  ;;  %v5665_v37 = vrot.slane %v12819_v4, 1 }
 0x642   : > { %6117 = vmatmul.bf16.gmra.mxu3 %v5956_v19  ;;  %v5773_v51 = vpop.f32.mrf.mxu2  ;;  %v5959_v19 = vor.u32 %v5958_v36, %v5957_v28 }
 0x643   : > { %v5847_v1 = vadd.f32 %v5773_v51, %v5588_v32 }
 0x644   : > { %v5960_v7 = vsel %vm1802_vm4, %v5955_v17, %v5959_v19 }
 0x645   : > { %v5519_v33 = vpop.f32.mrf.mxu1  ;;  %v6078_v55 = vpop.f32.mrf.mxu3 }
 0x646   : > { %v5590_v21 = vadd.f32 %v5519_v33, %v12379_v24  ;;  %v12823_v40 = vadd.f32 %v6078_v55, %v5846_v61  ;;  %v9520_v24 = vld [vmem:[#allocation8 + $0x200] sm:$0xff]  ;;  %v5395_v61 = vsel %vm534_vm0, %v5390_v27, %v5394_v56 }
 0x647   : > { %5815 = vmatmul.bf16.gmra.mxu2 %v5664_v3  ;;  %v9512_v33 = vld [vmem:[#allocation8 + $0x1c0] sm:$0xff]  ;;  %v5396_v3 = vshrl.u32 %v12819_v4, 16 }
 0x648   : > { %7135 = vmatpush.bf16.msra.mxu2 %v9520_v24  ;;  %6828 = vmatpush.bf16.msra.mxu1 %v9512_v33  ;;  %v12833_v55 = vld [vmem:[#allocation2 + $0x94] sm:$0xff] }
 0x649   : > { %v5400_v17 = vshll.u32 %v12833_v55, 16 }
 0x64a   : > { %v5776_v5 = vpop.f32.mrf.mxu2 }
 0x64b   : > { %v5848_v20 = vadd.f32 %v5776_v5, %v5589_v22  ;;  %v5666_v5 = vsel %vm1088_vm1, %v5663_v10, %v5665_v37  ;;  %v5402_v24 = vrot.slane %v5400_v17, 1  ;;  %v5244_v10 = vunpack.c.l.b16 %v5153_v11  ;;  %v5872_v11 = vld [vmem:[#allocation2 + $0x9c] sm:$0x3] }
 0x64d   : > { %v5522_v62 = vpop.f32.mrf.mxu1  ;;  %v6080_v32 = vpop.f32.mrf.mxu3 }
 0x64e   : > { %v5591_v39 = vadd.f32 %v5522_v62, %v12413_v45  ;;  %v12828_v51 = vadd.f32 %v6080_v32, %v5847_v1  ;;  %v5961_v62 = vrot.slane %v5396_v3, 1  ;;  %v5962_v32 = vrot.slane %v5392_v23, 2 }
 0x650   : > { %5561 = vmatmul.bf16.gmra.mxu1 %v5395_v61 }
 0x652   : > { %6122 = vmatmul.bf16.gmra.mxu3 %v5960_v7  ;;  %v5778_v22 = vpop.f32.mrf.mxu2  ;;  %v5398_v7 = vor.u32 %v5396_v3, %v5394_v56  ;;  %v5404_v56 = vshrl.u32 %v12833_v55, 16 }
 0x653   : > { %v5849_v45 = vadd.f32 %v5778_v22, %v5590_v21  ;;  %v5963_v22 = vor.u32 %v5962_v32, %v5961_v62 }
 0x654   : > { %v5965_v32 = vrot.slane %v5404_v56, 1 }
 0x655   : > { %v5524_v1 = vpop.f32.mrf.mxu1  ;;  %v6083_v0 = vpop.f32.mrf.mxu3 }
 0x656   : > { %v5592_v28 = vadd.f32 %v5524_v1, %v12443_v6  ;;  %v12837_v36 = vadd.f32 %v6083_v0, %v5848_v20  ;;  %v5403_v20 = vsel %vm534_vm0, %v5398_v7, %v5402_v24  ;;  %v5964_v1 = vsel %vm1802_vm4, %v5959_v19, %v5963_v22 }
 0x657   : > { %5820 = vmatmul.bf16.gmra.mxu2 %v5666_v5  ;;  %v5667_v0 = vrot.slane %v12833_v55, 1  ;;  %v5966_v19 = vrot.slane %v5400_v17, 2 }
 0x658   : > { %13626 = vst [vmem:[#allocation43_spill] sm:$0xff] %v12837_v36 }
 0x659   : > { %v5668_v3 = vsel %vm1088_vm1, %v5665_v37, %v5667_v0 }
 0x65a   : > { %v5781_v27 = vpop.f32.mrf.mxu2 }
 0x65b   : > { %v5850_v61 = vadd.f32 %v5781_v27, %v5591_v39  ;;  %v5263_v39 = vpack.c.b16 %v5244_v10, %v5244_v10 }
 0x65d   : > { %v5527_v21 = vpop.f32.mrf.mxu1  ;;  %v6085_v33 = vpop.f32.mrf.mxu3  ;;  %v5408_v62 = vshll.u32 %v5263_v39, 16 }
 0x65e   : > { %v5593_v4 = vadd.f32 %v5527_v21, %v12463_v38  ;;  %v12842_v6 = vadd.f32 %v6085_v33, %v5849_v45  ;;  %v5406_v33 = vor.u32 %v5404_v56, %v5402_v24  ;;  %v5669_v24 = vrot.slane %v5263_v39, 1 }
 0x65f   : > { %v5410_v7 = vrot.slane %v5408_v62, 1 }
 0x660   : > { %5566 = vmatmul.bf16.gmra.mxu1 %v5403_v20 }
 0x662   : > { %6127 = vmatmul.bf16.gmra.mxu3 %v5964_v1  ;;  %v5783_v23 = vpop.f32.mrf.mxu2  ;;  %v5967_v1 = vor.u32 %v5966_v19, %v5965_v32  ;;  %v5670_v32 = vsel %vm1088_vm1, %v5667_v0, %v5669_v24 }
 0x663   : > { %v5851_v5 = vadd.f32 %v5783_v23, %v5592_v28  ;;  %v5891_v23 = vunpack.c.l.b16 %v5872_v11 }
 0x664   : > { %v5968_v37 = vsel %vm1802_vm4, %v5963_v22, %v5967_v1 }
 0x665   : > { %v5529_v27 = vpop.f32.mrf.mxu1  ;;  %v6088_v36 = vpop.f32.mrf.mxu3 }
 0x666   : > { %v5594_v38 = vadd.f32 %v5529_v27, %v12496_v44  ;;  %v12849_v45 = vadd.f32 %v6088_v36, %v5850_v61  ;;  %v5411_v36 = vsel %vm534_vm0, %v5406_v33, %v5410_v7  ;;  %v5892_v61 = vpack.c.b16 %v5891_v23, %v5891_v23  ;;  %v9170_v33 = vld [vmem:[%s10510_s17 + $0x10] sm:$0xc]  ;;  %v9528_v7 = vld [vmem:[%s10510_s17 + $0x10] sm:$0xf0] }
 0x667   : > { %5825 = vmatmul.bf16.gmra.mxu2 %v5668_v3 }
 0x668   : > { %v5970_v3 = vshrl.u32 %v5892_v61, 16  ;;  %v5973_v62 = vshll.u32 %v5892_v61, 16 }
 0x66a   : > { %v5786_v21 = vpop.f32.mrf.mxu2  ;;  %v5972_v22 = vrot.slane %v5970_v3, 1  ;;  %v5975_v19 = vrot.slane %v5973_v62, 2 }
 0x66b   : > { %v5852_v20 = vadd.f32 %v5786_v21, %v5593_v4 }
 0x66d   : > { %v5532_v28 = vpop.f32.mrf.mxu1  ;;  %v6090_v10 = vpop.f32.mrf.mxu3 }
 0x66e   : > { %v5595_v55 = vadd.f32 %v5532_v28, %v12531_v30  ;;  %v12853_v44 = vadd.f32 %v6090_v10, %v5851_v5  ;;  %v5976_v28 = vor.u32 %v5975_v19, %v5972_v22 }
 0x670   : > { %5571 = vmatmul.bf16.gmra.mxu1 %v5411_v36  ;;  %v9529_v36 = vld [vmem:[%s10510_s17 + $0x18] sm:$0xff]  ;;  %v5977_v0 = vsel %vm1802_vm4, %v5967_v1, %v5976_v28 }
 0x672   : > { %6132 = vmatmul.bf16.gmra.mxu3 %v5968_v37  ;;  %v5788_v17 = vpop.f32.mrf.mxu2 }
 0x673   : > { %v5853_v4 = vadd.f32 %v5788_v17, %v5594_v38  ;;  %v7497_v17 = vshll.u32 %v9529_v36, 16 }
 0x675   : > { %v5534_v27 = vpop.f32.mrf.mxu1  ;;  %v6093_v56 = vpop.f32.mrf.mxu3 }
 0x676   : > { %v5596_v30 = vadd.f32 %v5534_v27, %v12554_v25  ;;  %v12858_v5 = vadd.f32 %v6093_v56, %v5852_v20  ;;  %v9171_v25 = vor.u32 %v9528_v7, %v9170_v33 }
 0x677   : > { %5830 = vmatmul.bf16.gmra.mxu2 %v5670_v32 }
 0x678   : > { %v7486_v37 = vshrl.u32 %v9171_v25, 16  ;;  %v7489_v61 = vshll.u32 %v9171_v25, 16 }
 0x67a   : > { %v5791_v11 = vpop.f32.mrf.mxu2  ;;  %v7491_v62 = vrot.slane %v7489_v61, 3 }
 0x67b   : > { %v5854_v21 = vadd.f32 %v5791_v11, %v5595_v55  ;;  %v7494_v55 = vshrl.u32 %v9529_v36, 16 }
 0x67d   : > { %v5537_v39 = vpop.f32.mrf.mxu1  ;;  %v6095_v38 = vpop.f32.mrf.mxu3  ;;  %v7496_v32 = vrot.slane %v7494_v55, 2  ;;  %v13628_v55 = vld [vmem:[#allocation49_spill] sm:$0xff] }
 0x67e   : > { %v5597_v10 = vadd.f32 %v5537_v39, %v12586_v41  ;;  %v12864_v23 = vadd.f32 %v6095_v38, %v5853_v4  ;;  %v7488_v4 = vrot.slane %v7486_v37, 2  ;;  %v13627_v38 = vld [vmem:[#allocation48_spill] sm:$0xff] }
 0x680   : > { %6829 = vmatmul.bf16.vlgmr.msra.gmra.mxu1 %v11695_v42  ;;  %v7499_v42 = vrot.slane %v7497_v17, 3  ;;  %v7492_v22 = vor.u32 %v7491_v62, %v7488_v4 }
 0x682   : > { %6137 = vmatmul.bf16.gmra.mxu3 %v5977_v0  ;;  %v5793_v20 = vpop.f32.mrf.mxu2  ;;  %v7500_v19 = vor.u32 %v7499_v42, %v7496_v32  ;;  %v9531_v42 = vld [vmem:[%s10510_s17 + $0x28] sm:$0xff] }
 0x683   : > { %v5855_v24 = vadd.f32 %v5793_v20, %v5596_v30 }
 0x685   : > { %v5539_v27 = vpop.f32.mrf.mxu1  ;;  %v6098_v56 = vpop.f32.mrf.mxu3 }
 0x686   : > { %v5598_v3 = vadd.f32 %v5539_v27, %v12595_v18  ;;  %v12870_v41 = vadd.f32 %v6098_v56, %v5854_v21  ;;  %v7501_v18 = vsel %vm2949_vm3, %v7492_v22, %v7500_v19  ;;  %v9530_v21 = vld [vmem:[%s10510_s17 + $0x20] sm:$0xff]  ;;  %v7512_v22 = vshrl.u32 %v9531_v42, 16 }
 0x687   : > { %7136 = vmatmul.bf16.vlgmr.msra.gmra.mxu2 %v11710_v54  ;;  %v7503_v36 = vshrl.u32 %v9530_v21, 16  ;;  %v7506_v25 = vshll.u32 %v9530_v21, 16 }
 0x689   : > { %v7508_v61 = vrot.slane %v7506_v25, 3 }
 0x68a   : > { %v5796_v1 = vpop.f32.mrf.mxu2 }
 0x68b   : > { %v5856_v11 = vadd.f32 %v5796_v1, %v5597_v10  ;;  %v13629_v1 = vld [vmem:[#allocation61_spill] sm:$0xff] }
 0x68d   : > { %v5542_v33 = vpop.f32.mrf.mxu1  ;;  %v6100_v7 = vpop.f32.mrf.mxu3 }
 0x68e   : > { %v5599_v30 = vadd.f32 %v5542_v33, %v12607_v35  ;;  %v12874_v39 = vadd.f32 %v6100_v7, %v5855_v24  ;;  %v7505_v35 = vrot.slane %v7503_v36, 2 }
 0x690   : > { %6834 = vmatmul.bf16.gmra.mxu1 %v13627_v38  ;;  %v7509_v24 = vor.u32 %v7508_v61, %v7505_v35  ;;  %v9532_v61 = vld [vmem:[%s10510_s17 + $0x30] sm:$0xff] }
 0x692   : > { %7729 = vmatmul.bf16.vlgmr.msra.gmra.mxu3 %v7501_v18  ;;  %v5798_v28 = vpop.f32.mrf.mxu2 }
 0x693   : > { %v5857_v54 = vadd.f32 %v5798_v28, %v5598_v3  ;;  %v7510_v3 = vsel %vm2949_vm3, %v7500_v19, %v7509_v24  ;;  %v13630_v28 = vld [vmem:[#allocation52_spill] sm:$0xff] }
 0x695   : > { %v5544_v0 = vpop.f32.mrf.mxu1  ;;  %v6103_v20 = vpop.f32.mrf.mxu3 }
 0x696   : > { %v5600_v10 = vadd.f32 %v5544_v0, %v12614_v2  ;;  %v12880_v37 = vadd.f32 %v6103_v20, %v5856_v11  ;;  %v7515_v11 = vshll.u32 %v9531_v42, 16 }
 0x697   : > { %7141 = vmatmul.bf16.gmra.mxu2 %v13628_v55  ;;  %v13631_v55 = vld [vmem:[#allocation60_spill] sm:$0xff] }
 0x698   : > { %v7517_v38 = vrot.slane %v7515_v11, 3 }
 0x69a   : > { %v5801_v17 = vpop.f32.mrf.mxu2 }
 0x69b   : > { %v5858_v27 = vadd.f32 %v5801_v17, %v5599_v30  ;;  %v7521_v17 = vshrl.u32 %v9532_v61, 16 }
 0x69d   : > { %v5547_v56 = vpop.f32.mrf.mxu1  ;;  %v6105_v4 = vpop.f32.mrf.mxu3 }
 0x69e   : > { %v5601_v62 = vadd.f32 %v5547_v56, %v12628_v50  ;;  %v12884_v32 = vadd.f32 %v6105_v4, %v5857_v54  ;;  %v7514_v50 = vrot.slane %v7512_v22, 2 }
 0x6a0   : > { %6839 = vmatmul.bf16.gmra.mxu1 %v13629_v1  ;;  %v7518_v36 = vor.u32 %v7517_v38, %v7514_v50  ;;  %v9533_v38 = vld [vmem:[%s10510_s17 + $0x38] sm:$0xff] }
 0x6a2   : > { %7734 = vmatmul.bf16.gmra.mxu3 %v7510_v3  ;;  %v5803_v2 = vpop.f32.mrf.mxu2 }
 0x6a3   : > { %v5859_v33 = vadd.f32 %v5803_v2, %v5600_v10  ;;  %v7519_v10 = vsel %vm2949_vm3, %v7509_v24, %v7518_v36  ;;  %v13632_v2 = vld [vmem:[#allocation53_spill] sm:$0xff] }
 0x6a5   : > { %v5549_v7 = vpop.f32.mrf.mxu1  ;;  %v6108_v18 = vpop.f32.mrf.mxu3 }
 0x6a6   : > { %v5602_v30 = vadd.f32 %v5549_v7, %v12633_v16  ;;  %v12890_v21 = vadd.f32 %v6108_v18, %v5858_v27  ;;  %v7524_v27 = vshll.u32 %v9532_v61, 16 }
 0x6a7   : > { %7146 = vmatmul.bf16.gmra.mxu2 %v13630_v28  ;;  %v13633_v28 = vld [vmem:[#allocation54_spill] sm:$0xff] }
 0x6a8   : > { %v7526_v1 = vrot.slane %v7524_v27, 3 }
 0x6aa   : > { %v5806_v19 = vpop.f32.mrf.mxu2 }
 0x6ab   : > { %v5860_v25 = vadd.f32 %v5806_v19, %v5601_v62  ;;  %v7530_v19 = vshrl.u32 %v9533_v38, 16 }
 0x6ad   : > { %v5552_v54 = vpop.f32.mrf.mxu1  ;;  %v6110_v0 = vpop.f32.mrf.mxu3 }
 0x6ae   : > { %v5603_v20 = vadd.f32 %v5552_v54, %v12647_v49  ;;  %v12894_v35 = vadd.f32 %v6110_v0, %v5859_v33  ;;  %v7523_v49 = vrot.slane %v7521_v17, 2 }
 0x6b0   : > { %6844 = vmatmul.bf16.gmra.mxu1 %v13631_v55  ;;  %v7527_v22 = vor.u32 %v7526_v1, %v7523_v49  ;;  %v9534_v1 = vld [vmem:[%s10510_s17 + $0x40] sm:$0xff] }
 0x6b2   : > { %7739 = vmatmul.bf16.gmra.mxu3 %v7519_v10  ;;  %v5808_v16 = vpop.f32.mrf.mxu2 }
 0x6b3   : > { %v5861_v56 = vadd.f32 %v5808_v16, %v5602_v30  ;;  %v7528_v30 = vsel %vm2949_vm3, %v7518_v36, %v7527_v22  ;;  %v13634_v16 = vld [vmem:[#allocation64_spill] sm:$0xff] }
 0x6b5   : > { %v5554_v4 = vpop.f32.mrf.mxu1  ;;  %v6113_v3 = vpop.f32.mrf.mxu3 }
 0x6b6   : > { %v5604_v62 = vadd.f32 %v5554_v4, %v12654_v12  ;;  %v12900_v42 = vadd.f32 %v6113_v3, %v5860_v25  ;;  %v7533_v25 = vshll.u32 %v9533_v38, 16 }
 0x6b7   : > { %7151 = vmatmul.bf16.gmra.mxu2 %v13632_v2  ;;  %v13635_v2 = vld [vmem:[#allocation57_spill] sm:$0xff] }
 0x6b8   : > { %v7535_v55 = vrot.slane %v7533_v25, 3 }
 0x6ba   : > { %v5811_v24 = vpop.f32.mrf.mxu2 }
 0x6bb   : > { %v5862_v11 = vadd.f32 %v5811_v24, %v5603_v20  ;;  %v7539_v24 = vshrl.u32 %v9534_v1, 16 }
 0x6bd   : > { %v5557_v33 = vpop.f32.mrf.mxu1  ;;  %v6115_v7 = vpop.f32.mrf.mxu3 }
 0x6be   : > { %v5605_v18 = vadd.f32 %v5557_v33, %v12668_v52  ;;  %v12904_v50 = vadd.f32 %v6115_v7, %v5861_v56  ;;  %v7532_v52 = vrot.slane %v7530_v19, 2 }
 0x6c0   : > { %6849 = vmatmul.bf16.gmra.mxu1 %v13633_v28  ;;  %v7536_v17 = vor.u32 %v7535_v55, %v7532_v52  ;;  %v9535_v55 = vld [vmem:[%s10510_s17 + $0x48] sm:$0xff] }
 0x6c2   : > { %7744 = vmatmul.bf16.gmra.mxu3 %v7528_v30  ;;  %v5813_v12 = vpop.f32.mrf.mxu2 }
 0x6c3   : > { %v5863_v54 = vadd.f32 %v5813_v12, %v5604_v62  ;;  %v7537_v62 = vsel %vm2949_vm3, %v7527_v22, %v7536_v17  ;;  %v13636_v12 = vld [vmem:[#allocation62_spill] sm:$0xff] }
 0x6c5   : > { %v5559_v0 = vpop.f32.mrf.mxu1  ;;  %v6118_v10 = vpop.f32.mrf.mxu3 }
 0x6c6   : > { %v5606_v20 = vadd.f32 %v5559_v0, %v12675_v8  ;;  %v12910_v61 = vadd.f32 %v6118_v10, %v5862_v11  ;;  %v7542_v11 = vshll.u32 %v9534_v1, 16 }
 0x6c7   : > { %7156 = vmatmul.bf16.gmra.mxu2 %v13634_v16  ;;  %v13637_v16 = vld [vmem:[#allocation58_spill] sm:$0xff] }
 0x6c8   : > { %v7544_v28 = vrot.slane %v7542_v11, 3 }
 0x6ca   : > { %v5816_v36 = vpop.f32.mrf.mxu2 }
 0x6cb   : > { %v5864_v27 = vadd.f32 %v5816_v36, %v5605_v18  ;;  %v7548_v36 = vshrl.u32 %v9535_v55, 16 }
 0x6cd   : > { %v5562_v56 = vpop.f32.mrf.mxu1  ;;  %v6120_v4 = vpop.f32.mrf.mxu3 }
 0x6ce   : > { %v5607_v3 = vadd.f32 %v5562_v56, %v12687_v13  ;;  %v12914_v49 = vadd.f32 %v6120_v4, %v5863_v54  ;;  %v7541_v13 = vrot.slane %v7539_v24, 2 }
 0x6d0   : > { %6854 = vmatmul.bf16.gmra.mxu1 %v13635_v2  ;;  %v7545_v19 = vor.u32 %v7544_v28, %v7541_v13  ;;  %v9536_v28 = vld [vmem:[%s10510_s17 + $0x50] sm:$0xff] }
 0x6d2   : > { %7749 = vmatmul.bf16.gmra.mxu3 %v7537_v62  ;;  %v5818_v8 = vpop.f32.mrf.mxu2 }
 0x6d3   : > { %v5865_v33 = vadd.f32 %v5818_v8, %v5606_v20  ;;  %v7546_v20 = vsel %vm2949_vm3, %v7536_v17, %v7545_v19  ;;  %v13638_v8 = vld [vmem:[#allocation59_spill] sm:$0xff] }
 0x6d5   : > { %v5564_v7 = vpop.f32.mrf.mxu1  ;;  %v6123_v30 = vpop.f32.mrf.mxu3 }
 0x6d6   : > { %v5608_v18 = vadd.f32 %v5564_v7, %v12694_v14  ;;  %v12920_v38 = vadd.f32 %v6123_v30, %v5864_v27  ;;  %v7551_v27 = vshll.u32 %v9535_v55, 16 }
 0x6d7   : > { %7161 = vmatmul.bf16.gmra.mxu2 %v13636_v12  ;;  %v13639_v12 = vld [vmem:[#allocation65_spill] sm:$0xff] }
 0x6d8   : > { %v7553_v2 = vrot.slane %v7551_v27, 3 }
 0x6da   : > { %v5821_v22 = vpop.f32.mrf.mxu2 }
 0x6db   : > { %v5866_v25 = vadd.f32 %v5821_v22, %v5607_v3  ;;  %v7557_v22 = vshrl.u32 %v9536_v28, 16 }
 0x6dd   : > { %v5567_v54 = vpop.f32.mrf.mxu1  ;;  %v6125_v0 = vpop.f32.mrf.mxu3 }
 0x6de   : > { %v5609_v10 = vadd.f32 %v5567_v54, %v12708_v31  ;;  %v12924_v52 = vadd.f32 %v6125_v0, %v5865_v33  ;;  %v7550_v31 = vrot.slane %v7548_v36, 2 }
 0x6e0   : > { %6859 = vmatmul.bf16.gmra.mxu1 %v13637_v16  ;;  %v7554_v24 = vor.u32 %v7553_v2, %v7550_v31  ;;  %v13641_v2 = vld [vmem:[#allocation67_spill] sm:$0xff] }
 0x6e2   : > { %7754 = vmatmul.bf16.gmra.mxu3 %v7546_v20  ;;  %v5823_v14 = vpop.f32.mrf.mxu2 }
 0x6e3   : > { %v5867_v56 = vadd.f32 %v5823_v14, %v5608_v18  ;;  %v7555_v18 = vsel %vm2949_vm3, %v7545_v19, %v7554_v24  ;;  %v13640_v14 = vld [vmem:[#allocation66_spill] sm:$0xff] }
 0x6e5   : > { %v5569_v4 = vpop.f32.mrf.mxu1  ;;  %v6128_v62 = vpop.f32.mrf.mxu3 }
 0x6e6   : > { %v5610_v3 = vadd.f32 %v5569_v4, %v12716_v53  ;;  %v12930_v1 = vadd.f32 %v6128_v62, %v5866_v25  ;;  %v7560_v25 = vshll.u32 %v9536_v28, 16 }
 0x6e7   : > { %7166 = vmatmul.bf16.gmra.mxu2 %v13638_v8 }
 0x6e8   : > { %v7562_v16 = vrot.slane %v7560_v25, 3 }
 0x6ea   : > { %v5826_v17 = vpop.f32.mrf.mxu2 }
 0x6eb   : > { %v5868_v11 = vadd.f32 %v5826_v17, %v5609_v10 }
 0x6ed   : > { %v5572_v33 = vpop.f32.mrf.mxu1  ;;  %v6130_v7 = vpop.f32.mrf.mxu3 }
 0x6ee   : > { %v5611_v30 = vadd.f32 %v5572_v33, %v12731_v46  ;;  %v12934_v13 = vadd.f32 %v6130_v7, %v5867_v56  ;;  %v7559_v46 = vrot.slane %v7557_v22, 2 }
 0x6f0   : > { %6864 = vmatmul.bf16.gmra.mxu1 %v13639_v12  ;;  %v7563_v36 = vor.u32 %v7562_v16, %v7559_v46  ;;  %v13642_v12 = vld [vmem:[#allocation68_spill] sm:$0xff] }
 0x6f1   : > { %v9538_v16 = vld [vmem:[%s10510_s17 + $0x60] sm:$0xff] }
 0x6f2   : > { %7759 = vmatmul.bf16.gmra.mxu3 %v7555_v18  ;;  %v5828_v53 = vpop.f32.mrf.mxu2  ;;  %v7564_v31 = vsel %vm2949_vm3, %v7554_v24, %v7563_v36  ;;  %v13643_v24 = vld [vmem:[#allocation29_spill] sm:$0xff] }
 0x6f3   : > { %v5869_v54 = vadd.f32 %v5828_v53, %v5610_v3  ;;  %v9537_v3 = vld [vmem:[%s10510_s17 + $0x58] sm:$0xff]  ;;  %v6661_v25 = vadd.f32 %v13643_v24, %v12750_v63  ;;  %v7578_v63 = vshll.u32 %v9538_v16, 16 }
 0x6f4   : > { %v7566_v8 = vshrl.u32 %v9537_v3, 16  ;;  %v7569_v17 = vshll.u32 %v9537_v3, 16  ;;  %v7575_v3 = vshrl.u32 %v9538_v16, 16  ;;  %v13647_v16 = vld [vmem:[#allocation33_spill] sm:$0xff] }
 0x6f5   : > { %v5574_v0 = vpop.f32.mrf.mxu1  ;;  %v6133_v20 = vpop.f32.mrf.mxu3 }
 0x6f6   : > { %v5612_v10 = vadd.f32 %v5574_v0, %v12739_v60  ;;  %v12940_v55 = vadd.f32 %v6133_v20, %v5868_v11  ;;  %v7571_v28 = vrot.slane %v7569_v17, 3 }
 0x6f7   : > { %7171 = vmatmul.bf16.gmra.mxu2 %v13640_v14 }
 0x6fa   : > { %v5831_v19 = vpop.f32.mrf.mxu2 }
 0x6fb   : > { %v5870_v27 = vadd.f32 %v5831_v19, %v5611_v30  ;;  %v7568_v30 = vrot.slane %v7566_v8, 2  ;;  %v12957_v19 = vld [vmem:[#allocation11 + $0x2] ss:$0 sm:$0xff]  ;;  %v12965_v8 = vld [vmem:[#allocation11 + $0x3] ss:$0 sm:$0xff] }
 0x6fd   : > { %v6830_v56 = vpop.f32.mrf.mxu1  ;;  %v6135_v4 = vpop.f32.mrf.mxu3  ;;  %v7572_v22 = vor.u32 %v7571_v28, %v7568_v30  ;;  %v7577_v28 = vrot.slane %v7575_v3, 2 }
 0x6fe   : > { %v12943_v62 = vadd.f32 %v6135_v4, %v5869_v54  ;;  %v6920_v20 = vadd.f32 %v6830_v56, %v6661_v25  ;;  %v12960_v4 = vld [vmem:[#allocation11 + $0x4] ss:$0 sm:$0xff] }
 0x6ff   : > { %v13646_v25 = vld [vmem:[#allocation30_spill] sm:$0xff] }
 0x700   : > { %6869 = vmatmul.bf16.gmra.mxu1 %v13641_v2  ;;  %v13645_v2 = vld [vmem:[#allocation42_spill] sm:$0xff] }
 0x701   : > { %v6662_v56 = vadd.f32 %v13645_v2, %v12758_v58 }
 0x702   : > { %7764 = vmatmul.bf16.gmra.mxu3 %v7564_v31  ;;  %v5833_v60 = vpop.f32.mrf.mxu2 }
 0x703   : > { %v5871_v11 = vadd.f32 %v5833_v60, %v5612_v10  ;;  %v7573_v10 = vsel %vm2949_vm3, %v7563_v36, %v7572_v22  ;;  %v12967_v36 = vld [vmem:[#allocation11 + $0x5] ss:$0 sm:$0xff] }
 0x705   : > { %v6832_v33 = vpop.f32.mrf.mxu1  ;;  %v6138_v7 = vpop.f32.mrf.mxu3 }
 0x706   : > { %v12948_v18 = vadd.f32 %v6138_v7, %v5870_v27  ;;  %v13644_v27 = vld [vmem:[#allocation26_spill] sm:$0xff]  ;;  %v6921_v7 = vadd.f32 %v6832_v33, %v6662_v56 }
 0x707   : > { %7176 = vmatmul.bf16.gmra.mxu2 %v13642_v12  ;;  %v7580_v12 = vrot.slane %v7578_v63, 3 }
 0x70a   : > { %v7137_v53 = vpop.f32.mrf.mxu2 }
 0x70b   : > { %v7227_v14 = vadd.f32 %v7137_v53, %v6920_v20 }
 0x70d   : > { %v6835_v54 = vpop.f32.mrf.mxu1  ;;  %v6140_v0 = vpop.f32.mrf.mxu3  ;;  %v7265_v60 = vmul.f32 %v12957_v19, %v7227_v14  ;;  %v6663_v14 = vadd.f32 %v13647_v16, %v12767_v59 }
 0x70e   : > { %v12953_v46 = vadd.f32 %v6140_v0, %v5871_v11 }
 0x70f   : > { %v7303_v53 = vadd.f32 %v12965_v8, %v7265_v60  ;;  %v6922_v63 = vadd.f32 %v6835_v54, %v6663_v14  ;;  %v9539_v60 = vld [vmem:[%s10510_s17 + $0x68] sm:$0xff] }
 0x710   : > { %6874 = vmatmul.bf16.gmra.mxu1 %v13644_v27 }
 0x712   : > { %7769 = vmatmul.bf16.gmra.mxu3 %v7573_v10  ;;  %v7139_v31 = vpop.f32.mrf.mxu2  ;;  %v7581_v10 = vor.u32 %v7580_v12, %v7577_v28  ;;  %v7584_v12 = vshrl.u32 %v9539_v60, 16 }
 0x713   : > { %v7228_v24 = vadd.f32 %v7139_v31, %v6921_v7 }
 0x714   : > { %v7582_v56 = vsel %vm2949_vm3, %v7572_v22, %v7581_v10 }
 0x715   : > { %v6837_v17 = vpop.f32.mrf.mxu1  ;;  %v7730_v11 = vpop.f32.mrf.mxu3  ;;  %v7266_v33 = vmul.f32 %v12957_v19, %v7228_v24  ;;  %v13649_v24 = vld [vmem:[#allocation51_spill] sm:$0xff] }
 0x716   : > { %v7822_v30 = vmul.f32 %v12960_v4, %v7730_v11 }
 0x717   : > { %7181 = vmatmul.bf16.gmra.mxu2 %v13646_v25  ;;  %v7304_v11 = vadd.f32 %v12965_v8, %v7266_v33  ;;  %v7586_v33 = vrot.slane %v7584_v12, 2 }
 0x718   : > { %v7860_v58 = vadd.f32 %v12967_v36, %v7822_v30  ;;  %v13648_v30 = vld [vmem:[#allocation20_spill] sm:$0xff] }
 0x71a   : > { %v7896_v0 = vadd.f32 %v7860_v58, %v7303_v53  ;;  %v7142_v20 = vpop.f32.mrf.mxu2  ;;  %v7587_v53 = vshll.u32 %v9539_v60, 16  ;;  %v6664_v58 = vadd.f32 %v13649_v24, %v12772_v48 }
 0x71b   : > { %v7229_v7 = vadd.f32 %v7142_v20, %v6922_v63 }
 0x71c   : > { %v7932_v27 = vmax.f32 %v7896_v0, 0.0  ;;  %v6923_v14 = vadd.f32 %v6837_v17, %v6664_v58  ;;  %v9540_v58 = vld [vmem:[%s10510_s17 + $0x70] sm:$0xff] }
 0x71d   : > { %v6840_v2 = vpop.f32.mrf.mxu1  ;;  %v7732_v3 = vpop.f32.mrf.mxu3  ;;  %v7267_v25 = vmul.f32 %v12957_v19, %v7229_v7  ;;  %v13651_v7 = vld [vmem:[#allocation40_spill] sm:$0xff] }
 0x71e   : > { %7968 = vst [vmem:[%s12977_s18] sm:$0xff] %v7932_v27  ;;  %v7823_v31 = vmul.f32 %v12960_v4, %v7732_v3  ;;  %v7589_v27 = vrot.slane %v7587_v53, 3  ;;  %v6665_v17 = vadd.f32 %v13651_v7, %v12781_v29 }
 0x71f   : > { %v7305_v3 = vadd.f32 %v12965_v8, %v7267_v25 }
 0x720   : > { %v7861_v59 = vadd.f32 %v12967_v36, %v7823_v31  ;;  %6879 = vmatmul.bf16.gmra.mxu1 %v13648_v30  ;;  %v6924_v53 = vadd.f32 %v6840_v2, %v6665_v17  ;;  %v13653_v2 = vld [vmem:[#allocation34_spill] sm:$0xff] }
 0x722   : > { %v7897_v28 = vadd.f32 %v7861_v59, %v7304_v11  ;;  %7774 = vmatmul.bf16.gmra.mxu3 %v7582_v56  ;;  %v7144_v54 = vpop.f32.mrf.mxu2  ;;  %v13650_v56 = vld [vmem:[#allocation21_spill] sm:$0xff]  ;;  %v7590_v11 = vor.u32 %v7589_v27, %v7586_v33  ;;  %v7593_v33 = vshrl.u32 %v9540_v58, 16  ;;  %v7596_v27 = vshll.u32 %v9540_v58, 16  ;;  %v13012_v58 = vpop.f32.mrf.mxu0 }
 0x723   : > { %v7230_v63 = vadd.f32 %v7144_v54, %v6923_v14  ;;  %v13652_v14 = vld [vmem:[#allocation27_spill] sm:$0xff] }
 0x724   : > { %v7933_v22 = vmax.f32 %v7897_v28, 0.0  ;;  %v7591_v54 = vsel %vm2949_vm3, %v7581_v10, %v7590_v11  ;;  %v7595_v7 = vrot.slane %v7593_v33, 2  ;;  %v7598_v17 = vrot.slane %v7596_v27, 3 }
 0x725   : > { %v6842_v0 = vpop.f32.mrf.mxu1  ;;  %v7735_v16 = vpop.f32.mrf.mxu3  ;;  %v7268_v59 = vmul.f32 %v12957_v19, %v7230_v63 }
 0x726   : > { %7969 = vst [vmem:[%s12977_s18 + $0x8] sm:$0xff] %v7933_v22  ;;  %v7824_v20 = vmul.f32 %v12960_v4, %v7735_v16 }
 0x727   : > { %7186 = vmatmul.bf16.gmra.mxu2 %v13650_v56  ;;  %v7306_v25 = vadd.f32 %v12965_v8, %v7268_v59 }
 0x728   : > { %v7862_v31 = vadd.f32 %v12967_v36, %v7824_v20 }
 0x72a   : > { %v7898_v48 = vadd.f32 %v7862_v31, %v7305_v3  ;;  %v7147_v60 = vpop.f32.mrf.mxu2  ;;  %v6666_v3 = vadd.f32 %v13653_v2, %v12786_v34  ;;  %v9541_v2 = vld [vmem:[%s10510_s17 + $0x78] sm:$0xff] }
 0x72b   : > { %v7231_v22 = vadd.f32 %v7147_v60, %v6924_v53  ;;  %v13654_v53 = vld [vmem:[#allocation31_spill] sm:$0xff] }
 0x72c   : > { %v7934_v30 = vmax.f32 %v7898_v48, 0.0  ;;  %v6925_v48 = vadd.f32 %v6842_v0, %v6666_v3  ;;  %v13655_v0 = vld [vmem:[#allocation38_spill] sm:$0xff] }
 0x72d   : > { %v6845_v28 = vpop.f32.mrf.mxu1  ;;  %v7737_v12 = vpop.f32.mrf.mxu3  ;;  %v7269_v63 = vmul.f32 %v12957_v19, %v7231_v22 }
 0x72e   : > { %7970 = vst [vmem:[%s12977_s18 + $0x10] sm:$0xff] %v7934_v30  ;;  %v7825_v24 = vmul.f32 %v12960_v4, %v7737_v12 }
 0x72f   : > { %v7307_v59 = vadd.f32 %v12965_v8, %v7269_v63 }
 0x730   : > { %v7863_v16 = vadd.f32 %v12967_v36, %v7825_v24  ;;  %6884 = vmatmul.bf16.gmra.mxu1 %v13652_v14 }
 0x732   : > { %v7899_v29 = vadd.f32 %v7863_v16, %v7306_v25  ;;  %7779 = vmatmul.bf16.gmra.mxu3 %v7591_v54  ;;  %v7149_v20 = vpop.f32.mrf.mxu2  ;;  %v7599_v54 = vor.u32 %v7598_v17, %v7595_v7  ;;  %v6667_v25 = vadd.f32 %v13655_v0, %v12795_v43  ;;  %v7605_v7 = vshll.u32 %v9541_v2, 16 }
 0x733   : > { %v7232_v30 = vadd.f32 %v7149_v20, %v6925_v48 }
 0x734   : > { %v7935_v10 = vmax.f32 %v7899_v29, 0.0  ;;  %v6926_v33 = vadd.f32 %v6845_v28, %v6667_v25  ;;  %v7600_v27 = vsel %vm2949_vm3, %v7590_v11, %v7599_v54  ;;  %v13657_v28 = vld [vmem:[#allocation56_spill] sm:$0xff]  ;;  %v7607_v25 = vrot.slane %v7605_v7, 3 }
 0x735   : > { %v6847_v31 = vpop.f32.mrf.mxu1  ;;  %v7740_v56 = vpop.f32.mrf.mxu3  ;;  %v7270_v22 = vmul.f32 %v12957_v19, %v7232_v30  ;;  %v6668_v17 = vadd.f32 %v13657_v28, %v12800_v26  ;;  %v9542_v7 = vld [vmem:[%s10510_s17 + $0x80] sm:$0xff] }
 0x736   : > { %7971 = vst [vmem:[%s12977_s18 + $0x18] sm:$0xff] %v7935_v10  ;;  %v7826_v60 = vmul.f32 %v12960_v4, %v7740_v56  ;;  %v13656_v56 = vld [vmem:[#allocation36_spill] sm:$0xff] }
 0x737   : > { %7191 = vmatmul.bf16.gmra.mxu2 %v13654_v53  ;;  %v7308_v3 = vadd.f32 %v12965_v8, %v7270_v22  ;;  %v13027_v53 = vpop.f32.mrf.mxu0 }
 0x738   : > { %v7864_v12 = vadd.f32 %v12967_v36, %v7826_v60  ;;  %v7602_v60 = vshrl.u32 %v9541_v2, 16  ;;  %v13659_v2 = vld [vmem:[#allocation45_spill] sm:$0xff] }
 0x73a   : > { %v7900_v34 = vadd.f32 %v7864_v12, %v7307_v59  ;;  %v7152_v24 = vpop.f32.mrf.mxu2  ;;  %v7604_v0 = vrot.slane %v7602_v60, 2 }
 0x73b   : > { %v7233_v63 = vadd.f32 %v7152_v24, %v6926_v33 }
 0x73c   : > { %v7936_v16 = vmax.f32 %v7900_v34, 0.0  ;;  %v6927_v34 = vadd.f32 %v6847_v31, %v6668_v17  ;;  %v6669_v31 = vadd.f32 %v13659_v2, %v12809_v9 }
 0x73d   : > { %v6850_v14 = vpop.f32.mrf.mxu1  ;;  %v7742_v29 = vpop.f32.mrf.mxu3  ;;  %v7271_v59 = vmul.f32 %v12957_v19, %v7233_v63 }
 0x73e   : > { %7972 = vst [vmem:[%s12977_s18 + $0x20] sm:$0xff] %v7936_v16  ;;  %v7827_v20 = vmul.f32 %v12960_v4, %v7742_v29  ;;  %v13658_v29 = vld [vmem:[#allocation22_spill] sm:$0xff] }
 0x73f   : > { %v7309_v22 = vadd.f32 %v12965_v8, %v7271_v59  ;;  %v13041_v28 = vpop.f32.mrf.mxu0 }
 0x740   : > { %v7865_v10 = vadd.f32 %v12967_v36, %v7827_v20  ;;  %6889 = vmatmul.bf16.gmra.mxu1 %v13656_v56 }
 0x742   : > { %v7901_v43 = vadd.f32 %v7865_v10, %v7308_v3  ;;  %7784 = vmatmul.bf16.gmra.mxu3 %v7600_v27  ;;  %v7154_v48 = vpop.f32.mrf.mxu2  ;;  %v7608_v27 = vor.u32 %v7607_v25, %v7604_v0  ;;  %v6670_v0 = vadd.f32 %v12728_v47, %v12814_v57 }
 0x743   : > { %v7234_v16 = vadd.f32 %v7154_v48, %v6927_v34 }
 0x744   : > { %v7937_v11 = vmax.f32 %v7901_v43, 0.0  ;;  %v6928_v43 = vadd.f32 %v6850_v14, %v6669_v31  ;;  %v7609_v48 = vsel %vm2949_vm3, %v7599_v54, %v7608_v27  ;;  %v7611_v14 = vshrl.u32 %v9542_v7, 16 }
 0x745   : > { %v6852_v30 = vpop.f32.mrf.mxu1  ;;  %v7745_v12 = vpop.f32.mrf.mxu3  ;;  %v7272_v3 = vmul.f32 %v12957_v19, %v7234_v16 }
 0x746   : > { %7973 = vst [vmem:[%s12977_s18 + $0x28] sm:$0xff] %v7937_v11  ;;  %v7828_v24 = vmul.f32 %v12960_v4, %v7745_v12  ;;  %v13660_v11 = vld [vmem:[#allocation23_spill] sm:$0xff] }
 0x747   : > { %7196 = vmatmul.bf16.gmra.mxu2 %v13658_v29  ;;  %v7310_v17 = vadd.f32 %v12965_v8, %v7272_v3  ;;  %v13054_v47 = vpop.f32.mrf.mxu0 }
 0x748   : > { %v7866_v26 = vadd.f32 %v12967_v36, %v7828_v24  ;;  %v7614_v24 = vshll.u32 %v9542_v7, 16 }
 0x74a   : > { %v7902_v33 = vadd.f32 %v7866_v26, %v7309_v22  ;;  %v7157_v20 = vpop.f32.mrf.mxu2  ;;  %v6929_v26 = vadd.f32 %v6852_v30, %v6670_v0  ;;  %v6671_v30 = vadd.f32 %v12742_v15, %v12823_v40  ;;  %v13662_v0 = vld [vmem:[#allocation25_spill] sm:$0xff] }
 0x74b   : > { %v7235_v59 = vadd.f32 %v7157_v20, %v6928_v43  ;;  %v7616_v20 = vrot.slane %v7614_v24, 3 }
 0x74c   : > { %v7938_v63 = vmax.f32 %v7902_v33, 0.0  ;;  %v7613_v33 = vrot.slane %v7611_v14, 2 }
 0x74d   : > { %v6855_v10 = vpop.f32.mrf.mxu1  ;;  %v7747_v56 = vpop.f32.mrf.mxu3  ;;  %v7273_v54 = vmul.f32 %v12957_v19, %v7235_v59 }
 0x74e   : > { %7974 = vst [vmem:[%s12977_s18 + $0x30] sm:$0xff] %v7938_v63  ;;  %v7829_v60 = vmul.f32 %v12960_v4, %v7747_v56  ;;  %v13661_v63 = vld [vmem:[#allocation32_spill] sm:$0xff]  ;;  %v7617_v43 = vor.u32 %v7616_v20, %v7613_v33  ;;  %v6930_v59 = vadd.f32 %v6855_v10, %v6671_v30 }
 0x74f   : > { %v7311_v2 = vadd.f32 %v12965_v8, %v7273_v54  ;;  %v13066_v10 = vpop.f32.mrf.mxu0 }
 0x750   : > { %v7867_v9 = vadd.f32 %v12967_v36, %v7829_v60  ;;  %6894 = vmatmul.bf16.gmra.mxu1 %v13660_v11  ;;  %v7618_v11 = vsel %vm2949_vm3, %v7608_v27, %v7617_v43 }
 0x752   : > { %v7903_v12 = vadd.f32 %v7867_v9, %v7310_v17  ;;  %7789 = vmatmul.bf16.gmra.mxu3 %v7609_v48  ;;  %v7159_v34 = vpop.f32.mrf.mxu2 }
 0x753   : > { %v7236_v31 = vadd.f32 %v7159_v34, %v6929_v26 }
 0x754   : > { %v7939_v25 = vmax.f32 %v7903_v12, 0.0  ;;  %v9543_v12 = vld [vmem:[%s10510_s17 + $0x88] sm:$0xff] }
 0x755   : > { %v6857_v22 = vpop.f32.mrf.mxu1  ;;  %v7750_v16 = vpop.f32.mrf.mxu3  ;;  %v7274_v60 = vmul.f32 %v12957_v19, %v7236_v31  ;;  %v7620_v54 = vshrl.u32 %v9543_v12, 16 }
 0x756   : > { %7975 = vst [vmem:[%s12977_s18 + $0x38] sm:$0xff] %v7939_v25  ;;  %v7830_v29 = vmul.f32 %v12960_v4, %v7750_v16  ;;  %v7623_v25 = vshll.u32 %v9543_v12, 16  ;;  %v13663_v16 = vld [vmem:[#allocation39_spill] sm:$0xff] }
 0x757   : > { %7201 = vmatmul.bf16.gmra.mxu2 %v13661_v63  ;;  %v7312_v34 = vadd.f32 %v12965_v8, %v7274_v60  ;;  %v6672_v26 = vadd.f32 %v13663_v16, %v12828_v51  ;;  %v13664_v60 = vld [vmem:[#allocation41_spill] sm:$0xff]  ;;  %v13666_v16 = vld [vmem:[#allocation24_spill] sm:$0xff] }
 0x758   : > { %v7868_v3 = vadd.f32 %v12967_v36, %v7830_v29  ;;  %v7625_v63 = vrot.slane %v7623_v25, 3 }
 0x75a   : > { %v7904_v57 = vadd.f32 %v7868_v3, %v7311_v2  ;;  %v7162_v56 = vpop.f32.mrf.mxu2  ;;  %v6931_v2 = vadd.f32 %v6857_v22, %v6672_v26  ;;  %v7622_v3 = vrot.slane %v7620_v54, 2 }
 0x75b   : > { %v7237_v14 = vadd.f32 %v7162_v56, %v6930_v59  ;;  %v13665_v59 = vld [vmem:[#allocation43_spill] sm:$0xff] }
 0x75c   : > { %v7940_v48 = vmax.f32 %v7904_v57, 0.0  ;;  %v6673_v22 = vadd.f32 %v13012_v58, %v13665_v59 }
 0x75d   : > { %v6860_v7 = vpop.f32.mrf.mxu1  ;;  %v7752_v17 = vpop.f32.mrf.mxu3  ;;  %v7275_v27 = vmul.f32 %v12957_v19, %v7237_v14 }
 0x75e   : > { %7976 = vst [vmem:[%s12977_s18 + $0x40] sm:$0xff] %v7940_v48  ;;  %v7831_v9 = vmul.f32 %v12960_v4, %v7752_v17  ;;  %v7626_v17 = vor.u32 %v7625_v63, %v7622_v3  ;;  %v13079_v14 = vpop.f32.mrf.mxu0 }
 0x75f   : > { %v7313_v57 = vadd.f32 %v12965_v8, %v7275_v27 }
 0x760   : > { %v7869_v24 = vadd.f32 %v12967_v36, %v7831_v9  ;;  %6899 = vmatmul.bf16.gmra.mxu1 %v13662_v0 }
 0x762   : > { %v7905_v15 = vadd.f32 %v7869_v24, %v7312_v34  ;;  %7794 = vmatmul.bf16.gmra.mxu3 %v7618_v11  ;;  %v7164_v40 = vpop.f32.mrf.mxu2  ;;  %v6932_v24 = vadd.f32 %v6860_v7, %v6673_v22  ;;  %v6674_v7 = vadd.f32 %v13027_v53, %v12842_v6  ;;  %v13667_v53 = vld [vmem:[#allocation63_spill] sm:$0xff] }
 0x763   : > { %v7238_v56 = vadd.f32 %v7164_v40, %v6931_v2  ;;  %v9544_v40 = vld [vmem:[%s10510_s17 + $0x90] sm:$0xff] }
 0x764   : > { %v7941_v29 = vmax.f32 %v7905_v15, 0.0  ;;  %v7627_v15 = vsel %vm2949_vm3, %v7617_v43, %v7626_v17 }
 0x765   : > { %v6862_v33 = vpop.f32.mrf.mxu1  ;;  %v7755_v20 = vpop.f32.mrf.mxu3  ;;  %v7276_v9 = vmul.f32 %v12957_v19, %v7238_v56 }
 0x766   : > { %7977 = vst [vmem:[%s12977_s18 + $0x48] sm:$0xff] %v7941_v29  ;;  %v7832_v31 = vmul.f32 %v12960_v4, %v7755_v20  ;;  %v7629_v29 = vshrl.u32 %v9544_v40, 16  ;;  %v7632_v20 = vshll.u32 %v9544_v40, 16  ;;  %v6933_v63 = vadd.f32 %v6862_v33, %v6674_v7 }
 0x767   : > { %7206 = vmatmul.bf16.gmra.mxu2 %v13664_v60  ;;  %v7314_v54 = vadd.f32 %v12965_v8, %v7276_v9  ;;  %v13093_v60 = vpop.f32.mrf.mxu0  ;;  %v6675_v33 = vadd.f32 %v13041_v28, %v12849_v45  ;;  %v6956_v45 = vld [vmem:[#allocation2 + $0xa4] sm:$0x7] }
 0x768   : > { %v7870_v30 = vadd.f32 %v12967_v36, %v7832_v31  ;;  %v7631_v56 = vrot.slane %v7629_v29, 2 }
 0x76a   : > { %v7906_v51 = vadd.f32 %v7870_v30, %v7313_v57  ;;  %v7167_v48 = vpop.f32.mrf.mxu2  ;;  %v7634_v30 = vrot.slane %v7632_v20, 3 }
 0x76b   : > { %v7239_v25 = vadd.f32 %v7167_v48, %v6932_v24 }
 0x76c   : > { %v7942_v11 = vmax.f32 %v7906_v51, 0.0  ;;  %v7635_v9 = vor.u32 %v7634_v30, %v7631_v56 }
 0x76d   : > { %v6865_v12 = vpop.f32.mrf.mxu1  ;;  %v7757_v34 = vpop.f32.mrf.mxu3  ;;  %v7277_v2 = vmul.f32 %v12957_v19, %v7239_v25  ;;  %v9545_v25 = vld [vmem:[%s10510_s17 + $0x98] sm:$0xff] }
 0x76e   : > { %7978 = vst [vmem:[%s12977_s18 + $0x50] sm:$0xff] %v7942_v11  ;;  %v7833_v0 = vmul.f32 %v12960_v4, %v7757_v34  ;;  %v7638_v20 = vshrl.u32 %v9545_v25, 16  ;;  %v7641_v7 = vshll.u32 %v9545_v25, 16 }
 0x76f   : > { %v7315_v51 = vadd.f32 %v12965_v8, %v7277_v2  ;;  %v13108_v28 = vpop.f32.mrf.mxu0  ;;  %v6975_v2 = vunpack.c.l.b16 %v6956_v45 }
 0x770   : > { %v7871_v58 = vadd.f32 %v12967_v36, %v7833_v0  ;;  %6904 = vmatmul.bf16.gmra.mxu1 %v13666_v16 }
 0x772   : > { %v7907_v26 = vadd.f32 %v7871_v58, %v7314_v54  ;;  %7799 = vmatmul.bf16.gmra.mxu3 %v7627_v15  ;;  %v7169_v27 = vpop.f32.mrf.mxu2  ;;  %v6934_v15 = vadd.f32 %v6865_v12, %v6675_v33  ;;  %v7636_v54 = vsel %vm2949_vm3, %v7626_v17, %v7635_v9  ;;  %v6676_v17 = vadd.f32 %v13054_v47, %v12853_v44  ;;  %v13669_v33 = vld [vmem:[#allocation35_spill] sm:$0xff] }
 0x773   : > { %v7240_v48 = vadd.f32 %v7169_v27, %v6933_v63  ;;  %v13668_v27 = vld [vmem:[#allocation37_spill] sm:$0xff]  ;;  %v7375_v44 = vld [vmem:[%s10510_s17 + $0xa0] sm:$0x7] }
 0x774   : > { %v7943_v43 = vmax.f32 %v7907_v26, 0.0 }
 0x775   : > { %v6867_v31 = vpop.f32.mrf.mxu1  ;;  %v7760_v3 = vpop.f32.mrf.mxu3  ;;  %v7278_v11 = vmul.f32 %v12957_v19, %v7240_v48  ;;  %v7643_v48 = vrot.slane %v7641_v7, 3 }
 0x776   : > { %7979 = vst [vmem:[%s12977_s18 + $0x58] sm:$0xff] %v7943_v43  ;;  %v7834_v57 = vmul.f32 %v12960_v4, %v7760_v3  ;;  %v6935_v56 = vadd.f32 %v6867_v31, %v6676_v17 }
 0x777   : > { %7211 = vmatmul.bf16.gmra.mxu2 %v13667_v53  ;;  %v7316_v58 = vadd.f32 %v12965_v8, %v7278_v11 }
 0x778   : > { %v7872_v6 = vadd.f32 %v12967_v36, %v7834_v57 }
 0x77a   : > { %v7908_v59 = vadd.f32 %v7872_v6, %v7315_v51  ;;  %v7172_v22 = vpop.f32.mrf.mxu2  ;;  %v7640_v51 = vrot.slane %v7638_v20, 2  ;;  %v6976_v6 = vpack.c.b16 %v6975_v2, %v6975_v2 }
 0x77b   : > { %v7241_v16 = vadd.f32 %v7172_v22, %v6934_v15  ;;  %v7465_v15 = vunpack.c.l.b16 %v7375_v44 }
 0x77c   : > { %v7944_v34 = vmax.f32 %v7908_v59, 0.0  ;;  %v7057_v31 = vshll.u32 %v6976_v6, 16 }
 0x77d   : > { %v6870_v24 = vpop.f32.mrf.mxu1  ;;  %v7762_v0 = vpop.f32.mrf.mxu3  ;;  %v7279_v43 = vmul.f32 %v12957_v19, %v7241_v16  ;;  %v7484_v7 = vpack.c.b16 %v7465_v15, %v7465_v15 }
 0x77e   : > { %7980 = vst [vmem:[%s12977_s18 + $0x60] sm:$0xff] %v7944_v34  ;;  %v7835_v40 = vmul.f32 %v12960_v4, %v7762_v0  ;;  %v7644_v34 = vor.u32 %v7643_v48, %v7640_v51  ;;  %v7054_v0 = vshrl.u32 %v6976_v6, 16  ;;  %v7059_v20 = vrot.slane %v7057_v31, 3 }
 0x77f   : > { %v7317_v53 = vadd.f32 %v12965_v8, %v7279_v43 }
 0x780   : > { %v7873_v26 = vadd.f32 %v12967_v36, %v7835_v40  ;;  %6909 = vmatmul.bf16.gmra.mxu1 %v13668_v27  ;;  %v13119_v40 = vpop.f32.mrf.mxu0 }
 0x782   : > { %v7909_v29 = vadd.f32 %v7873_v26, %v7316_v58  ;;  %7804 = vmatmul.bf16.gmra.mxu3 %v7636_v54  ;;  %v7174_v12 = vpop.f32.mrf.mxu2  ;;  %v6677_v54 = vadd.f32 %v13066_v10, %v12858_v5  ;;  %v13670_v10 = vld [vmem:[#allocation46_spill] sm:$0xff] }
 0x783   : > { %v7242_v59 = vadd.f32 %v7174_v12, %v6935_v56  ;;  %v7056_v12 = vrot.slane %v7054_v0, 2  ;;  %v7650_v56 = vshll.u32 %v7484_v7, 16 }
 0x784   : > { %v7945_v3 = vmax.f32 %v7909_v29, 0.0  ;;  %v6936_v27 = vadd.f32 %v6870_v24, %v6677_v54  ;;  %v7645_v29 = vsel %vm2949_vm3, %v7635_v9, %v7644_v34  ;;  %v6678_v9 = vadd.f32 %v13079_v14, %v12864_v23 }
 0x785   : > { %v6872_v63 = vpop.f32.mrf.mxu1  ;;  %v7765_v57 = vpop.f32.mrf.mxu3  ;;  %v7280_v25 = vmul.f32 %v12957_v19, %v7242_v59  ;;  %v7060_v24 = vor.u32 %v7059_v20, %v7056_v12 }
 0x786   : > { %7981 = vst [vmem:[%s12977_s18 + $0x68] sm:$0xff] %v7945_v3  ;;  %v7836_v30 = vmul.f32 %v12960_v4, %v7765_v57  ;;  %v7647_v57 = vshrl.u32 %v7484_v7, 16  ;;  %v6937_v59 = vadd.f32 %v6872_v63, %v6678_v9  ;;  %v6679_v63 = vadd.f32 %v13093_v60, %v12870_v41 }
 0x787   : > { %7216 = vmatmul.bf16.gmra.mxu2 %v13669_v33  ;;  %v7318_v2 = vadd.f32 %v12965_v8, %v7280_v25  ;;  %v13671_v33 = vld [vmem:[#allocation28_spill] sm:$0xff]  ;;  %v6680_v60 = vadd.f32 %v13108_v28, %v12874_v39  ;;  %v6681_v39 = vadd.f32 %v13119_v40, %v12880_v37 }
 0x788   : > { %v7874_v22 = vadd.f32 %v12967_v36, %v7836_v30  ;;  %v7061_v44 = vsel %vm2949_vm3, %v13671_v33, %v7060_v24 }
 0x78a   : > { %v7910_v47 = vadd.f32 %v7874_v22, %v7317_v53  ;;  %v7177_v11 = vpop.f32.mrf.mxu2  ;;  %v6623_v53 = vpop.f32.mrf.mxu0 }
 0x78b   : > { %v7243_v17 = vadd.f32 %v7177_v11, %v6936_v27  ;;  %v7652_v11 = vrot.slane %v7650_v56, 3  ;;  %v6682_v37 = vadd.f32 %v6623_v53, %v12884_v32 }
 0x78c   : > { %v7946_v58 = vmax.f32 %v7910_v47, 0.0  ;;  %v7649_v47 = vrot.slane %v7647_v57, 2 }
 0x78d   : > { %v6875_v16 = vpop.f32.mrf.mxu1  ;;  %v7767_v26 = vpop.f32.mrf.mxu3  ;;  %v7281_v30 = vmul.f32 %v12957_v19, %v7243_v17 }
 0x78e   : > { %7982 = vst [vmem:[%s12977_s18 + $0x70] sm:$0xff] %v7946_v58  ;;  %v7837_v45 = vmul.f32 %v12960_v4, %v7767_v26  ;;  %v7653_v54 = vor.u32 %v7652_v11, %v7649_v47 }
 0x78f   : > { %v7319_v0 = vadd.f32 %v12965_v8, %v7281_v30 }
 0x790   : > { %v7875_v5 = vadd.f32 %v12967_v36, %v7837_v45  ;;  %6914 = vmatmul.bf16.gmra.mxu1 %v13670_v10  ;;  %v6938_v45 = vadd.f32 %v6875_v16, %v6679_v63  ;;  %v7654_v12 = vsel %vm2949_vm3, %v7644_v34, %v7653_v54 }
 0x792   : > { %v7911_v43 = vadd.f32 %v7875_v5, %v7318_v2  ;;  %7809 = vmatmul.bf16.gmra.mxu3 %v7645_v29  ;;  %v7179_v3 = vpop.f32.mrf.mxu2  ;;  %v6626_v20 = vpop.f32.mrf.mxu0 }
 0x793   : > { %v7244_v31 = vadd.f32 %v7179_v3, %v6937_v59 }
 0x794   : > { %v7947_v51 = vmax.f32 %v7911_v43, 0.0 }
 0x795   : > { %v6877_v48 = vpop.f32.mrf.mxu1  ;;  %v7770_v6 = vpop.f32.mrf.mxu3  ;;  %v7282_v25 = vmul.f32 %v12957_v19, %v7244_v31 }
 0x796   : > { %7983 = vst [vmem:[%s12977_s18 + $0x78] sm:$0xff] %v7947_v51  ;;  %v7838_v22 = vmul.f32 %v12960_v4, %v7770_v6  ;;  %v6939_v24 = vadd.f32 %v6877_v48, %v6680_v60 }
 0x797   : > { %7221 = vmatmul.bf16.gmra.mxu2 %v7061_v44  ;;  %v7320_v7 = vadd.f32 %v12965_v8, %v7282_v25 }
 0x798   : > { %v7876_v23 = vadd.f32 %v12967_v36, %v7838_v22 }
 0x79a   : > { %v7912_v14 = vadd.f32 %v7876_v23, %v7319_v0  ;;  %v7182_v15 = vpop.f32.mrf.mxu2  ;;  %v6628_v30 = vpop.f32.mrf.mxu0 }
 0x79b   : > { %v7245_v2 = vadd.f32 %v7182_v15, %v6938_v45 }
 0x79c   : > { %v7948_v58 = vmax.f32 %v7912_v14, 0.0 }
 0x79d   : > { %v6880_v26 = vpop.f32.mrf.mxu1  ;;  %v7772_v27 = vpop.f32.mrf.mxu3  ;;  %v7283_v16 = vmul.f32 %v12957_v19, %v7245_v2 }
 0x79e   : > { %7984 = vst [vmem:[%s12977_s18 + $0x80] sm:$0xff] %v7948_v58  ;;  %v7839_v29 = vmul.f32 %v12960_v4, %v7772_v27  ;;  %v6940_v48 = vadd.f32 %v6880_v26, %v6681_v39 }
 0x79f   : > { %v7321_v57 = vadd.f32 %v12965_v8, %v7283_v16 }
 0x7a0   : > { %v7877_v17 = vadd.f32 %v12967_v36, %v7839_v29 }
 0x7a2   : > { %v7913_v5 = vadd.f32 %v7877_v17, %v7320_v7  ;;  %7814 = vmatmul.bf16.gmra.mxu3 %v7654_v12  ;;  %v7184_v41 = vpop.f32.mrf.mxu2  ;;  %v6631_v14 = vpop.f32.mrf.mxu0  ;;  %v6683_v7 = vadd.f32 %v6626_v20, %v12890_v21  ;;  %v6684_v21 = vadd.f32 %v6628_v30, %v12894_v35 }
 0x7a3   : > { %v7246_v56 = vadd.f32 %v7184_v41, %v6939_v24  ;;  %v6685_v35 = vadd.f32 %v6631_v14, %v12900_v42 }
 0x7a4   : > { %v7949_v10 = vmax.f32 %v7913_v5, 0.0 }
 0x7a5   : > { %v6882_v43 = vpop.f32.mrf.mxu1  ;;  %v7775_v3 = vpop.f32.mrf.mxu3  ;;  %v7284_v28 = vmul.f32 %v12957_v19, %v7246_v56 }
 0x7a6   : > { %7985 = vst [vmem:[%s12977_s18 + $0x88] sm:$0xff] %v7949_v10  ;;  %v7840_v34 = vmul.f32 %v12960_v4, %v7775_v3  ;;  %v6941_v25 = vadd.f32 %v6882_v43, %v6682_v37 }
 0x7a7   : > { %v7322_v47 = vadd.f32 %v12965_v8, %v7284_v28 }
 0x7a8   : > { %v7878_v9 = vadd.f32 %v12967_v36, %v7840_v34 }
 0x7aa   : > { %v7914_v51 = vadd.f32 %v7878_v9, %v7321_v57  ;;  %v7187_v6 = vpop.f32.mrf.mxu2  ;;  %v6633_v5 = vpop.f32.mrf.mxu0 }
 0x7ab   : > { %v7247_v11 = vadd.f32 %v7187_v6, %v6940_v48  ;;  %v6686_v42 = vadd.f32 %v6633_v5, %v12904_v50 }
 0x7ac   : > { %v7950_v59 = vmax.f32 %v7914_v51, 0.0 }
 0x7ad   : > { %v6885_v22 = vpop.f32.mrf.mxu1  ;;  %v7777_v33 = vpop.f32.mrf.mxu3  ;;  %v7285_v40 = vmul.f32 %v12957_v19, %v7247_v11 }
 0x7ae   : > { %7986 = vst [vmem:[%s12977_s18 + $0x90] sm:$0xff] %v7950_v59  ;;  %v7841_v44 = vmul.f32 %v12960_v4, %v7777_v33  ;;  %v6942_v41 = vadd.f32 %v6885_v22, %v6683_v7 }
 0x7af   : > { %v7323_v26 = vadd.f32 %v12965_v8, %v7285_v40 }
 0x7b0   : > { %v7879_v0 = vadd.f32 %v12967_v36, %v7841_v44 }
 0x7b2   : > { %v7915_v31 = vadd.f32 %v7879_v0, %v7322_v47  ;;  %v7189_v23 = vpop.f32.mrf.mxu2  ;;  %v6636_v6 = vpop.f32.mrf.mxu0 }
 0x7b3   : > { %v7248_v27 = vadd.f32 %v7189_v23, %v6941_v25  ;;  %v6687_v50 = vadd.f32 %v6636_v6, %v12910_v61 }
 0x7b4   : > { %v7951_v15 = vmax.f32 %v7915_v31, 0.0 }
 0x7b5   : > { %v6887_v54 = vpop.f32.mrf.mxu1  ;;  %v7780_v63 = vpop.f32.mrf.mxu3  ;;  %v7286_v32 = vmul.f32 %v12957_v19, %v7248_v27 }
 0x7b6   : > { %7987 = vst [vmem:[%s12977_s18 + $0x98] sm:$0xff] %v7951_v15  ;;  %v7842_v58 = vmul.f32 %v12960_v4, %v7780_v63  ;;  %v6943_v9 = vadd.f32 %v6887_v54, %v6684_v21 }
 0x7b7   : > { %v7324_v16 = vadd.f32 %v12965_v8, %v7286_v32 }
 0x7b8   : > { %v7880_v45 = vadd.f32 %v12967_v36, %v7842_v58 }
 0x7ba   : > { %v7916_v29 = vadd.f32 %v7880_v45, %v7323_v26  ;;  %v7192_v12 = vpop.f32.mrf.mxu2  ;;  %v6638_v40 = vpop.f32.mrf.mxu0 }
 0x7bb   : > { %v7249_v10 = vadd.f32 %v7192_v12, %v6942_v41 }
 0x7bc   : > { %v7952_v53 = vmax.f32 %v7916_v29, 0.0 }
 0x7bd   : > { %v6890_v2 = vpop.f32.mrf.mxu1  ;;  %v7782_v17 = vpop.f32.mrf.mxu3  ;;  %v7287_v20 = vmul.f32 %v12957_v19, %v7249_v10 }
 0x7be   : > { %7988 = vst [vmem:[%s12977_s18 + $0xa0] sm:$0xff] %v7952_v53  ;;  %v7843_v60 = vmul.f32 %v12960_v4, %v7782_v17  ;;  %v6944_v11 = vadd.f32 %v6890_v2, %v6685_v35 }
 0x7bf   : > { %v7325_v39 = vadd.f32 %v12965_v8, %v7287_v20  ;;  %v6688_v20 = vadd.f32 %v6638_v40, %v12914_v49 }
 0x7c0   : > { %v7881_v43 = vadd.f32 %v12967_v36, %v7843_v60 }
 0x7c2   : > { %v7917_v3 = vadd.f32 %v7881_v43, %v7324_v16  ;;  %v7194_v24 = vpop.f32.mrf.mxu2  ;;  %v6641_v53 = vpop.f32.mrf.mxu0 }
 0x7c3   : > { %v7250_v28 = vadd.f32 %v7194_v24, %v6943_v9  ;;  %v6689_v49 = vadd.f32 %v6641_v53, %v12920_v38 }
 0x7c4   : > { %v7953_v34 = vmax.f32 %v7917_v3, 0.0 }
 0x7c5   : > { %v6892_v57 = vpop.f32.mrf.mxu1  ;;  %v7785_v56 = vpop.f32.mrf.mxu3  ;;  %v7288_v30 = vmul.f32 %v12957_v19, %v7250_v28 }
 0x7c6   : > { %7989 = vst [vmem:[%s12977_s18 + $0xa8] sm:$0xff] %v7953_v34  ;;  %v7844_v51 = vmul.f32 %v12960_v4, %v7785_v56  ;;  %v6945_v26 = vadd.f32 %v6892_v57, %v6686_v42 }
 0x7c7   : > { %v7326_v31 = vadd.f32 %v12965_v8, %v7288_v30 }
 0x7c8   : > { %v7882_v59 = vadd.f32 %v12967_v36, %v7844_v51 }
 0x7ca   : > { %v7918_v22 = vadd.f32 %v7882_v59, %v7325_v39  ;;  %v7197_v33 = vpop.f32.mrf.mxu2  ;;  %v6643_v56 = vpop.f32.mrf.mxu0 }
 0x7cb   : > { %v7251_v23 = vadd.f32 %v7197_v33, %v6944_v11  ;;  %v6690_v38 = vadd.f32 %v6643_v56, %v12924_v52 }
 0x7cc   : > { %v7954_v48 = vmax.f32 %v7918_v22, 0.0 }
 0x7cd   : > { %v6895_v44 = vpop.f32.mrf.mxu1  ;;  %v7787_v47 = vpop.f32.mrf.mxu3  ;;  %v7289_v14 = vmul.f32 %v12957_v19, %v7251_v23 }
 0x7ce   : > { %7990 = vst [vmem:[%s12977_s18 + $0xb0] sm:$0xff] %v7954_v48  ;;  %v7845_v0 = vmul.f32 %v12960_v4, %v7787_v47  ;;  %v6946_v60 = vadd.f32 %v6895_v44, %v6687_v50 }
 0x7cf   : > { %v7327_v45 = vadd.f32 %v12965_v8, %v7289_v14 }
 0x7d0   : > { %v7883_v37 = vadd.f32 %v12967_v36, %v7845_v0 }
 0x7d2   : > { %v7919_v15 = vadd.f32 %v7883_v37, %v7326_v31  ;;  %v7199_v54 = vpop.f32.mrf.mxu2  ;;  %v6646_v11 = vpop.f32.mrf.mxu0 }
 0x7d3   : > { %v7252_v29 = vadd.f32 %v7199_v54, %v6945_v26  ;;  %v6691_v52 = vadd.f32 %v6646_v11, %v12930_v1  ;;  %v13222_v1 = vld [vmem:[#allocation11 + $0x2] ss:$0 sm:$0xff] }
 0x7d4   : > { %v7955_v63 = vmax.f32 %v7919_v15, 0.0 }
 0x7d5   : > { %v6897_v25 = vpop.f32.mrf.mxu1  ;;  %v7790_v58 = vpop.f32.mrf.mxu3  ;;  %v7290_v2 = vmul.f32 %v12957_v19, %v7252_v29 }
 0x7d6   : > { %7991 = vst [vmem:[%s12977_s18 + $0xb8] sm:$0xff] %v7955_v63  ;;  %v7846_v27 = vmul.f32 %v12960_v4, %v7790_v58  ;;  %v6947_v9 = vadd.f32 %v6897_v25, %v6688_v20 }
 0x7d7   : > { %v7328_v10 = vadd.f32 %v12965_v8, %v7290_v2 }
 0x7d8   : > { %v7884_v12 = vadd.f32 %v12967_v36, %v7846_v27 }
 0x7da   : > { %v7920_v7 = vadd.f32 %v7884_v12, %v7327_v45  ;;  %v7202_v32 = vpop.f32.mrf.mxu2  ;;  %v6648_v45 = vpop.f32.mrf.mxu0 }
 0x7db   : > { %v7253_v43 = vadd.f32 %v7202_v32, %v6946_v60 }
 0x7dc   : > { %v7956_v17 = vmax.f32 %v7920_v7, 0.0 }
 0x7dd   : > { %v6900_v5 = vpop.f32.mrf.mxu1  ;;  %v7792_v41 = vpop.f32.mrf.mxu3  ;;  %v7291_v61 = vmul.f32 %v12957_v19, %v7253_v43 }
 0x7de   : > { %7992 = vst [vmem:[%s12977_s18 + $0xc0] sm:$0xff] %v7956_v17  ;;  %v7847_v16 = vmul.f32 %v12960_v4, %v7792_v41  ;;  %v6948_v44 = vadd.f32 %v6900_v5, %v6689_v49 }
 0x7df   : > { %v7329_v39 = vadd.f32 %v12965_v8, %v7291_v61 }
 0x7e0   : > { %v7885_v3 = vadd.f32 %v12967_v36, %v7847_v16 }
 0x7e2   : > { %v7921_v24 = vadd.f32 %v7885_v3, %v7328_v10  ;;  %v7204_v21 = vpop.f32.mrf.mxu2  ;;  %v6651_v43 = vpop.f32.mrf.mxu0  ;;  %v6692_v3 = vadd.f32 %v6648_v45, %v12934_v13  ;;  %v13232_v13 = vld [vmem:[#allocation11 + $0x5] ss:$0 sm:$0xff] }
 0x7e3   : > { %v7254_v28 = vadd.f32 %v7204_v21, %v6947_v9 }
 0x7e4   : > { %v7957_v34 = vmax.f32 %v7921_v24, 0.0 }
 0x7e5   : > { %v7795_v57 = vpop.f32.mrf.mxu3  ;;  %v6902_v6 = vpop.f32.mrf.mxu1  ;;  %v7292_v35 = vmul.f32 %v12957_v19, %v7254_v28 }
 0x7e6   : > { %7993 = vst [vmem:[%s12977_s18 + $0xc8] sm:$0xff] %v7957_v34  ;;  %v7848_v51 = vmul.f32 %v12960_v4, %v7795_v57  ;;  %v6949_v63 = vadd.f32 %v6902_v6, %v6690_v38  ;;  %v6693_v6 = vadd.f32 %v6651_v43, %v12940_v55 }
 0x7e7   : > { %v7330_v0 = vadd.f32 %v12965_v8, %v7292_v35 }
 0x7e8   : > { %v7886_v59 = vadd.f32 %v12967_v36, %v7848_v51 }
 0x7ea   : > { %v7922_v22 = vadd.f32 %v7886_v59, %v7329_v39  ;;  %v7207_v33 = vpop.f32.mrf.mxu2  ;;  %v6653_v49 = vpop.f32.mrf.mxu0 }
 0x7eb   : > { %v7255_v31 = vadd.f32 %v7207_v33, %v6948_v44  ;;  %v6694_v55 = vadd.f32 %v6653_v49, %v12943_v62 }
 0x7ec   : > { %v7958_v30 = vmax.f32 %v7922_v22, 0.0 }
 0x7ed   : > { %v7797_v48 = vpop.f32.mrf.mxu3  ;;  %v6905_v37 = vpop.f32.mrf.mxu1  ;;  %v7293_v54 = vmul.f32 %v12957_v19, %v7255_v31 }
 0x7ee   : > { %7994 = vst [vmem:[%s12977_s18 + $0xd0] sm:$0xff] %v7958_v30  ;;  %v7849_v47 = vmul.f32 %v12960_v4, %v7797_v48  ;;  %v6950_v2 = vadd.f32 %v6905_v37, %v6691_v52 }
 0x7ef   : > { %v7331_v58 = vadd.f32 %v12965_v8, %v7293_v54 }
 0x7f0   : > { %v7887_v23 = vadd.f32 %v12967_v36, %v7849_v47 }
 0x7f2   : > { %v7923_v40 = vadd.f32 %v7887_v23, %v7330_v0  ;;  %v7209_v15 = vpop.f32.mrf.mxu2 }
 0x7f3   : > { %v7256_v26 = vadd.f32 %v7209_v15, %v6949_v63 }
 0x7f4   : > { %v7959_v42 = vmax.f32 %v7923_v40, 0.0 }
 0x7f5   : > { %v7800_v14 = vpop.f32.mrf.mxu3  ;;  %v6907_v12 = vpop.f32.mrf.mxu1  ;;  %v7294_v32 = vmul.f32 %v12957_v19, %v7256_v26 }
 0x7f6   : > { %7995 = vst [vmem:[%s12977_s18 + $0xd8] sm:$0xff] %v7959_v42  ;;  %v7850_v25 = vmul.f32 %v12960_v4, %v7800_v14  ;;  %v6951_v61 = vadd.f32 %v6907_v12, %v6692_v3  ;;  %v6656_v42 = vpop.f32.mrf.mxu0 }
 0x7f7   : > { %v7332_v5 = vadd.f32 %v12965_v8, %v7294_v32  ;;  %v6695_v62 = vadd.f32 %v6656_v42, %v12948_v18 }
 0x7f8   : > { %v7888_v27 = vadd.f32 %v12967_v36, %v7850_v25 }
 0x7fa   : > { %v7924_v29 = vadd.f32 %v7888_v27, %v7331_v58  ;;  %v7212_v7 = vpop.f32.mrf.mxu2 }
 0x7fb   : > { %v7257_v41 = vadd.f32 %v7212_v7, %v6950_v2 }
 0x7fc   : > { %v7960_v53 = vmax.f32 %v7924_v29, 0.0 }
 0x7fd   : > { %v7802_v50 = vpop.f32.mrf.mxu3  ;;  %v7295_v19 = vmul.f32 %v13222_v1, %v7257_v41  ;;  %v6910_v21 = vpop.f32.mrf.mxu1 }
 0x7fe   : > { %7996 = vst [vmem:[%s12977_s18 + $0xe0] sm:$0xff] %v7960_v53  ;;  %v7851_v17 = vmul.f32 %v12960_v4, %v7802_v50  ;;  %v13226_v4 = vld [vmem:[#allocation11 + $0x4] ss:$0 sm:$0xff]  ;;  %v6952_v22 = vadd.f32 %v6910_v21, %v6693_v6  ;;  %v6658_v53 = vpop.f32.mrf.mxu0 }
 0x7ff   : > { %v6696_v18 = vadd.f32 %v6658_v53, %v12953_v46 }
 0x800   : > { %v7889_v60 = vadd.f32 %v12967_v36, %v7851_v17  ;;  %v13229_v36 = vld [vmem:[#allocation11 + $0x3] ss:$0 sm:$0xff] }
 0x801   : > { %v7333_v34 = vadd.f32 %v13229_v36, %v7295_v19 }
 0x802   : > { %v7925_v16 = vadd.f32 %v7889_v60, %v7332_v5  ;;  %v7214_v10 = vpop.f32.mrf.mxu2 }
 0x803   : > { %v7258_v57 = vadd.f32 %v7214_v10, %v6951_v61 }
 0x804   : > { %v7961_v24 = vmax.f32 %v7925_v16, 0.0 }
 0x805   : > { %v7805_v20 = vpop.f32.mrf.mxu3  ;;  %v7296_v39 = vmul.f32 %v13222_v1, %v7258_v57  ;;  %v6912_v35 = vpop.f32.mrf.mxu1 }
 0x806   : > { %7997 = vst [vmem:[%s12977_s18 + $0xe8] sm:$0xff] %v7961_v24  ;;  %v7852_v8 = vmul.f32 %v13226_v4, %v7805_v20  ;;  %v6953_v37 = vadd.f32 %v6912_v35, %v6694_v55 }
 0x807   : > { %v7334_v30 = vadd.f32 %v13229_v36, %v7296_v39 }
 0x808   : > { %v7890_v56 = vadd.f32 %v13232_v13, %v7852_v8 }
 0x80a   : > { %v7926_v9 = vadd.f32 %v7890_v56, %v7333_v34  ;;  %v7217_v51 = vpop.f32.mrf.mxu2 }
 0x80b   : > { %v7259_v48 = vadd.f32 %v7217_v51, %v6952_v22 }
 0x80c   : > { %v7962_v28 = vmax.f32 %v7926_v9, 0.0 }
 0x80d   : > { %v7807_v59 = vpop.f32.mrf.mxu3  ;;  %v7297_v0 = vmul.f32 %v13222_v1, %v7259_v48  ;;  %v6915_v14 = vpop.f32.mrf.mxu1 }
 0x80e   : > { %7998 = vst [vmem:[%s12977_s18 + $0xf0] sm:$0xff] %v7962_v28  ;;  %v7853_v33 = vmul.f32 %v13226_v4, %v7807_v59  ;;  %v6954_v45 = vadd.f32 %v6915_v14, %v6695_v62 }
 0x80f   : > { %v7335_v15 = vadd.f32 %v13229_v36, %v7297_v0 }
 0x810   : > { %v7891_v44 = vadd.f32 %v13232_v13, %v7853_v33 }
 0x812   : > { %v7927_v47 = vadd.f32 %v7891_v44, %v7334_v30  ;;  %v7219_v11 = vpop.f32.mrf.mxu2 }
 0x813   : > { %v7260_v38 = vadd.f32 %v7219_v11, %v6953_v37 }
 0x814   : > { %v7963_v31 = vmax.f32 %v7927_v47, 0.0 }
 0x815   : > { %v7810_v23 = vpop.f32.mrf.mxu3  ;;  %v7298_v58 = vmul.f32 %v13222_v1, %v7260_v38  ;;  %v6917_v50 = vpop.f32.mrf.mxu1 }
 0x816   : > { %7999 = vst [vmem:[%s12977_s18 + $0xf8] sm:$0xff] %v7963_v31  ;;  %v7854_v40 = vmul.f32 %v13226_v4, %v7810_v23  ;;  %v6955_v60 = vadd.f32 %v6917_v50, %v6696_v18 }
 0x817   : > { %v7336_v12 = vadd.f32 %v13229_v36, %v7298_v58 }
 0x818   : > { %v7892_v54 = vadd.f32 %v13232_v13, %v7854_v40 }
 0x81a   : > { %v7928_v63 = vadd.f32 %v7892_v54, %v7335_v15  ;;  %v7222_v25 = vpop.f32.mrf.mxu2 }
 0x81b   : > { %v7261_v7 = vadd.f32 %v7222_v25, %v6954_v45 }
 0x81c   : > { %v7964_v26 = vmax.f32 %v7928_v63, 0.0 }
 0x81d   : > { %v7812_v27 = vpop.f32.mrf.mxu3  ;;  %v7299_v2 = vmul.f32 %v13222_v1, %v7261_v7 }
 0x81e   : > { %8000 = vst [vmem:[%s12977_s18 + $0x100] sm:$0xff] %v7964_v26  ;;  %v7855_v29 = vmul.f32 %v13226_v4, %v7812_v27 }
 0x81f   : > { %v7337_v10 = vadd.f32 %v13229_v36, %v7299_v2 }
 0x820   : > { %v7893_v52 = vadd.f32 %v13232_v13, %v7855_v29 }
 0x822   : > { %v7929_v32 = vadd.f32 %v7893_v52, %v7336_v12  ;;  %v7224_v5 = vpop.f32.mrf.mxu2 }
 0x823   : > { %v7262_v43 = vadd.f32 %v7224_v5, %v6955_v60 }
 0x824   : > { %v7965_v17 = vmax.f32 %v7929_v32, 0.0 }
 0x825   : > { %v7815_v41 = vpop.f32.mrf.mxu3  ;;  %v7300_v46 = vmul.f32 %v13222_v1, %v7262_v43 }
 0x826   : > { %8001 = vst [vmem:[%s12977_s18 + $0x108] sm:$0xff] %v7965_v17  ;;  %v7856_v16 = vmul.f32 %v13226_v4, %v7815_v41 }
 0x827   : > { %v7338_v61 = vadd.f32 %v13229_v36, %v7300_v46 }
 0x828   : > { %v7894_v3 = vadd.f32 %v13232_v13, %v7856_v16 }
 0x82a   : > { %v7930_v19 = vadd.f32 %v7894_v3, %v7337_v10 }
 0x82c   : > { %v7966_v24 = vmax.f32 %v7930_v19, 0.0 }
 0x82d   : > { %v7817_v21 = vpop.f32.mrf.mxu3 }
 0x82e   : > { %8002 = vst [vmem:[%s12977_s18 + $0x110] sm:$0xff] %v7966_v24  ;;  %v7857_v20 = vmul.f32 %v13226_v4, %v7817_v21 }
 0x830   : > { %v7895_v8 = vadd.f32 %v13232_v13, %v7857_v20 }
 0x832   : > { %v7931_v34 = vadd.f32 %v7895_v8, %v7338_v61 }
 0x834   : > { %v7967_v57 = vmax.f32 %v7931_v34, 0.0 }
 0x836   : > { %8003 = vst [vmem:[%s12977_s18 + $0x118] sm:$0xff] %v7967_v57 }
 0x837   : > { %10277 = shalt.err (!%p10274_p9)
}
 0x838   : > { %s10340_s1 = smov 128   ;;  %s10341_s3 = smov 8  }
 0x839   : > { %9929 = dma.vmem_to_hbm [thread:$0]  (%p10472_p0), %s8018_s15, 4608, %s8020_s20, %s8005_s28, %s10340_s1, %s10340_s1, %s10341_s3  }
 0x83a PF: > { %s8034_s17 = sand.u32 1, %s10316_s21   ;;  %p13672_p10 = scmp.ge.s32.totalorder %s10328_s24, 2 }
 0x83b   : > { %s8035_s29 = scalar_lea.sflag [#allocation5], %s8034_s17 }
 0x83c   : > { %p9952_p11 = pnand %p13672_p10, %p10478_p6 }
 0x83e   : > { %p9953_p12 = pneg %p9952_p11 }
 0x840   : > { %10311 = dma.done.wait (%p9953_p12), %s8035_s29, 4608  }
 0x841   : > { %10313 = vsyncadd (%p9953_p12), %s8035_s29, 4294962688  ;;  %p22_p2 = scmp.ge.s32.totalorder %s10452_s19, 4   ;;  %s13673_s21 = smov %s10320_s22 }
 0x842   : > { %s13674_s22 = smov %s10324_s23  ;;  %s13675_s23 = smov %s10464_s25 }
 0x843   : > { %s13676_s24 = smov %s10452_s19  ;;  %24 = sbr.rel (!%p22_p2) target bundleno = 12 (0xc), region = 125 }
 0x848   :  { %8041 = vsyncpa [#allocation4], 1 }
 0x849   :  { %8043 = vsyncpa [#allocation4 + $0x1], 1 }
 0x84a   :  { %8044 = vsyncpa [#allocation7], 1 }
 0x84b   :  { %8045 = vsyncpa [#allocation10], 1 }
 0x84c   :  { %8046 = vsyncpa [#allocation13], 1 }
 0x84d   :  { %8047 = vsyncpa [#allocation5], 1 }
 0x84e   :  { %8049 = vsyncpa [#allocation5 + $0x1], 1 }

</bundles_post_ra>
